<compile_context>
chip_gen: v7x
topology: tpu7x:2x2x1
jax: 0.10.0
libtpu: 0.0.40
codegen_flags: <defaults>
</compile_context>

<pallas_src>
import functools

import jax
import jax.numpy as jnp
from jax.experimental import pallas as pl
from jax.experimental.pallas import tpu as pltpu


def _round_up(x, m):
    return (x + m - 1) // m * m


def _pick_rows_tile(rows, target):
    """Row-tile size: sublane-aligned (x8), MXU-row-filling, and (for large
    row counts) at least 2 tiles so the parallel grid axis can shard across
    v7x's two TensorCores."""
    if rows <= target:
        return _round_up(rows, 8)
    n_tiles = max(2, -(-rows // target))
    return _round_up(-(-rows // n_tiles), 8)


# ----------------------------------------------------------------------------
# Kernel 1: dense projection  y = act(x @ W + b), rows tiled on a parallel grid.
# Used only for the (small) context -> decoder-init projection now; the GRU
# input projections are fused into the GRU kernel.
# ----------------------------------------------------------------------------
def _dense_kernel(activation, x_ref, w_ref, b_ref, o_ref):
    y = jnp.dot(x_ref[...], w_ref[...],
                preferred_element_type=jnp.float32) + b_ref[...]
    if activation == "tanh":
        y = jnp.tanh(y)
    o_ref[...] = y


def dense(x, w, b, *, activation=None, tile_m=256):
    M, K = x.shape
    Nf = w.shape[-1]
    tm = _pick_rows_tile(M, tile_m)
    Mp = _round_up(M, tm)
    xp = x.astype(jnp.bfloat16)
    if Mp != M:
        xp = jnp.pad(xp, ((0, Mp - M), (0, 0)))
    out = pl.pallas_call(
        functools.partial(_dense_kernel, activation),
        out_shape=jax.ShapeDtypeStruct((Mp, Nf), jnp.float32),
        grid_spec=pltpu.PrefetchScalarGridSpec(
            num_scalar_prefetch=0,
            grid=(Mp // tm,),
            in_specs=[
                pl.BlockSpec((tm, K), lambda i: (i, 0)),
                pl.BlockSpec((K, Nf), lambda i: (0, 0)),
                pl.BlockSpec((1, Nf), lambda i: (0, 0)),
            ],
            out_specs=pl.BlockSpec((tm, Nf), lambda i: (i, 0)),
        ),
        compiler_params=pltpu.CompilerParams(
            dimension_semantics=("parallel",)),
    )(xp, w, b)
    return out[:M] if Mp != M else out


# ----------------------------------------------------------------------------
# Kernel 2: GRU over a tile of independent rows, time-major.
#   * input projection (gate-fused x@Wx + bx) is computed for the WHOLE tile
#     with one (T*bn, E) x (E, 3H) MXU matmul into VMEM scratch (off the
#     serial critical path, no gx HBM roundtrip),
#   * the recurrence then only does the (bn, H) x (H, 3H) h@Wh matmul per
#     step, reading gx_scratch[t] and (for return_all) writing out_ref[t]
#     as full lane/sublane-dense tiles.
# ----------------------------------------------------------------------------
def _gru_kernel(return_all, x_ref, len_ref, h0_ref, wx_ref, bx_ref,
                wh_ref, bh_ref, out_ref, gx_ref):
    T, bn, E = x_ref.shape
    H = wh_ref.shape[0]

    # Hoisted, gate-fused input projection for the whole tile (parallel MXU
    # work before the serial loop).
    x_all = x_ref[...].reshape(T * bn, E)                       # bf16
    gx = jnp.dot(x_all, wx_ref[...],
                 preferred_element_type=jnp.float32) + bx_ref[...]
    gx_ref[...] = gx.reshape(T, bn, 3 * H)

    wh = wh_ref[...]        # (H, 3H) bf16, loaded once
    bh = bh_ref[...]        # (1, 3H) f32
    lens = len_ref[...]     # (bn, 1) int32, loaded once (no per-step mask DMA)
    h = h0_ref[...]         # (bn, H) f32

    def step(t, h):
        g = gx_ref[t]                                           # (bn, 3H) f32
        gh = jnp.dot(h.astype(jnp.bfloat16), wh,
                     preferred_element_type=jnp.float32) + bh
        r = jax.nn.sigmoid(g[:, :H] + gh[:, :H])
        z = jax.nn.sigmoid(g[:, H:2 * H] + gh[:, H:2 * H])
        n = jnp.tanh(g[:, 2 * H:] + r * gh[:, 2 * H:])
        h_new = (1.0 - z) * n + z * h
        h = jnp.where(t < lens, h_new, h)       # freeze hidden past the length
        if return_all:
            out_ref[t] = h
        return h

    if T <= 8:
        # short, static trip-count: fully unrolled (LLO scheduling visibility)
        for t in range(T):
            h = step(t, h)
    else:
        # long sequences: fori_loop bounds live ranges / vreg pressure
        h = jax.lax.fori_loop(0, T, step, h)

    if not return_all:
        out_ref[...] = h


def gru_forward(x_tm, lengths, h0, wx, bx, wh, bh, *, return_all,
                block_rows=128):
    """x_tm: (T, R, E) time-major inputs (cast to bf16 here);
       lengths: (R,) int; h0: (R, H) f32;
       wx: (E, 3H) bf16; bx: (1, 3H) f32; wh: (H, 3H) bf16; bh: (1, 3H) f32.
       Returns (T, R, H) time-major if return_all else (R, H)."""
    T, R, E = x_tm.shape
    H = wh.shape[0]
    bn = _pick_rows_tile(R, block_rows)
    Rp = _round_up(R, bn)

    xt = x_tm.astype(jnp.bfloat16)
    lens = lengths.astype(jnp.int32)
    h0 = h0.astype(jnp.float32)
    if Rp != R:
        xt = jnp.pad(xt, ((0, 0), (0, Rp - R), (0, 0)))
        lens = jnp.pad(lens, (0, Rp - R))          # padded rows: length 0
        h0 = jnp.pad(h0, ((0, Rp - R), (0, 0)))
    lens2 = lens.reshape(Rp, 1)

    if return_all:
        out_shape = jax.ShapeDtypeStruct((T, Rp, H), jnp.float32)
        out_spec = pl.BlockSpec((T, bn, H), lambda i: (0, i, 0))
    else:
        out_shape = jax.ShapeDtypeStruct((Rp, H), jnp.float32)
        out_spec = pl.BlockSpec((bn, H), lambda i: (i, 0))

    out = pl.pallas_call(
        functools.partial(_gru_kernel, return_all),
        out_shape=out_shape,
        grid_spec=pltpu.PrefetchScalarGridSpec(
            num_scalar_prefetch=0,
            grid=(Rp // bn,),
            in_specs=[
                pl.BlockSpec((T, bn, E), lambda i: (0, i, 0)),
                pl.BlockSpec((bn, 1), lambda i: (i, 0)),
                pl.BlockSpec((bn, H), lambda i: (i, 0)),
                pl.BlockSpec((E, 3 * H), lambda i: (0, 0)),
                pl.BlockSpec((1, 3 * H), lambda i: (0, 0)),
                pl.BlockSpec((H, 3 * H), lambda i: (0, 0)),
                pl.BlockSpec((1, 3 * H), lambda i: (0, 0)),
            ],
            out_specs=out_spec,
            scratch_shapes=[pltpu.VMEM((T, bn, 3 * H), jnp.float32)],
        ),
        compiler_params=pltpu.CompilerParams(
            dimension_semantics=("parallel",)),
    )(xt, lens2, h0, wx, bx, wh, bh)

    if return_all:
        return out[:, :R] if Rp != R else out
    return out[:R] if Rp != R else out


# ----------------------------------------------------------------------------
# Kernel 3: output projection + log_softmax over the (pre-padded) vocab + row
# mask.  out_w/out_b arrive already padded to a multiple of 128 (padded
# columns carry a -1e30 bias so the normalizer is exact); zero-length
# utterance rows are zeroed by row_mask.
# ----------------------------------------------------------------------------
def _proj_logsoftmax_kernel(h_ref, w_ref, b_ref, m_ref, out_ref):
    logits = jnp.dot(h_ref[...], w_ref[...],
                     preferred_element_type=jnp.float32) + b_ref[...]
    mx = jnp.max(logits, axis=-1, keepdims=True)
    s = logits - mx
    lse = jnp.log(jnp.sum(jnp.exp(s), axis=-1, keepdims=True))
    out_ref[...] = (s - lse) * m_ref[...]


def proj_log_softmax(h, w, b, row_mask, out_cols, *, tile_m=128):
    """h: (M, Hd); w: (Hd, Vp) bf16 pre-padded; b: (1, Vp) f32 pre-padded;
       row_mask: (M, 1) f32.  Returns (M, out_cols) f32 log-probs."""
    M, Hd = h.shape
    Vp = w.shape[-1]
    tm = _pick_rows_tile(M, tile_m)
    Mp = _round_up(M, tm)
    hp = h.astype(jnp.bfloat16)
    mp = row_mask.astype(jnp.float32)
    if Mp != M:
        hp = jnp.pad(hp, ((0, Mp - M), (0, 0)))
        mp = jnp.pad(mp, ((0, Mp - M), (0, 0)))
    out = pl.pallas_call(
        _proj_logsoftmax_kernel,
        out_shape=jax.ShapeDtypeStruct((Mp, Vp), jnp.float32),
        grid_spec=pltpu.PrefetchScalarGridSpec(
            num_scalar_prefetch=0,
            grid=(Mp // tm,),
            in_specs=[
                pl.BlockSpec((tm, Hd), lambda i: (i, 0)),
                pl.BlockSpec((Hd, Vp), lambda i: (0, 0)),
                pl.BlockSpec((1, Vp), lambda i: (0, 0)),
                pl.BlockSpec((tm, 1), lambda i: (i, 0)),
            ],
            out_specs=pl.BlockSpec((tm, Vp), lambda i: (i, 0)),
        ),
        compiler_params=pltpu.CompilerParams(
            dimension_semantics=("parallel",)),
    )(hp, w, b, mp)
    return out[:M, :out_cols]


# ----------------------------------------------------------------------------
# Parameter construction (deterministic, in-script).  Matmul weights bf16,
# biases f32.  GRU gate weights are stored fused as (in, 3H) = [r | z | n].
# Output projection weights are pre-padded to a 128-aligned vocab at init.
# ----------------------------------------------------------------------------
def init_params(key, vocab, emb_dim, h_utt, h_conv, h_dec):
    ks = jax.random.split(key, 12)
    s = 0.1

    def w(k, shape, dtype=jnp.bfloat16):
        return (s * jax.random.normal(k, shape, dtype=jnp.float32)).astype(dtype)

    vp = _round_up(vocab, 128)
    out_w = w(ks[8], (h_dec, vocab))
    out_b = jnp.zeros((1, vocab), jnp.float32)
    if vp != vocab:
        # -1e30 (finite) keeps padded columns out of the normalizer and keeps
        # masked rows exactly 0.0 (no inf*0 NaNs).
        out_w = jnp.pad(out_w, ((0, 0), (0, vp - vocab)))
        out_b = jnp.pad(out_b, ((0, 0), (0, vp - vocab)), constant_values=-1e30)

    return {
        "embedding": w(ks[0], (vocab, emb_dim)),
        # utterance-level GRU encoder
        "utt_wx": w(ks[1], (emb_dim, 3 * h_utt)),
        "utt_wh": w(ks[2], (h_utt, 3 * h_utt)),
        "utt_bx": jnp.zeros((1, 3 * h_utt), jnp.float32),
        "utt_bh": jnp.zeros((1, 3 * h_utt), jnp.float32),
        # conversation-level GRU encoder
        "conv_wx": w(ks[3], (h_utt, 3 * h_conv)),
        "conv_wh": w(ks[4], (h_conv, 3 * h_conv)),
        "conv_bx": jnp.zeros((1, 3 * h_conv), jnp.float32),
        "conv_bh": jnp.zeros((1, 3 * h_conv), jnp.float32),
        # decoder init-state projection (context -> decoder hidden)
        "ctx_w": w(ks[5], (h_conv, h_dec)),
        "ctx_b": jnp.zeros((1, h_dec), jnp.float32),
        # decoder GRU
        "dec_wx": w(ks[6], (emb_dim, 3 * h_dec)),
        "dec_wh": w(ks[7], (h_dec, 3 * h_dec)),
        "dec_bx": jnp.zeros((1, 3 * h_dec), jnp.float32),
        "dec_bh": jnp.zeros((1, 3 * h_dec), jnp.float32),
        # output projection (pre-padded to 128-aligned vocab)
        "out_w": out_w,
        "out_b": out_b,
    }


# ----------------------------------------------------------------------------
# HRED forward (glue in plain JAX, hot paths in Pallas).
# ----------------------------------------------------------------------------
@functools.partial(jax.jit, static_argnames=("vocab",))
def hred_forward(params, dialogue, lengths, *, vocab):
    B, C, T = dialogue.shape
    N = B * C
    Hu = params["utt_wh"].shape[0]
    Hc = params["conv_wh"].shape[0]
    Hd = params["dec_wh"].shape[0]

    utt = dialogue.reshape(N, T)                       # (N, T) token ids
    lens = lengths.reshape(N)                          # (N,)

    # shared token embedding, gathered directly in TIME-MAJOR order so the
    # GRU kernels see (T, rows, E) without transposing the embedded tensor.
    emb_tm = params["embedding"][utt.T]                # (T, N, E) bf16

    # 1) utterance encoder (gate-fused input projection fused in-kernel)
    utt_rep = gru_forward(emb_tm, lens,
                          jnp.zeros((N, Hu), jnp.float32),
                          params["utt_wx"], params["utt_bx"],
                          params["utt_wh"], params["utt_bh"],
                          return_all=False)            # (N, Hu) last valid state

    # 2) conversation encoder (return_all=True), time-major over utterances
    utt_rep_tm = utt_rep.reshape(B, C, Hu).transpose(1, 0, 2)   # (C, B, Hu)
    conv_tm = gru_forward(utt_rep_tm, jnp.full((B,), C, jnp.int32),
                          jnp.zeros((B, Hc), jnp.float32),
                          params["conv_wx"], params["conv_bx"],
                          params["conv_wh"], params["conv_bh"],
                          return_all=True)             # (C, B, Hc)

    # 3) shift context: cat(zeros, reps).narrow(1, 0, C)  (done time-major)
    context_tm = jnp.concatenate(
        [jnp.zeros((1, B, Hc), jnp.float32), conv_tm[:-1]], axis=0)  # (C, B, Hc)
    context_flat = context_tm.transpose(1, 0, 2).reshape(N, Hc)      # n = b*C + c

    # 4) decoder: init hidden from context, GRU over the utterance tokens
    h0_dec = dense(context_flat, params["ctx_w"], params["ctx_b"],
                   activation="tanh")                  # (N, Hd)
    hs_tm = gru_forward(emb_tm, jnp.full((N,), T, jnp.int32), h0_dec,
                        params["dec_wx"], params["dec_bx"],
                        params["dec_wh"], params["dec_bh"],
                        return_all=True)               # (T, N, Hd) time-major
    # small transpose of the hidden states (NOT of the big vocab output)
    hs_flat = hs_tm.transpose(1, 0, 2).reshape(N * T, Hd)

    # 5) vocab projection + log_softmax, zero rows for zero-length utterances
    row_mask = jnp.repeat((lens > 0).astype(jnp.float32), T)[:, None]
    logp = proj_log_softmax(hs_flat, params["out_w"], params["out_b"],
                            row_mask, vocab)

    return logp.reshape(B, C, T, vocab)


# ----------------------------------------------------------------------------
if __name__ == "__main__":
    # dialogue: (batch, max_conversation_length, max_utterance_length)
    # lane-aligned feature dims (128); vocab 100 deliberately NOT a multiple
    # of 128 to exercise the pad+mask path.
    B, C, T = 2, 8, 8
    VOCAB, EMB, H_UTT, H_CONV, H_DEC = 100, 128, 128, 128, 128

    key = jax.random.PRNGKey(0)
    k_par, k_tok = jax.random.split(key)

    params = init_params(k_par, VOCAB, EMB, H_UTT, H_CONV, H_DEC)

    dialogue = jax.random.randint(k_tok, (B, C, T), 0, VOCAB, dtype=jnp.int32)
    # include zero-length utterances to exercise the padding / masking path
    lengths = jnp.array([[5, 8, 0, 3, 8, 1, 0, 6],
                         [3, 0, 7, 8, 2, 8, 4, 2]], dtype=jnp.int32)

    out = hred_forward(params, dialogue, lengths, vocab=VOCAB)
    out = jax.block_until_ready(out)

    assert out.shape == (B, C, T, VOCAB)
    assert out.dtype == jnp.float32
    # rows of non-empty utterances are valid log-probabilities (sum(exp) == 1)
    probs_sum = jnp.exp(out[0, 0, 0]).sum()
    assert jnp.abs(probs_sum - 1.0) < 1e-3
    # zero-length utterances are zero-padded (as in the original forward)
    assert jnp.all(out[0, 2] == 0.0)
    assert jnp.all(out[1, 1] == 0.0)

    print("KERNEL_OK")
</pallas_src>

<mosaic_0001>
module attributes {stable_mosaic.version = 11 : i64} {
  func.func @_gru_kernel(%arg0: i32, %arg1: memref<8x16x128xbf16, #tpu.memory_space<vmem>>, %arg2: memref<16x1xi32, #tpu.memory_space<vmem>>, %arg3: memref<16x128xf32, #tpu.memory_space<vmem>>, %arg4: memref<128x384xbf16, #tpu.memory_space<vmem>>, %arg5: memref<1x384xf32, #tpu.memory_space<vmem>>, %arg6: memref<128x384xbf16, #tpu.memory_space<vmem>>, %arg7: memref<1x384xf32, #tpu.memory_space<vmem>>, %arg8: memref<16x128xf32, #tpu.memory_space<vmem>>, %arg9: memref<8x16x384xf32, #tpu.memory_space<vmem>>) attributes {dimension_semantics = [#tpu.dimension_semantics<parallel>], iteration_bounds = array<i64: 1>, scalar_prefetch = 0 : i64, scratch_operands = 1 : i64, tpu.core_type = #tpu.core_type<tc>, window_params = [{transform_indices = @transform_0, window_bounds = array<i64: 8, 16, 128>}, {transform_indices = @transform_1, window_bounds = array<i64: 16, 1>}, {transform_indices = @transform_2, window_bounds = array<i64: 16, 128>}, {pipeline_mode = #tpu.pipeline_mode<synchronous>, transform_indices = @transform_3, window_bounds = array<i64: 128, 384>}, {pipeline_mode = #tpu.pipeline_mode<synchronous>, transform_indices = @transform_4, window_bounds = array<i64: 1, 384>}, {pipeline_mode = #tpu.pipeline_mode<synchronous>, transform_indices = @transform_5, window_bounds = array<i64: 128, 384>}, {pipeline_mode = #tpu.pipeline_mode<synchronous>, transform_indices = @transform_6, window_bounds = array<i64: 1, 384>}, {transform_indices = @transform_7, window_bounds = array<i64: 16, 128>}]} {
    %c0 = arith.constant 0 : index
    %c0_0 = arith.constant 0 : index
    %c0_1 = arith.constant 0 : index
    %0 = vector.load %arg1[%c0, %c0_0, %c0_1] : memref<8x16x128xbf16, #tpu.memory_space<vmem>>, vector<8x16x128xbf16>
    %1 = vector.shape_cast %0 : vector<8x16x128xbf16> to vector<128x128xbf16>
    %c0_2 = arith.constant 0 : index
    %c0_3 = arith.constant 0 : index
    %2 = vector.load %arg4[%c0_2, %c0_3] : memref<128x384xbf16, #tpu.memory_space<vmem>>, vector<128x384xbf16>
    %cst = arith.constant dense<0.000000e+00> : vector<128x384xf32>
    %3 = tpu.matmul %1, %2, %cst {dimension_numbers = #tpu.dot_dimension_numbers<[1], [0], [0], [1], [0, 0, 1, 1], [], []>} : vector<128x128xbf16>, vector<128x384xbf16>, vector<128x384xf32> -> vector<128x384xf32>
    %c0_4 = arith.constant 0 : index
    %c0_5 = arith.constant 0 : index
    %4 = vector.load %arg5[%c0_4, %c0_5] : memref<1x384xf32, #tpu.memory_space<vmem>>, vector<1x384xf32>
    %5 = vector.broadcast %4 : vector<1x384xf32> to vector<128x384xf32>
    %6 = arith.addf %3, %5 : vector<128x384xf32>
    %7 = vector.shape_cast %6 : vector<128x384xf32> to vector<8x16x384xf32>
    %c0_6 = arith.constant 0 : index
    %c0_7 = arith.constant 0 : index
    %c0_8 = arith.constant 0 : index
    %8 = vector.load %arg9[%c0_6, %c0_7, %c0_8] : memref<8x16x384xf32, #tpu.memory_space<vmem>>, vector<8x16x384xf32>
    tpu.vector_store %arg9[%c0_6, %c0_7, %c0_8], %7 {strides = array<i32>} : memref<8x16x384xf32, #tpu.memory_space<vmem>>, vector<8x16x384xf32>,
    %c0_9 = arith.constant 0 : index
    %c0_10 = arith.constant 0 : index
    %9 = vector.load %arg6[%c0_9, %c0_10] : memref<128x384xbf16, #tpu.memory_space<vmem>>, vector<128x384xbf16>
    %c0_11 = arith.constant 0 : index
    %c0_12 = arith.constant 0 : index
    %10 = vector.load %arg7[%c0_11, %c0_12] : memref<1x384xf32, #tpu.memory_space<vmem>>, vector<1x384xf32>
    %c0_13 = arith.constant 0 : index
    %c0_14 = arith.constant 0 : index
    %11 = vector.load %arg2[%c0_13, %c0_14] : memref<16x1xi32, #tpu.memory_space<vmem>>, vector<16x1xi32>
    %c0_15 = arith.constant 0 : index
    %c0_16 = arith.constant 0 : index
    %12 = vector.load %arg3[%c0_15, %c0_16] : memref<16x128xf32, #tpu.memory_space<vmem>>, vector<16x128xf32>
    %c0_17 = arith.constant 0 : index
    %c0_18 = arith.constant 0 : index
    %c0_19 = arith.constant 0 : index
    %13 = vector.load %arg9[%c0_17, %c0_18, %c0_19] : memref<8x16x384xf32, #tpu.memory_space<vmem>>, vector<1x16x384xf32>
    %14 = vector.shape_cast %13 : vector<1x16x384xf32> to vector<16x384xf32>
    %15 = arith.truncf %12 : vector<16x128xf32> to vector<16x128xbf16>
    %cst_20 = arith.constant dense<0.000000e+00> : vector<16x384xf32>
    %16 = tpu.matmul %15, %9, %cst_20 {dimension_numbers = #tpu.dot_dimension_numbers<[1], [0], [0], [1], [0, 0, 1, 1], [], []>} : vector<16x128xbf16>, vector<128x384xbf16>, vector<16x384xf32> -> vector<16x384xf32>
    %17 = vector.broadcast %10 : vector<1x384xf32> to vector<16x384xf32>
    %18 = arith.addf %16, %17 : vector<16x384xf32>
    %19 = vector.extract_strided_slice %14 {offsets = [0, 0], sizes = [16, 128], strides = [1, 1]} : vector<16x384xf32> to vector<16x128xf32>
    %20 = vector.extract_strided_slice %18 {offsets = [0, 0], sizes = [16, 128], strides = [1, 1]} : vector<16x384xf32> to vector<16x128xf32>
    %21 = arith.addf %19, %20 : vector<16x128xf32>
    %22 = arith.negf %21 : vector<16x128xf32>
    %23 = math.exp %22 : vector<16x128xf32>
    %cst_21 = arith.constant 1.000000e+00 : f32
    %24 = vector.broadcast %cst_21 : f32 to vector<16x128xf32>
    %25 = arith.addf %24, %23 : vector<16x128xf32>
    %26 = arith.divf %24, %25 : vector<16x128xf32>
    %27 = vector.extract_strided_slice %14 {offsets = [0, 128], sizes = [16, 128], strides = [1, 1]} : vector<16x384xf32> to vector<16x128xf32>
    %28 = vector.extract_strided_slice %18 {offsets = [0, 128], sizes = [16, 128], strides = [1, 1]} : vector<16x384xf32> to vector<16x128xf32>
    %29 = arith.addf %27, %28 : vector<16x128xf32>
    %30 = arith.negf %29 : vector<16x128xf32>
    %31 = math.exp %30 : vector<16x128xf32>
    %cst_22 = arith.constant 1.000000e+00 : f32
    %32 = vector.broadcast %cst_22 : f32 to vector<16x128xf32>
    %33 = arith.addf %32, %31 : vector<16x128xf32>
    %34 = arith.divf %32, %33 : vector<16x128xf32>
    %35 = vector.extract_strided_slice %14 {offsets = [0, 256], sizes = [16, 128], strides = [1, 1]} : vector<16x384xf32> to vector<16x128xf32>
    %36 = vector.extract_strided_slice %18 {offsets = [0, 256], sizes = [16, 128], strides = [1, 1]} : vector<16x384xf32> to vector<16x128xf32>
    %37 = arith.mulf %26, %36 : vector<16x128xf32>
    %38 = arith.addf %35, %37 : vector<16x128xf32>
    %39 = math.tanh %38 : vector<16x128xf32>
    %cst_23 = arith.constant 1.000000e+00 : f32
    %40 = vector.broadcast %cst_23 : f32 to vector<16x128xf32>
    %41 = arith.subf %40, %34 : vector<16x128xf32>
    %42 = arith.mulf %41, %39 : vector<16x128xf32>
    %43 = arith.mulf %34, %12 : vector<16x128xf32>
    %44 = arith.addf %42, %43 : vector<16x128xf32>
    %c0_i32 = arith.constant 0 : i32
    %45 = vector.broadcast %c0_i32 : i32 to vector<16x1xi32>
    %46 = arith.cmpi sgt, %11, %45 : vector<16x1xi32>
    %47 = vector.shape_cast %46 : vector<16x1xi1> to vector<16x1xi1>
    %48 = vector.broadcast %47 : vector<16x1xi1> to vector<16x128xi1>
    %49 = arith.select %48, %44, %12 : vector<16x128xi1>, vector<16x128xf32>
    %c1 = arith.constant 1 : index
    %c0_24 = arith.constant 0 : index
    %c0_25 = arith.constant 0 : index
    %50 = vector.load %arg9[%c1, %c0_24, %c0_25] : memref<8x16x384xf32, #tpu.memory_space<vmem>>, vector<1x16x384xf32>
    %51 = vector.shape_cast %50 : vector<1x16x384xf32> to vector<16x384xf32>
    %52 = arith.truncf %49 : vector<16x128xf32> to vector<16x128xbf16>
    %cst_26 = arith.constant dense<0.000000e+00> : vector<16x384xf32>
    %53 = tpu.matmul %52, %9, %cst_26 {dimension_numbers = #tpu.dot_dimension_numbers<[1], [0], [0], [1], [0, 0, 1, 1], [], []>} : vector<16x128xbf16>, vector<128x384xbf16>, vector<16x384xf32> -> vector<16x384xf32>
    %54 = vector.broadcast %10 : vector<1x384xf32> to vector<16x384xf32>
    %55 = arith.addf %53, %54 : vector<16x384xf32>
    %56 = vector.extract_strided_slice %51 {offsets = [0, 0], sizes = [16, 128], strides = [1, 1]} : vector<16x384xf32> to vector<16x128xf32>
    %57 = vector.extract_strided_slice %55 {offsets = [0, 0], sizes = [16, 128], strides = [1, 1]} : vector<16x384xf32> to vector<16x128xf32>
    %58 = arith.addf %56, %57 : vector<16x128xf32>
    %59 = arith.negf %58 : vector<16x128xf32>
    %60 = math.exp %59 : vector<16x128xf32>
    %cst_27 = arith.constant 1.000000e+00 : f32
    %61 = vector.broadcast %cst_27 : f32 to vector<16x128xf32>
    %62 = arith.addf %61, %60 : vector<16x128xf32>
    %63 = arith.divf %61, %62 : vector<16x128xf32>
    %64 = vector.extract_strided_slice %51 {offsets = [0, 128], sizes = [16, 128], strides = [1, 1]} : vector<16x384xf32> to vector<16x128xf32>
    %65 = vector.extract_strided_slice %55 {offsets = [0, 128], sizes = [16, 128], strides = [1, 1]} : vector<16x384xf32> to vector<16x128xf32>
    %66 = arith.addf %64, %65 : vector<16x128xf32>
    %67 = arith.negf %66 : vector<16x128xf32>
    %68 = math.exp %67 : vector<16x128xf32>
    %cst_28 = arith.constant 1.000000e+00 : f32
    %69 = vector.broadcast %cst_28 : f32 to vector<16x128xf32>
    %70 = arith.addf %69, %68 : vector<16x128xf32>
    %71 = arith.divf %69, %70 : vector<16x128xf32>
    %72 = vector.extract_strided_slice %51 {offsets = [0, 256], sizes = [16, 128], strides = [1, 1]} : vector<16x384xf32> to vector<16x128xf32>
    %73 = vector.extract_strided_slice %55 {offsets = [0, 256], sizes = [16, 128], strides = [1, 1]} : vector<16x384xf32> to vector<16x128xf32>
    %74 = arith.mulf %63, %73 : vector<16x128xf32>
    %75 = arith.addf %72, %74 : vector<16x128xf32>
    %76 = math.tanh %75 : vector<16x128xf32>
    %cst_29 = arith.constant 1.000000e+00 : f32
    %77 = vector.broadcast %cst_29 : f32 to vector<16x128xf32>
    %78 = arith.subf %77, %71 : vector<16x128xf32>
    %79 = arith.mulf %78, %76 : vector<16x128xf32>
    %80 = arith.mulf %71, %49 : vector<16x128xf32>
    %81 = arith.addf %79, %80 : vector<16x128xf32>
    %c1_i32 = arith.constant 1 : i32
    %82 = vector.broadcast %c1_i32 : i32 to vector<16x1xi32>
    %83 = arith.cmpi sgt, %11, %82 : vector<16x1xi32>
    %84 = vector.shape_cast %83 : vector<16x1xi1> to vector<16x1xi1>
    %85 = vector.broadcast %84 : vector<16x1xi1> to vector<16x128xi1>
    %86 = arith.select %85, %81, %49 : vector<16x128xi1>, vector<16x128xf32>
    %c2 = arith.constant 2 : index
    %c0_30 = arith.constant 0 : index
    %c0_31 = arith.constant 0 : index
    %87 = vector.load %arg9[%c2, %c0_30, %c0_31] : memref<8x16x384xf32, #tpu.memory_space<vmem>>, vector<1x16x384xf32>
    %88 = vector.shape_cast %87 : vector<1x16x384xf32> to vector<16x384xf32>
    %89 = arith.truncf %86 : vector<16x128xf32> to vector<16x128xbf16>
    %cst_32 = arith.constant dense<0.000000e+00> : vector<16x384xf32>
    %90 = tpu.matmul %89, %9, %cst_32 {dimension_numbers = #tpu.dot_dimension_numbers<[1], [0], [0], [1], [0, 0, 1, 1], [], []>} : vector<16x128xbf16>, vector<128x384xbf16>, vector<16x384xf32> -> vector<16x384xf32>
    %91 = vector.broadcast %10 : vector<1x384xf32> to vector<16x384xf32>
    %92 = arith.addf %90, %91 : vector<16x384xf32>
    %93 = vector.extract_strided_slice %88 {offsets = [0, 0], sizes = [16, 128], strides = [1, 1]} : vector<16x384xf32> to vector<16x128xf32>
    %94 = vector.extract_strided_slice %92 {offsets = [0, 0], sizes = [16, 128], strides = [1, 1]} : vector<16x384xf32> to vector<16x128xf32>
    %95 = arith.addf %93, %94 : vector<16x128xf32>
    %96 = arith.negf %95 : vector<16x128xf32>
    %97 = math.exp %96 : vector<16x128xf32>
    %cst_33 = arith.constant 1.000000e+00 : f32
    %98 = vector.broadcast %cst_33 : f32 to vector<16x128xf32>
    %99 = arith.addf %98, %97 : vector<16x128xf32>
    %100 = arith.divf %98, %99 : vector<16x128xf32>
    %101 = vector.extract_strided_slice %88 {offsets = [0, 128], sizes = [16, 128], strides = [1, 1]} : vector<16x384xf32> to vector<16x128xf32>
    %102 = vector.extract_strided_slice %92 {offsets = [0, 128], sizes = [16, 128], strides = [1, 1]} : vector<16x384xf32> to vector<16x128xf32>
    %103 = arith.addf %101, %102 : vector<16x128xf32>
    %104 = arith.negf %103 : vector<16x128xf32>
    %105 = math.exp %104 : vector<16x128xf32>
    %cst_34 = arith.constant 1.000000e+00 : f32
    %106 = vector.broadcast %cst_34 : f32 to vector<16x128xf32>
    %107 = arith.addf %106, %105 : vector<16x128xf32>
    %108 = arith.divf %106, %107 : vector<16x128xf32>
    %109 = vector.extract_strided_slice %88 {offsets = [0, 256], sizes = [16, 128], strides = [1, 1]} : vector<16x384xf32> to vector<16x128xf32>
    %110 = vector.extract_strided_slice %92 {offsets = [0, 256], sizes = [16, 128], strides = [1, 1]} : vector<16x384xf32> to vector<16x128xf32>
    %111 = arith.mulf %100, %110 : vector<16x128xf32>
    %112 = arith.addf %109, %111 : vector<16x128xf32>
    %113 = math.tanh %112 : vector<16x128xf32>
    %cst_35 = arith.constant 1.000000e+00 : f32
    %114 = vector.broadcast %cst_35 : f32 to vector<16x128xf32>
    %115 = arith.subf %114, %108 : vector<16x128xf32>
    %116 = arith.mulf %115, %113 : vector<16x128xf32>
    %117 = arith.mulf %108, %86 : vector<16x128xf32>
    %118 = arith.addf %116, %117 : vector<16x128xf32>
    %c2_i32 = arith.constant 2 : i32
    %119 = vector.broadcast %c2_i32 : i32 to vector<16x1xi32>
    %120 = arith.cmpi sgt, %11, %119 : vector<16x1xi32>
    %121 = vector.shape_cast %120 : vector<16x1xi1> to vector<16x1xi1>
    %122 = vector.broadcast %121 : vector<16x1xi1> to vector<16x128xi1>
    %123 = arith.select %122, %118, %86 : vector<16x128xi1>, vector<16x128xf32>
    %c3 = arith.constant 3 : index
    %c0_36 = arith.constant 0 : index
    %c0_37 = arith.constant 0 : index
    %124 = vector.load %arg9[%c3, %c0_36, %c0_37] : memref<8x16x384xf32, #tpu.memory_space<vmem>>, vector<1x16x384xf32>
    %125 = vector.shape_cast %124 : vector<1x16x384xf32> to vector<16x384xf32>
    %126 = arith.truncf %123 : vector<16x128xf32> to vector<16x128xbf16>
    %cst_38 = arith.constant dense<0.000000e+00> : vector<16x384xf32>
    %127 = tpu.matmul %126, %9, %cst_38 {dimension_numbers = #tpu.dot_dimension_numbers<[1], [0], [0], [1], [0, 0, 1, 1], [], []>} : vector<16x128xbf16>, vector<128x384xbf16>, vector<16x384xf32> -> vector<16x384xf32>
    %128 = vector.broadcast %10 : vector<1x384xf32> to vector<16x384xf32>
    %129 = arith.addf %127, %128 : vector<16x384xf32>
    %130 = vector.extract_strided_slice %125 {offsets = [0, 0], sizes = [16, 128], strides = [1, 1]} : vector<16x384xf32> to vector<16x128xf32>
    %131 = vector.extract_strided_slice %129 {offsets = [0, 0], sizes = [16, 128], strides = [1, 1]} : vector<16x384xf32> to vector<16x128xf32>
    %132 = arith.addf %130, %131 : vector<16x128xf32>
    %133 = arith.negf %132 : vector<16x128xf32>
    %134 = math.exp %133 : vector<16x128xf32>
    %cst_39 = arith.constant 1.000000e+00 : f32
    %135 = vector.broadcast %cst_39 : f32 to vector<16x128xf32>
    %136 = arith.addf %135, %134 : vector<16x128xf32>
    %137 = arith.divf %135, %136 : vector<16x128xf32>
    %138 = vector.extract_strided_slice %125 {offsets = [0, 128], sizes = [16, 128], strides = [1, 1]} : vector<16x384xf32> to vector<16x128xf32>
    %139 = vector.extract_strided_slice %129 {offsets = [0, 128], sizes = [16, 128], strides = [1, 1]} : vector<16x384xf32> to vector<16x128xf32>
    %140 = arith.addf %138, %139 : vector<16x128xf32>
    %141 = arith.negf %140 : vector<16x128xf32>
    %142 = math.exp %141 : vector<16x128xf32>
    %cst_40 = arith.constant 1.000000e+00 : f32
    %143 = vector.broadcast %cst_40 : f32 to vector<16x128xf32>
    %144 = arith.addf %143, %142 : vector<16x128xf32>
    %145 = arith.divf %143, %144 : vector<16x128xf32>
    %146 = vector.extract_strided_slice %125 {offsets = [0, 256], sizes = [16, 128], strides = [1, 1]} : vector<16x384xf32> to vector<16x128xf32>
    %147 = vector.extract_strided_slice %129 {offsets = [0, 256], sizes = [16, 128], strides = [1, 1]} : vector<16x384xf32> to vector<16x128xf32>
    %148 = arith.mulf %137, %147 : vector<16x128xf32>
    %149 = arith.addf %146, %148 : vector<16x128xf32>
    %150 = math.tanh %149 : vector<16x128xf32>
    %cst_41 = arith.constant 1.000000e+00 : f32
    %151 = vector.broadcast %cst_41 : f32 to vector<16x128xf32>
    %152 = arith.subf %151, %145 : vector<16x128xf32>
    %153 = arith.mulf %152, %150 : vector<16x128xf32>
    %154 = arith.mulf %145, %123 : vector<16x128xf32>
    %155 = arith.addf %153, %154 : vector<16x128xf32>
    %c3_i32 = arith.constant 3 : i32
    %156 = vector.broadcast %c3_i32 : i32 to vector<16x1xi32>
    %157 = arith.cmpi sgt, %11, %156 : vector<16x1xi32>
    %158 = vector.shape_cast %157 : vector<16x1xi1> to vector<16x1xi1>
    %159 = vector.broadcast %158 : vector<16x1xi1> to vector<16x128xi1>
    %160 = arith.select %159, %155, %123 : vector<16x128xi1>, vector<16x128xf32>
    %c4 = arith.constant 4 : index
    %c0_42 = arith.constant 0 : index
    %c0_43 = arith.constant 0 : index
    %161 = vector.load %arg9[%c4, %c0_42, %c0_43] : memref<8x16x384xf32, #tpu.memory_space<vmem>>, vector<1x16x384xf32>
    %162 = vector.shape_cast %161 : vector<1x16x384xf32> to vector<16x384xf32>
    %163 = arith.truncf %160 : vector<16x128xf32> to vector<16x128xbf16>
    %cst_44 = arith.constant dense<0.000000e+00> : vector<16x384xf32>
    %164 = tpu.matmul %163, %9, %cst_44 {dimension_numbers = #tpu.dot_dimension_numbers<[1], [0], [0], [1], [0, 0, 1, 1], [], []>} : vector<16x128xbf16>, vector<128x384xbf16>, vector<16x384xf32> -> vector<16x384xf32>
    %165 = vector.broadcast %10 : vector<1x384xf32> to vector<16x384xf32>
    %166 = arith.addf %164, %165 : vector<16x384xf32>
    %167 = vector.extract_strided_slice %162 {offsets = [0, 0], sizes = [16, 128], strides = [1, 1]} : vector<16x384xf32> to vector<16x128xf32>
    %168 = vector.extract_strided_slice %166 {offsets = [0, 0], sizes = [16, 128], strides = [1, 1]} : vector<16x384xf32> to vector<16x128xf32>
    %169 = arith.addf %167, %168 : vector<16x128xf32>
    %170 = arith.negf %169 : vector<16x128xf32>
    %171 = math.exp %170 : vector<16x128xf32>
    %cst_45 = arith.constant 1.000000e+00 : f32
    %172 = vector.broadcast %cst_45 : f32 to vector<16x128xf32>
    %173 = arith.addf %172, %171 : vector<16x128xf32>
    %174 = arith.divf %172, %173 : vector<16x128xf32>
    %175 = vector.extract_strided_slice %162 {offsets = [0, 128], sizes = [16, 128], strides = [1, 1]} : vector<16x384xf32> to vector<16x128xf32>
    %176 = vector.extract_strided_slice %166 {offsets = [0, 128], sizes = [16, 128], strides = [1, 1]} : vector<16x384xf32> to vector<16x128xf32>
    %177 = arith.addf %175, %176 : vector<16x128xf32>
    %178 = arith.negf %177 : vector<16x128xf32>
    %179 = math.exp %178 : vector<16x128xf32>
    %cst_46 = arith.constant 1.000000e+00 : f32
    %180 = vector.broadcast %cst_46 : f32 to vector<16x128xf32>
    %181 = arith.addf %180, %179 : vector<16x128xf32>
    %182 = arith.divf %180, %181 : vector<16x128xf32>
    %183 = vector.extract_strided_slice %162 {offsets = [0, 256], sizes = [16, 128], strides = [1, 1]} : vector<16x384xf32> to vector<16x128xf32>
    %184 = vector.extract_strided_slice %166 {offsets = [0, 256], sizes = [16, 128], strides = [1, 1]} : vector<16x384xf32> to vector<16x128xf32>
    %185 = arith.mulf %174, %184 : vector<16x128xf32>
    %186 = arith.addf %183, %185 : vector<16x128xf32>
    %187 = math.tanh %186 : vector<16x128xf32>
    %cst_47 = arith.constant 1.000000e+00 : f32
    %188 = vector.broadcast %cst_47 : f32 to vector<16x128xf32>
    %189 = arith.subf %188, %182 : vector<16x128xf32>
    %190 = arith.mulf %189, %187 : vector<16x128xf32>
    %191 = arith.mulf %182, %160 : vector<16x128xf32>
    %192 = arith.addf %190, %191 : vector<16x128xf32>
    %c4_i32 = arith.constant 4 : i32
    %193 = vector.broadcast %c4_i32 : i32 to vector<16x1xi32>
    %194 = arith.cmpi sgt, %11, %193 : vector<16x1xi32>
    %195 = vector.shape_cast %194 : vector<16x1xi1> to vector<16x1xi1>
    %196 = vector.broadcast %195 : vector<16x1xi1> to vector<16x128xi1>
    %197 = arith.select %196, %192, %160 : vector<16x128xi1>, vector<16x128xf32>
    %c5 = arith.constant 5 : index
    %c0_48 = arith.constant 0 : index
    %c0_49 = arith.constant 0 : index
    %198 = vector.load %arg9[%c5, %c0_48, %c0_49] : memref<8x16x384xf32, #tpu.memory_space<vmem>>, vector<1x16x384xf32>
    %199 = vector.shape_cast %198 : vector<1x16x384xf32> to vector<16x384xf32>
    %200 = arith.truncf %197 : vector<16x128xf32> to vector<16x128xbf16>
    %cst_50 = arith.constant dense<0.000000e+00> : vector<16x384xf32>
    %201 = tpu.matmul %200, %9, %cst_50 {dimension_numbers = #tpu.dot_dimension_numbers<[1], [0], [0], [1], [0, 0, 1, 1], [], []>} : vector<16x128xbf16>, vector<128x384xbf16>, vector<16x384xf32> -> vector<16x384xf32>
    %202 = vector.broadcast %10 : vector<1x384xf32> to vector<16x384xf32>
    %203 = arith.addf %201, %202 : vector<16x384xf32>
    %204 = vector.extract_strided_slice %199 {offsets = [0, 0], sizes = [16, 128], strides = [1, 1]} : vector<16x384xf32> to vector<16x128xf32>
    %205 = vector.extract_strided_slice %203 {offsets = [0, 0], sizes = [16, 128], strides = [1, 1]} : vector<16x384xf32> to vector<16x128xf32>
    %206 = arith.addf %204, %205 : vector<16x128xf32>
    %207 = arith.negf %206 : vector<16x128xf32>
    %208 = math.exp %207 : vector<16x128xf32>
    %cst_51 = arith.constant 1.000000e+00 : f32
    %209 = vector.broadcast %cst_51 : f32 to vector<16x128xf32>
    %210 = arith.addf %209, %208 : vector<16x128xf32>
    %211 = arith.divf %209, %210 : vector<16x128xf32>
    %212 = vector.extract_strided_slice %199 {offsets = [0, 128], sizes = [16, 128], strides = [1, 1]} : vector<16x384xf32> to vector<16x128xf32>
    %213 = vector.extract_strided_slice %203 {offsets = [0, 128], sizes = [16, 128], strides = [1, 1]} : vector<16x384xf32> to vector<16x128xf32>
    %214 = arith.addf %212, %213 : vector<16x128xf32>
    %215 = arith.negf %214 : vector<16x128xf32>
    %216 = math.exp %215 : vector<16x128xf32>
    %cst_52 = arith.constant 1.000000e+00 : f32
    %217 = vector.broadcast %cst_52 : f32 to vector<16x128xf32>
    %218 = arith.addf %217, %216 : vector<16x128xf32>
    %219 = arith.divf %217, %218 : vector<16x128xf32>
    %220 = vector.extract_strided_slice %199 {offsets = [0, 256], sizes = [16, 128], strides = [1, 1]} : vector<16x384xf32> to vector<16x128xf32>
    %221 = vector.extract_strided_slice %203 {offsets = [0, 256], sizes = [16, 128], strides = [1, 1]} : vector<16x384xf32> to vector<16x128xf32>
    %222 = arith.mulf %211, %221 : vector<16x128xf32>
    %223 = arith.addf %220, %222 : vector<16x128xf32>
    %224 = math.tanh %223 : vector<16x128xf32>
    %cst_53 = arith.constant 1.000000e+00 : f32
    %225 = vector.broadcast %cst_53 : f32 to vector<16x128xf32>
    %226 = arith.subf %225, %219 : vector<16x128xf32>
    %227 = arith.mulf %226, %224 : vector<16x128xf32>
    %228 = arith.mulf %219, %197 : vector<16x128xf32>
    %229 = arith.addf %227, %228 : vector<16x128xf32>
    %c5_i32 = arith.constant 5 : i32
    %230 = vector.broadcast %c5_i32 : i32 to vector<16x1xi32>
    %231 = arith.cmpi sgt, %11, %230 : vector<16x1xi32>
    %232 = vector.shape_cast %231 : vector<16x1xi1> to vector<16x1xi1>
    %233 = vector.broadcast %232 : vector<16x1xi1> to vector<16x128xi1>
    %234 = arith.select %233, %229, %197 : vector<16x128xi1>, vector<16x128xf32>
    %c6 = arith.constant 6 : index
    %c0_54 = arith.constant 0 : index
    %c0_55 = arith.constant 0 : index
    %235 = vector.load %arg9[%c6, %c0_54, %c0_55] : memref<8x16x384xf32, #tpu.memory_space<vmem>>, vector<1x16x384xf32>
    %236 = vector.shape_cast %235 : vector<1x16x384xf32> to vector<16x384xf32>
    %237 = arith.truncf %234 : vector<16x128xf32> to vector<16x128xbf16>
    %cst_56 = arith.constant dense<0.000000e+00> : vector<16x384xf32>
    %238 = tpu.matmul %237, %9, %cst_56 {dimension_numbers = #tpu.dot_dimension_numbers<[1], [0], [0], [1], [0, 0, 1, 1], [], []>} : vector<16x128xbf16>, vector<128x384xbf16>, vector<16x384xf32> -> vector<16x384xf32>
    %239 = vector.broadcast %10 : vector<1x384xf32> to vector<16x384xf32>
    %240 = arith.addf %238, %239 : vector<16x384xf32>
    %241 = vector.extract_strided_slice %236 {offsets = [0, 0], sizes = [16, 128], strides = [1, 1]} : vector<16x384xf32> to vector<16x128xf32>
    %242 = vector.extract_strided_slice %240 {offsets = [0, 0], sizes = [16, 128], strides = [1, 1]} : vector<16x384xf32> to vector<16x128xf32>
    %243 = arith.addf %241, %242 : vector<16x128xf32>
    %244 = arith.negf %243 : vector<16x128xf32>
    %245 = math.exp %244 : vector<16x128xf32>
    %cst_57 = arith.constant 1.000000e+00 : f32
    %246 = vector.broadcast %cst_57 : f32 to vector<16x128xf32>
    %247 = arith.addf %246, %245 : vector<16x128xf32>
    %248 = arith.divf %246, %247 : vector<16x128xf32>
    %249 = vector.extract_strided_slice %236 {offsets = [0, 128], sizes = [16, 128], strides = [1, 1]} : vector<16x384xf32> to vector<16x128xf32>
    %250 = vector.extract_strided_slice %240 {offsets = [0, 128], sizes = [16, 128], strides = [1, 1]} : vector<16x384xf32> to vector<16x128xf32>
    %251 = arith.addf %249, %250 : vector<16x128xf32>
    %252 = arith.negf %251 : vector<16x128xf32>
    %253 = math.exp %252 : vector<16x128xf32>
    %cst_58 = arith.constant 1.000000e+00 : f32
    %254 = vector.broadcast %cst_58 : f32 to vector<16x128xf32>
    %255 = arith.addf %254, %253 : vector<16x128xf32>
    %256 = arith.divf %254, %255 : vector<16x128xf32>
    %257 = vector.extract_strided_slice %236 {offsets = [0, 256], sizes = [16, 128], strides = [1, 1]} : vector<16x384xf32> to vector<16x128xf32>
    %258 = vector.extract_strided_slice %240 {offsets = [0, 256], sizes = [16, 128], strides = [1, 1]} : vector<16x384xf32> to vector<16x128xf32>
    %259 = arith.mulf %248, %258 : vector<16x128xf32>
    %260 = arith.addf %257, %259 : vector<16x128xf32>
    %261 = math.tanh %260 : vector<16x128xf32>
    %cst_59 = arith.constant 1.000000e+00 : f32
    %262 = vector.broadcast %cst_59 : f32 to vector<16x128xf32>
    %263 = arith.subf %262, %256 : vector<16x128xf32>
    %264 = arith.mulf %263, %261 : vector<16x128xf32>
    %265 = arith.mulf %256, %234 : vector<16x128xf32>
    %266 = arith.addf %264, %265 : vector<16x128xf32>
    %c6_i32 = arith.constant 6 : i32
    %267 = vector.broadcast %c6_i32 : i32 to vector<16x1xi32>
    %268 = arith.cmpi sgt, %11, %267 : vector<16x1xi32>
    %269 = vector.shape_cast %268 : vector<16x1xi1> to vector<16x1xi1>
    %270 = vector.broadcast %269 : vector<16x1xi1> to vector<16x128xi1>
    %271 = arith.select %270, %266, %234 : vector<16x128xi1>, vector<16x128xf32>
    %c7 = arith.constant 7 : index
    %c0_60 = arith.constant 0 : index
    %c0_61 = arith.constant 0 : index
    %272 = vector.load %arg9[%c7, %c0_60, %c0_61] : memref<8x16x384xf32, #tpu.memory_space<vmem>>, vector<1x16x384xf32>
    %273 = vector.shape_cast %272 : vector<1x16x384xf32> to vector<16x384xf32>
    %274 = arith.truncf %271 : vector<16x128xf32> to vector<16x128xbf16>
    %cst_62 = arith.constant dense<0.000000e+00> : vector<16x384xf32>
    %275 = tpu.matmul %274, %9, %cst_62 {dimension_numbers = #tpu.dot_dimension_numbers<[1], [0], [0], [1], [0, 0, 1, 1], [], []>} : vector<16x128xbf16>, vector<128x384xbf16>, vector<16x384xf32> -> vector<16x384xf32>
    %276 = vector.broadcast %10 : vector<1x384xf32> to vector<16x384xf32>
    %277 = arith.addf %275, %276 : vector<16x384xf32>
    %278 = vector.extract_strided_slice %273 {offsets = [0, 0], sizes = [16, 128], strides = [1, 1]} : vector<16x384xf32> to vector<16x128xf32>
    %279 = vector.extract_strided_slice %277 {offsets = [0, 0], sizes = [16, 128], strides = [1, 1]} : vector<16x384xf32> to vector<16x128xf32>
    %280 = arith.addf %278, %279 : vector<16x128xf32>
    %281 = arith.negf %280 : vector<16x128xf32>
    %282 = math.exp %281 : vector<16x128xf32>
    %cst_63 = arith.constant 1.000000e+00 : f32
    %283 = vector.broadcast %cst_63 : f32 to vector<16x128xf32>
    %284 = arith.addf %283, %282 : vector<16x128xf32>
    %285 = arith.divf %283, %284 : vector<16x128xf32>
    %286 = vector.extract_strided_slice %273 {offsets = [0, 128], sizes = [16, 128], strides = [1, 1]} : vector<16x384xf32> to vector<16x128xf32>
    %287 = vector.extract_strided_slice %277 {offsets = [0, 128], sizes = [16, 128], strides = [1, 1]} : vector<16x384xf32> to vector<16x128xf32>
    %288 = arith.addf %286, %287 : vector<16x128xf32>
    %289 = arith.negf %288 : vector<16x128xf32>
    %290 = math.exp %289 : vector<16x128xf32>
    %cst_64 = arith.constant 1.000000e+00 : f32
    %291 = vector.broadcast %cst_64 : f32 to vector<16x128xf32>
    %292 = arith.addf %291, %290 : vector<16x128xf32>
    %293 = arith.divf %291, %292 : vector<16x128xf32>
    %294 = vector.extract_strided_slice %273 {offsets = [0, 256], sizes = [16, 128], strides = [1, 1]} : vector<16x384xf32> to vector<16x128xf32>
    %295 = vector.extract_strided_slice %277 {offsets = [0, 256], sizes = [16, 128], strides = [1, 1]} : vector<16x384xf32> to vector<16x128xf32>
    %296 = arith.mulf %285, %295 : vector<16x128xf32>
    %297 = arith.addf %294, %296 : vector<16x128xf32>
    %298 = math.tanh %297 : vector<16x128xf32>
    %cst_65 = arith.constant 1.000000e+00 : f32
    %299 = vector.broadcast %cst_65 : f32 to vector<16x128xf32>
    %300 = arith.subf %299, %293 : vector<16x128xf32>
    %301 = arith.mulf %300, %298 : vector<16x128xf32>
    %302 = arith.mulf %293, %271 : vector<16x128xf32>
    %303 = arith.addf %301, %302 : vector<16x128xf32>
    %c7_i32 = arith.constant 7 : i32
    %304 = vector.broadcast %c7_i32 : i32 to vector<16x1xi32>
    %305 = arith.cmpi sgt, %11, %304 : vector<16x1xi32>
    %306 = vector.shape_cast %305 : vector<16x1xi1> to vector<16x1xi1>
    %307 = vector.broadcast %306 : vector<16x1xi1> to vector<16x128xi1>
    %308 = arith.select %307, %303, %271 : vector<16x128xi1>, vector<16x128xf32>
    %c0_66 = arith.constant 0 : index
    %c0_67 = arith.constant 0 : index
    %309 = vector.load %arg8[%c0_66, %c0_67] : memref<16x128xf32, #tpu.memory_space<vmem>>, vector<16x128xf32>
    tpu.vector_store %arg8[%c0_66, %c0_67], %308 {strides = array<i32>} : memref<16x128xf32, #tpu.memory_space<vmem>>, vector<16x128xf32>,
    return
  }
  func.func @transform_0(%arg0: i32) -> (i32, i32, i32) {
    %c0_i32 = arith.constant 0 : i32
    %c0_i32_0 = arith.constant 0 : i32
    %c0_i32_1 = arith.constant 0 : i32
    return %c0_i32, %arg0, %c0_i32_0 : i32, i32, i32
  }
  func.func @transform_1(%arg0: i32) -> (i32, i32) {
    %c0_i32 = arith.constant 0 : i32
    %c0_i32_0 = arith.constant 0 : i32
    return %arg0, %c0_i32 : i32, i32
  }
  func.func @transform_2(%arg0: i32) -> (i32, i32) {
    %c0_i32 = arith.constant 0 : i32
    %c0_i32_0 = arith.constant 0 : i32
    return %arg0, %c0_i32 : i32, i32
  }
  func.func @transform_3(%arg0: i32) -> (i32, i32) {
    %c0_i32 = arith.constant 0 : i32
    %c0_i32_0 = arith.constant 0 : i32
    %c0_i32_1 = arith.constant 0 : i32
    return %c0_i32, %c0_i32_0 : i32, i32
  }
  func.func @transform_4(%arg0: i32) -> (i32, i32) {
    %c0_i32 = arith.constant 0 : i32
    %c0_i32_0 = arith.constant 0 : i32
    %c0_i32_1 = arith.constant 0 : i32
    return %c0_i32, %c0_i32_0 : i32, i32
  }
  func.func @transform_5(%arg0: i32) -> (i32, i32) {
    %c0_i32 = arith.constant 0 : i32
    %c0_i32_0 = arith.constant 0 : i32
    %c0_i32_1 = arith.constant 0 : i32
    return %c0_i32, %c0_i32_0 : i32, i32
  }
  func.func @transform_6(%arg0: i32) -> (i32, i32) {
    %c0_i32 = arith.constant 0 : i32
    %c0_i32_0 = arith.constant 0 : i32
    %c0_i32_1 = arith.constant 0 : i32
    return %c0_i32, %c0_i32_0 : i32, i32
  }
  func.func @transform_7(%arg0: i32) -> (i32, i32) {
    %c0_i32 = arith.constant 0 : i32
    %c0_i32_0 = arith.constant 0 : i32
    return %arg0, %c0_i32 : i32, i32
  }
}

module attributes {stable_mosaic.version = 11 : i64} {
  func.func @_dense_kernel(%arg0: i32, %arg1: memref<16x128xbf16, #tpu.memory_space<vmem>>, %arg2: memref<128x128xbf16, #tpu.memory_space<vmem>>, %arg3: memref<1x128xf32, #tpu.memory_space<vmem>>, %arg4: memref<16x128xf32, #tpu.memory_space<vmem>>) attributes {dimension_semantics = [#tpu.dimension_semantics<parallel>], iteration_bounds = array<i64: 1>, scalar_prefetch = 0 : i64, scratch_operands = 0 : i64, tpu.core_type = #tpu.core_type<tc>, window_params = [{transform_indices = @transform_0, window_bounds = array<i64: 16, 128>}, {pipeline_mode = #tpu.pipeline_mode<synchronous>, transform_indices = @transform_1, window_bounds = array<i64: 128, 128>}, {pipeline_mode = #tpu.pipeline_mode<synchronous>, transform_indices = @transform_2, window_bounds = array<i64: 1, 128>}, {transform_indices = @transform_3, window_bounds = array<i64: 16, 128>}]} {
    %c0 = arith.constant 0 : index
    %c0_0 = arith.constant 0 : index
    %0 = vector.load %arg1[%c0, %c0_0] : memref<16x128xbf16, #tpu.memory_space<vmem>>, vector<16x128xbf16>
    %c0_1 = arith.constant 0 : index
    %c0_2 = arith.constant 0 : index
    %1 = vector.load %arg2[%c0_1, %c0_2] : memref<128x128xbf16, #tpu.memory_space<vmem>>, vector<128x128xbf16>
    %cst = arith.constant dense<0.000000e+00> : vector<16x128xf32>
    %2 = tpu.matmul %0, %1, %cst {dimension_numbers = #tpu.dot_dimension_numbers<[1], [0], [0], [1], [0, 0, 1, 1], [], []>} : vector<16x128xbf16>, vector<128x128xbf16>, vector<16x128xf32> -> vector<16x128xf32>
    %c0_3 = arith.constant 0 : index
    %c0_4 = arith.constant 0 : index
    %3 = vector.load %arg3[%c0_3, %c0_4] : memref<1x128xf32, #tpu.memory_space<vmem>>, vector<1x128xf32>
    %4 = vector.broadcast %3 : vector<1x128xf32> to vector<16x128xf32>
    %5 = arith.addf %2, %4 : vector<16x128xf32>
    %6 = math.tanh %5 : vector<16x128xf32>
    %c0_5 = arith.constant 0 : index
    %c0_6 = arith.constant 0 : index
    %7 = vector.load %arg4[%c0_5, %c0_6] : memref<16x128xf32, #tpu.memory_space<vmem>>, vector<16x128xf32>
    tpu.vector_store %arg4[%c0_5, %c0_6], %6 {strides = array<i32>} : memref<16x128xf32, #tpu.memory_space<vmem>>, vector<16x128xf32>,
    return
  }
  func.func @transform_0(%arg0: i32) -> (i32, i32) {
    %c0_i32 = arith.constant 0 : i32
    %c0_i32_0 = arith.constant 0 : i32
    return %arg0, %c0_i32 : i32, i32
  }
  func.func @transform_1(%arg0: i32) -> (i32, i32) {
    %c0_i32 = arith.constant 0 : i32
    %c0_i32_0 = arith.constant 0 : i32
    %c0_i32_1 = arith.constant 0 : i32
    return %c0_i32, %c0_i32_0 : i32, i32
  }
  func.func @transform_2(%arg0: i32) -> (i32, i32) {
    %c0_i32 = arith.constant 0 : i32
    %c0_i32_0 = arith.constant 0 : i32
    %c0_i32_1 = arith.constant 0 : i32
    return %c0_i32, %c0_i32_0 : i32, i32
  }
  func.func @transform_3(%arg0: i32) -> (i32, i32) {
    %c0_i32 = arith.constant 0 : i32
    %c0_i32_0 = arith.constant 0 : i32
    return %arg0, %c0_i32 : i32, i32
  }
}

module attributes {stable_mosaic.version = 11 : i64} {
  func.func @_gru_kernel(%arg0: i32, %arg1: memref<8x8x128xbf16, #tpu.memory_space<vmem>>, %arg2: memref<8x1xi32, #tpu.memory_space<vmem>>, %arg3: memref<8x128xf32, #tpu.memory_space<vmem>>, %arg4: memref<128x384xbf16, #tpu.memory_space<vmem>>, %arg5: memref<1x384xf32, #tpu.memory_space<vmem>>, %arg6: memref<128x384xbf16, #tpu.memory_space<vmem>>, %arg7: memref<1x384xf32, #tpu.memory_space<vmem>>, %arg8: memref<8x8x128xf32, #tpu.memory_space<vmem>>, %arg9: memref<8x8x384xf32, #tpu.memory_space<vmem>>) attributes {dimension_semantics = [#tpu.dimension_semantics<parallel>], iteration_bounds = array<i64: 1>, scalar_prefetch = 0 : i64, scratch_operands = 1 : i64, tpu.core_type = #tpu.core_type<tc>, window_params = [{transform_indices = @transform_0, window_bounds = array<i64: 8, 8, 128>}, {transform_indices = @transform_1, window_bounds = array<i64: 8, 1>}, {transform_indices = @transform_2, window_bounds = array<i64: 8, 128>}, {pipeline_mode = #tpu.pipeline_mode<synchronous>, transform_indices = @transform_3, window_bounds = array<i64: 128, 384>}, {pipeline_mode = #tpu.pipeline_mode<synchronous>, transform_indices = @transform_4, window_bounds = array<i64: 1, 384>}, {pipeline_mode = #tpu.pipeline_mode<synchronous>, transform_indices = @transform_5, window_bounds = array<i64: 128, 384>}, {pipeline_mode = #tpu.pipeline_mode<synchronous>, transform_indices = @transform_6, window_bounds = array<i64: 1, 384>}, {transform_indices = @transform_7, window_bounds = array<i64: 8, 8, 128>}]} {
    %c0 = arith.constant 0 : index
    %c0_0 = arith.constant 0 : index
    %c0_1 = arith.constant 0 : index
    %0 = vector.load %arg1[%c0, %c0_0, %c0_1] : memref<8x8x128xbf16, #tpu.memory_space<vmem>>, vector<8x8x128xbf16>
    %1 = vector.shape_cast %0 : vector<8x8x128xbf16> to vector<64x128xbf16>
    %c0_2 = arith.constant 0 : index
    %c0_3 = arith.constant 0 : index
    %2 = vector.load %arg4[%c0_2, %c0_3] : memref<128x384xbf16, #tpu.memory_space<vmem>>, vector<128x384xbf16>
    %cst = arith.constant dense<0.000000e+00> : vector<64x384xf32>
    %3 = tpu.matmul %1, %2, %cst {dimension_numbers = #tpu.dot_dimension_numbers<[1], [0], [0], [1], [0, 0, 1, 1], [], []>} : vector<64x128xbf16>, vector<128x384xbf16>, vector<64x384xf32> -> vector<64x384xf32>
    %c0_4 = arith.constant 0 : index
    %c0_5 = arith.constant 0 : index
    %4 = vector.load %arg5[%c0_4, %c0_5] : memref<1x384xf32, #tpu.memory_space<vmem>>, vector<1x384xf32>
    %5 = vector.broadcast %4 : vector<1x384xf32> to vector<64x384xf32>
    %6 = arith.addf %3, %5 : vector<64x384xf32>
    %7 = vector.shape_cast %6 : vector<64x384xf32> to vector<8x8x384xf32>
    %c0_6 = arith.constant 0 : index
    %c0_7 = arith.constant 0 : index
    %c0_8 = arith.constant 0 : index
    %8 = vector.load %arg9[%c0_6, %c0_7, %c0_8] : memref<8x8x384xf32, #tpu.memory_space<vmem>>, vector<8x8x384xf32>
    tpu.vector_store %arg9[%c0_6, %c0_7, %c0_8], %7 {strides = array<i32>} : memref<8x8x384xf32, #tpu.memory_space<vmem>>, vector<8x8x384xf32>,
    %c0_9 = arith.constant 0 : index
    %c0_10 = arith.constant 0 : index
    %9 = vector.load %arg6[%c0_9, %c0_10] : memref<128x384xbf16, #tpu.memory_space<vmem>>, vector<128x384xbf16>
    %c0_11 = arith.constant 0 : index
    %c0_12 = arith.constant 0 : index
    %10 = vector.load %arg7[%c0_11, %c0_12] : memref<1x384xf32, #tpu.memory_space<vmem>>, vector<1x384xf32>
    %c0_13 = arith.constant 0 : index
    %c0_14 = arith.constant 0 : index
    %11 = vector.load %arg2[%c0_13, %c0_14] : memref<8x1xi32, #tpu.memory_space<vmem>>, vector<8x1xi32>
    %c0_15 = arith.constant 0 : index
    %c0_16 = arith.constant 0 : index
    %12 = vector.load %arg3[%c0_15, %c0_16] : memref<8x128xf32, #tpu.memory_space<vmem>>, vector<8x128xf32>
    %c0_17 = arith.constant 0 : index
    %c0_18 = arith.constant 0 : index
    %c0_19 = arith.constant 0 : index
    %13 = vector.load %arg9[%c0_17, %c0_18, %c0_19] : memref<8x8x384xf32, #tpu.memory_space<vmem>>, vector<1x8x384xf32>
    %14 = vector.shape_cast %13 : vector<1x8x384xf32> to vector<8x384xf32>
    %15 = arith.truncf %12 : vector<8x128xf32> to vector<8x128xbf16>
    %cst_20 = arith.constant dense<0.000000e+00> : vector<8x384xf32>
    %16 = tpu.matmul %15, %9, %cst_20 {dimension_numbers = #tpu.dot_dimension_numbers<[1], [0], [0], [1], [0, 0, 1, 1], [], []>} : vector<8x128xbf16>, vector<128x384xbf16>, vector<8x384xf32> -> vector<8x384xf32>
    %17 = vector.broadcast %10 : vector<1x384xf32> to vector<8x384xf32>
    %18 = arith.addf %16, %17 : vector<8x384xf32>
    %19 = vector.extract_strided_slice %14 {offsets = [0, 0], sizes = [8, 128], strides = [1, 1]} : vector<8x384xf32> to vector<8x128xf32>
    %20 = vector.extract_strided_slice %18 {offsets = [0, 0], sizes = [8, 128], strides = [1, 1]} : vector<8x384xf32> to vector<8x128xf32>
    %21 = arith.addf %19, %20 : vector<8x128xf32>
    %22 = arith.negf %21 : vector<8x128xf32>
    %23 = math.exp %22 : vector<8x128xf32>
    %cst_21 = arith.constant 1.000000e+00 : f32
    %24 = vector.broadcast %cst_21 : f32 to vector<8x128xf32>
    %25 = arith.addf %24, %23 : vector<8x128xf32>
    %26 = arith.divf %24, %25 : vector<8x128xf32>
    %27 = vector.extract_strided_slice %14 {offsets = [0, 128], sizes = [8, 128], strides = [1, 1]} : vector<8x384xf32> to vector<8x128xf32>
    %28 = vector.extract_strided_slice %18 {offsets = [0, 128], sizes = [8, 128], strides = [1, 1]} : vector<8x384xf32> to vector<8x128xf32>
    %29 = arith.addf %27, %28 : vector<8x128xf32>
    %30 = arith.negf %29 : vector<8x128xf32>
    %31 = math.exp %30 : vector<8x128xf32>
    %cst_22 = arith.constant 1.000000e+00 : f32
    %32 = vector.broadcast %cst_22 : f32 to vector<8x128xf32>
    %33 = arith.addf %32, %31 : vector<8x128xf32>
    %34 = arith.divf %32, %33 : vector<8x128xf32>
    %35 = vector.extract_strided_slice %14 {offsets = [0, 256], sizes = [8, 128], strides = [1, 1]} : vector<8x384xf32> to vector<8x128xf32>
    %36 = vector.extract_strided_slice %18 {offsets = [0, 256], sizes = [8, 128], strides = [1, 1]} : vector<8x384xf32> to vector<8x128xf32>
    %37 = arith.mulf %26, %36 : vector<8x128xf32>
    %38 = arith.addf %35, %37 : vector<8x128xf32>
    %39 = math.tanh %38 : vector<8x128xf32>
    %cst_23 = arith.constant 1.000000e+00 : f32
    %40 = vector.broadcast %cst_23 : f32 to vector<8x128xf32>
    %41 = arith.subf %40, %34 : vector<8x128xf32>
    %42 = arith.mulf %41, %39 : vector<8x128xf32>
    %43 = arith.mulf %34, %12 : vector<8x128xf32>
    %44 = arith.addf %42, %43 : vector<8x128xf32>
    %c0_i32 = arith.constant 0 : i32
    %45 = vector.broadcast %c0_i32 : i32 to vector<8x1xi32>
    %46 = arith.cmpi sgt, %11, %45 : vector<8x1xi32>
    %47 = vector.shape_cast %46 : vector<8x1xi1> to vector<8x1xi1>
    %48 = vector.broadcast %47 : vector<8x1xi1> to vector<8x128xi1>
    %49 = arith.select %48, %44, %12 : vector<8x128xi1>, vector<8x128xf32>
    %c0_24 = arith.constant 0 : index
    %c0_25 = arith.constant 0 : index
    %c0_26 = arith.constant 0 : index
    %50 = vector.load %arg8[%c0_24, %c0_25, %c0_26] : memref<8x8x128xf32, #tpu.memory_space<vmem>>, vector<1x8x128xf32>
    %51 = vector.shape_cast %50 : vector<1x8x128xf32> to vector<8x128xf32>
    %52 = vector.shape_cast %49 : vector<8x128xf32> to vector<1x8x128xf32>
    tpu.vector_store %arg8[%c0_24, %c0_25, %c0_26], %52 {strides = array<i32>} : memref<8x8x128xf32, #tpu.memory_space<vmem>>, vector<1x8x128xf32>,
    %c1 = arith.constant 1 : index
    %c0_27 = arith.constant 0 : index
    %c0_28 = arith.constant 0 : index
    %53 = vector.load %arg9[%c1, %c0_27, %c0_28] : memref<8x8x384xf32, #tpu.memory_space<vmem>>, vector<1x8x384xf32>
    %54 = vector.shape_cast %53 : vector<1x8x384xf32> to vector<8x384xf32>
    %55 = arith.truncf %49 : vector<8x128xf32> to vector<8x128xbf16>
    %cst_29 = arith.constant dense<0.000000e+00> : vector<8x384xf32>
    %56 = tpu.matmul %55, %9, %cst_29 {dimension_numbers = #tpu.dot_dimension_numbers<[1], [0], [0], [1], [0, 0, 1, 1], [], []>} : vector<8x128xbf16>, vector<128x384xbf16>, vector<8x384xf32> -> vector<8x384xf32>
    %57 = vector.broadcast %10 : vector<1x384xf32> to vector<8x384xf32>
    %58 = arith.addf %56, %57 : vector<8x384xf32>
    %59 = vector.extract_strided_slice %54 {offsets = [0, 0], sizes = [8, 128], strides = [1, 1]} : vector<8x384xf32> to vector<8x128xf32>
    %60 = vector.extract_strided_slice %58 {offsets = [0, 0], sizes = [8, 128], strides = [1, 1]} : vector<8x384xf32> to vector<8x128xf32>
    %61 = arith.addf %59, %60 : vector<8x128xf32>
    %62 = arith.negf %61 : vector<8x128xf32>
    %63 = math.exp %62 : vector<8x128xf32>
    %cst_30 = arith.constant 1.000000e+00 : f32
    %64 = vector.broadcast %cst_30 : f32 to vector<8x128xf32>
    %65 = arith.addf %64, %63 : vector<8x128xf32>
    %66 = arith.divf %64, %65 : vector<8x128xf32>
    %67 = vector.extract_strided_slice %54 {offsets = [0, 128], sizes = [8, 128], strides = [1, 1]} : vector<8x384xf32> to vector<8x128xf32>
    %68 = vector.extract_strided_slice %58 {offsets = [0, 128], sizes = [8, 128], strides = [1, 1]} : vector<8x384xf32> to vector<8x128xf32>
    %69 = arith.addf %67, %68 : vector<8x128xf32>
    %70 = arith.negf %69 : vector<8x128xf32>
    %71 = math.exp %70 : vector<8x128xf32>
    %cst_31 = arith.constant 1.000000e+00 : f32
    %72 = vector.broadcast %cst_31 : f32 to vector<8x128xf32>
    %73 = arith.addf %72, %71 : vector<8x128xf32>
    %74 = arith.divf %72, %73 : vector<8x128xf32>
    %75 = vector.extract_strided_slice %54 {offsets = [0, 256], sizes = [8, 128], strides = [1, 1]} : vector<8x384xf32> to vector<8x128xf32>
    %76 = vector.extract_strided_slice %58 {offsets = [0, 256], sizes = [8, 128], strides = [1, 1]} : vector<8x384xf32> to vector<8x128xf32>
    %77 = arith.mulf %66, %76 : vector<8x128xf32>
    %78 = arith.addf %75, %77 : vector<8x128xf32>
    %79 = math.tanh %78 : vector<8x128xf32>
    %cst_32 = arith.constant 1.000000e+00 : f32
    %80 = vector.broadcast %cst_32 : f32 to vector<8x128xf32>
    %81 = arith.subf %80, %74 : vector<8x128xf32>
    %82 = arith.mulf %81, %79 : vector<8x128xf32>
    %83 = arith.mulf %74, %49 : vector<8x128xf32>
    %84 = arith.addf %82, %83 : vector<8x128xf32>
    %c1_i32 = arith.constant 1 : i32
    %85 = vector.broadcast %c1_i32 : i32 to vector<8x1xi32>
    %86 = arith.cmpi sgt, %11, %85 : vector<8x1xi32>
    %87 = vector.shape_cast %86 : vector<8x1xi1> to vector<8x1xi1>
    %88 = vector.broadcast %87 : vector<8x1xi1> to vector<8x128xi1>
    %89 = arith.select %88, %84, %49 : vector<8x128xi1>, vector<8x128xf32>
    %c1_33 = arith.constant 1 : index
    %c0_34 = arith.constant 0 : index
    %c0_35 = arith.constant 0 : index
    %90 = vector.load %arg8[%c1_33, %c0_34, %c0_35] : memref<8x8x128xf32, #tpu.memory_space<vmem>>, vector<1x8x128xf32>
    %91 = vector.shape_cast %90 : vector<1x8x128xf32> to vector<8x128xf32>
    %92 = vector.shape_cast %89 : vector<8x128xf32> to vector<1x8x128xf32>
    tpu.vector_store %arg8[%c1_33, %c0_34, %c0_35], %92 {strides = array<i32>} : memref<8x8x128xf32, #tpu.memory_space<vmem>>, vector<1x8x128xf32>,
    %c2 = arith.constant 2 : index
    %c0_36 = arith.constant 0 : index
    %c0_37 = arith.constant 0 : index
    %93 = vector.load %arg9[%c2, %c0_36, %c0_37] : memref<8x8x384xf32, #tpu.memory_space<vmem>>, vector<1x8x384xf32>
    %94 = vector.shape_cast %93 : vector<1x8x384xf32> to vector<8x384xf32>
    %95 = arith.truncf %89 : vector<8x128xf32> to vector<8x128xbf16>
    %cst_38 = arith.constant dense<0.000000e+00> : vector<8x384xf32>
    %96 = tpu.matmul %95, %9, %cst_38 {dimension_numbers = #tpu.dot_dimension_numbers<[1], [0], [0], [1], [0, 0, 1, 1], [], []>} : vector<8x128xbf16>, vector<128x384xbf16>, vector<8x384xf32> -> vector<8x384xf32>
    %97 = vector.broadcast %10 : vector<1x384xf32> to vector<8x384xf32>
    %98 = arith.addf %96, %97 : vector<8x384xf32>
    %99 = vector.extract_strided_slice %94 {offsets = [0, 0], sizes = [8, 128], strides = [1, 1]} : vector<8x384xf32> to vector<8x128xf32>
    %100 = vector.extract_strided_slice %98 {offsets = [0, 0], sizes = [8, 128], strides = [1, 1]} : vector<8x384xf32> to vector<8x128xf32>
    %101 = arith.addf %99, %100 : vector<8x128xf32>
    %102 = arith.negf %101 : vector<8x128xf32>
    %103 = math.exp %102 : vector<8x128xf32>
    %cst_39 = arith.constant 1.000000e+00 : f32
    %104 = vector.broadcast %cst_39 : f32 to vector<8x128xf32>
    %105 = arith.addf %104, %103 : vector<8x128xf32>
    %106 = arith.divf %104, %105 : vector<8x128xf32>
    %107 = vector.extract_strided_slice %94 {offsets = [0, 128], sizes = [8, 128], strides = [1, 1]} : vector<8x384xf32> to vector<8x128xf32>
    %108 = vector.extract_strided_slice %98 {offsets = [0, 128], sizes = [8, 128], strides = [1, 1]} : vector<8x384xf32> to vector<8x128xf32>
    %109 = arith.addf %107, %108 : vector<8x128xf32>
    %110 = arith.negf %109 : vector<8x128xf32>
    %111 = math.exp %110 : vector<8x128xf32>
    %cst_40 = arith.constant 1.000000e+00 : f32
    %112 = vector.broadcast %cst_40 : f32 to vector<8x128xf32>
    %113 = arith.addf %112, %111 : vector<8x128xf32>
    %114 = arith.divf %112, %113 : vector<8x128xf32>
    %115 = vector.extract_strided_slice %94 {offsets = [0, 256], sizes = [8, 128], strides = [1, 1]} : vector<8x384xf32> to vector<8x128xf32>
    %116 = vector.extract_strided_slice %98 {offsets = [0, 256], sizes = [8, 128], strides = [1, 1]} : vector<8x384xf32> to vector<8x128xf32>
    %117 = arith.mulf %106, %116 : vector<8x128xf32>
    %118 = arith.addf %115, %117 : vector<8x128xf32>
    %119 = math.tanh %118 : vector<8x128xf32>
    %cst_41 = arith.constant 1.000000e+00 : f32
    %120 = vector.broadcast %cst_41 : f32 to vector<8x128xf32>
    %121 = arith.subf %120, %114 : vector<8x128xf32>
    %122 = arith.mulf %121, %119 : vector<8x128xf32>
    %123 = arith.mulf %114, %89 : vector<8x128xf32>
    %124 = arith.addf %122, %123 : vector<8x128xf32>
    %c2_i32 = arith.constant 2 : i32
    %125 = vector.broadcast %c2_i32 : i32 to vector<8x1xi32>
    %126 = arith.cmpi sgt, %11, %125 : vector<8x1xi32>
    %127 = vector.shape_cast %126 : vector<8x1xi1> to vector<8x1xi1>
    %128 = vector.broadcast %127 : vector<8x1xi1> to vector<8x128xi1>
    %129 = arith.select %128, %124, %89 : vector<8x128xi1>, vector<8x128xf32>
    %c2_42 = arith.constant 2 : index
    %c0_43 = arith.constant 0 : index
    %c0_44 = arith.constant 0 : index
    %130 = vector.load %arg8[%c2_42, %c0_43, %c0_44] : memref<8x8x128xf32, #tpu.memory_space<vmem>>, vector<1x8x128xf32>
    %131 = vector.shape_cast %130 : vector<1x8x128xf32> to vector<8x128xf32>
    %132 = vector.shape_cast %129 : vector<8x128xf32> to vector<1x8x128xf32>
    tpu.vector_store %arg8[%c2_42, %c0_43, %c0_44], %132 {strides = array<i32>} : memref<8x8x128xf32, #tpu.memory_space<vmem>>, vector<1x8x128xf32>,
    %c3 = arith.constant 3 : index
    %c0_45 = arith.constant 0 : index
    %c0_46 = arith.constant 0 : index
    %133 = vector.load %arg9[%c3, %c0_45, %c0_46] : memref<8x8x384xf32, #tpu.memory_space<vmem>>, vector<1x8x384xf32>
    %134 = vector.shape_cast %133 : vector<1x8x384xf32> to vector<8x384xf32>
    %135 = arith.truncf %129 : vector<8x128xf32> to vector<8x128xbf16>
    %cst_47 = arith.constant dense<0.000000e+00> : vector<8x384xf32>
    %136 = tpu.matmul %135, %9, %cst_47 {dimension_numbers = #tpu.dot_dimension_numbers<[1], [0], [0], [1], [0, 0, 1, 1], [], []>} : vector<8x128xbf16>, vector<128x384xbf16>, vector<8x384xf32> -> vector<8x384xf32>
    %137 = vector.broadcast %10 : vector<1x384xf32> to vector<8x384xf32>
    %138 = arith.addf %136, %137 : vector<8x384xf32>
    %139 = vector.extract_strided_slice %134 {offsets = [0, 0], sizes = [8, 128], strides = [1, 1]} : vector<8x384xf32> to vector<8x128xf32>
    %140 = vector.extract_strided_slice %138 {offsets = [0, 0], sizes = [8, 128], strides = [1, 1]} : vector<8x384xf32> to vector<8x128xf32>
    %141 = arith.addf %139, %140 : vector<8x128xf32>
    %142 = arith.negf %141 : vector<8x128xf32>
    %143 = math.exp %142 : vector<8x128xf32>
    %cst_48 = arith.constant 1.000000e+00 : f32
    %144 = vector.broadcast %cst_48 : f32 to vector<8x128xf32>
    %145 = arith.addf %144, %143 : vector<8x128xf32>
    %146 = arith.divf %144, %145 : vector<8x128xf32>
    %147 = vector.extract_strided_slice %134 {offsets = [0, 128], sizes = [8, 128], strides = [1, 1]} : vector<8x384xf32> to vector<8x128xf32>
    %148 = vector.extract_strided_slice %138 {offsets = [0, 128], sizes = [8, 128], strides = [1, 1]} : vector<8x384xf32> to vector<8x128xf32>
    %149 = arith.addf %147, %148 : vector<8x128xf32>
    %150 = arith.negf %149 : vector<8x128xf32>
    %151 = math.exp %150 : vector<8x128xf32>
    %cst_49 = arith.constant 1.000000e+00 : f32
    %152 = vector.broadcast %cst_49 : f32 to vector<8x128xf32>
    %153 = arith.addf %152, %151 : vector<8x128xf32>
    %154 = arith.divf %152, %153 : vector<8x128xf32>
    %155 = vector.extract_strided_slice %134 {offsets = [0, 256], sizes = [8, 128], strides = [1, 1]} : vector<8x384xf32> to vector<8x128xf32>
    %156 = vector.extract_strided_slice %138 {offsets = [0, 256], sizes = [8, 128], strides = [1, 1]} : vector<8x384xf32> to vector<8x128xf32>
    %157 = arith.mulf %146, %156 : vector<8x128xf32>
    %158 = arith.addf %155, %157 : vector<8x128xf32>
    %159 = math.tanh %158 : vector<8x128xf32>
    %cst_50 = arith.constant 1.000000e+00 : f32
    %160 = vector.broadcast %cst_50 : f32 to vector<8x128xf32>
    %161 = arith.subf %160, %154 : vector<8x128xf32>
    %162 = arith.mulf %161, %159 : vector<8x128xf32>
    %163 = arith.mulf %154, %129 : vector<8x128xf32>
    %164 = arith.addf %162, %163 : vector<8x128xf32>
    %c3_i32 = arith.constant 3 : i32
    %165 = vector.broadcast %c3_i32 : i32 to vector<8x1xi32>
    %166 = arith.cmpi sgt, %11, %165 : vector<8x1xi32>
    %167 = vector.shape_cast %166 : vector<8x1xi1> to vector<8x1xi1>
    %168 = vector.broadcast %167 : vector<8x1xi1> to vector<8x128xi1>
    %169 = arith.select %168, %164, %129 : vector<8x128xi1>, vector<8x128xf32>
    %c3_51 = arith.constant 3 : index
    %c0_52 = arith.constant 0 : index
    %c0_53 = arith.constant 0 : index
    %170 = vector.load %arg8[%c3_51, %c0_52, %c0_53] : memref<8x8x128xf32, #tpu.memory_space<vmem>>, vector<1x8x128xf32>
    %171 = vector.shape_cast %170 : vector<1x8x128xf32> to vector<8x128xf32>
    %172 = vector.shape_cast %169 : vector<8x128xf32> to vector<1x8x128xf32>
    tpu.vector_store %arg8[%c3_51, %c0_52, %c0_53], %172 {strides = array<i32>} : memref<8x8x128xf32, #tpu.memory_space<vmem>>, vector<1x8x128xf32>,
    %c4 = arith.constant 4 : index
    %c0_54 = arith.constant 0 : index
    %c0_55 = arith.constant 0 : index
    %173 = vector.load %arg9[%c4, %c0_54, %c0_55] : memref<8x8x384xf32, #tpu.memory_space<vmem>>, vector<1x8x384xf32>
    %174 = vector.shape_cast %173 : vector<1x8x384xf32> to vector<8x384xf32>
    %175 = arith.truncf %169 : vector<8x128xf32> to vector<8x128xbf16>
    %cst_56 = arith.constant dense<0.000000e+00> : vector<8x384xf32>
    %176 = tpu.matmul %175, %9, %cst_56 {dimension_numbers = #tpu.dot_dimension_numbers<[1], [0], [0], [1], [0, 0, 1, 1], [], []>} : vector<8x128xbf16>, vector<128x384xbf16>, vector<8x384xf32> -> vector<8x384xf32>
    %177 = vector.broadcast %10 : vector<1x384xf32> to vector<8x384xf32>
    %178 = arith.addf %176, %177 : vector<8x384xf32>
    %179 = vector.extract_strided_slice %174 {offsets = [0, 0], sizes = [8, 128], strides = [1, 1]} : vector<8x384xf32> to vector<8x128xf32>
    %180 = vector.extract_strided_slice %178 {offsets = [0, 0], sizes = [8, 128], strides = [1, 1]} : vector<8x384xf32> to vector<8x128xf32>
    %181 = arith.addf %179, %180 : vector<8x128xf32>
    %182 = arith.negf %181 : vector<8x128xf32>
    %183 = math.exp %182 : vector<8x128xf32>
    %cst_57 = arith.constant 1.000000e+00 : f32
    %184 = vector.broadcast %cst_57 : f32 to vector<8x128xf32>
    %185 = arith.addf %184, %183 : vector<8x128xf32>
    %186 = arith.divf %184, %185 : vector<8x128xf32>
    %187 = vector.extract_strided_slice %174 {offsets = [0, 128], sizes = [8, 128], strides = [1, 1]} : vector<8x384xf32> to vector<8x128xf32>
    %188 = vector.extract_strided_slice %178 {offsets = [0, 128], sizes = [8, 128], strides = [1, 1]} : vector<8x384xf32> to vector<8x128xf32>
    %189 = arith.addf %187, %188 : vector<8x128xf32>
    %190 = arith.negf %189 : vector<8x128xf32>
    %191 = math.exp %190 : vector<8x128xf32>
    %cst_58 = arith.constant 1.000000e+00 : f32
    %192 = vector.broadcast %cst_58 : f32 to vector<8x128xf32>
    %193 = arith.addf %192, %191 : vector<8x128xf32>
    %194 = arith.divf %192, %193 : vector<8x128xf32>
    %195 = vector.extract_strided_slice %174 {offsets = [0, 256], sizes = [8, 128], strides = [1, 1]} : vector<8x384xf32> to vector<8x128xf32>
    %196 = vector.extract_strided_slice %178 {offsets = [0, 256], sizes = [8, 128], strides = [1, 1]} : vector<8x384xf32> to vector<8x128xf32>
    %197 = arith.mulf %186, %196 : vector<8x128xf32>
    %198 = arith.addf %195, %197 : vector<8x128xf32>
    %199 = math.tanh %198 : vector<8x128xf32>
    %cst_59 = arith.constant 1.000000e+00 : f32
    %200 = vector.broadcast %cst_59 : f32 to vector<8x128xf32>
    %201 = arith.subf %200, %194 : vector<8x128xf32>
    %202 = arith.mulf %201, %199 : vector<8x128xf32>
    %203 = arith.mulf %194, %169 : vector<8x128xf32>
    %204 = arith.addf %202, %203 : vector<8x128xf32>
    %c4_i32 = arith.constant 4 : i32
    %205 = vector.broadcast %c4_i32 : i32 to vector<8x1xi32>
    %206 = arith.cmpi sgt, %11, %205 : vector<8x1xi32>
    %207 = vector.shape_cast %206 : vector<8x1xi1> to vector<8x1xi1>
    %208 = vector.broadcast %207 : vector<8x1xi1> to vector<8x128xi1>
    %209 = arith.select %208, %204, %169 : vector<8x128xi1>, vector<8x128xf32>
    %c4_60 = arith.constant 4 : index
    %c0_61 = arith.constant 0 : index
    %c0_62 = arith.constant 0 : index
    %210 = vector.load %arg8[%c4_60, %c0_61, %c0_62] : memref<8x8x128xf32, #tpu.memory_space<vmem>>, vector<1x8x128xf32>
    %211 = vector.shape_cast %210 : vector<1x8x128xf32> to vector<8x128xf32>
    %212 = vector.shape_cast %209 : vector<8x128xf32> to vector<1x8x128xf32>
    tpu.vector_store %arg8[%c4_60, %c0_61, %c0_62], %212 {strides = array<i32>} : memref<8x8x128xf32, #tpu.memory_space<vmem>>, vector<1x8x128xf32>,
    %c5 = arith.constant 5 : index
    %c0_63 = arith.constant 0 : index
    %c0_64 = arith.constant 0 : index
    %213 = vector.load %arg9[%c5, %c0_63, %c0_64] : memref<8x8x384xf32, #tpu.memory_space<vmem>>, vector<1x8x384xf32>
    %214 = vector.shape_cast %213 : vector<1x8x384xf32> to vector<8x384xf32>
    %215 = arith.truncf %209 : vector<8x128xf32> to vector<8x128xbf16>
    %cst_65 = arith.constant dense<0.000000e+00> : vector<8x384xf32>
    %216 = tpu.matmul %215, %9, %cst_65 {dimension_numbers = #tpu.dot_dimension_numbers<[1], [0], [0], [1], [0, 0, 1, 1], [], []>} : vector<8x128xbf16>, vector<128x384xbf16>, vector<8x384xf32> -> vector<8x384xf32>
    %217 = vector.broadcast %10 : vector<1x384xf32> to vector<8x384xf32>
    %218 = arith.addf %216, %217 : vector<8x384xf32>
    %219 = vector.extract_strided_slice %214 {offsets = [0, 0], sizes = [8, 128], strides = [1, 1]} : vector<8x384xf32> to vector<8x128xf32>
    %220 = vector.extract_strided_slice %218 {offsets = [0, 0], sizes = [8, 128], strides = [1, 1]} : vector<8x384xf32> to vector<8x128xf32>
    %221 = arith.addf %219, %220 : vector<8x128xf32>
    %222 = arith.negf %221 : vector<8x128xf32>
    %223 = math.exp %222 : vector<8x128xf32>
    %cst_66 = arith.constant 1.000000e+00 : f32
    %224 = vector.broadcast %cst_66 : f32 to vector<8x128xf32>
    %225 = arith.addf %224, %223 : vector<8x128xf32>
    %226 = arith.divf %224, %225 : vector<8x128xf32>
    %227 = vector.extract_strided_slice %214 {offsets = [0, 128], sizes = [8, 128], strides = [1, 1]} : vector<8x384xf32> to vector<8x128xf32>
    %228 = vector.extract_strided_slice %218 {offsets = [0, 128], sizes = [8, 128], strides = [1, 1]} : vector<8x384xf32> to vector<8x128xf32>
    %229 = arith.addf %227, %228 : vector<8x128xf32>
    %230 = arith.negf %229 : vector<8x128xf32>
    %231 = math.exp %230 : vector<8x128xf32>
    %cst_67 = arith.constant 1.000000e+00 : f32
    %232 = vector.broadcast %cst_67 : f32 to vector<8x128xf32>
    %233 = arith.addf %232, %231 : vector<8x128xf32>
    %234 = arith.divf %232, %233 : vector<8x128xf32>
    %235 = vector.extract_strided_slice %214 {offsets = [0, 256], sizes = [8, 128], strides = [1, 1]} : vector<8x384xf32> to vector<8x128xf32>
    %236 = vector.extract_strided_slice %218 {offsets = [0, 256], sizes = [8, 128], strides = [1, 1]} : vector<8x384xf32> to vector<8x128xf32>
    %237 = arith.mulf %226, %236 : vector<8x128xf32>
    %238 = arith.addf %235, %237 : vector<8x128xf32>
    %239 = math.tanh %238 : vector<8x128xf32>
    %cst_68 = arith.constant 1.000000e+00 : f32
    %240 = vector.broadcast %cst_68 : f32 to vector<8x128xf32>
    %241 = arith.subf %240, %234 : vector<8x128xf32>
    %242 = arith.mulf %241, %239 : vector<8x128xf32>
    %243 = arith.mulf %234, %209 : vector<8x128xf32>
    %244 = arith.addf %242, %243 : vector<8x128xf32>
    %c5_i32 = arith.constant 5 : i32
    %245 = vector.broadcast %c5_i32 : i32 to vector<8x1xi32>
    %246 = arith.cmpi sgt, %11, %245 : vector<8x1xi32>
    %247 = vector.shape_cast %246 : vector<8x1xi1> to vector<8x1xi1>
    %248 = vector.broadcast %247 : vector<8x1xi1> to vector<8x128xi1>
    %249 = arith.select %248, %244, %209 : vector<8x128xi1>, vector<8x128xf32>
    %c5_69 = arith.constant 5 : index
    %c0_70 = arith.constant 0 : index
    %c0_71 = arith.constant 0 : index
    %250 = vector.load %arg8[%c5_69, %c0_70, %c0_71] : memref<8x8x128xf32, #tpu.memory_space<vmem>>, vector<1x8x128xf32>
    %251 = vector.shape_cast %250 : vector<1x8x128xf32> to vector<8x128xf32>
    %252 = vector.shape_cast %249 : vector<8x128xf32> to vector<1x8x128xf32>
    tpu.vector_store %arg8[%c5_69, %c0_70, %c0_71], %252 {strides = array<i32>} : memref<8x8x128xf32, #tpu.memory_space<vmem>>, vector<1x8x128xf32>,
    %c6 = arith.constant 6 : index
    %c0_72 = arith.constant 0 : index
    %c0_73 = arith.constant 0 : index
    %253 = vector.load %arg9[%c6, %c0_72, %c0_73] : memref<8x8x384xf32, #tpu.memory_space<vmem>>, vector<1x8x384xf32>
    %254 = vector.shape_cast %253 : vector<1x8x384xf32> to vector<8x384xf32>
    %255 = arith.truncf %249 : vector<8x128xf32> to vector<8x128xbf16>
    %cst_74 = arith.constant dense<0.000000e+00> : vector<8x384xf32>
    %256 = tpu.matmul %255, %9, %cst_74 {dimension_numbers = #tpu.dot_dimension_numbers<[1], [0], [0], [1], [0, 0, 1, 1], [], []>} : vector<8x128xbf16>, vector<128x384xbf16>, vector<8x384xf32> -> vector<8x384xf32>
    %257 = vector.broadcast %10 : vector<1x384xf32> to vector<8x384xf32>
    %258 = arith.addf %256, %257 : vector<8x384xf32>
    %259 = vector.extract_strided_slice %254 {offsets = [0, 0], sizes = [8, 128], strides = [1, 1]} : vector<8x384xf32> to vector<8x128xf32>
    %260 = vector.extract_strided_slice %258 {offsets = [0, 0], sizes = [8, 128], strides = [1, 1]} : vector<8x384xf32> to vector<8x128xf32>
    %261 = arith.addf %259, %260 : vector<8x128xf32>
    %262 = arith.negf %261 : vector<8x128xf32>
    %263 = math.exp %262 : vector<8x128xf32>
    %cst_75 = arith.constant 1.000000e+00 : f32
    %264 = vector.broadcast %cst_75 : f32 to vector<8x128xf32>
    %265 = arith.addf %264, %263 : vector<8x128xf32>
    %266 = arith.divf %264, %265 : vector<8x128xf32>
    %267 = vector.extract_strided_slice %254 {offsets = [0, 128], sizes = [8, 128], strides = [1, 1]} : vector<8x384xf32> to vector<8x128xf32>
    %268 = vector.extract_strided_slice %258 {offsets = [0, 128], sizes = [8, 128], strides = [1, 1]} : vector<8x384xf32> to vector<8x128xf32>
    %269 = arith.addf %267, %268 : vector<8x128xf32>
    %270 = arith.negf %269 : vector<8x128xf32>
    %271 = math.exp %270 : vector<8x128xf32>
    %cst_76 = arith.constant 1.000000e+00 : f32
    %272 = vector.broadcast %cst_76 : f32 to vector<8x128xf32>
    %273 = arith.addf %272, %271 : vector<8x128xf32>
    %274 = arith.divf %272, %273 : vector<8x128xf32>
    %275 = vector.extract_strided_slice %254 {offsets = [0, 256], sizes = [8, 128], strides = [1, 1]} : vector<8x384xf32> to vector<8x128xf32>
    %276 = vector.extract_strided_slice %258 {offsets = [0, 256], sizes = [8, 128], strides = [1, 1]} : vector<8x384xf32> to vector<8x128xf32>
    %277 = arith.mulf %266, %276 : vector<8x128xf32>
    %278 = arith.addf %275, %277 : vector<8x128xf32>
    %279 = math.tanh %278 : vector<8x128xf32>
    %cst_77 = arith.constant 1.000000e+00 : f32
    %280 = vector.broadcast %cst_77 : f32 to vector<8x128xf32>
    %281 = arith.subf %280, %274 : vector<8x128xf32>
    %282 = arith.mulf %281, %279 : vector<8x128xf32>
    %283 = arith.mulf %274, %249 : vector<8x128xf32>
    %284 = arith.addf %282, %283 : vector<8x128xf32>
    %c6_i32 = arith.constant 6 : i32
    %285 = vector.broadcast %c6_i32 : i32 to vector<8x1xi32>
    %286 = arith.cmpi sgt, %11, %285 : vector<8x1xi32>
    %287 = vector.shape_cast %286 : vector<8x1xi1> to vector<8x1xi1>
    %288 = vector.broadcast %287 : vector<8x1xi1> to vector<8x128xi1>
    %289 = arith.select %288, %284, %249 : vector<8x128xi1>, vector<8x128xf32>
    %c6_78 = arith.constant 6 : index
    %c0_79 = arith.constant 0 : index
    %c0_80 = arith.constant 0 : index
    %290 = vector.load %arg8[%c6_78, %c0_79, %c0_80] : memref<8x8x128xf32, #tpu.memory_space<vmem>>, vector<1x8x128xf32>
    %291 = vector.shape_cast %290 : vector<1x8x128xf32> to vector<8x128xf32>
    %292 = vector.shape_cast %289 : vector<8x128xf32> to vector<1x8x128xf32>
    tpu.vector_store %arg8[%c6_78, %c0_79, %c0_80], %292 {strides = array<i32>} : memref<8x8x128xf32, #tpu.memory_space<vmem>>, vector<1x8x128xf32>,
    %c7 = arith.constant 7 : index
    %c0_81 = arith.constant 0 : index
    %c0_82 = arith.constant 0 : index
    %293 = vector.load %arg9[%c7, %c0_81, %c0_82] : memref<8x8x384xf32, #tpu.memory_space<vmem>>, vector<1x8x384xf32>
    %294 = vector.shape_cast %293 : vector<1x8x384xf32> to vector<8x384xf32>
    %295 = arith.truncf %289 : vector<8x128xf32> to vector<8x128xbf16>
    %cst_83 = arith.constant dense<0.000000e+00> : vector<8x384xf32>
    %296 = tpu.matmul %295, %9, %cst_83 {dimension_numbers = #tpu.dot_dimension_numbers<[1], [0], [0], [1], [0, 0, 1, 1], [], []>} : vector<8x128xbf16>, vector<128x384xbf16>, vector<8x384xf32> -> vector<8x384xf32>
    %297 = vector.broadcast %10 : vector<1x384xf32> to vector<8x384xf32>
    %298 = arith.addf %296, %297 : vector<8x384xf32>
    %299 = vector.extract_strided_slice %294 {offsets = [0, 0], sizes = [8, 128], strides = [1, 1]} : vector<8x384xf32> to vector<8x128xf32>
    %300 = vector.extract_strided_slice %298 {offsets = [0, 0], sizes = [8, 128], strides = [1, 1]} : vector<8x384xf32> to vector<8x128xf32>
    %301 = arith.addf %299, %300 : vector<8x128xf32>
    %302 = arith.negf %301 : vector<8x128xf32>
    %303 = math.exp %302 : vector<8x128xf32>
    %cst_84 = arith.constant 1.000000e+00 : f32
    %304 = vector.broadcast %cst_84 : f32 to vector<8x128xf32>
    %305 = arith.addf %304, %303 : vector<8x128xf32>
    %306 = arith.divf %304, %305 : vector<8x128xf32>
    %307 = vector.extract_strided_slice %294 {offsets = [0, 128], sizes = [8, 128], strides = [1, 1]} : vector<8x384xf32> to vector<8x128xf32>
    %308 = vector.extract_strided_slice %298 {offsets = [0, 128], sizes = [8, 128], strides = [1, 1]} : vector<8x384xf32> to vector<8x128xf32>
    %309 = arith.addf %307, %308 : vector<8x128xf32>
    %310 = arith.negf %309 : vector<8x128xf32>
    %311 = math.exp %310 : vector<8x128xf32>
    %cst_85 = arith.constant 1.000000e+00 : f32
    %312 = vector.broadcast %cst_85 : f32 to vector<8x128xf32>
    %313 = arith.addf %312, %311 : vector<8x128xf32>
    %314 = arith.divf %312, %313 : vector<8x128xf32>
    %315 = vector.extract_strided_slice %294 {offsets = [0, 256], sizes = [8, 128], strides = [1, 1]} : vector<8x384xf32> to vector<8x128xf32>
    %316 = vector.extract_strided_slice %298 {offsets = [0, 256], sizes = [8, 128], strides = [1, 1]} : vector<8x384xf32> to vector<8x128xf32>
    %317 = arith.mulf %306, %316 : vector<8x128xf32>
    %318 = arith.addf %315, %317 : vector<8x128xf32>
    %319 = math.tanh %318 : vector<8x128xf32>
    %cst_86 = arith.constant 1.000000e+00 : f32
    %320 = vector.broadcast %cst_86 : f32 to vector<8x128xf32>
    %321 = arith.subf %320, %314 : vector<8x128xf32>
    %322 = arith.mulf %321, %319 : vector<8x128xf32>
    %323 = arith.mulf %314, %289 : vector<8x128xf32>
    %324 = arith.addf %322, %323 : vector<8x128xf32>
    %c7_i32 = arith.constant 7 : i32
    %325 = vector.broadcast %c7_i32 : i32 to vector<8x1xi32>
    %326 = arith.cmpi sgt, %11, %325 : vector<8x1xi32>
    %327 = vector.shape_cast %326 : vector<8x1xi1> to vector<8x1xi1>
    %328 = vector.broadcast %327 : vector<8x1xi1> to vector<8x128xi1>
    %329 = arith.select %328, %324, %289 : vector<8x128xi1>, vector<8x128xf32>
    %c7_87 = arith.constant 7 : index
    %c0_88 = arith.constant 0 : index
    %c0_89 = arith.constant 0 : index
    %330 = vector.load %arg8[%c7_87, %c0_88, %c0_89] : memref<8x8x128xf32, #tpu.memory_space<vmem>>, vector<1x8x128xf32>
    %331 = vector.shape_cast %330 : vector<1x8x128xf32> to vector<8x128xf32>
    %332 = vector.shape_cast %329 : vector<8x128xf32> to vector<1x8x128xf32>
    tpu.vector_store %arg8[%c7_87, %c0_88, %c0_89], %332 {strides = array<i32>} : memref<8x8x128xf32, #tpu.memory_space<vmem>>, vector<1x8x128xf32>,
    return
  }
  func.func @transform_0(%arg0: i32) -> (i32, i32, i32) {
    %c0_i32 = arith.constant 0 : i32
    %c0_i32_0 = arith.constant 0 : i32
    %c0_i32_1 = arith.constant 0 : i32
    return %c0_i32, %arg0, %c0_i32_0 : i32, i32, i32
  }
  func.func @transform_1(%arg0: i32) -> (i32, i32) {
    %c0_i32 = arith.constant 0 : i32
    %c0_i32_0 = arith.constant 0 : i32
    return %arg0, %c0_i32 : i32, i32
  }
  func.func @transform_2(%arg0: i32) -> (i32, i32) {
    %c0_i32 = arith.constant 0 : i32
    %c0_i32_0 = arith.constant 0 : i32
    return %arg0, %c0_i32 : i32, i32
  }
  func.func @transform_3(%arg0: i32) -> (i32, i32) {
    %c0_i32 = arith.constant 0 : i32
    %c0_i32_0 = arith.constant 0 : i32
    %c0_i32_1 = arith.constant 0 : i32
    return %c0_i32, %c0_i32_0 : i32, i32
  }
  func.func @transform_4(%arg0: i32) -> (i32, i32) {
    %c0_i32 = arith.constant 0 : i32
    %c0_i32_0 = arith.constant 0 : i32
    %c0_i32_1 = arith.constant 0 : i32
    return %c0_i32, %c0_i32_0 : i32, i32
  }
  func.func @transform_5(%arg0: i32) -> (i32, i32) {
    %c0_i32 = arith.constant 0 : i32
    %c0_i32_0 = arith.constant 0 : i32
    %c0_i32_1 = arith.constant 0 : i32
    return %c0_i32, %c0_i32_0 : i32, i32
  }
  func.func @transform_6(%arg0: i32) -> (i32, i32) {
    %c0_i32 = arith.constant 0 : i32
    %c0_i32_0 = arith.constant 0 : i32
    %c0_i32_1 = arith.constant 0 : i32
    return %c0_i32, %c0_i32_0 : i32, i32
  }
  func.func @transform_7(%arg0: i32) -> (i32, i32, i32) {
    %c0_i32 = arith.constant 0 : i32
    %c0_i32_0 = arith.constant 0 : i32
    %c0_i32_1 = arith.constant 0 : i32
    return %c0_i32, %arg0, %c0_i32_0 : i32, i32, i32
  }
}

module attributes {stable_mosaic.version = 11 : i64} {
  func.func @_gru_kernel(%arg0: i32, %arg1: memref<8x16x128xbf16, #tpu.memory_space<vmem>>, %arg2: memref<16x1xi32, #tpu.memory_space<vmem>>, %arg3: memref<16x128xf32, #tpu.memory_space<vmem>>, %arg4: memref<128x384xbf16, #tpu.memory_space<vmem>>, %arg5: memref<1x384xf32, #tpu.memory_space<vmem>>, %arg6: memref<128x384xbf16, #tpu.memory_space<vmem>>, %arg7: memref<1x384xf32, #tpu.memory_space<vmem>>, %arg8: memref<8x16x128xf32, #tpu.memory_space<vmem>>, %arg9: memref<8x16x384xf32, #tpu.memory_space<vmem>>) attributes {dimension_semantics = [#tpu.dimension_semantics<parallel>], iteration_bounds = array<i64: 1>, scalar_prefetch = 0 : i64, scratch_operands = 1 : i64, tpu.core_type = #tpu.core_type<tc>, window_params = [{transform_indices = @transform_0, window_bounds = array<i64: 8, 16, 128>}, {transform_indices = @transform_1, window_bounds = array<i64: 16, 1>}, {transform_indices = @transform_2, window_bounds = array<i64: 16, 128>}, {pipeline_mode = #tpu.pipeline_mode<synchronous>, transform_indices = @transform_3, window_bounds = array<i64: 128, 384>}, {pipeline_mode = #tpu.pipeline_mode<synchronous>, transform_indices = @transform_4, window_bounds = array<i64: 1, 384>}, {pipeline_mode = #tpu.pipeline_mode<synchronous>, transform_indices = @transform_5, window_bounds = array<i64: 128, 384>}, {pipeline_mode = #tpu.pipeline_mode<synchronous>, transform_indices = @transform_6, window_bounds = array<i64: 1, 384>}, {transform_indices = @transform_7, window_bounds = array<i64: 8, 16, 128>}]} {
    %c0 = arith.constant 0 : index
    %c0_0 = arith.constant 0 : index
    %c0_1 = arith.constant 0 : index
    %0 = vector.load %arg1[%c0, %c0_0, %c0_1] : memref<8x16x128xbf16, #tpu.memory_space<vmem>>, vector<8x16x128xbf16>
    %1 = vector.shape_cast %0 : vector<8x16x128xbf16> to vector<128x128xbf16>
    %c0_2 = arith.constant 0 : index
    %c0_3 = arith.constant 0 : index
    %2 = vector.load %arg4[%c0_2, %c0_3] : memref<128x384xbf16, #tpu.memory_space<vmem>>, vector<128x384xbf16>
    %cst = arith.constant dense<0.000000e+00> : vector<128x384xf32>
    %3 = tpu.matmul %1, %2, %cst {dimension_numbers = #tpu.dot_dimension_numbers<[1], [0], [0], [1], [0, 0, 1, 1], [], []>} : vector<128x128xbf16>, vector<128x384xbf16>, vector<128x384xf32> -> vector<128x384xf32>
    %c0_4 = arith.constant 0 : index
    %c0_5 = arith.constant 0 : index
    %4 = vector.load %arg5[%c0_4, %c0_5] : memref<1x384xf32, #tpu.memory_space<vmem>>, vector<1x384xf32>
    %5 = vector.broadcast %4 : vector<1x384xf32> to vector<128x384xf32>
    %6 = arith.addf %3, %5 : vector<128x384xf32>
    %7 = vector.shape_cast %6 : vector<128x384xf32> to vector<8x16x384xf32>
    %c0_6 = arith.constant 0 : index
    %c0_7 = arith.constant 0 : index
    %c0_8 = arith.constant 0 : index
    %8 = vector.load %arg9[%c0_6, %c0_7, %c0_8] : memref<8x16x384xf32, #tpu.memory_space<vmem>>, vector<8x16x384xf32>
    tpu.vector_store %arg9[%c0_6, %c0_7, %c0_8], %7 {strides = array<i32>} : memref<8x16x384xf32, #tpu.memory_space<vmem>>, vector<8x16x384xf32>,
    %c0_9 = arith.constant 0 : index
    %c0_10 = arith.constant 0 : index
    %9 = vector.load %arg6[%c0_9, %c0_10] : memref<128x384xbf16, #tpu.memory_space<vmem>>, vector<128x384xbf16>
    %c0_11 = arith.constant 0 : index
    %c0_12 = arith.constant 0 : index
    %10 = vector.load %arg7[%c0_11, %c0_12] : memref<1x384xf32, #tpu.memory_space<vmem>>, vector<1x384xf32>
    %c0_13 = arith.constant 0 : index
    %c0_14 = arith.constant 0 : index
    %11 = vector.load %arg2[%c0_13, %c0_14] : memref<16x1xi32, #tpu.memory_space<vmem>>, vector<16x1xi32>
    %c0_15 = arith.constant 0 : index
    %c0_16 = arith.constant 0 : index
    %12 = vector.load %arg3[%c0_15, %c0_16] : memref<16x128xf32, #tpu.memory_space<vmem>>, vector<16x128xf32>
    %c0_17 = arith.constant 0 : index
    %c0_18 = arith.constant 0 : index
    %c0_19 = arith.constant 0 : index
    %13 = vector.load %arg9[%c0_17, %c0_18, %c0_19] : memref<8x16x384xf32, #tpu.memory_space<vmem>>, vector<1x16x384xf32>
    %14 = vector.shape_cast %13 : vector<1x16x384xf32> to vector<16x384xf32>
    %15 = arith.truncf %12 : vector<16x128xf32> to vector<16x128xbf16>
    %cst_20 = arith.constant dense<0.000000e+00> : vector<16x384xf32>
    %16 = tpu.matmul %15, %9, %cst_20 {dimension_numbers = #tpu.dot_dimension_numbers<[1], [0], [0], [1], [0, 0, 1, 1], [], []>} : vector<16x128xbf16>, vector<128x384xbf16>, vector<16x384xf32> -> vector<16x384xf32>
    %17 = vector.broadcast %10 : vector<1x384xf32> to vector<16x384xf32>
    %18 = arith.addf %16, %17 : vector<16x384xf32>
    %19 = vector.extract_strided_slice %14 {offsets = [0, 0], sizes = [16, 128], strides = [1, 1]} : vector<16x384xf32> to vector<16x128xf32>
    %20 = vector.extract_strided_slice %18 {offsets = [0, 0], sizes = [16, 128], strides = [1, 1]} : vector<16x384xf32> to vector<16x128xf32>
    %21 = arith.addf %19, %20 : vector<16x128xf32>
    %22 = arith.negf %21 : vector<16x128xf32>
    %23 = math.exp %22 : vector<16x128xf32>
    %cst_21 = arith.constant 1.000000e+00 : f32
    %24 = vector.broadcast %cst_21 : f32 to vector<16x128xf32>
    %25 = arith.addf %24, %23 : vector<16x128xf32>
    %26 = arith.divf %24, %25 : vector<16x128xf32>
    %27 = vector.extract_strided_slice %14 {offsets = [0, 128], sizes = [16, 128], strides = [1, 1]} : vector<16x384xf32> to vector<16x128xf32>
    %28 = vector.extract_strided_slice %18 {offsets = [0, 128], sizes = [16, 128], strides = [1, 1]} : vector<16x384xf32> to vector<16x128xf32>
    %29 = arith.addf %27, %28 : vector<16x128xf32>
    %30 = arith.negf %29 : vector<16x128xf32>
    %31 = math.exp %30 : vector<16x128xf32>
    %cst_22 = arith.constant 1.000000e+00 : f32
    %32 = vector.broadcast %cst_22 : f32 to vector<16x128xf32>
    %33 = arith.addf %32, %31 : vector<16x128xf32>
    %34 = arith.divf %32, %33 : vector<16x128xf32>
    %35 = vector.extract_strided_slice %14 {offsets = [0, 256], sizes = [16, 128], strides = [1, 1]} : vector<16x384xf32> to vector<16x128xf32>
    %36 = vector.extract_strided_slice %18 {offsets = [0, 256], sizes = [16, 128], strides = [1, 1]} : vector<16x384xf32> to vector<16x128xf32>
    %37 = arith.mulf %26, %36 : vector<16x128xf32>
    %38 = arith.addf %35, %37 : vector<16x128xf32>
    %39 = math.tanh %38 : vector<16x128xf32>
    %cst_23 = arith.constant 1.000000e+00 : f32
    %40 = vector.broadcast %cst_23 : f32 to vector<16x128xf32>
    %41 = arith.subf %40, %34 : vector<16x128xf32>
    %42 = arith.mulf %41, %39 : vector<16x128xf32>
    %43 = arith.mulf %34, %12 : vector<16x128xf32>
    %44 = arith.addf %42, %43 : vector<16x128xf32>
    %c0_i32 = arith.constant 0 : i32
    %45 = vector.broadcast %c0_i32 : i32 to vector<16x1xi32>
    %46 = arith.cmpi sgt, %11, %45 : vector<16x1xi32>
    %47 = vector.shape_cast %46 : vector<16x1xi1> to vector<16x1xi1>
    %48 = vector.broadcast %47 : vector<16x1xi1> to vector<16x128xi1>
    %49 = arith.select %48, %44, %12 : vector<16x128xi1>, vector<16x128xf32>
    %c0_24 = arith.constant 0 : index
    %c0_25 = arith.constant 0 : index
    %c0_26 = arith.constant 0 : index
    %50 = vector.load %arg8[%c0_24, %c0_25, %c0_26] : memref<8x16x128xf32, #tpu.memory_space<vmem>>, vector<1x16x128xf32>
    %51 = vector.shape_cast %50 : vector<1x16x128xf32> to vector<16x128xf32>
    %52 = vector.shape_cast %49 : vector<16x128xf32> to vector<1x16x128xf32>
    tpu.vector_store %arg8[%c0_24, %c0_25, %c0_26], %52 {strides = array<i32>} : memref<8x16x128xf32, #tpu.memory_space<vmem>>, vector<1x16x128xf32>,
    %c1 = arith.constant 1 : index
    %c0_27 = arith.constant 0 : index
    %c0_28 = arith.constant 0 : index
    %53 = vector.load %arg9[%c1, %c0_27, %c0_28] : memref<8x16x384xf32, #tpu.memory_space<vmem>>, vector<1x16x384xf32>
    %54 = vector.shape_cast %53 : vector<1x16x384xf32> to vector<16x384xf32>
    %55 = arith.truncf %49 : vector<16x128xf32> to vector<16x128xbf16>
    %cst_29 = arith.constant dense<0.000000e+00> : vector<16x384xf32>
    %56 = tpu.matmul %55, %9, %cst_29 {dimension_numbers = #tpu.dot_dimension_numbers<[1], [0], [0], [1], [0, 0, 1, 1], [], []>} : vector<16x128xbf16>, vector<128x384xbf16>, vector<16x384xf32> -> vector<16x384xf32>
    %57 = vector.broadcast %10 : vector<1x384xf32> to vector<16x384xf32>
    %58 = arith.addf %56, %57 : vector<16x384xf32>
    %59 = vector.extract_strided_slice %54 {offsets = [0, 0], sizes = [16, 128], strides = [1, 1]} : vector<16x384xf32> to vector<16x128xf32>
    %60 = vector.extract_strided_slice %58 {offsets = [0, 0], sizes = [16, 128], strides = [1, 1]} : vector<16x384xf32> to vector<16x128xf32>
    %61 = arith.addf %59, %60 : vector<16x128xf32>
    %62 = arith.negf %61 : vector<16x128xf32>
    %63 = math.exp %62 : vector<16x128xf32>
    %cst_30 = arith.constant 1.000000e+00 : f32
    %64 = vector.broadcast %cst_30 : f32 to vector<16x128xf32>
    %65 = arith.addf %64, %63 : vector<16x128xf32>
    %66 = arith.divf %64, %65 : vector<16x128xf32>
    %67 = vector.extract_strided_slice %54 {offsets = [0, 128], sizes = [16, 128], strides = [1, 1]} : vector<16x384xf32> to vector<16x128xf32>
    %68 = vector.extract_strided_slice %58 {offsets = [0, 128], sizes = [16, 128], strides = [1, 1]} : vector<16x384xf32> to vector<16x128xf32>
    %69 = arith.addf %67, %68 : vector<16x128xf32>
    %70 = arith.negf %69 : vector<16x128xf32>
    %71 = math.exp %70 : vector<16x128xf32>
    %cst_31 = arith.constant 1.000000e+00 : f32
    %72 = vector.broadcast %cst_31 : f32 to vector<16x128xf32>
    %73 = arith.addf %72, %71 : vector<16x128xf32>
    %74 = arith.divf %72, %73 : vector<16x128xf32>
    %75 = vector.extract_strided_slice %54 {offsets = [0, 256], sizes = [16, 128], strides = [1, 1]} : vector<16x384xf32> to vector<16x128xf32>
    %76 = vector.extract_strided_slice %58 {offsets = [0, 256], sizes = [16, 128], strides = [1, 1]} : vector<16x384xf32> to vector<16x128xf32>
    %77 = arith.mulf %66, %76 : vector<16x128xf32>
    %78 = arith.addf %75, %77 : vector<16x128xf32>
    %79 = math.tanh %78 : vector<16x128xf32>
    %cst_32 = arith.constant 1.000000e+00 : f32
    %80 = vector.broadcast %cst_32 : f32 to vector<16x128xf32>
    %81 = arith.subf %80, %74 : vector<16x128xf32>
    %82 = arith.mulf %81, %79 : vector<16x128xf32>
    %83 = arith.mulf %74, %49 : vector<16x128xf32>
    %84 = arith.addf %82, %83 : vector<16x128xf32>
    %c1_i32 = arith.constant 1 : i32
    %85 = vector.broadcast %c1_i32 : i32 to vector<16x1xi32>
    %86 = arith.cmpi sgt, %11, %85 : vector<16x1xi32>
    %87 = vector.shape_cast %86 : vector<16x1xi1> to vector<16x1xi1>
    %88 = vector.broadcast %87 : vector<16x1xi1> to vector<16x128xi1>
    %89 = arith.select %88, %84, %49 : vector<16x128xi1>, vector<16x128xf32>
    %c1_33 = arith.constant 1 : index
    %c0_34 = arith.constant 0 : index
    %c0_35 = arith.constant 0 : index
    %90 = vector.load %arg8[%c1_33, %c0_34, %c0_35] : memref<8x16x128xf32, #tpu.memory_space<vmem>>, vector<1x16x128xf32>
    %91 = vector.shape_cast %90 : vector<1x16x128xf32> to vector<16x128xf32>
    %92 = vector.shape_cast %89 : vector<16x128xf32> to vector<1x16x128xf32>
    tpu.vector_store %arg8[%c1_33, %c0_34, %c0_35], %92 {strides = array<i32>} : memref<8x16x128xf32, #tpu.memory_space<vmem>>, vector<1x16x128xf32>,
    %c2 = arith.constant 2 : index
    %c0_36 = arith.constant 0 : index
    %c0_37 = arith.constant 0 : index
    %93 = vector.load %arg9[%c2, %c0_36, %c0_37] : memref<8x16x384xf32, #tpu.memory_space<vmem>>, vector<1x16x384xf32>
    %94 = vector.shape_cast %93 : vector<1x16x384xf32> to vector<16x384xf32>
    %95 = arith.truncf %89 : vector<16x128xf32> to vector<16x128xbf16>
    %cst_38 = arith.constant dense<0.000000e+00> : vector<16x384xf32>
    %96 = tpu.matmul %95, %9, %cst_38 {dimension_numbers = #tpu.dot_dimension_numbers<[1], [0], [0], [1], [0, 0, 1, 1], [], []>} : vector<16x128xbf16>, vector<128x384xbf16>, vector<16x384xf32> -> vector<16x384xf32>
    %97 = vector.broadcast %10 : vector<1x384xf32> to vector<16x384xf32>
    %98 = arith.addf %96, %97 : vector<16x384xf32>
    %99 = vector.extract_strided_slice %94 {offsets = [0, 0], sizes = [16, 128], strides = [1, 1]} : vector<16x384xf32> to vector<16x128xf32>
    %100 = vector.extract_strided_slice %98 {offsets = [0, 0], sizes = [16, 128], strides = [1, 1]} : vector<16x384xf32> to vector<16x128xf32>
    %101 = arith.addf %99, %100 : vector<16x128xf32>
    %102 = arith.negf %101 : vector<16x128xf32>
    %103 = math.exp %102 : vector<16x128xf32>
    %cst_39 = arith.constant 1.000000e+00 : f32
    %104 = vector.broadcast %cst_39 : f32 to vector<16x128xf32>
    %105 = arith.addf %104, %103 : vector<16x128xf32>
    %106 = arith.divf %104, %105 : vector<16x128xf32>
    %107 = vector.extract_strided_slice %94 {offsets = [0, 128], sizes = [16, 128], strides = [1, 1]} : vector<16x384xf32> to vector<16x128xf32>
    %108 = vector.extract_strided_slice %98 {offsets = [0, 128], sizes = [16, 128], strides = [1, 1]} : vector<16x384xf32> to vector<16x128xf32>
    %109 = arith.addf %107, %108 : vector<16x128xf32>
    %110 = arith.negf %109 : vector<16x128xf32>
    %111 = math.exp %110 : vector<16x128xf32>
    %cst_40 = arith.constant 1.000000e+00 : f32
    %112 = vector.broadcast %cst_40 : f32 to vector<16x128xf32>
    %113 = arith.addf %112, %111 : vector<16x128xf32>
    %114 = arith.divf %112, %113 : vector<16x128xf32>
    %115 = vector.extract_strided_slice %94 {offsets = [0, 256], sizes = [16, 128], strides = [1, 1]} : vector<16x384xf32> to vector<16x128xf32>
    %116 = vector.extract_strided_slice %98 {offsets = [0, 256], sizes = [16, 128], strides = [1, 1]} : vector<16x384xf32> to vector<16x128xf32>
    %117 = arith.mulf %106, %116 : vector<16x128xf32>
    %118 = arith.addf %115, %117 : vector<16x128xf32>
    %119 = math.tanh %118 : vector<16x128xf32>
    %cst_41 = arith.constant 1.000000e+00 : f32
    %120 = vector.broadcast %cst_41 : f32 to vector<16x128xf32>
    %121 = arith.subf %120, %114 : vector<16x128xf32>
    %122 = arith.mulf %121, %119 : vector<16x128xf32>
    %123 = arith.mulf %114, %89 : vector<16x128xf32>
    %124 = arith.addf %122, %123 : vector<16x128xf32>
    %c2_i32 = arith.constant 2 : i32
    %125 = vector.broadcast %c2_i32 : i32 to vector<16x1xi32>
    %126 = arith.cmpi sgt, %11, %125 : vector<16x1xi32>
    %127 = vector.shape_cast %126 : vector<16x1xi1> to vector<16x1xi1>
    %128 = vector.broadcast %127 : vector<16x1xi1> to vector<16x128xi1>
    %129 = arith.select %128, %124, %89 : vector<16x128xi1>, vector<16x128xf32>
    %c2_42 = arith.constant 2 : index
    %c0_43 = arith.constant 0 : index
    %c0_44 = arith.constant 0 : index
    %130 = vector.load %arg8[%c2_42, %c0_43, %c0_44] : memref<8x16x128xf32, #tpu.memory_space<vmem>>, vector<1x16x128xf32>
    %131 = vector.shape_cast %130 : vector<1x16x128xf32> to vector<16x128xf32>
    %132 = vector.shape_cast %129 : vector<16x128xf32> to vector<1x16x128xf32>
    tpu.vector_store %arg8[%c2_42, %c0_43, %c0_44], %132 {strides = array<i32>} : memref<8x16x128xf32, #tpu.memory_space<vmem>>, vector<1x16x128xf32>,
    %c3 = arith.constant 3 : index
    %c0_45 = arith.constant 0 : index
    %c0_46 = arith.constant 0 : index
    %133 = vector.load %arg9[%c3, %c0_45, %c0_46] : memref<8x16x384xf32, #tpu.memory_space<vmem>>, vector<1x16x384xf32>
    %134 = vector.shape_cast %133 : vector<1x16x384xf32> to vector<16x384xf32>
    %135 = arith.truncf %129 : vector<16x128xf32> to vector<16x128xbf16>
    %cst_47 = arith.constant dense<0.000000e+00> : vector<16x384xf32>
    %136 = tpu.matmul %135, %9, %cst_47 {dimension_numbers = #tpu.dot_dimension_numbers<[1], [0], [0], [1], [0, 0, 1, 1], [], []>} : vector<16x128xbf16>, vector<128x384xbf16>, vector<16x384xf32> -> vector<16x384xf32>
    %137 = vector.broadcast %10 : vector<1x384xf32> to vector<16x384xf32>
    %138 = arith.addf %136, %137 : vector<16x384xf32>
    %139 = vector.extract_strided_slice %134 {offsets = [0, 0], sizes = [16, 128], strides = [1, 1]} : vector<16x384xf32> to vector<16x128xf32>
    %140 = vector.extract_strided_slice %138 {offsets = [0, 0], sizes = [16, 128], strides = [1, 1]} : vector<16x384xf32> to vector<16x128xf32>
    %141 = arith.addf %139, %140 : vector<16x128xf32>
    %142 = arith.negf %141 : vector<16x128xf32>
    %143 = math.exp %142 : vector<16x128xf32>
    %cst_48 = arith.constant 1.000000e+00 : f32
    %144 = vector.broadcast %cst_48 : f32 to vector<16x128xf32>
    %145 = arith.addf %144, %143 : vector<16x128xf32>
    %146 = arith.divf %144, %145 : vector<16x128xf32>
    %147 = vector.extract_strided_slice %134 {offsets = [0, 128], sizes = [16, 128], strides = [1, 1]} : vector<16x384xf32> to vector<16x128xf32>
    %148 = vector.extract_strided_slice %138 {offsets = [0, 128], sizes = [16, 128], strides = [1, 1]} : vector<16x384xf32> to vector<16x128xf32>
    %149 = arith.addf %147, %148 : vector<16x128xf32>
    %150 = arith.negf %149 : vector<16x128xf32>
    %151 = math.exp %150 : vector<16x128xf32>
    %cst_49 = arith.constant 1.000000e+00 : f32
    %152 = vector.broadcast %cst_49 : f32 to vector<16x128xf32>
    %153 = arith.addf %152, %151 : vector<16x128xf32>
    %154 = arith.divf %152, %153 : vector<16x128xf32>
    %155 = vector.extract_strided_slice %134 {offsets = [0, 256], sizes = [16, 128], strides = [1, 1]} : vector<16x384xf32> to vector<16x128xf32>
    %156 = vector.extract_strided_slice %138 {offsets = [0, 256], sizes = [16, 128], strides = [1, 1]} : vector<16x384xf32> to vector<16x128xf32>
    %157 = arith.mulf %146, %156 : vector<16x128xf32>
    %158 = arith.addf %155, %157 : vector<16x128xf32>
    %159 = math.tanh %158 : vector<16x128xf32>
    %cst_50 = arith.constant 1.000000e+00 : f32
    %160 = vector.broadcast %cst_50 : f32 to vector<16x128xf32>
    %161 = arith.subf %160, %154 : vector<16x128xf32>
    %162 = arith.mulf %161, %159 : vector<16x128xf32>
    %163 = arith.mulf %154, %129 : vector<16x128xf32>
    %164 = arith.addf %162, %163 : vector<16x128xf32>
    %c3_i32 = arith.constant 3 : i32
    %165 = vector.broadcast %c3_i32 : i32 to vector<16x1xi32>
    %166 = arith.cmpi sgt, %11, %165 : vector<16x1xi32>
    %167 = vector.shape_cast %166 : vector<16x1xi1> to vector<16x1xi1>
    %168 = vector.broadcast %167 : vector<16x1xi1> to vector<16x128xi1>
    %169 = arith.select %168, %164, %129 : vector<16x128xi1>, vector<16x128xf32>
    %c3_51 = arith.constant 3 : index
    %c0_52 = arith.constant 0 : index
    %c0_53 = arith.constant 0 : index
    %170 = vector.load %arg8[%c3_51, %c0_52, %c0_53] : memref<8x16x128xf32, #tpu.memory_space<vmem>>, vector<1x16x128xf32>
    %171 = vector.shape_cast %170 : vector<1x16x128xf32> to vector<16x128xf32>
    %172 = vector.shape_cast %169 : vector<16x128xf32> to vector<1x16x128xf32>
    tpu.vector_store %arg8[%c3_51, %c0_52, %c0_53], %172 {strides = array<i32>} : memref<8x16x128xf32, #tpu.memory_space<vmem>>, vector<1x16x128xf32>,
    %c4 = arith.constant 4 : index
    %c0_54 = arith.constant 0 : index
    %c0_55 = arith.constant 0 : index
    %173 = vector.load %arg9[%c4, %c0_54, %c0_55] : memref<8x16x384xf32, #tpu.memory_space<vmem>>, vector<1x16x384xf32>
    %174 = vector.shape_cast %173 : vector<1x16x384xf32> to vector<16x384xf32>
    %175 = arith.truncf %169 : vector<16x128xf32> to vector<16x128xbf16>
    %cst_56 = arith.constant dense<0.000000e+00> : vector<16x384xf32>
    %176 = tpu.matmul %175, %9, %cst_56 {dimension_numbers = #tpu.dot_dimension_numbers<[1], [0], [0], [1], [0, 0, 1, 1], [], []>} : vector<16x128xbf16>, vector<128x384xbf16>, vector<16x384xf32> -> vector<16x384xf32>
    %177 = vector.broadcast %10 : vector<1x384xf32> to vector<16x384xf32>
    %178 = arith.addf %176, %177 : vector<16x384xf32>
    %179 = vector.extract_strided_slice %174 {offsets = [0, 0], sizes = [16, 128], strides = [1, 1]} : vector<16x384xf32> to vector<16x128xf32>
    %180 = vector.extract_strided_slice %178 {offsets = [0, 0], sizes = [16, 128], strides = [1, 1]} : vector<16x384xf32> to vector<16x128xf32>
    %181 = arith.addf %179, %180 : vector<16x128xf32>
    %182 = arith.negf %181 : vector<16x128xf32>
    %183 = math.exp %182 : vector<16x128xf32>
    %cst_57 = arith.constant 1.000000e+00 : f32
    %184 = vector.broadcast %cst_57 : f32 to vector<16x128xf32>
    %185 = arith.addf %184, %183 : vector<16x128xf32>
    %186 = arith.divf %184, %185 : vector<16x128xf32>
    %187 = vector.extract_strided_slice %174 {offsets = [0, 128], sizes = [16, 128], strides = [1, 1]} : vector<16x384xf32> to vector<16x128xf32>
    %188 = vector.extract_strided_slice %178 {offsets = [0, 128], sizes = [16, 128], strides = [1, 1]} : vector<16x384xf32> to vector<16x128xf32>
    %189 = arith.addf %187, %188 : vector<16x128xf32>
    %190 = arith.negf %189 : vector<16x128xf32>
    %191 = math.exp %190 : vector<16x128xf32>
    %cst_58 = arith.constant 1.000000e+00 : f32
    %192 = vector.broadcast %cst_58 : f32 to vector<16x128xf32>
    %193 = arith.addf %192, %191 : vector<16x128xf32>
    %194 = arith.divf %192, %193 : vector<16x128xf32>
    %195 = vector.extract_strided_slice %174 {offsets = [0, 256], sizes = [16, 128], strides = [1, 1]} : vector<16x384xf32> to vector<16x128xf32>
    %196 = vector.extract_strided_slice %178 {offsets = [0, 256], sizes = [16, 128], strides = [1, 1]} : vector<16x384xf32> to vector<16x128xf32>
    %197 = arith.mulf %186, %196 : vector<16x128xf32>
    %198 = arith.addf %195, %197 : vector<16x128xf32>
    %199 = math.tanh %198 : vector<16x128xf32>
    %cst_59 = arith.constant 1.000000e+00 : f32
    %200 = vector.broadcast %cst_59 : f32 to vector<16x128xf32>
    %201 = arith.subf %200, %194 : vector<16x128xf32>
    %202 = arith.mulf %201, %199 : vector<16x128xf32>
    %203 = arith.mulf %194, %169 : vector<16x128xf32>
    %204 = arith.addf %202, %203 : vector<16x128xf32>
    %c4_i32 = arith.constant 4 : i32
    %205 = vector.broadcast %c4_i32 : i32 to vector<16x1xi32>
    %206 = arith.cmpi sgt, %11, %205 : vector<16x1xi32>
    %207 = vector.shape_cast %206 : vector<16x1xi1> to vector<16x1xi1>
    %208 = vector.broadcast %207 : vector<16x1xi1> to vector<16x128xi1>
    %209 = arith.select %208, %204, %169 : vector<16x128xi1>, vector<16x128xf32>
    %c4_60 = arith.constant 4 : index
    %c0_61 = arith.constant 0 : index
    %c0_62 = arith.constant 0 : index
    %210 = vector.load %arg8[%c4_60, %c0_61, %c0_62] : memref<8x16x128xf32, #tpu.memory_space<vmem>>, vector<1x16x128xf32>
    %211 = vector.shape_cast %210 : vector<1x16x128xf32> to vector<16x128xf32>
    %212 = vector.shape_cast %209 : vector<16x128xf32> to vector<1x16x128xf32>
    tpu.vector_store %arg8[%c4_60, %c0_61, %c0_62], %212 {strides = array<i32>} : memref<8x16x128xf32, #tpu.memory_space<vmem>>, vector<1x16x128xf32>,
    %c5 = arith.constant 5 : index
    %c0_63 = arith.constant 0 : index
    %c0_64 = arith.constant 0 : index
    %213 = vector.load %arg9[%c5, %c0_63, %c0_64] : memref<8x16x384xf32, #tpu.memory_space<vmem>>, vector<1x16x384xf32>
    %214 = vector.shape_cast %213 : vector<1x16x384xf32> to vector<16x384xf32>
    %215 = arith.truncf %209 : vector<16x128xf32> to vector<16x128xbf16>
    %cst_65 = arith.constant dense<0.000000e+00> : vector<16x384xf32>
    %216 = tpu.matmul %215, %9, %cst_65 {dimension_numbers = #tpu.dot_dimension_numbers<[1], [0], [0], [1], [0, 0, 1, 1], [], []>} : vector<16x128xbf16>, vector<128x384xbf16>, vector<16x384xf32> -> vector<16x384xf32>
    %217 = vector.broadcast %10 : vector<1x384xf32> to vector<16x384xf32>
    %218 = arith.addf %216, %217 : vector<16x384xf32>
    %219 = vector.extract_strided_slice %214 {offsets = [0, 0], sizes = [16, 128], strides = [1, 1]} : vector<16x384xf32> to vector<16x128xf32>
    %220 = vector.extract_strided_slice %218 {offsets = [0, 0], sizes = [16, 128], strides = [1, 1]} : vector<16x384xf32> to vector<16x128xf32>
    %221 = arith.addf %219, %220 : vector<16x128xf32>
    %222 = arith.negf %221 : vector<16x128xf32>
    %223 = math.exp %222 : vector<16x128xf32>
    %cst_66 = arith.constant 1.000000e+00 : f32
    %224 = vector.broadcast %cst_66 : f32 to vector<16x128xf32>
    %225 = arith.addf %224, %223 : vector<16x128xf32>
    %226 = arith.divf %224, %225 : vector<16x128xf32>
    %227 = vector.extract_strided_slice %214 {offsets = [0, 128], sizes = [16, 128], strides = [1, 1]} : vector<16x384xf32> to vector<16x128xf32>
    %228 = vector.extract_strided_slice %218 {offsets = [0, 128], sizes = [16, 128], strides = [1, 1]} : vector<16x384xf32> to vector<16x128xf32>
    %229 = arith.addf %227, %228 : vector<16x128xf32>
    %230 = arith.negf %229 : vector<16x128xf32>
    %231 = math.exp %230 : vector<16x128xf32>
    %cst_67 = arith.constant 1.000000e+00 : f32
    %232 = vector.broadcast %cst_67 : f32 to vector<16x128xf32>
    %233 = arith.addf %232, %231 : vector<16x128xf32>
    %234 = arith.divf %232, %233 : vector<16x128xf32>
    %235 = vector.extract_strided_slice %214 {offsets = [0, 256], sizes = [16, 128], strides = [1, 1]} : vector<16x384xf32> to vector<16x128xf32>
    %236 = vector.extract_strided_slice %218 {offsets = [0, 256], sizes = [16, 128], strides = [1, 1]} : vector<16x384xf32> to vector<16x128xf32>
    %237 = arith.mulf %226, %236 : vector<16x128xf32>
    %238 = arith.addf %235, %237 : vector<16x128xf32>
    %239 = math.tanh %238 : vector<16x128xf32>
    %cst_68 = arith.constant 1.000000e+00 : f32
    %240 = vector.broadcast %cst_68 : f32 to vector<16x128xf32>
    %241 = arith.subf %240, %234 : vector<16x128xf32>
    %242 = arith.mulf %241, %239 : vector<16x128xf32>
    %243 = arith.mulf %234, %209 : vector<16x128xf32>
    %244 = arith.addf %242, %243 : vector<16x128xf32>
    %c5_i32 = arith.constant 5 : i32
    %245 = vector.broadcast %c5_i32 : i32 to vector<16x1xi32>
    %246 = arith.cmpi sgt, %11, %245 : vector<16x1xi32>
    %247 = vector.shape_cast %246 : vector<16x1xi1> to vector<16x1xi1>
    %248 = vector.broadcast %247 : vector<16x1xi1> to vector<16x128xi1>
    %249 = arith.select %248, %244, %209 : vector<16x128xi1>, vector<16x128xf32>
    %c5_69 = arith.constant 5 : index
    %c0_70 = arith.constant 0 : index
    %c0_71 = arith.constant 0 : index
    %250 = vector.load %arg8[%c5_69, %c0_70, %c0_71] : memref<8x16x128xf32, #tpu.memory_space<vmem>>, vector<1x16x128xf32>
    %251 = vector.shape_cast %250 : vector<1x16x128xf32> to vector<16x128xf32>
    %252 = vector.shape_cast %249 : vector<16x128xf32> to vector<1x16x128xf32>
    tpu.vector_store %arg8[%c5_69, %c0_70, %c0_71], %252 {strides = array<i32>} : memref<8x16x128xf32, #tpu.memory_space<vmem>>, vector<1x16x128xf32>,
    %c6 = arith.constant 6 : index
    %c0_72 = arith.constant 0 : index
    %c0_73 = arith.constant 0 : index
    %253 = vector.load %arg9[%c6, %c0_72, %c0_73] : memref<8x16x384xf32, #tpu.memory_space<vmem>>, vector<1x16x384xf32>
    %254 = vector.shape_cast %253 : vector<1x16x384xf32> to vector<16x384xf32>
    %255 = arith.truncf %249 : vector<16x128xf32> to vector<16x128xbf16>
    %cst_74 = arith.constant dense<0.000000e+00> : vector<16x384xf32>
    %256 = tpu.matmul %255, %9, %cst_74 {dimension_numbers = #tpu.dot_dimension_numbers<[1], [0], [0], [1], [0, 0, 1, 1], [], []>} : vector<16x128xbf16>, vector<128x384xbf16>, vector<16x384xf32> -> vector<16x384xf32>
    %257 = vector.broadcast %10 : vector<1x384xf32> to vector<16x384xf32>
    %258 = arith.addf %256, %257 : vector<16x384xf32>
    %259 = vector.extract_strided_slice %254 {offsets = [0, 0], sizes = [16, 128], strides = [1, 1]} : vector<16x384xf32> to vector<16x128xf32>
    %260 = vector.extract_strided_slice %258 {offsets = [0, 0], sizes = [16, 128], strides = [1, 1]} : vector<16x384xf32> to vector<16x128xf32>
    %261 = arith.addf %259, %260 : vector<16x128xf32>
    %262 = arith.negf %261 : vector<16x128xf32>
    %263 = math.exp %262 : vector<16x128xf32>
    %cst_75 = arith.constant 1.000000e+00 : f32
    %264 = vector.broadcast %cst_75 : f32 to vector<16x128xf32>
    %265 = arith.addf %264, %263 : vector<16x128xf32>
    %266 = arith.divf %264, %265 : vector<16x128xf32>
    %267 = vector.extract_strided_slice %254 {offsets = [0, 128], sizes = [16, 128], strides = [1, 1]} : vector<16x384xf32> to vector<16x128xf32>
    %268 = vector.extract_strided_slice %258 {offsets = [0, 128], sizes = [16, 128], strides = [1, 1]} : vector<16x384xf32> to vector<16x128xf32>
    %269 = arith.addf %267, %268 : vector<16x128xf32>
    %270 = arith.negf %269 : vector<16x128xf32>
    %271 = math.exp %270 : vector<16x128xf32>
    %cst_76 = arith.constant 1.000000e+00 : f32
    %272 = vector.broadcast %cst_76 : f32 to vector<16x128xf32>
    %273 = arith.addf %272, %271 : vector<16x128xf32>
    %274 = arith.divf %272, %273 : vector<16x128xf32>
    %275 = vector.extract_strided_slice %254 {offsets = [0, 256], sizes = [16, 128], strides = [1, 1]} : vector<16x384xf32> to vector<16x128xf32>
    %276 = vector.extract_strided_slice %258 {offsets = [0, 256], sizes = [16, 128], strides = [1, 1]} : vector<16x384xf32> to vector<16x128xf32>
    %277 = arith.mulf %266, %276 : vector<16x128xf32>
    %278 = arith.addf %275, %277 : vector<16x128xf32>
    %279 = math.tanh %278 : vector<16x128xf32>
    %cst_77 = arith.constant 1.000000e+00 : f32
    %280 = vector.broadcast %cst_77 : f32 to vector<16x128xf32>
    %281 = arith.subf %280, %274 : vector<16x128xf32>
    %282 = arith.mulf %281, %279 : vector<16x128xf32>
    %283 = arith.mulf %274, %249 : vector<16x128xf32>
    %284 = arith.addf %282, %283 : vector<16x128xf32>
    %c6_i32 = arith.constant 6 : i32
    %285 = vector.broadcast %c6_i32 : i32 to vector<16x1xi32>
    %286 = arith.cmpi sgt, %11, %285 : vector<16x1xi32>
    %287 = vector.shape_cast %286 : vector<16x1xi1> to vector<16x1xi1>
    %288 = vector.broadcast %287 : vector<16x1xi1> to vector<16x128xi1>
    %289 = arith.select %288, %284, %249 : vector<16x128xi1>, vector<16x128xf32>
    %c6_78 = arith.constant 6 : index
    %c0_79 = arith.constant 0 : index
    %c0_80 = arith.constant 0 : index
    %290 = vector.load %arg8[%c6_78, %c0_79, %c0_80] : memref<8x16x128xf32, #tpu.memory_space<vmem>>, vector<1x16x128xf32>
    %291 = vector.shape_cast %290 : vector<1x16x128xf32> to vector<16x128xf32>
    %292 = vector.shape_cast %289 : vector<16x128xf32> to vector<1x16x128xf32>
    tpu.vector_store %arg8[%c6_78, %c0_79, %c0_80], %292 {strides = array<i32>} : memref<8x16x128xf32, #tpu.memory_space<vmem>>, vector<1x16x128xf32>,
    %c7 = arith.constant 7 : index
    %c0_81 = arith.constant 0 : index
    %c0_82 = arith.constant 0 : index
    %293 = vector.load %arg9[%c7, %c0_81, %c0_82] : memref<8x16x384xf32, #tpu.memory_space<vmem>>, vector<1x16x384xf32>
    %294 = vector.shape_cast %293 : vector<1x16x384xf32> to vector<16x384xf32>
    %295 = arith.truncf %289 : vector<16x128xf32> to vector<16x128xbf16>
    %cst_83 = arith.constant dense<0.000000e+00> : vector<16x384xf32>
    %296 = tpu.matmul %295, %9, %cst_83 {dimension_numbers = #tpu.dot_dimension_numbers<[1], [0], [0], [1], [0, 0, 1, 1], [], []>} : vector<16x128xbf16>, vector<128x384xbf16>, vector<16x384xf32> -> vector<16x384xf32>
    %297 = vector.broadcast %10 : vector<1x384xf32> to vector<16x384xf32>
    %298 = arith.addf %296, %297 : vector<16x384xf32>
    %299 = vector.extract_strided_slice %294 {offsets = [0, 0], sizes = [16, 128], strides = [1, 1]} : vector<16x384xf32> to vector<16x128xf32>
    %300 = vector.extract_strided_slice %298 {offsets = [0, 0], sizes = [16, 128], strides = [1, 1]} : vector<16x384xf32> to vector<16x128xf32>
    %301 = arith.addf %299, %300 : vector<16x128xf32>
    %302 = arith.negf %301 : vector<16x128xf32>
    %303 = math.exp %302 : vector<16x128xf32>
    %cst_84 = arith.constant 1.000000e+00 : f32
    %304 = vector.broadcast %cst_84 : f32 to vector<16x128xf32>
    %305 = arith.addf %304, %303 : vector<16x128xf32>
    %306 = arith.divf %304, %305 : vector<16x128xf32>
    %307 = vector.extract_strided_slice %294 {offsets = [0, 128], sizes = [16, 128], strides = [1, 1]} : vector<16x384xf32> to vector<16x128xf32>
    %308 = vector.extract_strided_slice %298 {offsets = [0, 128], sizes = [16, 128], strides = [1, 1]} : vector<16x384xf32> to vector<16x128xf32>
    %309 = arith.addf %307, %308 : vector<16x128xf32>
    %310 = arith.negf %309 : vector<16x128xf32>
    %311 = math.exp %310 : vector<16x128xf32>
    %cst_85 = arith.constant 1.000000e+00 : f32
    %312 = vector.broadcast %cst_85 : f32 to vector<16x128xf32>
    %313 = arith.addf %312, %311 : vector<16x128xf32>
    %314 = arith.divf %312, %313 : vector<16x128xf32>
    %315 = vector.extract_strided_slice %294 {offsets = [0, 256], sizes = [16, 128], strides = [1, 1]} : vector<16x384xf32> to vector<16x128xf32>
    %316 = vector.extract_strided_slice %298 {offsets = [0, 256], sizes = [16, 128], strides = [1, 1]} : vector<16x384xf32> to vector<16x128xf32>
    %317 = arith.mulf %306, %316 : vector<16x128xf32>
    %318 = arith.addf %315, %317 : vector<16x128xf32>
    %319 = math.tanh %318 : vector<16x128xf32>
    %cst_86 = arith.constant 1.000000e+00 : f32
    %320 = vector.broadcast %cst_86 : f32 to vector<16x128xf32>
    %321 = arith.subf %320, %314 : vector<16x128xf32>
    %322 = arith.mulf %321, %319 : vector<16x128xf32>
    %323 = arith.mulf %314, %289 : vector<16x128xf32>
    %324 = arith.addf %322, %323 : vector<16x128xf32>
    %c7_i32 = arith.constant 7 : i32
    %325 = vector.broadcast %c7_i32 : i32 to vector<16x1xi32>
    %326 = arith.cmpi sgt, %11, %325 : vector<16x1xi32>
    %327 = vector.shape_cast %326 : vector<16x1xi1> to vector<16x1xi1>
    %328 = vector.broadcast %327 : vector<16x1xi1> to vector<16x128xi1>
    %329 = arith.select %328, %324, %289 : vector<16x128xi1>, vector<16x128xf32>
    %c7_87 = arith.constant 7 : index
    %c0_88 = arith.constant 0 : index
    %c0_89 = arith.constant 0 : index
    %330 = vector.load %arg8[%c7_87, %c0_88, %c0_89] : memref<8x16x128xf32, #tpu.memory_space<vmem>>, vector<1x16x128xf32>
    %331 = vector.shape_cast %330 : vector<1x16x128xf32> to vector<16x128xf32>
    %332 = vector.shape_cast %329 : vector<16x128xf32> to vector<1x16x128xf32>
    tpu.vector_store %arg8[%c7_87, %c0_88, %c0_89], %332 {strides = array<i32>} : memref<8x16x128xf32, #tpu.memory_space<vmem>>, vector<1x16x128xf32>,
    return
  }
  func.func @transform_0(%arg0: i32) -> (i32, i32, i32) {
    %c0_i32 = arith.constant 0 : i32
    %c0_i32_0 = arith.constant 0 : i32
    %c0_i32_1 = arith.constant 0 : i32
    return %c0_i32, %arg0, %c0_i32_0 : i32, i32, i32
  }
  func.func @transform_1(%arg0: i32) -> (i32, i32) {
    %c0_i32 = arith.constant 0 : i32
    %c0_i32_0 = arith.constant 0 : i32
    return %arg0, %c0_i32 : i32, i32
  }
  func.func @transform_2(%arg0: i32) -> (i32, i32) {
    %c0_i32 = arith.constant 0 : i32
    %c0_i32_0 = arith.constant 0 : i32
    return %arg0, %c0_i32 : i32, i32
  }
  func.func @transform_3(%arg0: i32) -> (i32, i32) {
    %c0_i32 = arith.constant 0 : i32
    %c0_i32_0 = arith.constant 0 : i32
    %c0_i32_1 = arith.constant 0 : i32
    return %c0_i32, %c0_i32_0 : i32, i32
  }
  func.func @transform_4(%arg0: i32) -> (i32, i32) {
    %c0_i32 = arith.constant 0 : i32
    %c0_i32_0 = arith.constant 0 : i32
    %c0_i32_1 = arith.constant 0 : i32
    return %c0_i32, %c0_i32_0 : i32, i32
  }
  func.func @transform_5(%arg0: i32) -> (i32, i32) {
    %c0_i32 = arith.constant 0 : i32
    %c0_i32_0 = arith.constant 0 : i32
    %c0_i32_1 = arith.constant 0 : i32
    return %c0_i32, %c0_i32_0 : i32, i32
  }
  func.func @transform_6(%arg0: i32) -> (i32, i32) {
    %c0_i32 = arith.constant 0 : i32
    %c0_i32_0 = arith.constant 0 : i32
    %c0_i32_1 = arith.constant 0 : i32
    return %c0_i32, %c0_i32_0 : i32, i32
  }
  func.func @transform_7(%arg0: i32) -> (i32, i32, i32) {
    %c0_i32 = arith.constant 0 : i32
    %c0_i32_0 = arith.constant 0 : i32
    %c0_i32_1 = arith.constant 0 : i32
    return %c0_i32, %arg0, %c0_i32_0 : i32, i32, i32
  }
}

module attributes {stable_mosaic.version = 11 : i64} {
  func.func @_proj_logsoftmax_kernel(%arg0: i32, %arg1: memref<128x128xbf16, #tpu.memory_space<vmem>>, %arg2: memref<128x128xbf16, #tpu.memory_space<vmem>>, %arg3: memref<1x128xf32, #tpu.memory_space<vmem>>, %arg4: memref<128x1xf32, #tpu.memory_space<vmem>>, %arg5: memref<128x128xf32, #tpu.memory_space<vmem>>) attributes {dimension_semantics = [#tpu.dimension_semantics<parallel>], iteration_bounds = array<i64: 1>, scalar_prefetch = 0 : i64, scratch_operands = 0 : i64, tpu.core_type = #tpu.core_type<tc>, window_params = [{transform_indices = @transform_0, window_bounds = array<i64: 128, 128>}, {pipeline_mode = #tpu.pipeline_mode<synchronous>, transform_indices = @transform_1, window_bounds = array<i64: 128, 128>}, {pipeline_mode = #tpu.pipeline_mode<synchronous>, transform_indices = @transform_2, window_bounds = array<i64: 1, 128>}, {transform_indices = @transform_3, window_bounds = array<i64: 128, 1>}, {transform_indices = @transform_4, window_bounds = array<i64: 128, 128>}]} {
    %c0 = arith.constant 0 : index
    %c0_0 = arith.constant 0 : index
    %0 = vector.load %arg1[%c0, %c0_0] : memref<128x128xbf16, #tpu.memory_space<vmem>>, vector<128x128xbf16>
    %c0_1 = arith.constant 0 : index
    %c0_2 = arith.constant 0 : index
    %1 = vector.load %arg2[%c0_1, %c0_2] : memref<128x128xbf16, #tpu.memory_space<vmem>>, vector<128x128xbf16>
    %cst = arith.constant dense<0.000000e+00> : vector<128x128xf32>
    %2 = tpu.matmul %0, %1, %cst {dimension_numbers = #tpu.dot_dimension_numbers<[1], [0], [0], [1], [0, 0, 1, 1], [], []>} : vector<128x128xbf16>, vector<128x128xbf16>, vector<128x128xf32> -> vector<128x128xf32>
    %c0_3 = arith.constant 0 : index
    %c0_4 = arith.constant 0 : index
    %3 = vector.load %arg3[%c0_3, %c0_4] : memref<1x128xf32, #tpu.memory_space<vmem>>, vector<1x128xf32>
    %4 = vector.broadcast %3 : vector<1x128xf32> to vector<128x128xf32>
    %5 = arith.addf %2, %4 : vector<128x128xf32>
    %cst_5 = arith.constant dense<0xFF800000> : vector<128xf32>
    %6 = vector.multi_reduction <maximumf>, %5, %cst_5 [1] : vector<128x128xf32> to vector<128xf32>
    %7 = vector.shape_cast %6 : vector<128xf32> to vector<128x1xf32>
    %8 = vector.broadcast %7 : vector<128x1xf32> to vector<128x128xf32>
    %9 = arith.subf %5, %8 : vector<128x128xf32>
    %10 = math.exp %9 : vector<128x128xf32>
    %cst_6 = arith.constant dense<0.000000e+00> : vector<128xf32>
    %11 = vector.multi_reduction <add>, %10, %cst_6 [1] : vector<128x128xf32> to vector<128xf32>
    %12 = vector.shape_cast %11 : vector<128xf32> to vector<128x1xf32>
    %13 = math.log %12 : vector<128x1xf32>
    %14 = vector.broadcast %13 : vector<128x1xf32> to vector<128x128xf32>
    %15 = arith.subf %9, %14 : vector<128x128xf32>
    %c0_7 = arith.constant 0 : index
    %c0_8 = arith.constant 0 : index
    %16 = vector.load %arg4[%c0_7, %c0_8] : memref<128x1xf32, #tpu.memory_space<vmem>>, vector<128x1xf32>
    %17 = vector.broadcast %16 : vector<128x1xf32> to vector<128x128xf32>
    %18 = arith.mulf %15, %17 : vector<128x128xf32>
    %c0_9 = arith.constant 0 : index
    %c0_10 = arith.constant 0 : index
    %19 = vector.load %arg5[%c0_9, %c0_10] : memref<128x128xf32, #tpu.memory_space<vmem>>, vector<128x128xf32>
    tpu.vector_store %arg5[%c0_9, %c0_10], %18 {strides = array<i32>} : memref<128x128xf32, #tpu.memory_space<vmem>>, vector<128x128xf32>,
    return
  }
  func.func @transform_0(%arg0: i32) -> (i32, i32) {
    %c0_i32 = arith.constant 0 : i32
    %c0_i32_0 = arith.constant 0 : i32
    return %arg0, %c0_i32 : i32, i32
  }
  func.func @transform_1(%arg0: i32) -> (i32, i32) {
    %c0_i32 = arith.constant 0 : i32
    %c0_i32_0 = arith.constant 0 : i32
    %c0_i32_1 = arith.constant 0 : i32
    return %c0_i32, %c0_i32_0 : i32, i32
  }
  func.func @transform_2(%arg0: i32) -> (i32, i32) {
    %c0_i32 = arith.constant 0 : i32
    %c0_i32_0 = arith.constant 0 : i32
    %c0_i32_1 = arith.constant 0 : i32
    return %c0_i32, %c0_i32_0 : i32, i32
  }
  func.func @transform_3(%arg0: i32) -> (i32, i32) {
    %c0_i32 = arith.constant 0 : i32
    %c0_i32_0 = arith.constant 0 : i32
    return %arg0, %c0_i32 : i32, i32
  }
  func.func @transform_4(%arg0: i32) -> (i32, i32) {
    %c0_i32 = arith.constant 0 : i32
    %c0_i32_0 = arith.constant 0 : i32
    return %arg0, %c0_i32 : i32, i32
  }
}

</mosaic_0001>

<bundles_post_ra>
// kernel: hred_forward.7
= control target key start
LH: loop header
LB: loop body
LE: loop exit
PB: predicated region body
PF: predicated region fallthrough
CT: control target
= control target key end

     0   :  { %v197_v0 = vmov 0.0   ;;  %vm198_vm0 = vmmov 0   ;;  %s255_s1 = inlined_call_operand.vmem [shape: bf16[128,128], index: 1, kind: input, shape index: {}]   ;;  %s256_s0 = inlined_call_operand.vmem [shape: bf16[16,128], index: 0, kind: input, shape index: {}]   ;;  %s257_s2 = inlined_call_operand.vmem [shape: f32[1,128], index: 2, kind: input, shape index: {}]   ;;  %s258_s3 = inlined_call_operand.vmem [shape: f32[16,128], index: 3, kind: output, shape index: {}]  }
   0x1   :  { %162 = vmatprep.subr.bf16.mxu0 %v197_v0  ;;  %v184_v1 = vld [vmem:[%s255_s1] sm:$0xff]   ;;  %178 = vmatprep.mubr.msk.bf16.mxu0 %vm198_vm0, %v197_v0  ;;  %v185_v2 = vld [vmem:[%s255_s1 + $0x8] sm:$0xff]   ;;  %v186_v3 = vld [vmem:[%s255_s1 + $0x10] sm:$0xff]  }
   0x2   :  { %163 = vmatpush3.bf16.msra.mxu0 %v184_v1  ;;  %v187_v4 = vld [vmem:[%s255_s1 + $0x18] sm:$0xff]   ;;  %v188_v5 = vld [vmem:[%s255_s1 + $0x20] sm:$0xff]   ;;  %v189_v6 = vld [vmem:[%s255_s1 + $0x28] sm:$0xff]  }
   0x3   :  { %164 = vmatprep.subr.bf16.mxu0 %v197_v0  ;;  %v190_v7 = vld [vmem:[%s255_s1 + $0x30] sm:$0xff]   ;;  %v191_v8 = vld [vmem:[%s255_s1 + $0x38] sm:$0xff]   ;;  %v192_v9 = vld [vmem:[%s256_s0] sm:$0xff]  }
   0x4   :  { %v143_v10 = vld [vmem:[%s257_s2] ss:$0 sm:$0xff] }
   0x6   :  { %165 = vmatpush3.bf16.msra.mxu0 %v185_v2 }
   0x7   :  { %166 = vmatprep.subr.bf16.mxu0 %v197_v0 }
   0xa   :  { %167 = vmatpush3.bf16.msra.mxu0 %v186_v3 }
   0xb   :  { %168 = vmatprep.subr.bf16.mxu0 %v197_v0 }
   0xe   :  { %169 = vmatpush3.bf16.msra.mxu0 %v187_v4 }
   0xf   :  { %170 = vmatprep.subr.bf16.mxu0 %v197_v0 }
  0x12   :  { %171 = vmatpush3.bf16.msra.mxu0 %v188_v5 }
  0x13   :  { %172 = vmatprep.subr.bf16.mxu0 %v197_v0 }
  0x16   :  { %173 = vmatpush3.bf16.msra.mxu0 %v189_v6 }
  0x17   :  { %174 = vmatprep.subr.bf16.mxu0 %v197_v0 }
  0x1a   :  { %175 = vmatpush3.bf16.msra.mxu0 %v190_v7 }
  0x1b   :  { %176 = vmatprep.subr.bf16.mxu0 %v197_v0 }
  0x1e   :  { %177 = vmatpush3.bf16.msra.mxu0 %v191_v8 }
  0x21   :  { %179 = vmatmul.mubr.bf16.vlgmr.msra.gmra.mrb[0].mxu0 %v192_v9 }
  0xf4   :  { %v128_v11 = vpop.f32.mrb[0].mxu0 }
  0xf5   :  { %v129_v12 = vadd.f32 %v143_v10, %v128_v11  ;;  %v180_v13 = vpop.f32.mrb[1].mxu0 }
  0xf6   :  { %v131_v14 = vpop.f32.mrb[2].mxu0 }
  0xf7   :  { %193 = vtanh.f32 %v129_v12  ;;  %v132_v15 = vadd.f32 %v143_v10, %v131_v14  ;;  %v181_v16 = vpop.f32.mrb[3].mxu0 }
  0xf9   :  { %195 = vtanh.f32 %v132_v15 }
 0x101   :  { %v194_v17 = vpop.eup %193 }
 0x102   :  { %137 = vst [vmem:[%s258_s3] sm:$0xff] %v194_v17 }
 0x103   :  { %v196_v18 = vpop.eup %195 }
 0x104   :  { %138 = vst [vmem:[%s258_s3 + $0x8] sm:$0xff] %v196_v18 }

// kernel: hred_forward.6
= control target key start
LH: loop header
LB: loop body
LE: loop exit
PB: predicated region body
PF: predicated region fallthrough
CT: control target
= control target key end

     0   :  { %v2875_v1 = vmov 0   ;;  %v2877_v36 = vmov 0.0   ;;  %vm2029_vm2 = vmmov 0   ;;  %v69_v61 = vlaneseq  ;;  %s2867_s3 = inlined_call_operand.vmem [shape: bf16[128,384], index: 3, kind: input, shape index: {}]   ;;  %s2868_s0 = inlined_call_operand.vmem [shape: bf16[8,8,128], index: 0, kind: input, shape index: {}]   ;;  %s2869_s5 = inlined_call_operand.vmem [shape: bf16[128,384], index: 5, kind: input, shape index: {}]   ;;  %s2870_s1 = inlined_call_operand.vmem [shape: s32[8,1], index: 1, kind: input, shape index: {}]   ;;  %s2871_s2 = inlined_call_operand.vmem [shape: f32[8,128], index: 2, kind: input, shape index: {}]   ;;  %s2872_s4 = inlined_call_operand.vmem [shape: f32[1,384], index: 4, kind: input, shape index: {}]   ;;  %s2873_s6 = inlined_call_operand.vmem [shape: f32[1,384], index: 6, kind: input, shape index: {}]   ;;  %s2874_s7 = inlined_call_operand.vmem [shape: f32[8,8,128], index: 7, kind: output, shape index: {}]  }
   0x1   :  { %v1855_v0 = vld [vmem:[%s2867_s3 + $0x4] ss:$12 sps:$4 sm:$0xff]   ;;  %268 = vmatprep.mubr.bf16.mxu0 %v2875_v1  ;;  %1853 = vset.pattern.permute.xlu0 %v2875_v1  ;;  %v1857_v2 = vld [vmem:[%s2867_s3] ss:$12 sps:$4 sm:$0xff]   ;;  %v1858_v3 = vld [vmem:[%s2867_s3 + $0x1c] ss:$12 sps:$4 sm:$0xff]  }
   0x2   :  { %1854 = vset.pattern.permute.xlu1 %v2875_v1  ;;  %236 = vmatprep.subr.bf16.mxu0 %v1855_v0  ;;  %v1860_v4 = vld [vmem:[%s2867_s3 + $0x18] ss:$12 sps:$4 sm:$0xff]   ;;  %v1861_v5 = vld [vmem:[%s2867_s3 + $0x34] ss:$12 sps:$4 sm:$0xff]   ;;  %v1863_v6 = vld [vmem:[%s2867_s3 + $0x30] ss:$12 sps:$4 sm:$0xff]  }
   0x3   :  { %237 = vmatpush1.bf16.msra.mxu0 %v1857_v2  ;;  %v1864_v7 = vld [vmem:[%s2867_s3 + $0x4c] ss:$12 sps:$4 sm:$0xff]   ;;  %v1876_v8 = vld [vmem:[%s2867_s3 + $0x8] ss:$12 sps:$4 sm:$0xff]   ;;  %v1867_v10 = vld [vmem:[%s2867_s3 + $0x64] ss:$12 sps:$4 sm:$0xff]  }
   0x4   :  { %238 = vmatprep.subr.bf16.mxu0 %v1858_v3  ;;  %v1866_v9 = vld [vmem:[%s2867_s3 + $0x48] ss:$12 sps:$4 sm:$0xff]   ;;  %1666 = vmatprep.subr.bf16.mxu1 %v1876_v8  ;;  %v1880_v11 = vld [vmem:[%s2867_s3 + $0x20] ss:$12 sps:$4 sm:$0xff]   ;;  %v1885_v14 = vld [vmem:[%s2867_s3 + $0x38] ss:$12 sps:$4 sm:$0xff]  }
   0x5   :  { %1667 = vmatpush3.bf16.msra.mxu1 %v1876_v8  ;;  %v1881_v12 = vld [vmem:[%s2868_s0] sm:$0xff]   ;;  %v1870_v15 = vld [vmem:[%s2867_s3 + $0x7c] ss:$12 sps:$4 sm:$0xff]   ;;  %v1877_v21 = vld [vmem:[%s2867_s3 + $0xac] ss:$12 sps:$4 sm:$0xff]   ;;  %v2372_v62 = vshrl.u32 %v69_v61, 7 }
   0x6   :  { %v1869_v13 = vld [vmem:[%s2867_s3 + $0x60] ss:$12 sps:$4 sm:$0xff]   ;;  %1668 = vmatprep.subr.bf16.mxu1 %v1880_v11  ;;  %1682 = vmatprep.mubr.bf16.mxu1 %v1881_v12  ;;  %v1889_v16 = vld [vmem:[%s2867_s3 + $0x50] ss:$12 sps:$4 sm:$0xff]   ;;  %v1872_v17 = vld [vmem:[%s2867_s3 + $0x78] ss:$12 sps:$4 sm:$0xff]  }
   0x7   :  { %239 = vmatpush1.bf16.msra.mxu0 %v1860_v4  ;;  %v1873_v18 = vld [vmem:[%s2867_s3 + $0x94] ss:$12 sps:$4 sm:$0xff]   ;;  %v1875_v20 = vld [vmem:[%s2867_s3 + $0x90] ss:$12 sps:$4 sm:$0xff]   ;;  %v1903_v25 = vld [vmem:[%s2867_s3 + $0x98] ss:$12 sps:$4 sm:$0xff]  }
   0x8   :  { %240 = vmatprep.subr.bf16.mxu0 %v1861_v5  ;;  %v1894_v19 = vld [vmem:[%s2867_s3 + $0x68] ss:$12 sps:$4 sm:$0xff]   ;;  %v1898_v22 = vld [vmem:[%s2867_s3 + $0x80] ss:$12 sps:$4 sm:$0xff]   ;;  %v2145_v24 = vld [vmem:[%s2869_s5 + $0x4] ss:$12 sps:$4 sm:$0xff]  }
   0x9   :  { %1669 = vmatpush3.bf16.msra.mxu1 %v1880_v11  ;;  %v1879_v23 = vld [vmem:[%s2867_s3 + $0xa8] ss:$12 sps:$4 sm:$0xff]   ;;  %v2153_v26 = vld [vmem:[%s2869_s5] ss:$12 sps:$4 sm:$0xff]   ;;  %v1907_v28 = vld [vmem:[%s2867_s3 + $0xb0] ss:$12 sps:$4 sm:$0xff]  }
   0xa   :  { %1670 = vmatprep.subr.bf16.mxu1 %v1885_v14  ;;  %v2159_v27 = vld [vmem:[%s2869_s5 + $0x1c] ss:$12 sps:$4 sm:$0xff]   ;;  %v2168_v29 = vld [vmem:[%s2869_s5 + $0x18] ss:$12 sps:$4 sm:$0xff]   ;;  %v2175_v30 = vld [vmem:[%s2869_s5 + $0x34] ss:$12 sps:$4 sm:$0xff]  }
   0xb   :  { %241 = vmatpush1.bf16.msra.mxu0 %v1863_v6  ;;  %v1890_v31 = vld [vmem:[%s2868_s0 + $0x8] sm:$0xff]   ;;  %v2184_v32 = vld [vmem:[%s2869_s5 + $0x30] ss:$12 sps:$4 sm:$0xff]   ;;  %v2200_v35 = vld [vmem:[%s2870_s1] sm:$0xff]  ;;  %v71_v63 = vsub.s32 0, %v2372_v62  ;;  %v75_v2 = vsub.s32 1, %v2372_v62 }
   0xc   :  { %242 = vmatprep.subr.bf16.mxu0 %v1864_v7  ;;  %v2190_v33 = vld [vmem:[%s2869_s5 + $0x4c] ss:$12 sps:$4 sm:$0xff]   ;;  %v2195_v34 = vld [vmem:[%s2869_s5 + $0x8] ss:$12 sps:$4 sm:$0xff]   ;;  %vm683_vm0 = vcmp.gt.s32.totalorder %v2200_v35, 0  ;;  %vm798_vm1 = vcmp.gt.s32.totalorder %v2200_v35, 1 }
   0xd   :  { %1671 = vmatpush3.bf16.msra.mxu1 %v1885_v14  ;;  %v2208_v37 = vld [vmem:[%s2869_s5 + $0x48] ss:$12 sps:$4 sm:$0xff]   ;;  %v684_v39 = vsel %vm683_vm0, 1, %v2875_v1  ;;  %v2219_v40 = vld [vmem:[%s2869_s5 + $0x64] ss:$12 sps:$4 sm:$0xff]   ;;  %v1908_v45 = vld [vmem:[%s2868_s0 + $0x18] sm:$0xff]  }
   0xe   :  { %1672 = vmatprep.subr.bf16.mxu1 %v1889_v16  ;;  %v1899_v38 = vld [vmem:[%s2868_s0 + $0x10] sm:$0xff]   ;;  %v2225_v41 = vld [vmem:[%s2869_s5 + $0x20] ss:$12 sps:$4 sm:$0xff]   ;;  %686 = vperm.xlu0 %1853, %v684_v39   ;;  %v2238_v43 = vld [vmem:[%s2869_s5 + $0x7c] ss:$12 sps:$4 sm:$0xff]   ;;  %v799_v47 = vsel %vm798_vm1, 1, %v2875_v1 }
   0xf   :  { %243 = vmatpush1.bf16.msra.mxu0 %v1866_v9  ;;  %v2232_v42 = vld [vmem:[%s2869_s5 + $0x60] ss:$12 sps:$4 sm:$0xff]   ;;  %v2245_v44 = vld [vmem:[%s2869_s5 + $0x38] ss:$12 sps:$4 sm:$0xff]   ;;  %v2269_v49 = vld [vmem:[%s2869_s5 + $0x50] ss:$12 sps:$4 sm:$0xff]  }
  0x10   :  { %244 = vmatprep.subr.bf16.mxu0 %v1867_v10  ;;  %v2255_v46 = vld [vmem:[%s2869_s5 + $0x78] ss:$12 sps:$4 sm:$0xff]   ;;  %v2263_v48 = vld [vmem:[%s2869_s5 + $0x94] ss:$12 sps:$4 sm:$0xff]   ;;  %vm1146_vm3 = vcmp.gt.s32.totalorder %v2200_v35, 4  ;;  %vm1378_vm4 = vcmp.gt.s32.totalorder %v2200_v35, 6 }
  0x11   :  { %1673 = vmatpush3.bf16.msra.mxu1 %v1889_v16  ;;  %v2279_v50 = vld [vmem:[%s2869_s5 + $0x90] ss:$12 sps:$4 sm:$0xff]   ;;  %v2285_v51 = vld [vmem:[%s2869_s5 + $0xac] ss:$12 sps:$4 sm:$0xff]   ;;  %v2291_v52 = vld [vmem:[%s2869_s5 + $0x68] ss:$12 sps:$4 sm:$0xff]  }
  0x12   :  { %1674 = vmatprep.subr.bf16.mxu1 %v1894_v19  ;;  %801 = vperm.xlu0 %1853, %v799_v47   ;;  %v1147_v53 = vsel %vm1146_vm3, 1, %v2875_v1  ;;  %v2300_v54 = vld [vmem:[%s2869_s5 + $0xa8] ss:$12 sps:$4 sm:$0xff]   ;;  %v2306_v55 = vld [vmem:[%s2871_s2] sm:$0xff]  ;;  %v1379_v57 = vsel %vm1378_vm4, 1, %v2875_v1  ;;  %v2879_v10 = vsub.s32 2, %v2372_v62 }
  0x13   :  { %245 = vmatpush1.bf16.msra.mxu0 %v1869_v13  ;;  %v2313_v56 = vld [vmem:[%s2869_s5 + $0x80] ss:$12 sps:$4 sm:$0xff]   ;;  %v436_v58 = vpack.c.bf16 %v2306_v55, %v2306_v55  ;;  %v2325_v59 = vld [vmem:[%s2869_s5 + $0x98] ss:$12 sps:$4 sm:$0xff]   ;;  %v2335_v60 = vld [vmem:[%s2869_s5 + $0xb0] ss:$12 sps:$4 sm:$0xff]  }
  0x14   :  { %246 = vmatprep.subr.bf16.mxu0 %v1870_v15  ;;  %v67_v0 = vld [vmem:[%s2872_s4] sm:$0x7]  ;;  %vm914_vm6 = vcmp.gt.s32.totalorder %v2200_v35, 2  ;;  %vm1030_vm7 = vcmp.gt.s32.totalorder %v2200_v35, 3  ;;  %vm1262_vm8 = vcmp.gt.s32.totalorder %v2200_v35, 5  ;;  %vm1494_vm9 = vcmp.gt.s32.totalorder %v2200_v35, 7 }
  0x15   :  { %1675 = vmatpush3.bf16.msra.mxu1 %v1894_v19  ;;  %v72_v4 = vrot.slane %v67_v0, %v71_v63  ;;  %v76_v6 = vrot.slane %v67_v0, %v75_v2 }
  0x16   :  { %1676 = vmatprep.subr.bf16.mxu1 %v1898_v22  ;;  %1149 = vperm.xlu0 %1853, %v1147_v53  }
  0x17   :  { %247 = vmatpush1.bf16.msra.mxu0 %v1872_v17 }
  0x18   :  { %248 = vmatprep.subr.bf16.mxu0 %v1873_v18 }
  0x19   :  { %1677 = vmatpush3.bf16.msra.mxu1 %v1898_v22 }
  0x1a   :  { %1678 = vmatprep.subr.bf16.mxu1 %v1903_v25  ;;  %1381 = vperm.xlu0 %1853, %v1379_v57  }
  0x1b   :  { %249 = vmatpush1.bf16.msra.mxu0 %v1875_v20 }
  0x1c   :  { %250 = vmatprep.subr.bf16.mxu0 %v1877_v21 }
  0x1d   :  { %1679 = vmatpush3.bf16.msra.mxu1 %v1903_v25 }
  0x1e   :  { %1680 = vmatprep.subr.bf16.mxu1 %v1907_v28 }
  0x1f   :  { %251 = vmatpush1.bf16.msra.mxu0 %v1879_v23 }
  0x20   :  { %581 = vmatprep.subr.bf16.mxu0 %v2145_v24 }
  0x21   :  { %1681 = vmatpush3.bf16.msra.mxu1 %v1907_v28 }
  0x22   :  { %269 = vmatmul.mubr.bf16.vlgmr.msra.gmra.mrb[0].mxu0 %v1881_v12  ;;  %1690 = vmatprep.subr.bf16.mxu1 %v2877_v36  ;;  %v2386_v12 = vrot.slane %v67_v0, %v2879_v10 }
  0x23   :  { %582 = vmatpush1.bf16.msra.mxu0 %v2153_v26  ;;  %278 = vmatprep.mubr.bf16.mxu0 %v2875_v1 }
  0x24   :  { %583 = vmatprep.subr.bf16.mxu0 %v2159_v27  ;;  %1683 = vmatmul.mubr.bf16.vlgmr.msra.gmra.mrb[0].mxu1 %v1890_v31 }
  0x25   :  { %1691 = vmatpush3.bf16.msra.mxu1 %v2195_v34  ;;  %1686 = vmatprep.mubr.bf16.mxu1 %v1899_v38 }
  0x26   :  { %1692 = vmatprep.subr.bf16.mxu1 %v2877_v36 }
  0x27   :  { %584 = vmatpush1.bf16.msra.mxu0 %v2168_v29 }
  0x28   :  { %585 = vmatprep.subr.bf16.mxu0 %v2175_v30 }
  0x29   :  { %1693 = vmatpush3.bf16.msra.mxu1 %v2225_v41 }
  0x2a   :  { %279 = vmatmul.mubr.bf16.gmra.mrb[4].mxu0 %v1890_v31  ;;  %1694 = vmatprep.subr.bf16.mxu1 %v2877_v36 }
  0x2b   :  { %586 = vmatpush1.bf16.msra.mxu0 %v2184_v32  ;;  %288 = vmatprep.mubr.bf16.mxu0 %v2875_v1 }
  0x2c   :  { %587 = vmatprep.subr.bf16.mxu0 %v2190_v33  ;;  %1687 = vmatmul.mubr.bf16.gmra.mrb[4].mxu1 %v1908_v45 }
  0x2d   :  { %1695 = vmatpush3.bf16.msra.mxu1 %v2245_v44  ;;  %1706 = vmatprep.mubr.msk.bf16.mxu1 %vm2029_vm2, %v2877_v36 }
  0x2e   :  { %1696 = vmatprep.subr.bf16.mxu1 %v2877_v36 }
  0x2f   :  { %588 = vmatpush1.bf16.msra.mxu0 %v2208_v37 }
  0x30   :  { %589 = vmatprep.subr.bf16.mxu0 %v2219_v40 }
  0x31   :  { %1697 = vmatpush3.bf16.msra.mxu1 %v2269_v49 }
  0x32   :  { %289 = vmatmul.mubr.bf16.gmra.mrb[8].mxu0 %v1899_v38  ;;  %1698 = vmatprep.subr.bf16.mxu1 %v2877_v36 }
  0x33   :  { %590 = vmatpush1.bf16.msra.mxu0 %v2232_v42  ;;  %298 = vmatprep.mubr.bf16.mxu0 %v2875_v1 }
  0x34   :  { %591 = vmatprep.subr.bf16.mxu0 %v2238_v43 }
  0x35   :  { %1699 = vmatpush3.bf16.msra.mxu1 %v2291_v52 }
  0x36   :  { %1700 = vmatprep.subr.bf16.mxu1 %v2877_v36 }
  0x37   :  { %592 = vmatpush1.bf16.msra.mxu0 %v2255_v46 }
  0x38   :  { %593 = vmatprep.subr.bf16.mxu0 %v2263_v48 }
  0x39   :  { %1701 = vmatpush3.bf16.msra.mxu1 %v2313_v56 }
  0x3a   :  { %299 = vmatmul.mubr.bf16.gmra.mrb[12].mxu0 %v1908_v45  ;;  %1702 = vmatprep.subr.bf16.mxu1 %v2877_v36 }
  0x3b   :  { %594 = vmatpush1.bf16.msra.mxu0 %v2279_v50  ;;  %613 = vmatprep.mubr.bf16.mxu0 %v2875_v1 }
  0x3c   :  { %595 = vmatprep.subr.bf16.mxu0 %v2285_v51 }
  0x3d   :  { %1703 = vmatpush3.bf16.msra.mxu1 %v2325_v59 }
  0x3e   :  { %1704 = vmatprep.subr.bf16.mxu1 %v2877_v36 }
  0x3f   :  { %596 = vmatpush1.bf16.msra.mxu0 %v2300_v54 }
  0x40   :  { %696 = vmatprep.subr.bf16.mxu0 %v2145_v24 }
  0x41   :  { %1705 = vmatpush3.bf16.msra.mxu1 %v2335_v60 }
  0x42   :  { %614 = vmatmul.mubr.bf16.vlgmr.msra.gmra.mrb[16].mxu0 %v436_v58  ;;  %1710 = vmatprep.subr.bf16.mxu1 %v2877_v36 }
  0x43   :  { %697 = vmatpush1.bf16.msra.mxu0 %v2153_v26  ;;  %728 = vmatprep.mubr.bf16.mxu0 %v2875_v1 }
  0x44   :  { %698 = vmatprep.subr.bf16.mxu0 %v2159_v27  ;;  %1707 = vmatmul.mubr.bf16.vlgmr.msra.gmra.mrb[8].mxu1 %v436_v58 }
  0x45   :  { %1711 = vmatpush3.bf16.msra.mxu1 %v2195_v34  ;;  %1726 = vmatprep.mubr.msk.bf16.mxu1 %vm2029_vm2, %v2877_v36 }
  0x46   :  { %1712 = vmatprep.subr.bf16.mxu1 %v2877_v36 }
  0x47   :  { %699 = vmatpush1.bf16.msra.mxu0 %v2168_v29 }
  0x48   :  { %700 = vmatprep.subr.bf16.mxu0 %v2175_v30 }
  0x49   :  { %1713 = vmatpush3.bf16.msra.mxu1 %v2225_v41 }
  0x4a   :  { %1714 = vmatprep.subr.bf16.mxu1 %v2877_v36 }
  0x4b   :  { %701 = vmatpush1.bf16.msra.mxu0 %v2184_v32 }
  0x4c   :  { %702 = vmatprep.subr.bf16.mxu0 %v2190_v33 }
  0x4d   :  { %1715 = vmatpush3.bf16.msra.mxu1 %v2245_v44 }
  0x4e   :  { %1716 = vmatprep.subr.bf16.mxu1 %v2877_v36 }
  0x4f   :  { %703 = vmatpush1.bf16.msra.mxu0 %v2208_v37 }
  0x50   :  { %704 = vmatprep.subr.bf16.mxu0 %v2219_v40 }
  0x51   :  { %1717 = vmatpush3.bf16.msra.mxu1 %v2269_v49 }
  0x52   :  { %1718 = vmatprep.subr.bf16.mxu1 %v2877_v36 }
  0x53   :  { %705 = vmatpush1.bf16.msra.mxu0 %v2232_v42 }
  0x54   :  { %706 = vmatprep.subr.bf16.mxu0 %v2238_v43 }
  0x55   :  { %1719 = vmatpush3.bf16.msra.mxu1 %v2291_v52 }
  0x56   :  { %1720 = vmatprep.subr.bf16.mxu1 %v2877_v36 }
  0x57   :  { %707 = vmatpush1.bf16.msra.mxu0 %v2255_v46 }
  0x58   :  { %708 = vmatprep.subr.bf16.mxu0 %v2263_v48 }
  0x59   :  { %1721 = vmatpush3.bf16.msra.mxu1 %v2313_v56 }
  0x5a   :  { %1722 = vmatprep.subr.bf16.mxu1 %v2877_v36 }
  0x5b   :  { %709 = vmatpush1.bf16.msra.mxu0 %v2279_v50 }
  0x5c   :  { %710 = vmatprep.subr.bf16.mxu0 %v2285_v51 }
  0x5d   :  { %1723 = vmatpush3.bf16.msra.mxu1 %v2325_v59 }
  0x5e   :  { %1724 = vmatprep.subr.bf16.mxu1 %v2877_v36 }
  0x5f   :  { %711 = vmatpush1.bf16.msra.mxu0 %v2300_v54 }
  0x60   :  { %812 = vmatprep.subr.bf16.mxu0 %v2145_v24 }
  0x61   :  { %1725 = vmatpush3.bf16.msra.mxu1 %v2335_v60 }
  0x62   :  { %1730 = vmatprep.subr.bf16.mxu1 %v2877_v36 }
  0xf5   :  { %v270_v3 = vpop.f32.mrb[0].mxu0 }
  0xf6   :  { %v272_v5 = vpop.f32.mrb[1].mxu0 }
  0xf7   :  { %v274_v7 = vpop.f32.mrb[2].mxu0  ;;  %v1684_v18 = vpop.f32.mrb[0].mxu1 }
  0xf8   :  { %v2379_v8 = vadd.f32 %v274_v7, %v72_v4  ;;  %v276_v9 = vpop.f32.mrb[3].mxu0  ;;  %v2395_v21 = vadd.f32 %v1684_v18, %v2386_v12  ;;  %v343_v22 = vpop.f32.mrb[1].mxu1 }
  0xf9   :  { %v2382_v11 = vadd.f32 %v276_v9, %v76_v6  ;;  %v1685_v25 = vpop.f32.mrb[2].mxu1 }
  0xfa   :  { %v2400_v28 = vadd.f32 %v1685_v25, %v2386_v12  ;;  %v346_v31 = vpop.f32.mrb[3].mxu1 }
  0xfb   :  { %v2403_v38 = vadd.f32 %v346_v31, %v2386_v12 }
  0xfd   :  { %v280_v13 = vpop.f32.mrb[4].mxu0 }
  0xfe   :  { %v2388_v14 = vadd.f32 %v280_v13, %v72_v4  ;;  %v282_v15 = vpop.f32.mrb[5].mxu0 }
  0xff   :  { %v2390_v16 = vadd.f32 %v282_v15, %v76_v6  ;;  %v284_v17 = vpop.f32.mrb[6].mxu0  ;;  %v1688_v58 = vpop.f32.mrb[4].mxu1 }
 0x100   :  { %v2392_v19 = vadd.f32 %v284_v17, %v72_v4  ;;  %v286_v20 = vpop.f32.mrb[7].mxu0  ;;  %v2412_v7 = vadd.f32 %v1688_v58, %v2386_v12  ;;  %v359_v9 = vpop.f32.mrb[5].mxu1 }
 0x101   :  { %v2397_v23 = vadd.f32 %v286_v20, %v76_v6  ;;  %v2417_v15 = vadd.f32 %v359_v9, %v2386_v12  ;;  %v1689_v17 = vpop.f32.mrb[6].mxu1 }
 0x102   :  { %2881 = vst [vmem:[#allocation4_spill] sm:$0xff] %v2412_v7  ;;  %v2420_v18 = vadd.f32 %v1689_v17, %v2386_v12  ;;  %v362_v20 = vpop.f32.mrb[7].mxu1  ;;  %v273_v7 = vadd.f32 %v272_v5, %v76_v6 }
 0x103   :  { %2883 = vst [vmem:[#allocation6_spill] sm:$0xff] %v2417_v15  ;;  %v2423_v25 = vadd.f32 %v362_v20, %v2386_v12 }
 0x104   :  { %2884 = vst [vmem:[#allocation7_spill] sm:$0xff] %v2420_v18 }
 0x105   :  { %v290_v39 = vpop.f32.mrb[8].mxu0  ;;  %2885 = vst [vmem:[#allocation8_spill] sm:$0xff] %v2423_v25 }
 0x106   :  { %v2405_v45 = vadd.f32 %v290_v39, %v72_v4  ;;  %v292_v47 = vpop.f32.mrb[9].mxu0 }
 0x107   :  { %v2407_v53 = vadd.f32 %v292_v47, %v76_v6  ;;  %v294_v57 = vpop.f32.mrb[10].mxu0 }
 0x108   :  { %v2409_v61 = vadd.f32 %v294_v57, %v72_v4  ;;  %v296_v0 = vpop.f32.mrb[11].mxu0 }
 0x109   :  { %v2414_v13 = vadd.f32 %v296_v0, %v76_v6  ;;  %v430_v0 = vld [vmem:[%s2873_s6] sm:$0x7] }
 0x10a   :  { %2880 = vst [vmem:[#allocation3_spill] sm:$0xff] %v2409_v61  ;;  %v2436_v36 = vrot.slane %v430_v0, %v71_v63  ;;  %v2438_v20 = vrot.slane %v430_v0, %v75_v2 }
 0x10b   :  { %2882 = vst [vmem:[#allocation5_spill] sm:$0xff] %v2414_v13 }
 0x10d   :  { %v300_v31 = vpop.f32.mrb[12].mxu0 }
 0x10e   :  { %v2425_v39 = vadd.f32 %v300_v31, %v72_v4  ;;  %v302_v47 = vpop.f32.mrb[13].mxu0  ;;  %v271_v31 = vadd.f32 %v270_v3, %v72_v4 }
 0x10f   :  { %v2427_v57 = vadd.f32 %v302_v47, %v76_v6  ;;  %v304_v58 = vpop.f32.mrb[14].mxu0 }
 0x110   :  { %2886 = vst [vmem:[#allocation9_spill] sm:$0xff] %v2425_v39  ;;  %v2432_v9 = vadd.f32 %v304_v58, %v72_v4  ;;  %v306_v1 = vpop.f32.mrb[15].mxu0  ;;  %v2890_v4 = vsub.s32 2, %v2372_v62 }
 0x111   :  { %2887 = vst [vmem:[#allocation10_spill] sm:$0xff] %v2427_v57  ;;  %v2434_v17 = vadd.f32 %v306_v1, %v76_v6 }
 0x112   :  { %2888 = vst [vmem:[#allocation11_spill] sm:$0xff] %v2432_v9  ;;  %v2444_v5 = vrot.slane %v430_v0, %v2890_v4 }
 0x113   :  { %2889 = vst [vmem:[#allocation12_spill] sm:$0xff] %v2434_v17 }
 0x115   :  { %v615_v10 = vpop.f32.mrb[16].mxu0 }
 0x116   :  { %v616_v18 = vadd.f32 %v615_v10, %v2436_v36  ;;  %v617_v47 = vpop.f32.mrb[17].mxu0 }
 0x117   :  { %v618_v57 = vadd.f32 %v617_v47, %v2438_v20  ;;  %v619_v39 = vpop.f32.mrb[18].mxu0  ;;  %v656_v17 = vpop.f32.mrb[8].mxu1 }
 0x118   :  { %v662_v25 = vadd.f32 %v616_v18, %v271_v31  ;;  %v620_v13 = vpop.f32.mrb[19].mxu0  ;;  %v1708_v63 = vpop.f32.mrb[9].mxu1  ;;  %v344_v18 = vadd.f32 %v343_v22, %v2386_v12  ;;  %v2891_v22 = vmov 0.0  }
 0x119   :  { %v669_v58 = vadd.f32 %v618_v57, %v273_v7  ;;  %v659_v61 = vpop.f32.mrb[10].mxu1  ;;  %v657_v13 = vadd.f32 %v656_v17, %v2444_v5 }
 0x11a   :  { %v1559_v9 = vmul.f32 -1.442695, %v662_v25  ;;  %v1709_v2 = vpop.f32.mrb[11].mxu1 }
 0x11b   :  { %v1560_v1 = vmul.f32 -1.442695, %v669_v58 }
 0x11c   :  { %1923 = vpow2.f32 %v1559_v9 }
 0x11d   :  { %1925 = vpow2.f32 %v1560_v1 }
 0x126   :  { %v1924_v15 = vpop.eup %1923 }
 0x127   :  { %v666_v3 = vadd.f32 1.0, %v1924_v15  ;;  %v1926_v6 = vpop.eup %1925  ;;  %v687_v15 = vpop.permute.xlu0 %686 }
 0x128   :  { %v673_v10 = vadd.f32 1.0, %v1926_v6  ;;  %vm688_vm5 = vcmp.eq.s32.totalorder %v687_v15, 1 }
 0x129   :  { %1927 = vrcp.f32 %v666_v3 }
 0x12a   :  { %1929 = vrcp.f32 %v673_v10 }
 0x133   :  { %v1928_v7 = vpop.eup %1927 }
 0x134   :  { %v676_v25 = vmul.f32 %v1928_v7, %v657_v13  ;;  %v1930_v61 = vpop.eup %1929 }
 0x135   :  { %v679_v57 = vsub.f32 1.0, %v1930_v61  ;;  %v681_v62 = vmul.f32 %v1930_v61, %v2306_v55 }
 0x136   :  { %v677_v39 = vadd.f32 %v676_v25, %v344_v18 }
 0x138   :  { %1931 = vtanh.f32 %v677_v39 }
 0x142   :  { %v1932_v9 = vpop.eup %1931 }
 0x143   :  { %v680_v31 = vmul.f32 %v1932_v9, %v679_v57 }
 0x145   :  { %v682_v0 = vadd.f32 %v681_v62, %v680_v31 }
 0x147   :  { %v2450_v47 = vsel %vm688_vm5, %v682_v0, %v2306_v55  ;;  %v2892_v55 = vmov 0  }
 0x148   :  { %690 = vst [vmem:[%s2874_s7] sm:$0xff] %v2450_v47  ;;  %v695_v12 = vpack.c.bf16 %v2450_v47, %v2450_v47  ;;  %v915_v17 = vsel %vm914_vm6, 1, %v2892_v55  ;;  %v1031_v58 = vsel %vm1030_vm7, 1, %v2892_v55  ;;  %v1263_v1 = vsel %vm1262_vm8, 1, %v2892_v55 }
 0x149   :  { %917 = vperm.xlu1 %1854, %v915_v17   ;;  %v1495_v63 = vsel %vm1494_vm9, 1, %v2892_v55 }
 0x14a   :  { %729 = vmatmul.mubr.bf16.vlgmr.msra.gmra.mrb[20].mxu0 %v695_v12  ;;  %1727 = vmatmul.mubr.bf16.vlgmr.msra.gmra.mrb[12].mxu1 %v695_v12 }
 0x14b   :  { %813 = vmatpush1.bf16.msra.mxu0 %v2153_v26  ;;  %1731 = vmatpush3.bf16.msra.mxu1 %v2195_v34 }
 0x14c   :  { %814 = vmatprep.subr.bf16.mxu0 %v2159_v27  ;;  %1732 = vmatprep.subr.bf16.mxu1 %v2891_v22 }
 0x14d   :  { %844 = vmatprep.mubr.bf16.mxu0 %v2892_v55  ;;  %1746 = vmatprep.mubr.msk.bf16.mxu1 %vm2029_vm2, %v2891_v22 }
 0x14e   :  { %1033 = vperm.xlu1 %1854, %v1031_v58  }
 0x14f   :  { %815 = vmatpush1.bf16.msra.mxu0 %v2168_v29  ;;  %1733 = vmatpush3.bf16.msra.mxu1 %v2225_v41 }
 0x150   :  { %816 = vmatprep.subr.bf16.mxu0 %v2175_v30  ;;  %1734 = vmatprep.subr.bf16.mxu1 %v2891_v22 }
 0x152   :  { %1265 = vperm.xlu1 %1854, %v1263_v1  }
 0x153   :  { %817 = vmatpush1.bf16.msra.mxu0 %v2184_v32  ;;  %1735 = vmatpush3.bf16.msra.mxu1 %v2245_v44 }
 0x154   :  { %818 = vmatprep.subr.bf16.mxu0 %v2190_v33  ;;  %1736 = vmatprep.subr.bf16.mxu1 %v2891_v22 }
 0x156   :  { %1497 = vperm.xlu1 %1854, %v1495_v63  }
 0x157   :  { %819 = vmatpush1.bf16.msra.mxu0 %v2208_v37  ;;  %1737 = vmatpush3.bf16.msra.mxu1 %v2269_v49 }
 0x158   :  { %820 = vmatprep.subr.bf16.mxu0 %v2219_v40  ;;  %1738 = vmatprep.subr.bf16.mxu1 %v2891_v22 }
 0x15b   :  { %821 = vmatpush1.bf16.msra.mxu0 %v2232_v42  ;;  %1739 = vmatpush3.bf16.msra.mxu1 %v2291_v52 }
 0x15c   :  { %822 = vmatprep.subr.bf16.mxu0 %v2238_v43  ;;  %1740 = vmatprep.subr.bf16.mxu1 %v2891_v22 }
 0x15f   :  { %823 = vmatpush1.bf16.msra.mxu0 %v2255_v46  ;;  %1741 = vmatpush3.bf16.msra.mxu1 %v2313_v56 }
 0x160   :  { %824 = vmatprep.subr.bf16.mxu0 %v2263_v48  ;;  %1742 = vmatprep.subr.bf16.mxu1 %v2891_v22 }
 0x163   :  { %825 = vmatpush1.bf16.msra.mxu0 %v2279_v50  ;;  %1743 = vmatpush3.bf16.msra.mxu1 %v2325_v59 }
 0x164   :  { %826 = vmatprep.subr.bf16.mxu0 %v2285_v51  ;;  %1744 = vmatprep.subr.bf16.mxu1 %v2891_v22 }
 0x167   :  { %827 = vmatpush1.bf16.msra.mxu0 %v2300_v54  ;;  %1745 = vmatpush3.bf16.msra.mxu1 %v2335_v60 }
 0x168   :  { %928 = vmatprep.subr.bf16.mxu0 %v2145_v24  ;;  %1750 = vmatprep.subr.bf16.mxu1 %v2891_v22 }
 0x21d   :  { %v730_v2 = vpop.f32.mrb[20].mxu0  ;;  %v771_v3 = vpop.f32.mrb[12].mxu1 }
 0x21e   :  { %v731_v4 = vadd.f32 %v730_v2, %v2436_v36  ;;  %v732_v6 = vpop.f32.mrb[21].mxu0  ;;  %v1728_v10 = vpop.f32.mrb[13].mxu1  ;;  %v772_v12 = vadd.f32 %v771_v3, %v2444_v5 }
 0x21f   :  { %v733_v13 = vadd.f32 %v732_v6, %v2438_v20  ;;  %v734_v7 = vpop.f32.mrb[22].mxu0  ;;  %v774_v18 = vpop.f32.mrb[14].mxu1 }
 0x220   :  { %v777_v25 = vadd.f32 %v731_v4, %v2379_v8  ;;  %v735_v39 = vpop.f32.mrb[23].mxu0  ;;  %v1729_v61 = vpop.f32.mrb[15].mxu1 }
 0x221   :  { %v784_v35 = vadd.f32 %v733_v13, %v2382_v11  ;;  %v802_v6 = vpop.permute.xlu0 %801 }
 0x222   :  { %v1561_v57 = vmul.f32 -1.442695, %v777_v25  ;;  %vm803_vm10 = vcmp.eq.s32.totalorder %v802_v6, 1  ;;  %v918_v6 = vpop.permute.xlu1 %917 }
 0x223   :  { %v1562_v9 = vmul.f32 -1.442695, %v784_v35  ;;  %vm919_vm11 = vcmp.eq.s32.totalorder %v918_v6, 1 }
 0x224   :  { %1933 = vpow2.f32 %v1561_v57 }
 0x225   :  { %1935 = vpow2.f32 %v1562_v9 }
 0x226   :  { %v1034_v6 = vpop.permute.xlu1 %1033 }
 0x227   :  { %vm1035_vm12 = vcmp.eq.s32.totalorder %v1034_v6, 1 }
 0x22e   :  { %v1934_v15 = vpop.eup %1933 }
 0x22f   :  { %v781_v31 = vadd.f32 1.0, %v1934_v15  ;;  %v1936_v62 = vpop.eup %1935 }
 0x230   :  { %v788_v0 = vadd.f32 1.0, %v1936_v62 }
 0x231   :  { %1937 = vrcp.f32 %v781_v31 }
 0x232   :  { %1939 = vrcp.f32 %v788_v0 }
 0x23b   :  { %v1938_v17 = vpop.eup %1937 }
 0x23c   :  { %v791_v58 = vmul.f32 %v1938_v17, %v772_v12  ;;  %v1940_v1 = vpop.eup %1939 }
 0x23d   :  { %v794_v63 = vsub.f32 1.0, %v1940_v1  ;;  %v796_v2 = vmul.f32 %v1940_v1, %v2450_v47 }
 0x23e   :  { %v792_v8 = vadd.f32 %v791_v58, %v2403_v38 }
 0x240   :  { %1941 = vtanh.f32 %v792_v8 }
 0x24a   :  { %v1942_v11 = vpop.eup %1941 }
 0x24b   :  { %v795_v4 = vmul.f32 %v1942_v11, %v794_v63 }
 0x24d   :  { %v797_v10 = vadd.f32 %v796_v2, %v795_v4 }
 0x24f   :  { %v2509_v13 = vsel %vm803_vm10, %v797_v10, %v2450_v47 }
 0x250   :  { %1563 = vst [vmem:[%s2874_s7 + $0x8] sm:$0xff] %v2509_v13  ;;  %v811_v38 = vpack.c.bf16 %v2509_v13, %v2509_v13 }
 0x252   :  { %845 = vmatmul.mubr.bf16.vlgmr.msra.gmra.mrb[24].mxu0 %v811_v38  ;;  %1747 = vmatmul.mubr.bf16.vlgmr.msra.gmra.mrb[16].mxu1 %v811_v38 }
 0x253   :  { %929 = vmatpush1.bf16.msra.mxu0 %v2153_v26  ;;  %1751 = vmatpush3.bf16.msra.mxu1 %v2195_v34 }
 0x254   :  { %930 = vmatprep.subr.bf16.mxu0 %v2159_v27  ;;  %1752 = vmatprep.subr.bf16.mxu1 %v2891_v22 }
 0x255   :  { %960 = vmatprep.mubr.bf16.mxu0 %v2892_v55  ;;  %1766 = vmatprep.mubr.msk.bf16.mxu1 %vm2029_vm2, %v2891_v22 }
 0x257   :  { %931 = vmatpush1.bf16.msra.mxu0 %v2168_v29  ;;  %1753 = vmatpush3.bf16.msra.mxu1 %v2225_v41 }
 0x258   :  { %932 = vmatprep.subr.bf16.mxu0 %v2175_v30  ;;  %1754 = vmatprep.subr.bf16.mxu1 %v2891_v22 }
 0x25b   :  { %933 = vmatpush1.bf16.msra.mxu0 %v2184_v32  ;;  %1755 = vmatpush3.bf16.msra.mxu1 %v2245_v44 }
 0x25c   :  { %934 = vmatprep.subr.bf16.mxu0 %v2190_v33  ;;  %1756 = vmatprep.subr.bf16.mxu1 %v2891_v22 }
 0x25f   :  { %935 = vmatpush1.bf16.msra.mxu0 %v2208_v37  ;;  %1757 = vmatpush3.bf16.msra.mxu1 %v2269_v49 }
 0x260   :  { %936 = vmatprep.subr.bf16.mxu0 %v2219_v40  ;;  %1758 = vmatprep.subr.bf16.mxu1 %v2891_v22 }
 0x263   :  { %937 = vmatpush1.bf16.msra.mxu0 %v2232_v42  ;;  %1759 = vmatpush3.bf16.msra.mxu1 %v2291_v52 }
 0x264   :  { %938 = vmatprep.subr.bf16.mxu0 %v2238_v43  ;;  %1760 = vmatprep.subr.bf16.mxu1 %v2891_v22 }
 0x267   :  { %939 = vmatpush1.bf16.msra.mxu0 %v2255_v46  ;;  %1761 = vmatpush3.bf16.msra.mxu1 %v2313_v56 }
 0x268   :  { %940 = vmatprep.subr.bf16.mxu0 %v2263_v48  ;;  %1762 = vmatprep.subr.bf16.mxu1 %v2891_v22 }
 0x26b   :  { %941 = vmatpush1.bf16.msra.mxu0 %v2279_v50  ;;  %1763 = vmatpush3.bf16.msra.mxu1 %v2325_v59 }
 0x26c   :  { %942 = vmatprep.subr.bf16.mxu0 %v2285_v51  ;;  %1764 = vmatprep.subr.bf16.mxu1 %v2891_v22 }
 0x26f   :  { %943 = vmatpush1.bf16.msra.mxu0 %v2300_v54  ;;  %1765 = vmatpush3.bf16.msra.mxu1 %v2335_v60 }
 0x270   :  { %1044 = vmatprep.subr.bf16.mxu0 %v2145_v24  ;;  %1770 = vmatprep.subr.bf16.mxu1 %v2891_v22 }
 0x325   :  { %v846_v47 = vpop.f32.mrb[24].mxu0  ;;  %v887_v3 = vpop.f32.mrb[16].mxu1 }
 0x326   :  { %v847_v7 = vadd.f32 %v846_v47, %v2436_v36  ;;  %v848_v18 = vpop.f32.mrb[25].mxu0  ;;  %v1748_v25 = vpop.f32.mrb[17].mxu1  ;;  %v888_v1 = vadd.f32 %v887_v3, %v2444_v5 }
 0x327   :  { %v849_v39 = vadd.f32 %v848_v18, %v2438_v20  ;;  %v850_v61 = vpop.f32.mrb[26].mxu0  ;;  %v890_v35 = vpop.f32.mrb[18].mxu1 }
 0x328   :  { %v893_v57 = vadd.f32 %v847_v7, %v2388_v14  ;;  %v851_v9 = vpop.f32.mrb[27].mxu0  ;;  %v1749_v15 = vpop.f32.mrb[19].mxu1 }
 0x329   :  { %v900_v31 = vadd.f32 %v849_v39, %v2390_v16 }
 0x32a   :  { %v1564_v62 = vmul.f32 -1.442695, %v893_v57 }
 0x32b   :  { %v1565_v0 = vmul.f32 -1.442695, %v900_v31 }
 0x32c   :  { %1943 = vpow2.f32 %v1564_v62 }
 0x32d   :  { %1945 = vpow2.f32 %v1565_v0 }
 0x336   :  { %v1944_v12 = vpop.eup %1943 }
 0x337   :  { %v897_v17 = vadd.f32 1.0, %v1944_v12  ;;  %v1946_v58 = vpop.eup %1945 }
 0x338   :  { %v904_v8 = vadd.f32 1.0, %v1946_v58 }
 0x339   :  { %1947 = vrcp.f32 %v897_v17 }
 0x33a   :  { %1949 = vrcp.f32 %v904_v8 }
 0x343   :  { %v1948_v63 = vpop.eup %1947 }
 0x344   :  { %v907_v11 = vmul.f32 %v1948_v63, %v888_v1  ;;  %v1950_v2 = vpop.eup %1949 }
 0x345   :  { %v910_v4 = vsub.f32 1.0, %v1950_v2  ;;  %v912_v38 = vmul.f32 %v1950_v2, %v2509_v13 }
 0x346   :  { %v908_v14 = vadd.f32 %v907_v11, %v2395_v21 }
 0x348   :  { %1951 = vtanh.f32 %v908_v14 }
 0x352   :  { %v1952_v16 = vpop.eup %1951 }
 0x353   :  { %v911_v10 = vmul.f32 %v1952_v16, %v910_v4 }
 0x355   :  { %v913_v47 = vadd.f32 %v912_v38, %v911_v10 }
 0x357   :  { %v2560_v7 = vsel %vm919_vm11, %v913_v47, %v2509_v13 }
 0x358   :  { %1566 = vst [vmem:[%s2874_s7 + $0x10] sm:$0xff] %v2560_v7  ;;  %v927_v21 = vpack.c.bf16 %v2560_v7, %v2560_v7 }
 0x35a   :  { %961 = vmatmul.mubr.bf16.vlgmr.msra.gmra.mrb[28].mxu0 %v927_v21  ;;  %1767 = vmatmul.mubr.bf16.vlgmr.msra.gmra.mrb[20].mxu1 %v927_v21 }
 0x35b   :  { %1045 = vmatpush1.bf16.msra.mxu0 %v2153_v26  ;;  %1771 = vmatpush3.bf16.msra.mxu1 %v2195_v34 }
 0x35c   :  { %1046 = vmatprep.subr.bf16.mxu0 %v2159_v27  ;;  %1772 = vmatprep.subr.bf16.mxu1 %v2891_v22 }
 0x35d   :  { %1076 = vmatprep.mubr.bf16.mxu0 %v2892_v55  ;;  %1786 = vmatprep.mubr.msk.bf16.mxu1 %vm2029_vm2, %v2891_v22 }
 0x35f   :  { %1047 = vmatpush1.bf16.msra.mxu0 %v2168_v29  ;;  %1773 = vmatpush3.bf16.msra.mxu1 %v2225_v41 }
 0x360   :  { %1048 = vmatprep.subr.bf16.mxu0 %v2175_v30  ;;  %1774 = vmatprep.subr.bf16.mxu1 %v2891_v22 }
 0x363   :  { %1049 = vmatpush1.bf16.msra.mxu0 %v2184_v32  ;;  %1775 = vmatpush3.bf16.msra.mxu1 %v2245_v44 }
 0x364   :  { %1050 = vmatprep.subr.bf16.mxu0 %v2190_v33  ;;  %1776 = vmatprep.subr.bf16.mxu1 %v2891_v22 }
 0x367   :  { %1051 = vmatpush1.bf16.msra.mxu0 %v2208_v37  ;;  %1777 = vmatpush3.bf16.msra.mxu1 %v2269_v49 }
 0x368   :  { %1052 = vmatprep.subr.bf16.mxu0 %v2219_v40  ;;  %1778 = vmatprep.subr.bf16.mxu1 %v2891_v22 }
 0x36b   :  { %1053 = vmatpush1.bf16.msra.mxu0 %v2232_v42  ;;  %1779 = vmatpush3.bf16.msra.mxu1 %v2291_v52 }
 0x36c   :  { %1054 = vmatprep.subr.bf16.mxu0 %v2238_v43  ;;  %1780 = vmatprep.subr.bf16.mxu1 %v2891_v22 }
 0x36f   :  { %1055 = vmatpush1.bf16.msra.mxu0 %v2255_v46  ;;  %1781 = vmatpush3.bf16.msra.mxu1 %v2313_v56 }
 0x370   :  { %1056 = vmatprep.subr.bf16.mxu0 %v2263_v48  ;;  %1782 = vmatprep.subr.bf16.mxu1 %v2891_v22 }
 0x373   :  { %1057 = vmatpush1.bf16.msra.mxu0 %v2279_v50  ;;  %1783 = vmatpush3.bf16.msra.mxu1 %v2325_v59 }
 0x374   :  { %1058 = vmatprep.subr.bf16.mxu0 %v2285_v51  ;;  %1784 = vmatprep.subr.bf16.mxu1 %v2891_v22 }
 0x377   :  { %1059 = vmatpush1.bf16.msra.mxu0 %v2300_v54  ;;  %1785 = vmatpush3.bf16.msra.mxu1 %v2335_v60 }
 0x378   :  { %1160 = vmatprep.subr.bf16.mxu0 %v2145_v24  ;;  %1790 = vmatprep.subr.bf16.mxu1 %v2891_v22 }
 0x42d   :  { %v962_v13 = vpop.f32.mrb[28].mxu0  ;;  %v1003_v3 = vpop.f32.mrb[20].mxu1 }
 0x42e   :  { %v963_v18 = vadd.f32 %v962_v13, %v2436_v36  ;;  %v964_v25 = vpop.f32.mrb[29].mxu0  ;;  %v1768_v39 = vpop.f32.mrb[21].mxu1  ;;  %v1004_v1 = vadd.f32 %v1003_v3, %v2444_v5 }
 0x42f   :  { %v965_v61 = vadd.f32 %v964_v25, %v2438_v20  ;;  %v966_v35 = vpop.f32.mrb[30].mxu0  ;;  %v1006_v57 = vpop.f32.mrb[22].mxu1 }
 0x430   :  { %v1009_v9 = vadd.f32 %v963_v18, %v2392_v19  ;;  %v967_v15 = vpop.f32.mrb[31].mxu0  ;;  %v1769_v31 = vpop.f32.mrb[23].mxu1 }
 0x431   :  { %v1016_v62 = vadd.f32 %v965_v61, %v2397_v23  ;;  %v2893_v61 = vld [vmem:[#allocation6_spill] sm:$0xff]  ;;  %v1150_v31 = vpop.permute.xlu0 %1149 }
 0x432   :  { %v1567_v0 = vmul.f32 -1.442695, %v1009_v9  ;;  %vm1151_vm13 = vcmp.eq.s32.totalorder %v1150_v31, 1  ;;  %v2026_v31 = vld [vmem:[%s2869_s5 + $0xb0] ss:$12 sps:$4 sm:$0xff]  }
 0x433   :  { %v1568_v24 = vmul.f32 -1.442695, %v1016_v62 }
 0x434   :  { %1953 = vpow2.f32 %v1567_v0 }
 0x435   :  { %1955 = vpow2.f32 %v1568_v24 }
 0x43e   :  { %v1954_v12 = vpop.eup %1953 }
 0x43f   :  { %v1013_v17 = vadd.f32 1.0, %v1954_v12  ;;  %v1956_v58 = vpop.eup %1955  ;;  %v2678_v12 = vld [vmem:[%s2869_s5] ss:$12 sps:$4 sm:$0xff]  }
 0x440   :  { %v1020_v8 = vadd.f32 1.0, %v1956_v58  ;;  %v2690_v58 = vld [vmem:[%s2869_s5 + $0x1c] ss:$12 sps:$4 sm:$0xff]  }
 0x441   :  { %1957 = vrcp.f32 %v1013_v17  ;;  %v2684_v17 = vld [vmem:[%s2869_s5 + $0x8] ss:$12 sps:$4 sm:$0xff]  }
 0x442   :  { %1959 = vrcp.f32 %v1020_v8  ;;  %v2700_v8 = vld [vmem:[%s2869_s5 + $0x18] ss:$12 sps:$4 sm:$0xff]  }
 0x44b   :  { %v1958_v63 = vpop.eup %1957 }
 0x44c   :  { %v1023_v11 = vmul.f32 %v1958_v63, %v1004_v1  ;;  %v1960_v14 = vpop.eup %1959  ;;  %v2706_v1 = vld [vmem:[%s2869_s5 + $0x20] ss:$12 sps:$4 sm:$0xff]  }
 0x44d   :  { %v1026_v2 = vsub.f32 1.0, %v1960_v14  ;;  %v1028_v4 = vmul.f32 %v1960_v14, %v2560_v7  ;;  %v2712_v63 = vld [vmem:[%s2869_s5 + $0x34] ss:$12 sps:$4 sm:$0xff]  }
 0x44e   :  { %v1024_v19 = vadd.f32 %v1023_v11, %v2400_v28  ;;  %v2719_v11 = vld [vmem:[%s2869_s5 + $0x30] ss:$12 sps:$4 sm:$0xff]   ;;  %v2733_v14 = vld [vmem:[%s2869_s5 + $0x48] ss:$12 sps:$4 sm:$0xff]  }
 0x450   :  { %1961 = vtanh.f32 %v1024_v19  ;;  %v2726_v19 = vld [vmem:[%s2869_s5 + $0x4c] ss:$12 sps:$4 sm:$0xff]  }
 0x45a   :  { %v1962_v23 = vpop.eup %1961 }
 0x45b   :  { %v1027_v16 = vmul.f32 %v1962_v23, %v1026_v2  ;;  %v2747_v2 = vld [vmem:[%s2869_s5 + $0x60] ss:$12 sps:$4 sm:$0xff]   ;;  %v2761_v23 = vld [vmem:[%s2869_s5 + $0x78] ss:$12 sps:$4 sm:$0xff]  }
 0x45d   :  { %v1029_v10 = vadd.f32 %v1028_v4, %v1027_v16 }
 0x45f   :  { %v2611_v38 = vsel %vm1035_vm12, %v1029_v10, %v2560_v7 }
 0x460   :  { %1569 = vst [vmem:[%s2874_s7 + $0x18] sm:$0xff] %v2611_v38  ;;  %v1043_v28 = vpack.c.bf16 %v2611_v38, %v2611_v38 }
 0x462   :  { %1077 = vmatmul.mubr.bf16.vlgmr.msra.gmra.mrb[32].mxu0 %v1043_v28  ;;  %1787 = vmatmul.mubr.bf16.vlgmr.msra.gmra.mrb[24].mxu1 %v1043_v28 }
 0x463   :  { %1161 = vmatpush1.bf16.msra.mxu0 %v2153_v26  ;;  %1791 = vmatpush3.bf16.msra.mxu1 %v2195_v34  ;;  %v2655_v26 = vld [vmem:[%s2869_s5 + $0x4] ss:$12 sps:$4 sm:$0xff]  }
 0x464   :  { %1162 = vmatprep.subr.bf16.mxu0 %v2159_v27  ;;  %1792 = vmatprep.subr.bf16.mxu1 %v2891_v22 }
 0x465   :  { %1192 = vmatprep.mubr.bf16.mxu0 %v2892_v55  ;;  %1806 = vmatprep.mubr.msk.bf16.mxu1 %vm2029_vm2, %v2891_v22 }
 0x467   :  { %1163 = vmatpush1.bf16.msra.mxu0 %v2168_v29  ;;  %1793 = vmatpush3.bf16.msra.mxu1 %v2225_v41 }
 0x468   :  { %1164 = vmatprep.subr.bf16.mxu0 %v2175_v30  ;;  %1794 = vmatprep.subr.bf16.mxu1 %v2891_v22 }
 0x46b   :  { %1165 = vmatpush1.bf16.msra.mxu0 %v2184_v32  ;;  %1795 = vmatpush3.bf16.msra.mxu1 %v2245_v44 }
 0x46c   :  { %1166 = vmatprep.subr.bf16.mxu0 %v2190_v33  ;;  %1796 = vmatprep.subr.bf16.mxu1 %v2891_v22 }
 0x46f   :  { %1167 = vmatpush1.bf16.msra.mxu0 %v2208_v37  ;;  %1797 = vmatpush3.bf16.msra.mxu1 %v2269_v49 }
 0x470   :  { %1168 = vmatprep.subr.bf16.mxu0 %v2219_v40  ;;  %1798 = vmatprep.subr.bf16.mxu1 %v2891_v22 }
 0x473   :  { %1169 = vmatpush1.bf16.msra.mxu0 %v2232_v42  ;;  %1799 = vmatpush3.bf16.msra.mxu1 %v2291_v52 }
 0x474   :  { %1170 = vmatprep.subr.bf16.mxu0 %v2238_v43  ;;  %1800 = vmatprep.subr.bf16.mxu1 %v2891_v22 }
 0x477   :  { %1171 = vmatpush1.bf16.msra.mxu0 %v2255_v46  ;;  %1801 = vmatpush3.bf16.msra.mxu1 %v2313_v56 }
 0x478   :  { %1172 = vmatprep.subr.bf16.mxu0 %v2263_v48  ;;  %1802 = vmatprep.subr.bf16.mxu1 %v2891_v22 }
 0x47b   :  { %1173 = vmatpush1.bf16.msra.mxu0 %v2279_v50  ;;  %1803 = vmatpush3.bf16.msra.mxu1 %v2325_v59 }
 0x47c   :  { %1174 = vmatprep.subr.bf16.mxu0 %v2285_v51  ;;  %1804 = vmatprep.subr.bf16.mxu1 %v2891_v22 }
 0x47f   :  { %1175 = vmatpush1.bf16.msra.mxu0 %v2300_v54  ;;  %1805 = vmatpush3.bf16.msra.mxu1 %v2335_v60 }
 0x480   :  { %1276 = vmatprep.subr.bf16.mxu0 %v2655_v26  ;;  %1810 = vmatprep.subr.bf16.mxu1 %v2891_v22 }
 0x535   :  { %v1078_v27 = vpop.f32.mrb[32].mxu0  ;;  %v1119_v29 = vpop.f32.mrb[24].mxu1 }
 0x536   :  { %v1079_v30 = vadd.f32 %v1078_v27, %v2436_v36  ;;  %v1080_v32 = vpop.f32.mrb[33].mxu0  ;;  %v1788_v33 = vpop.f32.mrb[25].mxu1  ;;  %v1120_v18 = vadd.f32 %v1119_v29, %v2444_v5  ;;  %v2895_v29 = vld [vmem:[#allocation5_spill] sm:$0xff] }
 0x537   :  { %v1081_v34 = vadd.f32 %v1080_v32, %v2438_v20  ;;  %v1082_v37 = vpop.f32.mrb[34].mxu0  ;;  %v1122_v40 = vpop.f32.mrb[26].mxu1 }
 0x538   :  { %v1125_v41 = vadd.f32 %v1079_v30, %v2405_v45  ;;  %v1083_v42 = vpop.f32.mrb[35].mxu0  ;;  %v1789_v43 = vpop.f32.mrb[27].mxu1 }
 0x539   :  { %v1132_v46 = vadd.f32 %v1081_v34, %v2407_v53  ;;  %v2896_v43 = vld [vmem:[#allocation8_spill] sm:$0xff] }
 0x53a   :  { %v1570_v48 = vmul.f32 -1.442695, %v1125_v41 }
 0x53b   :  { %v1571_v47 = vmul.f32 -1.442695, %v1132_v46 }
 0x53c   :  { %1963 = vpow2.f32 %v1570_v48 }
 0x53d   :  { %1965 = vpow2.f32 %v1571_v47 }
 0x546   :  { %v1964_v7 = vpop.eup %1963 }
 0x547   :  { %v1129_v21 = vadd.f32 1.0, %v1964_v7  ;;  %v1966_v13 = vpop.eup %1965 }
 0x548   :  { %v1136_v3 = vadd.f32 1.0, %v1966_v13 }
 0x549   :  { %1967 = vrcp.f32 %v1129_v21 }
 0x54a   :  { %1969 = vrcp.f32 %v1136_v3  ;;  %v1266_v3 = vpop.permute.xlu1 %1265 }
 0x54b   :  { %vm1267_vm14 = vcmp.eq.s32.totalorder %v1266_v3, 1 }
 0x553   :  { %v1968_v25 = vpop.eup %1967 }
 0x554   :  { %v1139_v39 = vmul.f32 %v1968_v25, %v1120_v18  ;;  %v1970_v35 = vpop.eup %1969 }
 0x555   :  { %v1142_v57 = vsub.f32 1.0, %v1970_v35  ;;  %v1144_v9 = vmul.f32 %v1970_v35, %v2611_v38  ;;  %v2021_v35 = vld [vmem:[%s2869_s5 + $0x80] ss:$12 sps:$4 sm:$0xff]  }
 0x556   :  { %v1140_v45 = vadd.f32 %v1139_v39, %v2893_v61  ;;  %v2018_v61 = vld [vmem:[%s2869_s5 + $0x38] ss:$12 sps:$4 sm:$0xff]  }
 0x558   :  { %1971 = vtanh.f32 %v1140_v45  ;;  %v2020_v45 = vld [vmem:[%s2869_s5 + $0x68] ss:$12 sps:$4 sm:$0xff]  }
 0x562   :  { %v1972_v53 = vpop.eup %1971 }
 0x563   :  { %v1143_v15 = vmul.f32 %v1972_v53, %v1142_v57  ;;  %v2022_v57 = vld [vmem:[%s2869_s5 + $0x90] ss:$12 sps:$4 sm:$0xff]   ;;  %v2023_v53 = vld [vmem:[%s2869_s5 + $0x98] ss:$12 sps:$4 sm:$0xff]  }
 0x565   :  { %v1145_v62 = vadd.f32 %v1144_v9, %v1143_v15  ;;  %v2024_v9 = vld [vmem:[%s2869_s5 + $0xac] ss:$12 sps:$4 sm:$0xff]   ;;  %v2025_v15 = vld [vmem:[%s2869_s5 + $0xa8] ss:$12 sps:$4 sm:$0xff]  }
 0x567   :  { %v2667_v0 = vsel %vm1151_vm13, %v1145_v62, %v2611_v38  ;;  %v2894_v38 = vld [vmem:[#allocation3_spill] sm:$0xff] }
 0x568   :  { %1572 = vst [vmem:[%s2874_s7 + $0x20] sm:$0xff] %v2667_v0  ;;  %v1159_v24 = vpack.c.bf16 %v2667_v0, %v2667_v0 }
 0x56a   :  { %1193 = vmatmul.mubr.bf16.vlgmr.msra.gmra.mrb[36].mxu0 %v1159_v24  ;;  %1807 = vmatmul.mubr.bf16.vlgmr.msra.gmra.mrb[28].mxu1 %v1159_v24 }
 0x56b   :  { %1277 = vmatpush1.bf16.msra.mxu0 %v2678_v12  ;;  %1811 = vmatpush3.bf16.msra.mxu1 %v2684_v17 }
 0x56c   :  { %1278 = vmatprep.subr.bf16.mxu0 %v2690_v58  ;;  %1812 = vmatprep.subr.bf16.mxu1 %v2891_v22 }
 0x56d   :  { %1308 = vmatprep.mubr.bf16.mxu0 %v2892_v55  ;;  %1826 = vmatprep.mubr.msk.bf16.mxu1 %vm2029_vm2, %v2891_v22 }
 0x56f   :  { %1279 = vmatpush1.bf16.msra.mxu0 %v2700_v8  ;;  %1813 = vmatpush3.bf16.msra.mxu1 %v2706_v1 }
 0x570   :  { %1280 = vmatprep.subr.bf16.mxu0 %v2712_v63  ;;  %1814 = vmatprep.subr.bf16.mxu1 %v2891_v22 }
 0x573   :  { %1281 = vmatpush1.bf16.msra.mxu0 %v2719_v11  ;;  %1815 = vmatpush3.bf16.msra.mxu1 %v2245_v44  ;;  %v2740_v44 = vld [vmem:[%s2869_s5 + $0x64] ss:$12 sps:$4 sm:$0xff]  }
 0x574   :  { %1282 = vmatprep.subr.bf16.mxu0 %v2726_v19  ;;  %1816 = vmatprep.subr.bf16.mxu1 %v2891_v22 }
 0x577   :  { %1283 = vmatpush1.bf16.msra.mxu0 %v2733_v14  ;;  %1817 = vmatpush3.bf16.msra.mxu1 %v2269_v49  ;;  %v2754_v49 = vld [vmem:[%s2869_s5 + $0x7c] ss:$12 sps:$4 sm:$0xff]  }
 0x578   :  { %1284 = vmatprep.subr.bf16.mxu0 %v2740_v44  ;;  %1818 = vmatprep.subr.bf16.mxu1 %v2891_v22 }
 0x57b   :  { %1285 = vmatpush1.bf16.msra.mxu0 %v2747_v2  ;;  %1819 = vmatpush3.bf16.msra.mxu1 %v2291_v52  ;;  %v2768_v52 = vld [vmem:[%s2869_s5 + $0x94] ss:$12 sps:$4 sm:$0xff]  }
 0x57c   :  { %1286 = vmatprep.subr.bf16.mxu0 %v2754_v49  ;;  %1820 = vmatprep.subr.bf16.mxu1 %v2891_v22 }
 0x57f   :  { %1287 = vmatpush1.bf16.msra.mxu0 %v2761_v23  ;;  %1821 = vmatpush3.bf16.msra.mxu1 %v2313_v56 }
 0x580   :  { %1288 = vmatprep.subr.bf16.mxu0 %v2768_v52  ;;  %1822 = vmatprep.subr.bf16.mxu1 %v2891_v22 }
 0x583   :  { %1289 = vmatpush1.bf16.msra.mxu0 %v2279_v50  ;;  %1823 = vmatpush3.bf16.msra.mxu1 %v2325_v59 }
 0x584   :  { %1290 = vmatprep.subr.bf16.mxu0 %v2285_v51  ;;  %1824 = vmatprep.subr.bf16.mxu1 %v2891_v22 }
 0x587   :  { %1291 = vmatpush1.bf16.msra.mxu0 %v2300_v54  ;;  %1825 = vmatpush3.bf16.msra.mxu1 %v2335_v60 }
 0x588   :  { %1392 = vmatprep.subr.bf16.mxu0 %v2655_v26  ;;  %1830 = vmatprep.subr.bf16.mxu1 %v2891_v22 }
 0x63d   :  { %v1194_v56 = vpop.f32.mrb[36].mxu0  ;;  %v1235_v4 = vpop.f32.mrb[28].mxu1 }
 0x63e   :  { %v1195_v16 = vadd.f32 %v1194_v56, %v2436_v36  ;;  %v1196_v6 = vpop.f32.mrb[37].mxu0  ;;  %v1808_v50 = vpop.f32.mrb[29].mxu1  ;;  %v1236_v40 = vadd.f32 %v1235_v4, %v2444_v5 }
 0x63f   :  { %v1197_v59 = vadd.f32 %v1196_v6, %v2438_v20  ;;  %v1198_v10 = vpop.f32.mrb[38].mxu0  ;;  %v1238_v51 = vpop.f32.mrb[30].mxu1 }
 0x640   :  { %v1241_v28 = vadd.f32 %v1195_v16, %v2894_v38  ;;  %v1199_v27 = vpop.f32.mrb[39].mxu0  ;;  %v1809_v54 = vpop.f32.mrb[31].mxu1 }
 0x641   :  { %v1248_v60 = vadd.f32 %v1197_v59, %v2895_v29  ;;  %v2899_v59 = vld [vmem:[#allocation4_spill] sm:$0xff]  ;;  %v1382_v27 = vpop.permute.xlu0 %1381 }
 0x642   :  { %v1573_v30 = vmul.f32 -1.442695, %v1241_v28  ;;  %vm1383_vm15 = vcmp.eq.s32.totalorder %v1382_v27, 1 }
 0x643   :  { %v1574_v26 = vmul.f32 -1.442695, %v1248_v60 }
 0x644   :  { %1973 = vpow2.f32 %v1573_v30 }
 0x645   :  { %1975 = vpow2.f32 %v1574_v26 }
 0x64e   :  { %v1974_v32 = vpop.eup %1973 }
 0x64f   :  { %v1245_v33 = vadd.f32 1.0, %v1974_v32  ;;  %v1976_v34 = vpop.eup %1975 }
 0x650   :  { %v1252_v37 = vadd.f32 1.0, %v1976_v34 }
 0x651   :  { %1977 = vrcp.f32 %v1245_v33 }
 0x652   :  { %1979 = vrcp.f32 %v1252_v37 }
 0x65b   :  { %v1978_v41 = vpop.eup %1977 }
 0x65c   :  { %v1255_v42 = vmul.f32 %v1978_v41, %v1236_v40  ;;  %v1980_v48 = vpop.eup %1979 }
 0x65d   :  { %v1258_v47 = vsub.f32 1.0, %v1980_v48  ;;  %v1260_v21 = vmul.f32 %v1980_v48, %v2667_v0 }
 0x65e   :  { %v1256_v46 = vadd.f32 %v1255_v42, %v2896_v43 }
 0x660   :  { %1981 = vtanh.f32 %v1256_v46  ;;  %v2900_v46 = vld [vmem:[#allocation11_spill] sm:$0xff] }
 0x66a   :  { %v1982_v7 = vpop.eup %1981 }
 0x66b   :  { %v1259_v13 = vmul.f32 %v1982_v7, %v1258_v47 }
 0x66d   :  { %v1261_v18 = vadd.f32 %v1260_v21, %v1259_v13  ;;  %v2901_v21 = vld [vmem:[#allocation12_spill] sm:$0xff] }
 0x66f   :  { %v2788_v25 = vsel %vm1267_vm14, %v1261_v18, %v2667_v0 }
 0x670   :  { %1575 = vst [vmem:[%s2874_s7 + $0x28] sm:$0xff] %v2788_v25  ;;  %v1275_v39 = vpack.c.bf16 %v2788_v25, %v2788_v25 }
 0x672   :  { %1309 = vmatmul.mubr.bf16.vlgmr.msra.gmra.mrb[40].mxu0 %v1275_v39  ;;  %1827 = vmatmul.mubr.bf16.vlgmr.msra.gmra.mrb[32].mxu1 %v1275_v39 }
 0x673   :  { %1393 = vmatpush1.bf16.msra.mxu0 %v2678_v12  ;;  %1831 = vmatpush3.bf16.msra.mxu1 %v2684_v17 }
 0x674   :  { %1394 = vmatprep.subr.bf16.mxu0 %v2690_v58  ;;  %1832 = vmatprep.subr.bf16.mxu1 %v2891_v22 }
 0x675   :  { %1424 = vmatprep.mubr.bf16.mxu0 %v2892_v55  ;;  %1846 = vmatprep.mubr.msk.bf16.mxu1 %vm2029_vm2, %v2891_v22  ;;  %v2019_v55 = vld [vmem:[%s2869_s5 + $0x50] ss:$12 sps:$4 sm:$0xff]  }
 0x677   :  { %1395 = vmatpush1.bf16.msra.mxu0 %v2700_v8  ;;  %1833 = vmatpush3.bf16.msra.mxu1 %v2706_v1  ;;  %v2897_v1 = vld [vmem:[#allocation9_spill] sm:$0xff] }
 0x678   :  { %1396 = vmatprep.subr.bf16.mxu0 %v2712_v63  ;;  %1834 = vmatprep.subr.bf16.mxu1 %v2891_v22 }
 0x67b   :  { %1397 = vmatpush1.bf16.msra.mxu0 %v2719_v11  ;;  %1835 = vmatpush3.bf16.msra.mxu1 %v2018_v61 }
 0x67c   :  { %1398 = vmatprep.subr.bf16.mxu0 %v2726_v19  ;;  %1836 = vmatprep.subr.bf16.mxu1 %v2891_v22 }
 0x67f   :  { %1399 = vmatpush1.bf16.msra.mxu0 %v2733_v14  ;;  %1837 = vmatpush3.bf16.msra.mxu1 %v2019_v55  ;;  %v2898_v14 = vld [vmem:[#allocation10_spill] sm:$0xff] }
 0x680   :  { %1400 = vmatprep.subr.bf16.mxu0 %v2740_v44  ;;  %1838 = vmatprep.subr.bf16.mxu1 %v2891_v22 }
 0x683   :  { %1401 = vmatpush1.bf16.msra.mxu0 %v2747_v2  ;;  %1839 = vmatpush3.bf16.msra.mxu1 %v2020_v45 }
 0x684   :  { %1402 = vmatprep.subr.bf16.mxu0 %v2754_v49  ;;  %1840 = vmatprep.subr.bf16.mxu1 %v2891_v22 }
 0x687   :  { %1403 = vmatpush1.bf16.msra.mxu0 %v2761_v23  ;;  %1841 = vmatpush3.bf16.msra.mxu1 %v2021_v35  ;;  %v2902_v35 = vld [vmem:[#allocation7_spill] sm:$0xff] }
 0x688   :  { %1404 = vmatprep.subr.bf16.mxu0 %v2768_v52  ;;  %1842 = vmatprep.subr.bf16.mxu1 %v2891_v22 }
 0x68b   :  { %1405 = vmatpush1.bf16.msra.mxu0 %v2022_v57  ;;  %1843 = vmatpush3.bf16.msra.mxu1 %v2023_v53 }
 0x68c   :  { %1406 = vmatprep.subr.bf16.mxu0 %v2024_v9  ;;  %1844 = vmatprep.subr.bf16.mxu1 %v2891_v22 }
 0x68f   :  { %1407 = vmatpush1.bf16.msra.mxu0 %v2025_v15  ;;  %1845 = vmatpush3.bf16.msra.mxu1 %v2026_v31  ;;  %v1498_v31 = vpop.permute.xlu1 %1497 }
 0x690   :  { %vm1499_vm0 = vcmp.eq.s32.totalorder %v1498_v31, 1 }
 0x745   :  { %v1310_v62 = vpop.f32.mrb[40].mxu0  ;;  %v1351_v0 = vpop.f32.mrb[32].mxu1 }
 0x746   :  { %v1311_v24 = vadd.f32 %v1310_v62, %v2436_v36  ;;  %v1312_v12 = vpop.f32.mrb[41].mxu0  ;;  %v1828_v17 = vpop.f32.mrb[33].mxu1  ;;  %v1352_v16 = vadd.f32 %v1351_v0, %v2444_v5 }
 0x747   :  { %v1313_v58 = vadd.f32 %v1312_v12, %v2438_v20  ;;  %v1314_v8 = vpop.f32.mrb[42].mxu0  ;;  %v1354_v22 = vpop.f32.mrb[34].mxu1 }
 0x748   :  { %v1357_v63 = vadd.f32 %v1311_v24, %v2897_v1  ;;  %v1315_v11 = vpop.f32.mrb[43].mxu0  ;;  %v1829_v19 = vpop.f32.mrb[35].mxu1 }
 0x749   :  { %v1364_v44 = vadd.f32 %v1313_v58, %v2898_v14 }
 0x74a   :  { %v1576_v2 = vmul.f32 -1.442695, %v1357_v63 }
 0x74b   :  { %v1577_v49 = vmul.f32 -1.442695, %v1364_v44 }
 0x74c   :  { %1983 = vpow2.f32 %v1576_v2 }
 0x74d   :  { %1985 = vpow2.f32 %v1577_v49 }
 0x756   :  { %v1984_v23 = vpop.eup %1983 }
 0x757   :  { %v1361_v52 = vadd.f32 1.0, %v1984_v23  ;;  %v1986_v56 = vpop.eup %1985 }
 0x758   :  { %v1368_v4 = vadd.f32 1.0, %v1986_v56 }
 0x759   :  { %1987 = vrcp.f32 %v1361_v52 }
 0x75a   :  { %1989 = vrcp.f32 %v1368_v4 }
 0x763   :  { %v1988_v6 = vpop.eup %1987 }
 0x764   :  { %v1371_v50 = vmul.f32 %v1988_v6, %v1352_v16  ;;  %v1990_v51 = vpop.eup %1989 }
 0x765   :  { %v1374_v38 = vsub.f32 1.0, %v1990_v51  ;;  %v1376_v54 = vmul.f32 %v1990_v51, %v2788_v25 }
 0x766   :  { %v1372_v10 = vadd.f32 %v1371_v50, %v2899_v59 }
 0x768   :  { %1991 = vtanh.f32 %v1372_v10 }
 0x772   :  { %v1992_v28 = vpop.eup %1991 }
 0x773   :  { %v1375_v29 = vmul.f32 %v1992_v28, %v1374_v38 }
 0x775   :  { %v1377_v60 = vadd.f32 %v1376_v54, %v1375_v29 }
 0x777   :  { %v1384_v30 = vsel %vm1383_vm15, %v1377_v60, %v2788_v25 }
 0x778   :  { %1578 = vst [vmem:[%s2874_s7 + $0x30] sm:$0xff] %v1384_v30  ;;  %v1391_v26 = vpack.c.bf16 %v1384_v30, %v1384_v30 }
 0x77a   :  { %1425 = vmatmul.mubr.bf16.vlgmr.msra.gmra.mrb[44].mxu0 %v1391_v26  ;;  %1847 = vmatmul.mubr.bf16.vlgmr.msra.gmra.mrb[36].mxu1 %v1391_v26 }
 0x84d   :  { %v1426_v32 = vpop.f32.mrb[44].mxu0  ;;  %v1467_v33 = vpop.f32.mrb[36].mxu1 }
 0x84e   :  { %v1427_v34 = vadd.f32 %v1426_v32, %v2436_v36  ;;  %v1428_v37 = vpop.f32.mrb[45].mxu0  ;;  %v1848_v40 = vpop.f32.mrb[37].mxu1  ;;  %v1468_v55 = vadd.f32 %v1467_v33, %v2444_v5 }
 0x84f   :  { %v1429_v41 = vadd.f32 %v1428_v37, %v2438_v20  ;;  %v1430_v42 = vpop.f32.mrb[46].mxu0  ;;  %v1470_v43 = vpop.f32.mrb[38].mxu1 }
 0x850   :  { %v1473_v48 = vadd.f32 %v1427_v34, %v2900_v46  ;;  %v1431_v47 = vpop.f32.mrb[47].mxu0  ;;  %v1849_v7 = vpop.f32.mrb[39].mxu1 }
 0x851   :  { %v1480_v13 = vadd.f32 %v1429_v41, %v2901_v21 }
 0x852   :  { %v1579_v3 = vmul.f32 -1.442695, %v1473_v48 }
 0x853   :  { %v1580_v18 = vmul.f32 -1.442695, %v1480_v13 }
 0x854   :  { %1993 = vpow2.f32 %v1579_v3 }
 0x855   :  { %1995 = vpow2.f32 %v1580_v18 }
 0x85e   :  { %v1994_v25 = vpop.eup %1993 }
 0x85f   :  { %v1477_v39 = vadd.f32 1.0, %v1994_v25  ;;  %v1996_v36 = vpop.eup %1995 }
 0x860   :  { %v1484_v61 = vadd.f32 1.0, %v1996_v36 }
 0x861   :  { %1997 = vrcp.f32 %v1477_v39 }
 0x862   :  { %1999 = vrcp.f32 %v1484_v61 }
 0x86b   :  { %v1998_v20 = vpop.eup %1997 }
 0x86c   :  { %v1487_v45 = vmul.f32 %v1998_v20, %v1468_v55  ;;  %v2000_v53 = vpop.eup %1999 }
 0x86d   :  { %v1490_v9 = vsub.f32 1.0, %v2000_v53  ;;  %v1492_v0 = vmul.f32 %v2000_v53, %v1384_v30 }
 0x86e   :  { %v1488_v57 = vadd.f32 %v1487_v45, %v2902_v35 }
 0x870   :  { %2001 = vtanh.f32 %v1488_v57 }
 0x87a   :  { %v2002_v15 = vpop.eup %2001 }
 0x87b   :  { %v1491_v62 = vmul.f32 %v2002_v15, %v1490_v9 }
 0x87d   :  { %v1493_v24 = vadd.f32 %v1492_v0, %v1491_v62 }
 0x87f   :  { %v1500_v12 = vsel %vm1499_vm0, %v1493_v24, %v1384_v30 }
 0x880   :  { %1581 = vst [vmem:[%s2874_s7 + $0x38] sm:$0xff] %v1500_v12 }

// kernel: hred_forward.5
= control target key start
LH: loop header
LB: loop body
LE: loop exit
PB: predicated region body
PF: predicated region fallthrough
CT: control target
= control target key end

     0   :  { %v3567_v1 = vmov 0   ;;  %v3569_v46 = vmov 0.0   ;;  %vm2623_vm8 = vmmov 0   ;;  %s3559_s3 = inlined_call_operand.vmem [shape: bf16[128,384], index: 3, kind: input, shape index: {}]   ;;  %s3560_s0 = inlined_call_operand.vmem [shape: bf16[8,16,128], index: 0, kind: input, shape index: {}]   ;;  %s3561_s5 = inlined_call_operand.vmem [shape: bf16[128,384], index: 5, kind: input, shape index: {}]   ;;  %s3562_s1 = inlined_call_operand.vmem [shape: s32[16,1], index: 1, kind: input, shape index: {}]   ;;  %s3563_s2 = inlined_call_operand.vmem [shape: f32[16,128], index: 2, kind: input, shape index: {}]   ;;  %s3564_s4 = inlined_call_operand.vmem [shape: f32[1,384], index: 4, kind: input, shape index: {}]   ;;  %s3565_s6 = inlined_call_operand.vmem [shape: f32[1,384], index: 6, kind: input, shape index: {}]   ;;  %s3566_s7 = inlined_call_operand.vmem [shape: f32[16,128], index: 7, kind: output, shape index: {}]  }
   0x1   :  { %v2365_v0 = vld [vmem:[%s3559_s3 + $0x4] ss:$12 sps:$4 sm:$0xff]   ;;  %300 = vmatprep.mubr.bf16.mxu0 %v3567_v1  ;;  %2363 = vset.pattern.permute.xlu0 %v3567_v1  ;;  %v2367_v2 = vld [vmem:[%s3559_s3] ss:$12 sps:$4 sm:$0xff]   ;;  %v2368_v3 = vld [vmem:[%s3559_s3 + $0x1c] ss:$12 sps:$4 sm:$0xff]  }
   0x2   :  { %2364 = vset.pattern.permute.xlu1 %v3567_v1  ;;  %268 = vmatprep.subr.bf16.mxu0 %v2365_v0  ;;  %v2370_v4 = vld [vmem:[%s3559_s3 + $0x18] ss:$12 sps:$4 sm:$0xff]   ;;  %v2371_v5 = vld [vmem:[%s3559_s3 + $0x34] ss:$12 sps:$4 sm:$0xff]   ;;  %v2373_v6 = vld [vmem:[%s3559_s3 + $0x30] ss:$12 sps:$4 sm:$0xff]  }
   0x3   :  { %269 = vmatpush1.bf16.msra.mxu0 %v2367_v2  ;;  %v2374_v7 = vld [vmem:[%s3559_s3 + $0x4c] ss:$12 sps:$4 sm:$0xff]   ;;  %v2376_v8 = vld [vmem:[%s3559_s3 + $0x48] ss:$12 sps:$4 sm:$0xff]   ;;  %v2389_v9 = vld [vmem:[%s3560_s0] sm:$0xff]  }
   0x4   :  { %270 = vmatprep.subr.bf16.mxu0 %v2368_v3  ;;  %v2377_v10 = vld [vmem:[%s3559_s3 + $0x64] ss:$12 sps:$4 sm:$0xff]   ;;  %2088 = vmatprep.mubr.bf16.mxu1 %v2389_v9  ;;  %v2379_v11 = vld [vmem:[%s3559_s3 + $0x60] ss:$12 sps:$4 sm:$0xff]   ;;  %v2380_v12 = vld [vmem:[%s3559_s3 + $0x7c] ss:$12 sps:$4 sm:$0xff]  }
   0x5   :  { %v2382_v13 = vld [vmem:[%s3559_s3 + $0x78] ss:$12 sps:$4 sm:$0xff]   ;;  %v2402_v14 = vld [vmem:[%s3559_s3 + $0x8] ss:$12 sps:$4 sm:$0xff]   ;;  %v2406_v16 = vld [vmem:[%s3559_s3 + $0x20] ss:$12 sps:$4 sm:$0xff]  }
   0x6   :  { %v2383_v15 = vld [vmem:[%s3559_s3 + $0x94] ss:$12 sps:$4 sm:$0xff]   ;;  %2072 = vmatprep.subr.bf16.mxu1 %v2402_v14  ;;  %v2385_v17 = vld [vmem:[%s3559_s3 + $0x90] ss:$12 sps:$4 sm:$0xff]   ;;  %v2408_v18 = vld [vmem:[%s3559_s3 + $0x38] ss:$12 sps:$4 sm:$0xff]  }
   0x7   :  { %271 = vmatpush1.bf16.msra.mxu0 %v2370_v4  ;;  %2073 = vmatpush3.bf16.msra.mxu1 %v2402_v14  ;;  %v2386_v19 = vld [vmem:[%s3559_s3 + $0xac] ss:$12 sps:$4 sm:$0xff]   ;;  %v2388_v20 = vld [vmem:[%s3559_s3 + $0xa8] ss:$12 sps:$4 sm:$0xff]   ;;  %v2412_v21 = vld [vmem:[%s3559_s3 + $0x50] ss:$12 sps:$4 sm:$0xff]  }
   0x8   :  { %272 = vmatprep.subr.bf16.mxu0 %v2371_v5  ;;  %2074 = vmatprep.subr.bf16.mxu1 %v2406_v16  ;;  %v2733_v22 = vld [vmem:[%s3561_s5 + $0x4] ss:$12 sps:$4 sm:$0xff]   ;;  %v2738_v23 = vld [vmem:[%s3561_s5] ss:$12 sps:$4 sm:$0xff]   ;;  %v2743_v24 = vld [vmem:[%s3561_s5 + $0x1c] ss:$12 sps:$4 sm:$0xff]  }
   0x9   :  { %v2414_v25 = vld [vmem:[%s3559_s3 + $0x68] ss:$12 sps:$4 sm:$0xff]   ;;  %v2752_v26 = vld [vmem:[%s3561_s5 + $0x18] ss:$12 sps:$4 sm:$0xff]   ;;  %v2418_v27 = vld [vmem:[%s3559_s3 + $0x80] ss:$12 sps:$4 sm:$0xff]  }
   0xa   :  { %v2763_v28 = vld [vmem:[%s3561_s5 + $0x34] ss:$12 sps:$4 sm:$0xff]   ;;  %v2393_v29 = vld [vmem:[%s3560_s0 + $0x8] sm:$0xff]   ;;  %v2772_v30 = vld [vmem:[%s3561_s5 + $0x30] ss:$12 sps:$4 sm:$0xff]  }
   0xb   :  { %273 = vmatpush1.bf16.msra.mxu0 %v2373_v6  ;;  %2075 = vmatpush3.bf16.msra.mxu1 %v2406_v16  ;;  %v2777_v31 = vld [vmem:[%s3561_s5 + $0x4c] ss:$12 sps:$4 sm:$0xff]   ;;  %v2786_v33 = vld [vmem:[%s3561_s5 + $0x48] ss:$12 sps:$4 sm:$0xff]   ;;  %v2424_v34 = vld [vmem:[%s3559_s3 + $0xb0] ss:$12 sps:$4 sm:$0xff]  }
   0xc   :  { %274 = vmatprep.subr.bf16.mxu0 %v2374_v7  ;;  %2076 = vmatprep.subr.bf16.mxu1 %v2408_v18  ;;  %v2420_v32 = vld [vmem:[%s3559_s3 + $0x98] ss:$12 sps:$4 sm:$0xff]   ;;  %v2397_v36 = vld [vmem:[%s3560_s0 + $0x10] sm:$0xff]   ;;  %v2810_v38 = vld [vmem:[%s3562_s1 + $0x8] sm:$0xff] }
   0xd   :  { %v2797_v35 = vld [vmem:[%s3561_s5 + $0x64] ss:$12 sps:$4 sm:$0xff]   ;;  %v2816_v39 = vld [vmem:[%s3561_s5 + $0x60] ss:$12 sps:$4 sm:$0xff]   ;;  %vm841_vm1 = vcmp.gt.s32.totalorder %v2810_v38, 0  ;;  %v2401_v47 = vld [vmem:[%s3560_s0 + $0x18] sm:$0xff]  }
   0xe   :  { %v2805_v37 = vld [vmem:[%s3562_s1] sm:$0xff]  ;;  %v2824_v40 = vld [vmem:[%s3561_s5 + $0x7c] ss:$12 sps:$4 sm:$0xff]   ;;  %v843_v43 = vsel %vm841_vm1, 1, %v3567_v1  ;;  %v2870_v51 = vld [vmem:[%s3561_s5 + $0xac] ss:$12 sps:$4 sm:$0xff]  }
   0xf   :  { %275 = vmatpush1.bf16.msra.mxu0 %v2376_v8  ;;  %2077 = vmatpush3.bf16.msra.mxu1 %v2408_v18  ;;  %vm840_vm0 = vcmp.gt.s32.totalorder %v2805_v37, 0  ;;  %v2830_v42 = vld [vmem:[%s3561_s5 + $0x8] ss:$12 sps:$4 sm:$0xff]   ;;  %v2838_v44 = vld [vmem:[%s3561_s5 + $0x78] ss:$12 sps:$4 sm:$0xff]   ;;  %vm1136_vm2 = vcmp.gt.s32.totalorder %v2805_v37, 2 }
  0x10   :  { %276 = vmatprep.subr.bf16.mxu0 %v2377_v10  ;;  %2078 = vmatprep.subr.bf16.mxu1 %v2412_v21  ;;  %v842_v41 = vsel %vm840_vm0, 1, %v3567_v1  ;;  %v2845_v45 = vld [vmem:[%s3561_s5 + $0x94] ss:$12 sps:$4 sm:$0xff]   ;;  %v1138_v49 = vsel %vm1136_vm2, 1, %v3567_v1  ;;  %v2862_v50 = vld [vmem:[%s3561_s5 + $0x90] ss:$12 sps:$4 sm:$0xff]  }
  0x11   :  { %845 = vperm.xlu0 %2363, %v842_v41   ;;  %v2855_v48 = vld [vmem:[%s3561_s5 + $0x20] ss:$12 sps:$4 sm:$0xff]   ;;  %vm1284_vm3 = vcmp.gt.s32.totalorder %v2805_v37, 3  ;;  %v2876_v52 = vld [vmem:[%s3561_s5 + $0x38] ss:$12 sps:$4 sm:$0xff]   ;;  %vm1432_vm4 = vcmp.gt.s32.totalorder %v2805_v37, 4 }
  0x12   :  { %v1286_v53 = vsel %vm1284_vm3, 1, %v3567_v1  ;;  %v2884_v54 = vld [vmem:[%s3561_s5 + $0xa8] ss:$12 sps:$4 sm:$0xff]   ;;  %v2407_v55 = vld [vmem:[%s3560_s0 + $0x20] sm:$0xff]   ;;  %v2896_v56 = vld [vmem:[%s3561_s5 + $0x50] ss:$12 sps:$4 sm:$0xff]  }
  0x13   :  { %277 = vmatpush1.bf16.msra.mxu0 %v2379_v11  ;;  %2079 = vmatpush3.bf16.msra.mxu1 %v2412_v21  ;;  %v1434_v57 = vsel %vm1432_vm4, 1, %v3567_v1  ;;  %vm1580_vm5 = vcmp.gt.s32.totalorder %v2805_v37, 5  ;;  %v2907_v58 = vld [vmem:[%s3561_s5 + $0x68] ss:$12 sps:$4 sm:$0xff]   ;;  %vm1728_vm6 = vcmp.gt.s32.totalorder %v2805_v37, 6  ;;  %vm1876_vm7 = vcmp.gt.s32.totalorder %v2805_v37, 7 }
  0x14   :  { %278 = vmatprep.subr.bf16.mxu0 %v2380_v12  ;;  %2080 = vmatprep.subr.bf16.mxu1 %v2414_v25  ;;  %v1582_v59 = vsel %vm1580_vm5, 1, %v3567_v1  ;;  %v2413_v60 = vld [vmem:[%s3560_s0 + $0x28] sm:$0xff]   ;;  %v2419_v61 = vld [vmem:[%s3560_s0 + $0x30] sm:$0xff]   ;;  %v1730_v63 = vsel %vm1728_vm6, 1, %v3567_v1  ;;  %v2932_v0 = vld [vmem:[%s3561_s5 + $0x98] ss:$12 sps:$4 sm:$0xff]   ;;  %v77_v12 = vlaneseq }
  0x15   :  { %848 = vperm.xlu0 %2363, %v843_v43   ;;  %v2923_v62 = vld [vmem:[%s3561_s5 + $0x80] ss:$12 sps:$4 sm:$0xff]   ;;  %v1878_v2 = vsel %vm1876_vm7, 1, %v3567_v1  ;;  %v2425_v3 = vld [vmem:[%s3560_s0 + $0x38] sm:$0xff]   ;;  %vm988_vm9 = vcmp.gt.s32.totalorder %v2805_v37, 1  ;;  %vm989_vm10 = vcmp.gt.s32.totalorder %v2810_v38, 1 }
  0x16   :  { %v2944_v4 = vld [vmem:[%s3561_s5 + $0xb0] ss:$12 sps:$4 sm:$0xff]   ;;  %v2952_v5 = vld [vmem:[%s3563_s2] sm:$0xff]  ;;  %v2957_v6 = vld [vmem:[%s3563_s2 + $0x8] sm:$0xff]  ;;  %v990_v8 = vsel %vm988_vm9, 1, %v3567_v1  ;;  %vm1137_vm11 = vcmp.gt.s32.totalorder %v2810_v38, 2 }
  0x17   :  { %279 = vmatpush1.bf16.msra.mxu0 %v2382_v13  ;;  %2081 = vmatpush3.bf16.msra.mxu1 %v2414_v25  ;;  %v569_v7 = vpack.c.bf16 %v2957_v6, %v2952_v5  ;;  %v1139_v10 = vsel %vm1137_vm11, 1, %v3567_v1  ;;  %vm1285_vm12 = vcmp.gt.s32.totalorder %v2810_v38, 3  ;;  %vm1433_vm13 = vcmp.gt.s32.totalorder %v2810_v38, 4  ;;  %v75_v18 = vld [vmem:[%s3564_s4] sm:$0x7] }
  0x18   :  { %280 = vmatprep.subr.bf16.mxu0 %v2383_v15  ;;  %2082 = vmatprep.subr.bf16.mxu1 %v2418_v27  ;;  %v1287_v11 = vsel %vm1285_vm12, 1, %v3567_v1  ;;  %v1435_v13 = vsel %vm1433_vm13, 1, %v3567_v1  ;;  %vm1581_vm14 = vcmp.gt.s32.totalorder %v2810_v38, 5  ;;  %v3011_v14 = vshrl.u32 %v77_v12, 7 }
  0x19   :  { %1141 = vperm.xlu0 %2363, %v1138_v49   ;;  %993 = vperm.xlu1 %2364, %v990_v8   ;;  %v1583_v15 = vsel %vm1581_vm14, 1, %v3567_v1  ;;  %vm1729_vm15 = vcmp.gt.s32.totalorder %v2810_v38, 6  ;;  %vm1877_vm0 = vcmp.gt.s32.totalorder %v2810_v38, 7 }
  0x1a   :  { %v3571_v16 = vsub.s32 2, %v3011_v14 }
  0x1b   :  { %281 = vmatpush1.bf16.msra.mxu0 %v2385_v17  ;;  %2083 = vmatpush3.bf16.msra.mxu1 %v2418_v27  ;;  %v1731_v17 = vsel %vm1729_vm15, 1, %v3567_v1 }
  0x1c   :  { %282 = vmatprep.subr.bf16.mxu0 %v2386_v19  ;;  %2084 = vmatprep.subr.bf16.mxu1 %v2420_v32  ;;  %v3023_v19 = vrot.slane %v75_v18, %v3571_v16 }
  0x1d   :  { %1289 = vperm.xlu0 %2363, %v1286_v53  }
  0x1f   :  { %283 = vmatpush1.bf16.msra.mxu0 %v2388_v20  ;;  %2085 = vmatpush3.bf16.msra.mxu1 %v2420_v32  ;;  %v1879_v20 = vsel %vm1877_vm0, 1, %v3567_v1 }
  0x20   :  { %714 = vmatprep.subr.bf16.mxu0 %v2733_v22  ;;  %2086 = vmatprep.subr.bf16.mxu1 %v2424_v34 }
  0x21   :  { %1437 = vperm.xlu0 %2363, %v1434_v57  }
  0x22   :  { %301 = vmatmul.mubr.bf16.vlgmr.msra.gmra.mrb[0].mxu0 %v2389_v9  ;;  %v991_v9 = vsel %vm989_vm10, 1, %v3567_v1 }
  0x23   :  { %715 = vmatpush1.bf16.msra.mxu0 %v2738_v23  ;;  %310 = vmatprep.mubr.bf16.mxu0 %v3567_v1 }
  0x24   :  { %716 = vmatprep.subr.bf16.mxu0 %v2743_v24  ;;  %2087 = vmatpush3.bf16.msra.mxu1 %v2424_v34 }
  0x25   :  { %2104 = vmatprep.subr.bf16.mxu1 %v3569_v46  ;;  %1585 = vperm.xlu0 %2363, %v1582_v59  }
  0x26   :  { %996 = vperm.xlu1 %2364, %v991_v9  }
  0x27   :  { %717 = vmatpush1.bf16.msra.mxu0 %v2752_v26  ;;  %2089 = vmatmul.mubr.bf16.vlgmr.msra.gmra.mrb[0].mxu1 %v2393_v29 }
  0x28   :  { %718 = vmatprep.subr.bf16.mxu0 %v2763_v28  ;;  %2105 = vmatpush3.bf16.msra.mxu1 %v2830_v42 }
  0x29   :  { %2092 = vmatprep.mubr.bf16.mxu1 %v2397_v36  ;;  %2106 = vmatprep.subr.bf16.mxu1 %v3569_v46 }
  0x2a   :  { %311 = vmatmul.mubr.bf16.gmra.mrb[4].mxu0 %v2393_v29  ;;  %1733 = vperm.xlu0 %2363, %v1730_v63  }
  0x2b   :  { %320 = vmatprep.mubr.bf16.mxu0 %v3567_v1  ;;  %719 = vmatpush1.bf16.msra.mxu0 %v2772_v30 }
  0x2c   :  { %720 = vmatprep.subr.bf16.mxu0 %v2777_v31  ;;  %2107 = vmatpush3.bf16.msra.mxu1 %v2855_v48 }
  0x2d   :  { %2108 = vmatprep.subr.bf16.mxu1 %v3569_v46  ;;  %1144 = vperm.xlu1 %2364, %v1139_v10  }
  0x2e   :  { %1881 = vperm.xlu0 %2363, %v1878_v2  }
  0x2f   :  { %721 = vmatpush1.bf16.msra.mxu0 %v2786_v33  ;;  %2093 = vmatmul.mubr.bf16.gmra.mrb[4].mxu1 %v2401_v47 }
  0x30   :  { %722 = vmatprep.subr.bf16.mxu0 %v2797_v35  ;;  %2109 = vmatpush3.bf16.msra.mxu1 %v2876_v52 }
  0x31   :  { %2096 = vmatprep.mubr.bf16.mxu1 %v2407_v55  ;;  %2110 = vmatprep.subr.bf16.mxu1 %v3569_v46 }
  0x32   :  { %321 = vmatmul.mubr.bf16.gmra.mrb[8].mxu0 %v2397_v36  ;;  %1292 = vperm.xlu1 %2364, %v1287_v11  }
  0x33   :  { %330 = vmatprep.mubr.bf16.mxu0 %v3567_v1  ;;  %723 = vmatpush1.bf16.msra.mxu0 %v2816_v39 }
  0x34   :  { %724 = vmatprep.subr.bf16.mxu0 %v2824_v40  ;;  %2111 = vmatpush3.bf16.msra.mxu1 %v2896_v56 }
  0x35   :  { %2112 = vmatprep.subr.bf16.mxu1 %v3569_v46 }
  0x36   :  { %1440 = vperm.xlu1 %2364, %v1435_v13  }
  0x37   :  { %725 = vmatpush1.bf16.msra.mxu0 %v2838_v44  ;;  %2097 = vmatmul.mubr.bf16.gmra.mrb[8].mxu1 %v2413_v60 }
  0x38   :  { %726 = vmatprep.subr.bf16.mxu0 %v2845_v45  ;;  %2113 = vmatpush3.bf16.msra.mxu1 %v2907_v58 }
  0x39   :  { %2100 = vmatprep.mubr.bf16.mxu1 %v2419_v61  ;;  %2114 = vmatprep.subr.bf16.mxu1 %v3569_v46 }
  0x3a   :  { %331 = vmatmul.mubr.bf16.gmra.mrb[12].mxu0 %v2401_v47  ;;  %1588 = vperm.xlu1 %2364, %v1583_v15  }
  0x3b   :  { %340 = vmatprep.mubr.bf16.mxu0 %v3567_v1  ;;  %727 = vmatpush1.bf16.msra.mxu0 %v2862_v50 }
  0x3c   :  { %728 = vmatprep.subr.bf16.mxu0 %v2870_v51  ;;  %2115 = vmatpush3.bf16.msra.mxu1 %v2923_v62 }
  0x3d   :  { %2116 = vmatprep.subr.bf16.mxu1 %v3569_v46 }
  0x3e   :  { %1736 = vperm.xlu1 %2364, %v1731_v17  }
  0x3f   :  { %729 = vmatpush1.bf16.msra.mxu0 %v2884_v54  ;;  %2101 = vmatmul.mubr.bf16.gmra.mrb[12].mxu1 %v2425_v3 }
  0x40   :  { %862 = vmatprep.subr.bf16.mxu0 %v2733_v22  ;;  %2117 = vmatpush3.bf16.msra.mxu1 %v2932_v0 }
  0x41   :  { %2120 = vmatprep.mubr.msk.bf16.mxu1 %vm2623_vm8, %v3569_v46  ;;  %2118 = vmatprep.subr.bf16.mxu1 %v3569_v46 }
  0x42   :  { %341 = vmatmul.mubr.bf16.gmra.mrb[16].mxu0 %v2407_v55  ;;  %1884 = vperm.xlu1 %2364, %v1879_v20  }
  0x43   :  { %350 = vmatprep.mubr.bf16.mxu0 %v3567_v1 }
  0x44   :  { %2119 = vmatpush3.bf16.msra.mxu1 %v2944_v4 }
  0x45   :  { %2124 = vmatprep.subr.bf16.mxu1 %v3569_v46 }
  0x47   :  { %2121 = vmatmul.mubr.bf16.vlgmr.msra.gmra.mrb[16].mxu1 %v569_v7 }
  0x48   :  { %2125 = vmatpush3.bf16.msra.mxu1 %v2830_v42  ;;  %2140 = vmatprep.mubr.msk.bf16.mxu1 %vm2623_vm8, %v3569_v46 }
  0x49   :  { %2126 = vmatprep.subr.bf16.mxu1 %v3569_v46 }
  0x4a   :  { %351 = vmatmul.mubr.bf16.gmra.mrb[20].mxu0 %v2413_v60 }
  0x4b   :  { %360 = vmatprep.mubr.bf16.mxu0 %v3567_v1 }
  0x4c   :  { %2127 = vmatpush3.bf16.msra.mxu1 %v2855_v48 }
  0x4d   :  { %2128 = vmatprep.subr.bf16.mxu1 %v3569_v46 }
  0x50   :  { %2129 = vmatpush3.bf16.msra.mxu1 %v2876_v52 }
  0x51   :  { %2130 = vmatprep.subr.bf16.mxu1 %v3569_v46 }
  0x52   :  { %361 = vmatmul.mubr.bf16.gmra.mrb[24].mxu0 %v2419_v61 }
  0x53   :  { %370 = vmatprep.mubr.bf16.mxu0 %v3567_v1 }
  0x54   :  { %2131 = vmatpush3.bf16.msra.mxu1 %v2896_v56 }
  0x55   :  { %2132 = vmatprep.subr.bf16.mxu1 %v3569_v46 }
  0x58   :  { %2133 = vmatpush3.bf16.msra.mxu1 %v2907_v58 }
  0x59   :  { %2134 = vmatprep.subr.bf16.mxu1 %v3569_v46 }
  0x5a   :  { %371 = vmatmul.mubr.bf16.gmra.mrb[28].mxu0 %v2425_v3 }
  0x5b   :  { %746 = vmatprep.mubr.bf16.mxu0 %v3567_v1 }
  0x5c   :  { %2135 = vmatpush3.bf16.msra.mxu1 %v2923_v62 }
  0x5d   :  { %2136 = vmatprep.subr.bf16.mxu1 %v3569_v46 }
  0x60   :  { %2137 = vmatpush3.bf16.msra.mxu1 %v2932_v0 }
  0x61   :  { %2138 = vmatprep.subr.bf16.mxu1 %v3569_v46 }
  0x62   :  { %747 = vmatmul.mubr.bf16.vlgmr.msra.gmra.mrb[0].mxu0 %v569_v7 }
  0x63   :  { %863 = vmatpush1.bf16.msra.mxu0 %v2738_v23  ;;  %894 = vmatprep.mubr.bf16.mxu0 %v3567_v1 }
  0x64   :  { %864 = vmatprep.subr.bf16.mxu0 %v2743_v24  ;;  %2139 = vmatpush3.bf16.msra.mxu1 %v2944_v4 }
  0x65   :  { %2144 = vmatprep.subr.bf16.mxu1 %v3569_v46 }
  0x67   :  { %865 = vmatpush1.bf16.msra.mxu0 %v2752_v26 }
  0x68   :  { %866 = vmatprep.subr.bf16.mxu0 %v2763_v28 }
  0x6b   :  { %867 = vmatpush1.bf16.msra.mxu0 %v2772_v30 }
  0x6c   :  { %868 = vmatprep.subr.bf16.mxu0 %v2777_v31 }
  0x6f   :  { %869 = vmatpush1.bf16.msra.mxu0 %v2786_v33 }
  0x70   :  { %870 = vmatprep.subr.bf16.mxu0 %v2797_v35 }
  0x73   :  { %871 = vmatpush1.bf16.msra.mxu0 %v2816_v39 }
  0x74   :  { %872 = vmatprep.subr.bf16.mxu0 %v2824_v40 }
  0x77   :  { %873 = vmatpush1.bf16.msra.mxu0 %v2838_v44 }
  0x78   :  { %874 = vmatprep.subr.bf16.mxu0 %v2845_v45 }
  0x7b   :  { %875 = vmatpush1.bf16.msra.mxu0 %v2862_v50 }
  0x7c   :  { %876 = vmatprep.subr.bf16.mxu0 %v2870_v51 }
  0x7f   :  { %877 = vmatpush1.bf16.msra.mxu0 %v2884_v54 }
  0x80   :  { %1010 = vmatprep.subr.bf16.mxu0 %v2733_v22 }
  0xfa   :  { %v2090_v21 = vpop.f32.mrb[0].mxu1 }
  0xfb   :  { %v3027_v25 = vadd.f32 %v2090_v21, %v3023_v19  ;;  %v3029_v27 = vpop.f32.mrb[1].mxu1  ;;  %v79_v21 = vsub.s32 0, %v3011_v14 }
  0xfc   :  { %v2091_v29 = vpop.f32.mrb[2].mxu1 }
  0xfd   :  { %v3032_v32 = vadd.f32 %v2091_v29, %v3023_v19  ;;  %v3034_v34 = vpop.f32.mrb[3].mxu1 }
 0x102   :  { %v2094_v36 = vpop.f32.mrb[4].mxu1 }
 0x103   :  { %v3037_v37 = vadd.f32 %v2094_v36, %v3023_v19  ;;  %v431_v38 = vpop.f32.mrb[5].mxu1  ;;  %v558_v36 = vld [vmem:[%s3565_s6] sm:$0x7] }
 0x104   :  { %v3040_v41 = vadd.f32 %v431_v38, %v3023_v19  ;;  %v2095_v43 = vpop.f32.mrb[6].mxu1 }
 0x105   :  { %v3043_v47 = vadd.f32 %v2095_v43, %v3023_v19  ;;  %v434_v49 = vpop.f32.mrb[7].mxu1  ;;  %v83_v43 = vsub.s32 1, %v3011_v14 }
 0x106   :  { %v3046_v53 = vadd.f32 %v434_v49, %v3023_v19  ;;  %v80_v49 = vrot.slane %v75_v18, %v79_v21 }
 0x10a   :  { %v2098_v55 = vpop.f32.mrb[8].mxu1 }
 0x10b   :  { %v3049_v57 = vadd.f32 %v2098_v55, %v3023_v19  ;;  %v447_v59 = vpop.f32.mrb[9].mxu1  ;;  %v574_v55 = vrot.slane %v558_v36, %v79_v21 }
 0x10c   :  { %v3052_v60 = vadd.f32 %v447_v59, %v3023_v19  ;;  %v2099_v61 = vpop.f32.mrb[10].mxu1  ;;  %v84_v59 = vrot.slane %v75_v18, %v83_v43 }
 0x10d   :  { %v3055_v63 = vadd.f32 %v2099_v61, %v3023_v19  ;;  %v450_v2 = vpop.f32.mrb[11].mxu1  ;;  %v578_v61 = vrot.slane %v558_v36, %v83_v43 }
 0x10e   :  { %v3058_v3 = vadd.f32 %v450_v2, %v3023_v19  ;;  %v3077_v2 = vadd.f32 %v574_v55, %v80_v49 }
 0x112   :  { %v2102_v7 = vpop.f32.mrb[12].mxu1 }
 0x113   :  { %v3061_v8 = vadd.f32 %v2102_v7, %v3023_v19  ;;  %v463_v9 = vpop.f32.mrb[13].mxu1 }
 0x114   :  { %v3064_v10 = vadd.f32 %v463_v9, %v3023_v19  ;;  %v2103_v11 = vpop.f32.mrb[14].mxu1  ;;  %v3079_v9 = vadd.f32 %v578_v61, %v84_v59 }
 0x115   :  { %v3067_v12 = vadd.f32 %v2103_v11, %v3023_v19  ;;  %v466_v13 = vpop.f32.mrb[15].mxu1 }
 0x116   :  { %v3070_v15 = vadd.f32 %v466_v13, %v3023_v19 }
 0x117   :  { %3572 = vst [vmem:[#allocation3_spill] sm:$0xff] %v3067_v12 }
 0x11a   :  { %v791_v17 = vpop.f32.mrb[16].mxu1 }
 0x11b   :  { %v2122_v20 = vpop.f32.mrb[17].mxu1 }
 0x11c   :  { %v794_v29 = vpop.f32.mrb[18].mxu1 }
 0x11d   :  { %v2123_v38 = vpop.f32.mrb[19].mxu1 }
 0x135   :  { %v748_v7 = vpop.f32.mrb[0].mxu0 }
 0x136   :  { %v2265_v11 = vadd.f32 %v3077_v2, %v748_v7  ;;  %v750_v13 = vpop.f32.mrb[1].mxu0  ;;  %v3573_v7 = vsub.s32 2, %v3011_v14  ;;  %v419_v14 = vadd.f32 %v3034_v34, %v3023_v19 }
 0x137   :  { %v752_v20 = vpop.f32.mrb[2].mxu0  ;;  %v2267_v38 = vadd.f32 %v3079_v9, %v750_v13 }
 0x138   :  { %v1952_v1 = vmul.f32 -1.442695, %v2265_v11  ;;  %v2269_v46 = vadd.f32 %v3077_v2, %v752_v20  ;;  %v754_v16 = vpop.f32.mrb[3].mxu0  ;;  %v3087_v11 = vrot.slane %v558_v36, %v3573_v7  ;;  %v846_v7 = vpop.permute.xlu0 %845 }
 0x139   :  { %v2271_v18 = vadd.f32 %v3079_v9, %v754_v16  ;;  %v1954_v21 = vmul.f32 -1.442695, %v2267_v38  ;;  %v416_v38 = vadd.f32 %v3029_v27, %v3023_v19  ;;  %vm850_vm1 = vcmp.eq.s32.totalorder %v846_v7, 1 }
 0x13a   :  { %2437 = vpow2.f32 %v1952_v1  ;;  %v1953_v12 = vmul.f32 -1.442695, %v2269_v46  ;;  %v792_v16 = vadd.f32 %v791_v17, %v3087_v11 }
 0x13b   :  { %v1955_v43 = vmul.f32 -1.442695, %v2271_v18 }
 0x13c   :  { %2439 = vpow2.f32 %v1953_v12  ;;  %v849_v34 = vpop.permute.xlu0 %848 }
 0x13d   :  { %2441 = vpow2.f32 %v1954_v21  ;;  %v795_v21 = vadd.f32 %v794_v29, %v3087_v11  ;;  %vm851_vm2 = vcmp.eq.s32.totalorder %v849_v34, 1 }
 0x13e   :  { %2443 = vpow2.f32 %v1955_v43 }
 0x144   :  { %v2438_v49 = vpop.eup %2437 }
 0x145   :  { %v806_v55 = vadd.f32 1.0, %v2438_v49 }
 0x146   :  { %v2440_v59 = vpop.eup %2439 }
 0x147   :  { %2445 = vrcp.f32 %v806_v55  ;;  %v807_v61 = vadd.f32 1.0, %v2440_v59  ;;  %v2442_v13 = vpop.eup %2441 }
 0x148   :  { %v2444_v1 = vpop.eup %2443  ;;  %v820_v46 = vadd.f32 1.0, %v2442_v13 }
 0x149   :  { %2447 = vrcp.f32 %v807_v61  ;;  %v821_v12 = vadd.f32 1.0, %v2444_v1 }
 0x14a   :  { %2449 = vrcp.f32 %v820_v46 }
 0x14b   :  { %2451 = vrcp.f32 %v821_v12 }
 0x151   :  { %v2446_v20 = vpop.eup %2445 }
 0x152   :  { %v826_v18 = vmul.f32 %v2446_v20, %v792_v16 }
 0x153   :  { %v2448_v43 = vpop.eup %2447 }
 0x154   :  { %v828_v36 = vadd.f32 %v826_v18, %v416_v38  ;;  %v827_v49 = vmul.f32 %v2448_v43, %v795_v21  ;;  %v2450_v17 = vpop.eup %2449  ;;  %v3574_v43 = vmov 0.0  }
 0x155   :  { %v2452_v59 = vpop.eup %2451  ;;  %v832_v61 = vsub.f32 1.0, %v2450_v17  ;;  %v836_v27 = vmul.f32 %v2450_v17, %v2952_v5 }
 0x156   :  { %2453 = vtanh.f32 %v828_v36  ;;  %v829_v55 = vadd.f32 %v827_v49, %v419_v14  ;;  %v833_v1 = vsub.f32 1.0, %v2452_v59  ;;  %v837_v16 = vmul.f32 %v2452_v59, %v2957_v6 }
 0x157   :  { %v3575_v14 = vmov 0  }
 0x158   :  { %2455 = vtanh.f32 %v829_v55 }
 0x160   :  { %v2454_v13 = vpop.eup %2453 }
 0x161   :  { %v834_v46 = vmul.f32 %v2454_v13, %v832_v61 }
 0x162   :  { %v2456_v29 = vpop.eup %2455 }
 0x163   :  { %v835_v20 = vmul.f32 %v2456_v29, %v833_v1  ;;  %v838_v19 = vadd.f32 %v836_v27, %v834_v46 }
 0x165   :  { %v839_v12 = vadd.f32 %v837_v16, %v835_v20  ;;  %v3098_v38 = vsel %vm850_vm1, %v838_v19, %v2952_v5 }
 0x167   :  { %v3101_v18 = vsel %vm851_vm2, %v839_v12, %v2957_v6 }
 0x168   :  { %v861_v21 = vpack.c.bf16 %v3101_v18, %v3098_v38 }
 0x16a   :  { %895 = vmatmul.mubr.bf16.vlgmr.msra.gmra.mrb[4].mxu0 %v861_v21  ;;  %2141 = vmatmul.mubr.bf16.vlgmr.msra.gmra.mrb[20].mxu1 %v861_v21 }
 0x16b   :  { %1011 = vmatpush1.bf16.msra.mxu0 %v2738_v23  ;;  %2145 = vmatpush3.bf16.msra.mxu1 %v2830_v42 }
 0x16c   :  { %1012 = vmatprep.subr.bf16.mxu0 %v2743_v24  ;;  %2146 = vmatprep.subr.bf16.mxu1 %v3574_v43 }
 0x16d   :  { %1042 = vmatprep.mubr.bf16.mxu0 %v3575_v14  ;;  %2160 = vmatprep.mubr.msk.bf16.mxu1 %vm2623_vm8, %v3574_v43 }
 0x16f   :  { %1013 = vmatpush1.bf16.msra.mxu0 %v2752_v26  ;;  %2147 = vmatpush3.bf16.msra.mxu1 %v2855_v48 }
 0x170   :  { %1014 = vmatprep.subr.bf16.mxu0 %v2763_v28  ;;  %2148 = vmatprep.subr.bf16.mxu1 %v3574_v43 }
 0x173   :  { %1015 = vmatpush1.bf16.msra.mxu0 %v2772_v30  ;;  %2149 = vmatpush3.bf16.msra.mxu1 %v2876_v52 }
 0x174   :  { %1016 = vmatprep.subr.bf16.mxu0 %v2777_v31  ;;  %2150 = vmatprep.subr.bf16.mxu1 %v3574_v43 }
 0x177   :  { %1017 = vmatpush1.bf16.msra.mxu0 %v2786_v33  ;;  %2151 = vmatpush3.bf16.msra.mxu1 %v2896_v56 }
 0x178   :  { %1018 = vmatprep.subr.bf16.mxu0 %v2797_v35  ;;  %2152 = vmatprep.subr.bf16.mxu1 %v3574_v43 }
 0x17b   :  { %1019 = vmatpush1.bf16.msra.mxu0 %v2816_v39  ;;  %2153 = vmatpush3.bf16.msra.mxu1 %v2907_v58 }
 0x17c   :  { %1020 = vmatprep.subr.bf16.mxu0 %v2824_v40  ;;  %2154 = vmatprep.subr.bf16.mxu1 %v3574_v43 }
 0x17f   :  { %1021 = vmatpush1.bf16.msra.mxu0 %v2838_v44  ;;  %2155 = vmatpush3.bf16.msra.mxu1 %v2923_v62 }
 0x180   :  { %1022 = vmatprep.subr.bf16.mxu0 %v2845_v45  ;;  %2156 = vmatprep.subr.bf16.mxu1 %v3574_v43 }
 0x183   :  { %1023 = vmatpush1.bf16.msra.mxu0 %v2862_v50  ;;  %2157 = vmatpush3.bf16.msra.mxu1 %v2932_v0 }
 0x184   :  { %1024 = vmatprep.subr.bf16.mxu0 %v2870_v51  ;;  %2158 = vmatprep.subr.bf16.mxu1 %v3574_v43 }
 0x187   :  { %1025 = vmatpush1.bf16.msra.mxu0 %v2884_v54  ;;  %2159 = vmatpush3.bf16.msra.mxu1 %v2944_v4 }
 0x188   :  { %1158 = vmatprep.subr.bf16.mxu0 %v2733_v22  ;;  %2164 = vmatprep.subr.bf16.mxu1 %v3574_v43 }
 0x23d   :  { %v896_v5 = vpop.f32.mrb[4].mxu0  ;;  %v939_v6 = vpop.f32.mrb[20].mxu1 }
 0x23e   :  { %v2273_v36 = vadd.f32 %v3077_v2, %v896_v5  ;;  %v898_v49 = vpop.f32.mrb[5].mxu0  ;;  %v2142_v55 = vpop.f32.mrb[21].mxu1 }
 0x23f   :  { %v900_v17 = vpop.f32.mrb[6].mxu0  ;;  %v942_v59 = vpop.f32.mrb[22].mxu1  ;;  %v2275_v1 = vadd.f32 %v3079_v9, %v898_v49  ;;  %v940_v49 = vadd.f32 %v939_v6, %v3087_v11 }
 0x240   :  { %v1956_v61 = vmul.f32 -1.442695, %v2273_v36  ;;  %v2277_v7 = vadd.f32 %v3077_v2, %v900_v17  ;;  %v902_v13 = vpop.f32.mrb[7].mxu0  ;;  %v2143_v27 = vpop.f32.mrb[23].mxu1 }
 0x241   :  { %v2279_v29 = vadd.f32 %v3079_v9, %v902_v13  ;;  %v1958_v16 = vmul.f32 -1.442695, %v2275_v1  ;;  %v943_v13 = vadd.f32 %v942_v59, %v3087_v11 }
 0x242   :  { %2457 = vpow2.f32 %v1956_v61  ;;  %v1957_v46 = vmul.f32 -1.442695, %v2277_v7 }
 0x243   :  { %v1959_v20 = vmul.f32 -1.442695, %v2279_v29 }
 0x244   :  { %2459 = vpow2.f32 %v1957_v46 }
 0x245   :  { %2461 = vpow2.f32 %v1958_v16 }
 0x246   :  { %2463 = vpow2.f32 %v1959_v20 }
 0x24c   :  { %v2458_v19 = vpop.eup %2457 }
 0x24d   :  { %v954_v34 = vadd.f32 1.0, %v2458_v19  ;;  %v994_v19 = vpop.permute.xlu1 %993 }
 0x24e   :  { %v2460_v12 = vpop.eup %2459  ;;  %vm998_vm3 = vcmp.eq.s32.totalorder %v994_v19, 1 }
 0x24f   :  { %2465 = vrcp.f32 %v954_v34  ;;  %v955_v21 = vadd.f32 1.0, %v2460_v12  ;;  %v2462_v5 = vpop.eup %2461 }
 0x250   :  { %v2464_v36 = vpop.eup %2463  ;;  %v968_v55 = vadd.f32 1.0, %v2462_v5 }
 0x251   :  { %2467 = vrcp.f32 %v955_v21  ;;  %v969_v17 = vadd.f32 1.0, %v2464_v36 }
 0x252   :  { %2469 = vrcp.f32 %v968_v55 }
 0x253   :  { %2471 = vrcp.f32 %v969_v17 }
 0x259   :  { %v2466_v61 = vpop.eup %2465 }
 0x25a   :  { %v974_v7 = vmul.f32 %v2466_v61, %v940_v49  ;;  %v997_v49 = vpop.permute.xlu1 %996 }
 0x25b   :  { %v2468_v27 = vpop.eup %2467  ;;  %vm999_vm4 = vcmp.eq.s32.totalorder %v997_v49, 1 }
 0x25c   :  { %v976_v1 = vadd.f32 %v974_v7, %v3027_v25  ;;  %v975_v46 = vmul.f32 %v2468_v27, %v943_v13  ;;  %v2470_v16 = vpop.eup %2469 }
 0x25d   :  { %v2472_v20 = vpop.eup %2471  ;;  %v980_v34 = vsub.f32 1.0, %v2470_v16  ;;  %v984_v21 = vmul.f32 %v2470_v16, %v3098_v38 }
 0x25e   :  { %2473 = vtanh.f32 %v976_v1  ;;  %v977_v29 = vadd.f32 %v975_v46, %v3032_v32  ;;  %v981_v5 = vsub.f32 1.0, %v2472_v20  ;;  %v985_v25 = vmul.f32 %v2472_v20, %v3101_v18 }
 0x260   :  { %2475 = vtanh.f32 %v977_v29 }
 0x268   :  { %v2474_v6 = vpop.eup %2473 }
 0x269   :  { %v982_v12 = vmul.f32 %v2474_v6, %v980_v34 }
 0x26a   :  { %v2476_v36 = vpop.eup %2475 }
 0x26b   :  { %v986_v59 = vadd.f32 %v984_v21, %v982_v12  ;;  %v983_v55 = vmul.f32 %v2476_v36, %v981_v5 }
 0x26d   :  { %v987_v17 = vadd.f32 %v985_v25, %v983_v55  ;;  %v3151_v32 = vsel %vm998_vm3, %v986_v59, %v3098_v38 }
 0x26f   :  { %v3154_v61 = vsel %vm999_vm4, %v987_v17, %v3101_v18 }
 0x270   :  { %v1009_v7 = vpack.c.bf16 %v3154_v61, %v3151_v32 }
 0x272   :  { %1043 = vmatmul.mubr.bf16.vlgmr.msra.gmra.mrb[8].mxu0 %v1009_v7  ;;  %2161 = vmatmul.mubr.bf16.vlgmr.msra.gmra.mrb[24].mxu1 %v1009_v7 }
 0x273   :  { %1159 = vmatpush1.bf16.msra.mxu0 %v2738_v23  ;;  %2165 = vmatpush3.bf16.msra.mxu1 %v2830_v42 }
 0x274   :  { %1160 = vmatprep.subr.bf16.mxu0 %v2743_v24  ;;  %2166 = vmatprep.subr.bf16.mxu1 %v3574_v43 }
 0x275   :  { %1190 = vmatprep.mubr.bf16.mxu0 %v3575_v14  ;;  %2180 = vmatprep.mubr.msk.bf16.mxu1 %vm2623_vm8, %v3574_v43 }
 0x277   :  { %1161 = vmatpush1.bf16.msra.mxu0 %v2752_v26  ;;  %2167 = vmatpush3.bf16.msra.mxu1 %v2855_v48 }
 0x278   :  { %1162 = vmatprep.subr.bf16.mxu0 %v2763_v28  ;;  %2168 = vmatprep.subr.bf16.mxu1 %v3574_v43 }
 0x27b   :  { %1163 = vmatpush1.bf16.msra.mxu0 %v2772_v30  ;;  %2169 = vmatpush3.bf16.msra.mxu1 %v2876_v52 }
 0x27c   :  { %1164 = vmatprep.subr.bf16.mxu0 %v2777_v31  ;;  %2170 = vmatprep.subr.bf16.mxu1 %v3574_v43 }
 0x27f   :  { %1165 = vmatpush1.bf16.msra.mxu0 %v2786_v33  ;;  %2171 = vmatpush3.bf16.msra.mxu1 %v2896_v56 }
 0x280   :  { %1166 = vmatprep.subr.bf16.mxu0 %v2797_v35  ;;  %2172 = vmatprep.subr.bf16.mxu1 %v3574_v43 }
 0x283   :  { %1167 = vmatpush1.bf16.msra.mxu0 %v2816_v39  ;;  %2173 = vmatpush3.bf16.msra.mxu1 %v2907_v58 }
 0x284   :  { %1168 = vmatprep.subr.bf16.mxu0 %v2824_v40  ;;  %2174 = vmatprep.subr.bf16.mxu1 %v3574_v43 }
 0x287   :  { %1169 = vmatpush1.bf16.msra.mxu0 %v2838_v44  ;;  %2175 = vmatpush3.bf16.msra.mxu1 %v2923_v62 }
 0x288   :  { %1170 = vmatprep.subr.bf16.mxu0 %v2845_v45  ;;  %2176 = vmatprep.subr.bf16.mxu1 %v3574_v43 }
 0x28b   :  { %1171 = vmatpush1.bf16.msra.mxu0 %v2862_v50  ;;  %2177 = vmatpush3.bf16.msra.mxu1 %v2932_v0 }
 0x28c   :  { %1172 = vmatprep.subr.bf16.mxu0 %v2870_v51  ;;  %2178 = vmatprep.subr.bf16.mxu1 %v3574_v43 }
 0x28f   :  { %1173 = vmatpush1.bf16.msra.mxu0 %v2884_v54  ;;  %2179 = vmatpush3.bf16.msra.mxu1 %v2944_v4 }
 0x290   :  { %1306 = vmatprep.subr.bf16.mxu0 %v2733_v22  ;;  %2184 = vmatprep.subr.bf16.mxu1 %v3574_v43 }
 0x345   :  { %v1044_v23 = vpop.f32.mrb[8].mxu0  ;;  %v1087_v24 = vpop.f32.mrb[24].mxu1 }
 0x346   :  { %v2281_v26 = vadd.f32 %v3077_v2, %v1044_v23  ;;  %v1046_v28 = vpop.f32.mrb[9].mxu0  ;;  %v2162_v38 = vpop.f32.mrb[25].mxu1  ;;  %v1088_v25 = vadd.f32 %v1087_v24, %v3087_v11 }
 0x347   :  { %v1048_v18 = vpop.f32.mrb[10].mxu0  ;;  %v1090_v13 = vpop.f32.mrb[26].mxu1  ;;  %v2283_v16 = vadd.f32 %v3079_v9, %v1046_v28 }
 0x348   :  { %v1960_v27 = vmul.f32 -1.442695, %v2281_v26  ;;  %v2285_v1 = vadd.f32 %v3077_v2, %v1048_v18  ;;  %v1050_v46 = vpop.f32.mrb[11].mxu0  ;;  %v2163_v29 = vpop.f32.mrb[27].mxu1  ;;  %v1091_v23 = vadd.f32 %v1090_v13, %v3087_v11 }
 0x349   :  { %v2287_v22 = vadd.f32 %v3079_v9, %v1050_v46  ;;  %v1962_v19 = vmul.f32 -1.442695, %v2283_v16 }
 0x34a   :  { %2477 = vpow2.f32 %v1960_v27  ;;  %v1961_v20 = vmul.f32 -1.442695, %v2285_v1 }
 0x34b   :  { %v1963_v34 = vmul.f32 -1.442695, %v2287_v22 }
 0x34c   :  { %2479 = vpow2.f32 %v1961_v20 }
 0x34d   :  { %2481 = vpow2.f32 %v1962_v19 }
 0x34e   :  { %2483 = vpow2.f32 %v1963_v34 }
 0x354   :  { %v2478_v6 = vpop.eup %2477 }
 0x355   :  { %v1102_v12 = vadd.f32 1.0, %v2478_v6  ;;  %v1145_v6 = vpop.permute.xlu1 %1144 }
 0x356   :  { %v2480_v21 = vpop.eup %2479  ;;  %vm1147_vm6 = vcmp.eq.s32.totalorder %v1145_v6, 1 }
 0x357   :  { %2485 = vrcp.f32 %v1102_v12  ;;  %v1103_v5 = vadd.f32 1.0, %v2480_v21  ;;  %v2482_v36 = vpop.eup %2481 }
 0x358   :  { %v2484_v59 = vpop.eup %2483  ;;  %v1116_v55 = vadd.f32 1.0, %v2482_v36  ;;  %v3214_v36 = vld [vmem:[%s3561_s5] ss:$12 sps:$4 sm:$0xff]  }
 0x359   :  { %2487 = vrcp.f32 %v1103_v5  ;;  %v1117_v49 = vadd.f32 1.0, %v2484_v59 }
 0x35a   :  { %2489 = vrcp.f32 %v1116_v55 }
 0x35b   :  { %2491 = vrcp.f32 %v1117_v49 }
 0x361   :  { %v2486_v17 = vpop.eup %2485 }
 0x362   :  { %v1122_v7 = vmul.f32 %v2486_v17, %v1088_v25 }
 0x363   :  { %v2488_v26 = vpop.eup %2487 }
 0x364   :  { %v1124_v28 = vadd.f32 %v1122_v7, %v3040_v41  ;;  %v1123_v38 = vmul.f32 %v2488_v26, %v1091_v23  ;;  %v2490_v27 = vpop.eup %2489  ;;  %v1142_v41 = vpop.permute.xlu0 %1141 }
 0x365   :  { %v2492_v1 = vpop.eup %2491  ;;  %v1128_v46 = vsub.f32 1.0, %v2490_v27  ;;  %v1132_v24 = vmul.f32 %v2490_v27, %v3151_v32  ;;  %vm1146_vm5 = vcmp.eq.s32.totalorder %v1142_v41, 1 }
 0x366   :  { %2493 = vtanh.f32 %v1124_v28  ;;  %v1125_v18 = vadd.f32 %v1123_v38, %v3046_v53  ;;  %v1129_v16 = vsub.f32 1.0, %v2492_v1  ;;  %v1133_v13 = vmul.f32 %v2492_v1, %v3154_v61 }
 0x368   :  { %2495 = vtanh.f32 %v1125_v18 }
 0x370   :  { %v2494_v29 = vpop.eup %2493 }
 0x371   :  { %v1130_v20 = vmul.f32 %v2494_v29, %v1128_v46 }
 0x372   :  { %v2496_v22 = vpop.eup %2495 }
 0x373   :  { %v1131_v19 = vmul.f32 %v2496_v22, %v1129_v16  ;;  %v1134_v34 = vadd.f32 %v1132_v24, %v1130_v20 }
 0x375   :  { %v1135_v12 = vadd.f32 %v1133_v13, %v1131_v19  ;;  %v3204_v53 = vsel %vm1146_vm5, %v1134_v34, %v3151_v32  ;;  %v3221_v32 = vld [vmem:[%s3561_s5 + $0x1c] ss:$12 sps:$4 sm:$0xff]  }
 0x377   :  { %v3207_v21 = vsel %vm1147_vm6, %v1135_v12, %v3154_v61  ;;  %v3231_v61 = vld [vmem:[%s3561_s5 + $0x18] ss:$12 sps:$4 sm:$0xff]  }
 0x378   :  { %v1157_v5 = vpack.c.bf16 %v3207_v21, %v3204_v53 }
 0x37a   :  { %1191 = vmatmul.mubr.bf16.vlgmr.msra.gmra.mrb[12].mxu0 %v1157_v5  ;;  %2181 = vmatmul.mubr.bf16.vlgmr.msra.gmra.mrb[28].mxu1 %v1157_v5 }
 0x37b   :  { %1307 = vmatpush1.bf16.msra.mxu0 %v3214_v36  ;;  %2185 = vmatpush3.bf16.msra.mxu1 %v2830_v42  ;;  %v3238_v42 = vld [vmem:[%s3561_s5 + $0x34] ss:$12 sps:$4 sm:$0xff]  }
 0x37c   :  { %1308 = vmatprep.subr.bf16.mxu0 %v3221_v32  ;;  %2186 = vmatprep.subr.bf16.mxu1 %v3574_v43 }
 0x37d   :  { %1338 = vmatprep.mubr.bf16.mxu0 %v3575_v14  ;;  %2200 = vmatprep.mubr.msk.bf16.mxu1 %vm2623_vm8, %v3574_v43 }
 0x37f   :  { %1309 = vmatpush1.bf16.msra.mxu0 %v3231_v61  ;;  %2187 = vmatpush3.bf16.msra.mxu1 %v2855_v48 }
 0x380   :  { %1310 = vmatprep.subr.bf16.mxu0 %v3238_v42  ;;  %2188 = vmatprep.subr.bf16.mxu1 %v3574_v43 }
 0x383   :  { %1311 = vmatpush1.bf16.msra.mxu0 %v2772_v30  ;;  %2189 = vmatpush3.bf16.msra.mxu1 %v2876_v52  ;;  %v3267_v30 = vld [vmem:[%s3561_s5 + $0x4] ss:$12 sps:$4 sm:$0xff]  }
 0x384   :  { %1312 = vmatprep.subr.bf16.mxu0 %v2777_v31  ;;  %2190 = vmatprep.subr.bf16.mxu1 %v3574_v43 }
 0x387   :  { %1313 = vmatpush1.bf16.msra.mxu0 %v2786_v33  ;;  %2191 = vmatpush3.bf16.msra.mxu1 %v2896_v56 }
 0x388   :  { %1314 = vmatprep.subr.bf16.mxu0 %v2797_v35  ;;  %2192 = vmatprep.subr.bf16.mxu1 %v3574_v43 }
 0x38b   :  { %1315 = vmatpush1.bf16.msra.mxu0 %v2816_v39  ;;  %2193 = vmatpush3.bf16.msra.mxu1 %v2907_v58 }
 0x38c   :  { %1316 = vmatprep.subr.bf16.mxu0 %v2824_v40  ;;  %2194 = vmatprep.subr.bf16.mxu1 %v3574_v43 }
 0x38f   :  { %1317 = vmatpush1.bf16.msra.mxu0 %v2838_v44  ;;  %2195 = vmatpush3.bf16.msra.mxu1 %v2923_v62 }
 0x390   :  { %1318 = vmatprep.subr.bf16.mxu0 %v2845_v45  ;;  %2196 = vmatprep.subr.bf16.mxu1 %v3574_v43 }
 0x393   :  { %1319 = vmatpush1.bf16.msra.mxu0 %v2862_v50  ;;  %2197 = vmatpush3.bf16.msra.mxu1 %v2932_v0 }
 0x394   :  { %1320 = vmatprep.subr.bf16.mxu0 %v2870_v51  ;;  %2198 = vmatprep.subr.bf16.mxu1 %v3574_v43 }
 0x397   :  { %1321 = vmatpush1.bf16.msra.mxu0 %v2884_v54  ;;  %2199 = vmatpush3.bf16.msra.mxu1 %v2944_v4 }
 0x398   :  { %1454 = vmatprep.subr.bf16.mxu0 %v3267_v30  ;;  %2204 = vmatprep.subr.bf16.mxu1 %v3574_v43 }
 0x44d   :  { %v1192_v31 = vpop.f32.mrb[12].mxu0  ;;  %v1235_v33 = vpop.f32.mrb[28].mxu1 }
 0x44e   :  { %v2289_v35 = vadd.f32 %v3077_v2, %v1192_v31  ;;  %v1194_v39 = vpop.f32.mrb[13].mxu0  ;;  %v2182_v40 = vpop.f32.mrb[29].mxu1  ;;  %v1236_v26 = vadd.f32 %v1235_v33, %v3087_v11 }
 0x44f   :  { %v1196_v44 = vpop.f32.mrb[14].mxu0  ;;  %v1238_v45 = vpop.f32.mrb[30].mxu1  ;;  %v2291_v54 = vadd.f32 %v3079_v9, %v1194_v39 }
 0x450   :  { %v1964_v48 = vmul.f32 -1.442695, %v2289_v35  ;;  %v2293_v50 = vadd.f32 %v3077_v2, %v1196_v44  ;;  %v1198_v51 = vpop.f32.mrb[15].mxu0  ;;  %v2183_v52 = vpop.f32.mrb[31].mxu1  ;;  %v1239_v27 = vadd.f32 %v1238_v45, %v3087_v11  ;;  %v3293_v44 = vld [vmem:[%s3561_s5 + $0x8] ss:$12 sps:$4 sm:$0xff]  }
 0x451   :  { %v2295_v58 = vadd.f32 %v3079_v9, %v1198_v51  ;;  %v1966_v62 = vmul.f32 -1.442695, %v2291_v54  ;;  %v1293_v33 = vpop.permute.xlu1 %1292  ;;  %v3319_v45 = vld [vmem:[%s3561_s5 + $0x38] ss:$12 sps:$4 sm:$0xff]   ;;  %v3338_v51 = vld [vmem:[%s3561_s5 + $0x50] ss:$12 sps:$4 sm:$0xff]  }
 0x452   :  { %2497 = vpow2.f32 %v1964_v48  ;;  %v1965_v56 = vmul.f32 -1.442695, %v2293_v50  ;;  %vm1295_vm9 = vcmp.eq.s32.totalorder %v1293_v33, 1  ;;  %v3325_v48 = vld [vmem:[%s3561_s5 + $0x4c] ss:$12 sps:$4 sm:$0xff]  }
 0x453   :  { %v1967_v0 = vmul.f32 -1.442695, %v2295_v58  ;;  %v3332_v50 = vld [vmem:[%s3561_s5 + $0x48] ss:$12 sps:$4 sm:$0xff]   ;;  %v3344_v52 = vld [vmem:[%s3561_s5 + $0x64] ss:$12 sps:$4 sm:$0xff]  }
 0x454   :  { %2499 = vpow2.f32 %v1965_v56  ;;  %v3351_v54 = vld [vmem:[%s3561_s5 + $0x60] ss:$12 sps:$4 sm:$0xff]   ;;  %v3357_v56 = vld [vmem:[%s3561_s5 + $0x68] ss:$12 sps:$4 sm:$0xff]  }
 0x455   :  { %2501 = vpow2.f32 %v1966_v62  ;;  %v3363_v58 = vld [vmem:[%s3561_s5 + $0x7c] ss:$12 sps:$4 sm:$0xff]   ;;  %v3370_v62 = vld [vmem:[%s3561_s5 + $0x78] ss:$12 sps:$4 sm:$0xff]  }
 0x456   :  { %2503 = vpow2.f32 %v1967_v0  ;;  %v3376_v0 = vld [vmem:[%s3561_s5 + $0x80] ss:$12 sps:$4 sm:$0xff]  }
 0x45c   :  { %v2498_v59 = vpop.eup %2497 }
 0x45d   :  { %v1250_v55 = vadd.f32 1.0, %v2498_v59  ;;  %v3382_v59 = vld [vmem:[%s3561_s5 + $0x94] ss:$12 sps:$4 sm:$0xff]  }
 0x45e   :  { %v2500_v25 = vpop.eup %2499 }
 0x45f   :  { %2505 = vrcp.f32 %v1250_v55  ;;  %v1251_v49 = vadd.f32 1.0, %v2500_v25  ;;  %v2502_v17 = vpop.eup %2501  ;;  %v3389_v55 = vld [vmem:[%s3561_s5 + $0x90] ss:$12 sps:$4 sm:$0xff]   ;;  %v3395_v25 = vld [vmem:[%s3561_s5 + $0x98] ss:$12 sps:$4 sm:$0xff]  }
 0x460   :  { %v2504_v7 = vpop.eup %2503  ;;  %v1264_v23 = vadd.f32 1.0, %v2502_v17  ;;  %v3408_v17 = vld [vmem:[%s3561_s5 + $0xa8] ss:$12 sps:$4 sm:$0xff]  }
 0x461   :  { %2507 = vrcp.f32 %v1251_v49  ;;  %v1265_v28 = vadd.f32 1.0, %v2504_v7  ;;  %v3401_v49 = vld [vmem:[%s3561_s5 + $0xac] ss:$12 sps:$4 sm:$0xff]  }
 0x462   :  { %2509 = vrcp.f32 %v1264_v23 }
 0x463   :  { %2511 = vrcp.f32 %v1265_v28 }
 0x469   :  { %v2506_v38 = vpop.eup %2505 }
 0x46a   :  { %v1270_v18 = vmul.f32 %v2506_v38, %v1236_v26 }
 0x46b   :  { %v2508_v1 = vpop.eup %2507 }
 0x46c   :  { %v1272_v46 = vadd.f32 %v1270_v18, %v3037_v37  ;;  %v1271_v29 = vmul.f32 %v2508_v1, %v1239_v27  ;;  %v2510_v16 = vpop.eup %2509  ;;  %v1290_v37 = vpop.permute.xlu0 %1289 }
 0x46d   :  { %v2512_v20 = vpop.eup %2511  ;;  %v1276_v22 = vsub.f32 1.0, %v2510_v16  ;;  %v1280_v19 = vmul.f32 %v2510_v16, %v3204_v53  ;;  %vm1294_vm7 = vcmp.eq.s32.totalorder %v1290_v37, 1 }
 0x46e   :  { %2513 = vtanh.f32 %v1272_v46  ;;  %v1273_v24 = vadd.f32 %v1271_v29, %v3043_v47  ;;  %v1277_v34 = vsub.f32 1.0, %v2512_v20  ;;  %v1281_v12 = vmul.f32 %v2512_v20, %v3207_v21 }
 0x470   :  { %2515 = vtanh.f32 %v1273_v24 }
 0x478   :  { %v2514_v13 = vpop.eup %2513 }
 0x479   :  { %v1278_v41 = vmul.f32 %v2514_v13, %v1276_v22 }
 0x47a   :  { %v2516_v6 = vpop.eup %2515 }
 0x47b   :  { %v1279_v5 = vmul.f32 %v2516_v6, %v1277_v34  ;;  %v1282_v31 = vadd.f32 %v1280_v19, %v1278_v41 }
 0x47d   :  { %v1283_v35 = vadd.f32 %v1281_v12, %v1279_v5  ;;  %v3282_v47 = vsel %vm1294_vm7, %v1282_v31, %v3204_v53  ;;  %v3305_v53 = vld [vmem:[%s3561_s5 + $0x20] ss:$12 sps:$4 sm:$0xff]  }
 0x47f   :  { %v3285_v39 = vsel %vm1295_vm9, %v1283_v35, %v3207_v21  ;;  %v3313_v21 = vld [vmem:[%s3561_s5 + $0x30] ss:$12 sps:$4 sm:$0xff]  }
 0x480   :  { %v1305_v40 = vpack.c.bf16 %v3285_v39, %v3282_v47 }
 0x482   :  { %1339 = vmatmul.mubr.bf16.vlgmr.msra.gmra.mrb[16].mxu0 %v1305_v40  ;;  %2201 = vmatmul.mubr.bf16.vlgmr.msra.gmra.mrb[32].mxu1 %v1305_v40 }
 0x483   :  { %1455 = vmatpush1.bf16.msra.mxu0 %v3214_v36  ;;  %2205 = vmatpush3.bf16.msra.mxu1 %v3293_v44 }
 0x484   :  { %1456 = vmatprep.subr.bf16.mxu0 %v3221_v32  ;;  %2206 = vmatprep.subr.bf16.mxu1 %v3574_v43 }
 0x485   :  { %1486 = vmatprep.mubr.bf16.mxu0 %v3575_v14  ;;  %2220 = vmatprep.mubr.msk.bf16.mxu1 %vm2623_vm8, %v3574_v43 }
 0x487   :  { %1457 = vmatpush1.bf16.msra.mxu0 %v3231_v61  ;;  %2207 = vmatpush3.bf16.msra.mxu1 %v3305_v53 }
 0x488   :  { %1458 = vmatprep.subr.bf16.mxu0 %v3238_v42  ;;  %2208 = vmatprep.subr.bf16.mxu1 %v3574_v43 }
 0x48b   :  { %1459 = vmatpush1.bf16.msra.mxu0 %v3313_v21  ;;  %2209 = vmatpush3.bf16.msra.mxu1 %v3319_v45 }
 0x48c   :  { %1460 = vmatprep.subr.bf16.mxu0 %v3325_v48  ;;  %2210 = vmatprep.subr.bf16.mxu1 %v3574_v43 }
 0x48f   :  { %1461 = vmatpush1.bf16.msra.mxu0 %v3332_v50  ;;  %2211 = vmatpush3.bf16.msra.mxu1 %v3338_v51 }
 0x490   :  { %1462 = vmatprep.subr.bf16.mxu0 %v3344_v52  ;;  %2212 = vmatprep.subr.bf16.mxu1 %v3574_v43 }
 0x493   :  { %1463 = vmatpush1.bf16.msra.mxu0 %v3351_v54  ;;  %2213 = vmatpush3.bf16.msra.mxu1 %v3357_v56 }
 0x494   :  { %1464 = vmatprep.subr.bf16.mxu0 %v3363_v58  ;;  %2214 = vmatprep.subr.bf16.mxu1 %v3574_v43 }
 0x497   :  { %1465 = vmatpush1.bf16.msra.mxu0 %v3370_v62  ;;  %2215 = vmatpush3.bf16.msra.mxu1 %v3376_v0 }
 0x498   :  { %1466 = vmatprep.subr.bf16.mxu0 %v3382_v59  ;;  %2216 = vmatprep.subr.bf16.mxu1 %v3574_v43 }
 0x49b   :  { %1467 = vmatpush1.bf16.msra.mxu0 %v3389_v55  ;;  %2217 = vmatpush3.bf16.msra.mxu1 %v3395_v25 }
 0x49c   :  { %1468 = vmatprep.subr.bf16.mxu0 %v3401_v49  ;;  %2218 = vmatprep.subr.bf16.mxu1 %v3574_v43 }
 0x49f   :  { %1469 = vmatpush1.bf16.msra.mxu0 %v3408_v17  ;;  %2219 = vmatpush3.bf16.msra.mxu1 %v2944_v4 }
 0x4a0   :  { %1602 = vmatprep.subr.bf16.mxu0 %v3267_v30  ;;  %2224 = vmatprep.subr.bf16.mxu1 %v3574_v43 }
 0x555   :  { %v1340_v7 = vpop.f32.mrb[16].mxu0  ;;  %v1383_v23 = vpop.f32.mrb[32].mxu1 }
 0x556   :  { %v2297_v26 = vadd.f32 %v3077_v2, %v1340_v7  ;;  %v1342_v28 = vpop.f32.mrb[17].mxu0  ;;  %v2202_v38 = vpop.f32.mrb[33].mxu1  ;;  %v1384_v37 = vadd.f32 %v1383_v23, %v3087_v11 }
 0x557   :  { %v1344_v18 = vpop.f32.mrb[18].mxu0  ;;  %v1386_v27 = vpop.f32.mrb[34].mxu1  ;;  %v2299_v16 = vadd.f32 %v3079_v9, %v1342_v28 }
 0x558   :  { %v1968_v1 = vmul.f32 -1.442695, %v2297_v26  ;;  %v2301_v46 = vadd.f32 %v3077_v2, %v1344_v18  ;;  %v1346_v29 = vpop.f32.mrb[19].mxu0  ;;  %v2203_v24 = vpop.f32.mrb[35].mxu1  ;;  %v1387_v7 = vadd.f32 %v1386_v27, %v3087_v11 }
 0x559   :  { %v2303_v20 = vadd.f32 %v3079_v9, %v1346_v29  ;;  %v1970_v22 = vmul.f32 -1.442695, %v2299_v16 }
 0x55a   :  { %2517 = vpow2.f32 %v1968_v1  ;;  %v1969_v4 = vmul.f32 -1.442695, %v2301_v46 }
 0x55b   :  { %v1971_v13 = vmul.f32 -1.442695, %v2303_v20 }
 0x55c   :  { %2519 = vpow2.f32 %v1969_v4 }
 0x55d   :  { %2521 = vpow2.f32 %v1970_v22 }
 0x55e   :  { %2523 = vpow2.f32 %v1971_v13 }
 0x564   :  { %v2518_v19 = vpop.eup %2517 }
 0x565   :  { %v1398_v34 = vadd.f32 1.0, %v2518_v19  ;;  %v1441_v19 = vpop.permute.xlu1 %1440 }
 0x566   :  { %v2520_v41 = vpop.eup %2519  ;;  %vm1443_vm11 = vcmp.eq.s32.totalorder %v1441_v19, 1 }
 0x567   :  { %2525 = vrcp.f32 %v1398_v34  ;;  %v1399_v6 = vadd.f32 1.0, %v2520_v41  ;;  %v2522_v12 = vpop.eup %2521 }
 0x568   :  { %v2524_v5 = vpop.eup %2523  ;;  %v1412_v31 = vadd.f32 1.0, %v2522_v12 }
 0x569   :  { %2527 = vrcp.f32 %v1399_v6  ;;  %v1413_v33 = vadd.f32 1.0, %v2524_v5 }
 0x56a   :  { %2529 = vrcp.f32 %v1412_v31 }
 0x56b   :  { %2531 = vrcp.f32 %v1413_v33 }
 0x571   :  { %v2526_v35 = vpop.eup %2525 }
 0x572   :  { %v1418_v40 = vmul.f32 %v2526_v35, %v1384_v37 }
 0x573   :  { %v2528_v26 = vpop.eup %2527 }
 0x574   :  { %v1420_v28 = vadd.f32 %v1418_v40, %v3052_v60  ;;  %v1419_v38 = vmul.f32 %v2528_v26, %v1387_v7  ;;  %v2530_v1 = vpop.eup %2529  ;;  %v1438_v60 = vpop.permute.xlu0 %1437 }
 0x575   :  { %v2532_v46 = vpop.eup %2531  ;;  %v1424_v29 = vsub.f32 1.0, %v2530_v1  ;;  %v1428_v23 = vmul.f32 %v2530_v1, %v3282_v47  ;;  %vm1442_vm10 = vcmp.eq.s32.totalorder %v1438_v60, 1 }
 0x576   :  { %2533 = vtanh.f32 %v1420_v28  ;;  %v1421_v18 = vadd.f32 %v1419_v38, %v3058_v3  ;;  %v1425_v16 = vsub.f32 1.0, %v2532_v46  ;;  %v1429_v27 = vmul.f32 %v2532_v46, %v3285_v39 }
 0x578   :  { %2535 = vtanh.f32 %v1421_v18 }
 0x580   :  { %v2534_v24 = vpop.eup %2533 }
 0x581   :  { %v1426_v4 = vmul.f32 %v2534_v24, %v1424_v29 }
 0x582   :  { %v2536_v20 = vpop.eup %2535 }
 0x583   :  { %v1427_v22 = vmul.f32 %v2536_v20, %v1425_v16  ;;  %v1430_v13 = vadd.f32 %v1428_v23, %v1426_v4 }
 0x585   :  { %v1431_v34 = vadd.f32 %v1429_v27, %v1427_v22  ;;  %v3425_v3 = vsel %vm1442_vm10, %v1430_v13, %v3282_v47  ;;  %v3467_v47 = vld [vmem:[%s3561_s5 + $0xb0] ss:$12 sps:$4 sm:$0xff]  }
 0x587   :  { %v3428_v41 = vsel %vm1443_vm11, %v1431_v34, %v3285_v39 }
 0x588   :  { %v1453_v6 = vpack.c.bf16 %v3428_v41, %v3425_v3 }
 0x58a   :  { %1487 = vmatmul.mubr.bf16.vlgmr.msra.gmra.mrb[20].mxu0 %v1453_v6  ;;  %2221 = vmatmul.mubr.bf16.vlgmr.msra.gmra.mrb[36].mxu1 %v1453_v6 }
 0x58b   :  { %1603 = vmatpush1.bf16.msra.mxu0 %v3214_v36  ;;  %2225 = vmatpush3.bf16.msra.mxu1 %v3293_v44 }
 0x58c   :  { %1604 = vmatprep.subr.bf16.mxu0 %v3221_v32  ;;  %2226 = vmatprep.subr.bf16.mxu1 %v3574_v43 }
 0x58d   :  { %1634 = vmatprep.mubr.bf16.mxu0 %v3575_v14  ;;  %2240 = vmatprep.mubr.msk.bf16.mxu1 %vm2623_vm8, %v3574_v43 }
 0x58f   :  { %1605 = vmatpush1.bf16.msra.mxu0 %v3231_v61  ;;  %2227 = vmatpush3.bf16.msra.mxu1 %v3305_v53 }
 0x590   :  { %1606 = vmatprep.subr.bf16.mxu0 %v3238_v42  ;;  %2228 = vmatprep.subr.bf16.mxu1 %v3574_v43 }
 0x593   :  { %1607 = vmatpush1.bf16.msra.mxu0 %v3313_v21  ;;  %2229 = vmatpush3.bf16.msra.mxu1 %v3319_v45 }
 0x594   :  { %1608 = vmatprep.subr.bf16.mxu0 %v3325_v48  ;;  %2230 = vmatprep.subr.bf16.mxu1 %v3574_v43 }
 0x597   :  { %1609 = vmatpush1.bf16.msra.mxu0 %v3332_v50  ;;  %2231 = vmatpush3.bf16.msra.mxu1 %v3338_v51 }
 0x598   :  { %1610 = vmatprep.subr.bf16.mxu0 %v3344_v52  ;;  %2232 = vmatprep.subr.bf16.mxu1 %v3574_v43 }
 0x59b   :  { %1611 = vmatpush1.bf16.msra.mxu0 %v3351_v54  ;;  %2233 = vmatpush3.bf16.msra.mxu1 %v3357_v56 }
 0x59c   :  { %1612 = vmatprep.subr.bf16.mxu0 %v3363_v58  ;;  %2234 = vmatprep.subr.bf16.mxu1 %v3574_v43 }
 0x59f   :  { %1613 = vmatpush1.bf16.msra.mxu0 %v3370_v62  ;;  %2235 = vmatpush3.bf16.msra.mxu1 %v3376_v0 }
 0x5a0   :  { %1614 = vmatprep.subr.bf16.mxu0 %v3382_v59  ;;  %2236 = vmatprep.subr.bf16.mxu1 %v3574_v43 }
 0x5a3   :  { %1615 = vmatpush1.bf16.msra.mxu0 %v3389_v55  ;;  %2237 = vmatpush3.bf16.msra.mxu1 %v3395_v25 }
 0x5a4   :  { %1616 = vmatprep.subr.bf16.mxu0 %v3401_v49  ;;  %2238 = vmatprep.subr.bf16.mxu1 %v3574_v43 }
 0x5a7   :  { %1617 = vmatpush1.bf16.msra.mxu0 %v3408_v17  ;;  %2239 = vmatpush3.bf16.msra.mxu1 %v3467_v47 }
 0x5a8   :  { %1750 = vmatprep.subr.bf16.mxu0 %v3267_v30  ;;  %2244 = vmatprep.subr.bf16.mxu1 %v3574_v43 }
 0x65d   :  { %v1488_v39 = vpop.f32.mrb[20].mxu0  ;;  %v1531_v12 = vpop.f32.mrb[36].mxu1 }
 0x65e   :  { %v2305_v5 = vadd.f32 %v3077_v2, %v1488_v39  ;;  %v1490_v31 = vpop.f32.mrb[21].mxu0  ;;  %v2222_v37 = vpop.f32.mrb[37].mxu1  ;;  %v1532_v22 = vadd.f32 %v1531_v12, %v3087_v11 }
 0x65f   :  { %v1492_v33 = vpop.f32.mrb[22].mxu0  ;;  %v1534_v35 = vpop.f32.mrb[38].mxu1  ;;  %v2307_v38 = vadd.f32 %v3079_v9, %v1490_v31 }
 0x660   :  { %v1972_v40 = vmul.f32 -1.442695, %v2305_v5  ;;  %v2309_v7 = vadd.f32 %v3077_v2, %v1492_v33  ;;  %v1494_v26 = vpop.f32.mrb[23].mxu0  ;;  %v2223_v28 = vpop.f32.mrb[39].mxu1  ;;  %v1535_v34 = vadd.f32 %v1534_v35, %v3087_v11 }
 0x661   :  { %v2311_v30 = vadd.f32 %v3079_v9, %v1494_v26  ;;  %v1974_v1 = vmul.f32 -1.442695, %v2307_v38 }
 0x662   :  { %2537 = vpow2.f32 %v1972_v40  ;;  %v1973_v18 = vmul.f32 -1.442695, %v2309_v7 }
 0x663   :  { %v1975_v46 = vmul.f32 -1.442695, %v2311_v30 }
 0x664   :  { %2539 = vpow2.f32 %v1973_v18 }
 0x665   :  { %2541 = vpow2.f32 %v1974_v1  ;;  %v1589_v1 = vpop.permute.xlu1 %1588 }
 0x666   :  { %2543 = vpow2.f32 %v1975_v46  ;;  %vm1591_vm13 = vcmp.eq.s32.totalorder %v1589_v1, 1 }
 0x66c   :  { %v2538_v29 = vpop.eup %2537 }
 0x66d   :  { %v1546_v24 = vadd.f32 1.0, %v2538_v29 }
 0x66e   :  { %v2540_v23 = vpop.eup %2539 }
 0x66f   :  { %2545 = vrcp.f32 %v1546_v24  ;;  %v1547_v16 = vadd.f32 1.0, %v2540_v23  ;;  %v2542_v4 = vpop.eup %2541 }
 0x670   :  { %v2544_v20 = vpop.eup %2543  ;;  %v1560_v27 = vadd.f32 1.0, %v2542_v4 }
 0x671   :  { %2547 = vrcp.f32 %v1547_v16  ;;  %v1561_v13 = vadd.f32 1.0, %v2544_v20 }
 0x672   :  { %2549 = vrcp.f32 %v1560_v27 }
 0x673   :  { %2551 = vrcp.f32 %v1561_v13 }
 0x679   :  { %v2546_v60 = vpop.eup %2545 }
 0x67a   :  { %v1566_v19 = vmul.f32 %v2546_v60, %v1532_v22 }
 0x67b   :  { %v2548_v6 = vpop.eup %2547 }
 0x67c   :  { %v1568_v39 = vadd.f32 %v1566_v19, %v3049_v57  ;;  %v1567_v5 = vmul.f32 %v2548_v6, %v1535_v34  ;;  %v2550_v37 = vpop.eup %2549  ;;  %v1586_v57 = vpop.permute.xlu0 %1585 }
 0x67d   :  { %v2552_v33 = vpop.eup %2551  ;;  %v1572_v40 = vsub.f32 1.0, %v2550_v37  ;;  %v1576_v12 = vmul.f32 %v2550_v37, %v3425_v3  ;;  %vm1590_vm12 = vcmp.eq.s32.totalorder %v1586_v57, 1 }
 0x67e   :  { %2553 = vtanh.f32 %v1568_v39  ;;  %v1569_v31 = vadd.f32 %v1567_v5, %v3055_v63  ;;  %v1573_v26 = vsub.f32 1.0, %v2552_v33  ;;  %v1577_v35 = vmul.f32 %v2552_v33, %v3428_v41 }
 0x680   :  { %2555 = vtanh.f32 %v1569_v31 }
 0x688   :  { %v2554_v7 = vpop.eup %2553 }
 0x689   :  { %v1574_v28 = vmul.f32 %v2554_v7, %v1572_v40  ;;  %v1737_v40 = vpop.permute.xlu1 %1736 }
 0x68a   :  { %v2556_v38 = vpop.eup %2555  ;;  %vm1739_vm14 = vcmp.eq.s32.totalorder %v1737_v40, 1 }
 0x68b   :  { %v1575_v18 = vmul.f32 %v2556_v38, %v1573_v26  ;;  %v1578_v30 = vadd.f32 %v1576_v12, %v1574_v28 }
 0x68d   :  { %v1579_v46 = vadd.f32 %v1577_v35, %v1575_v18  ;;  %v3483_v63 = vsel %vm1590_vm12, %v1578_v30, %v3425_v3 }
 0x68f   :  { %v3486_v29 = vsel %vm1591_vm13, %v1579_v46, %v3428_v41 }
 0x690   :  { %v1601_v24 = vpack.c.bf16 %v3486_v29, %v3483_v63 }
 0x692   :  { %1635 = vmatmul.mubr.bf16.vlgmr.msra.gmra.mrb[24].mxu0 %v1601_v24  ;;  %2241 = vmatmul.mubr.bf16.vlgmr.msra.gmra.mrb[40].mxu1 %v1601_v24 }
 0x693   :  { %1751 = vmatpush1.bf16.msra.mxu0 %v3214_v36  ;;  %2245 = vmatpush3.bf16.msra.mxu1 %v3293_v44 }
 0x694   :  { %1752 = vmatprep.subr.bf16.mxu0 %v3221_v32  ;;  %2246 = vmatprep.subr.bf16.mxu1 %v3574_v43 }
 0x695   :  { %1782 = vmatprep.mubr.bf16.mxu0 %v3575_v14  ;;  %2260 = vmatprep.mubr.msk.bf16.mxu1 %vm2623_vm8, %v3574_v43 }
 0x697   :  { %1753 = vmatpush1.bf16.msra.mxu0 %v3231_v61  ;;  %2247 = vmatpush3.bf16.msra.mxu1 %v3305_v53 }
 0x698   :  { %1754 = vmatprep.subr.bf16.mxu0 %v3238_v42  ;;  %2248 = vmatprep.subr.bf16.mxu1 %v3574_v43 }
 0x69b   :  { %1755 = vmatpush1.bf16.msra.mxu0 %v3313_v21  ;;  %2249 = vmatpush3.bf16.msra.mxu1 %v3319_v45 }
 0x69c   :  { %1756 = vmatprep.subr.bf16.mxu0 %v3325_v48  ;;  %2250 = vmatprep.subr.bf16.mxu1 %v3574_v43 }
 0x69f   :  { %1757 = vmatpush1.bf16.msra.mxu0 %v3332_v50  ;;  %2251 = vmatpush3.bf16.msra.mxu1 %v3338_v51 }
 0x6a0   :  { %1758 = vmatprep.subr.bf16.mxu0 %v3344_v52  ;;  %2252 = vmatprep.subr.bf16.mxu1 %v3574_v43 }
 0x6a3   :  { %1759 = vmatpush1.bf16.msra.mxu0 %v3351_v54  ;;  %2253 = vmatpush3.bf16.msra.mxu1 %v3357_v56 }
 0x6a4   :  { %1760 = vmatprep.subr.bf16.mxu0 %v3363_v58  ;;  %2254 = vmatprep.subr.bf16.mxu1 %v3574_v43 }
 0x6a7   :  { %1761 = vmatpush1.bf16.msra.mxu0 %v3370_v62  ;;  %2255 = vmatpush3.bf16.msra.mxu1 %v3376_v0 }
 0x6a8   :  { %1762 = vmatprep.subr.bf16.mxu0 %v3382_v59  ;;  %2256 = vmatprep.subr.bf16.mxu1 %v3574_v43 }
 0x6ab   :  { %1763 = vmatpush1.bf16.msra.mxu0 %v3389_v55  ;;  %2257 = vmatpush3.bf16.msra.mxu1 %v3395_v25 }
 0x6ac   :  { %1764 = vmatprep.subr.bf16.mxu0 %v3401_v49  ;;  %2258 = vmatprep.subr.bf16.mxu1 %v3574_v43 }
 0x6af   :  { %1765 = vmatpush1.bf16.msra.mxu0 %v3408_v17  ;;  %2259 = vmatpush3.bf16.msra.mxu1 %v3467_v47 }
 0x765   :  { %v1636_v14 = vpop.f32.mrb[24].mxu0  ;;  %v1679_v36 = vpop.f32.mrb[40].mxu1 }
 0x766   :  { %v2313_v32 = vadd.f32 %v3077_v2, %v1636_v14  ;;  %v1638_v61 = vpop.f32.mrb[25].mxu0  ;;  %v2242_v42 = vpop.f32.mrb[41].mxu1  ;;  %v1680_v17 = vadd.f32 %v1679_v36, %v3087_v11 }
 0x767   :  { %v1640_v44 = vpop.f32.mrb[26].mxu0  ;;  %v1682_v53 = vpop.f32.mrb[42].mxu1  ;;  %v2315_v51 = vadd.f32 %v3079_v9, %v1638_v61 }
 0x768   :  { %v1976_v21 = vmul.f32 -1.442695, %v2313_v32  ;;  %v2317_v45 = vadd.f32 %v3077_v2, %v1640_v44  ;;  %v1642_v48 = vpop.f32.mrb[27].mxu0  ;;  %v2243_v50 = vpop.f32.mrb[43].mxu1  ;;  %v1683_v23 = vadd.f32 %v1682_v53, %v3087_v11 }
 0x769   :  { %v2319_v52 = vadd.f32 %v3079_v9, %v1642_v48  ;;  %v1978_v54 = vmul.f32 -1.442695, %v2315_v51 }
 0x76a   :  { %2557 = vpow2.f32 %v1976_v21  ;;  %v1977_v43 = vmul.f32 -1.442695, %v2317_v45 }
 0x76b   :  { %v1979_v56 = vmul.f32 -1.442695, %v2319_v52 }
 0x76c   :  { %2559 = vpow2.f32 %v1977_v43 }
 0x76d   :  { %2561 = vpow2.f32 %v1978_v54 }
 0x76e   :  { %2563 = vpow2.f32 %v1979_v56 }
 0x774   :  { %v2558_v58 = vpop.eup %2557 }
 0x775   :  { %v1694_v62 = vadd.f32 1.0, %v2558_v58 }
 0x776   :  { %v2560_v0 = vpop.eup %2559 }
 0x777   :  { %2565 = vrcp.f32 %v1694_v62  ;;  %v1695_v59 = vadd.f32 1.0, %v2560_v0  ;;  %v2562_v55 = vpop.eup %2561  ;;  %v3576_v0 = vld [vmem:[#allocation3_spill] sm:$0xff] }
 0x778   :  { %v2564_v25 = vpop.eup %2563  ;;  %v1708_v49 = vadd.f32 1.0, %v2562_v55 }
 0x779   :  { %2567 = vrcp.f32 %v1695_v59  ;;  %v1709_v3 = vadd.f32 1.0, %v2564_v25 }
 0x77a   :  { %2569 = vrcp.f32 %v1708_v49 }
 0x77b   :  { %2571 = vrcp.f32 %v1709_v3 }
 0x781   :  { %v2566_v41 = vpop.eup %2565 }
 0x782   :  { %v1714_v47 = vmul.f32 %v2566_v41, %v1680_v17 }
 0x783   :  { %v2568_v16 = vpop.eup %2567 }
 0x784   :  { %v1716_v4 = vadd.f32 %v1714_v47, %v3064_v10  ;;  %v1715_v20 = vmul.f32 %v2568_v16, %v1683_v23  ;;  %v2570_v22 = vpop.eup %2569  ;;  %v1734_v10 = vpop.permute.xlu0 %1733 }
 0x785   :  { %v2572_v13 = vpop.eup %2571  ;;  %v1720_v60 = vsub.f32 1.0, %v2570_v22  ;;  %v1724_v34 = vmul.f32 %v2570_v22, %v3483_v63  ;;  %vm1738_vm8 = vcmp.eq.s32.totalorder %v1734_v10, 1 }
 0x786   :  { %2573 = vtanh.f32 %v1716_v4  ;;  %v1717_v27 = vadd.f32 %v1715_v20, %v3070_v15  ;;  %v1721_v6 = vsub.f32 1.0, %v2572_v13  ;;  %v1725_v31 = vmul.f32 %v2572_v13, %v3486_v29 }
 0x788   :  { %2575 = vtanh.f32 %v1717_v27  ;;  %v1882_v3 = vpop.permute.xlu0 %1881 }
 0x789   :  { %vm1886_vm15 = vcmp.eq.s32.totalorder %v1882_v3, 1 }
 0x790   :  { %v2574_v19 = vpop.eup %2573 }
 0x791   :  { %v1722_v39 = vmul.f32 %v2574_v19, %v1720_v60 }
 0x792   :  { %v2576_v5 = vpop.eup %2575 }
 0x793   :  { %v1723_v37 = vmul.f32 %v2576_v5, %v1721_v6  ;;  %v1726_v33 = vadd.f32 %v1724_v34, %v1722_v39 }
 0x795   :  { %v1727_v7 = vadd.f32 %v1725_v31, %v1723_v37  ;;  %v3534_v15 = vsel %vm1738_vm8, %v1726_v33, %v3483_v63 }
 0x797   :  { %v3537_v12 = vsel %vm1739_vm14, %v1727_v7, %v3486_v29 }
 0x798   :  { %v1749_v26 = vpack.c.bf16 %v3537_v12, %v3534_v15 }
 0x79a   :  { %1783 = vmatmul.mubr.bf16.vlgmr.msra.gmra.mrb[28].mxu0 %v1749_v26  ;;  %2261 = vmatmul.mubr.bf16.vlgmr.msra.gmra.mrb[44].mxu1 %v1749_v26 }
 0x86d   :  { %v1784_v28 = vpop.f32.mrb[28].mxu0  ;;  %v1827_v38 = vpop.f32.mrb[44].mxu1 }
 0x86e   :  { %v2321_v35 = vadd.f32 %v3077_v2, %v1784_v28  ;;  %v1786_v18 = vpop.f32.mrb[29].mxu0  ;;  %v2262_v30 = vpop.f32.mrb[45].mxu1  ;;  %v1828_v51 = vadd.f32 %v1827_v38, %v3087_v11 }
 0x86f   :  { %v1788_v57 = vpop.f32.mrb[30].mxu0  ;;  %v1830_v1 = vpop.f32.mrb[46].mxu1  ;;  %v2323_v29 = vadd.f32 %v3079_v9, %v1786_v18 }
 0x870   :  { %v1980_v46 = vmul.f32 -1.442695, %v2321_v35  ;;  %v2325_v63 = vadd.f32 %v3077_v2, %v1788_v57  ;;  %v1790_v24 = vpop.f32.mrb[31].mxu0  ;;  %v2263_v14 = vpop.f32.mrb[47].mxu1 }
 0x871   :  { %v2327_v32 = vadd.f32 %v3079_v9, %v1790_v24  ;;  %v1982_v61 = vmul.f32 -1.442695, %v2323_v29  ;;  %v1831_v9 = vadd.f32 %v1830_v1, %v3087_v11  ;;  %v1885_v11 = vpop.permute.xlu1 %1884 }
 0x872   :  { %2577 = vpow2.f32 %v1980_v46  ;;  %v1981_v36 = vmul.f32 -1.442695, %v2325_v63  ;;  %vm1887_vm0 = vcmp.eq.s32.totalorder %v1885_v11, 1 }
 0x873   :  { %v1983_v42 = vmul.f32 -1.442695, %v2327_v32 }
 0x874   :  { %2579 = vpow2.f32 %v1981_v36 }
 0x875   :  { %2581 = vpow2.f32 %v1982_v61 }
 0x876   :  { %2583 = vpow2.f32 %v1983_v42 }
 0x87c   :  { %v2578_v44 = vpop.eup %2577 }
 0x87d   :  { %v1842_v53 = vadd.f32 1.0, %v2578_v44 }
 0x87e   :  { %v2580_v21 = vpop.eup %2579 }
 0x87f   :  { %2585 = vrcp.f32 %v1842_v53  ;;  %v1843_v45 = vadd.f32 1.0, %v2580_v21  ;;  %v2582_v2 = vpop.eup %2581 }
 0x880   :  { %v2584_v48 = vpop.eup %2583  ;;  %v1856_v50 = vadd.f32 1.0, %v2582_v2 }
 0x881   :  { %2587 = vrcp.f32 %v1843_v45  ;;  %v1857_v43 = vadd.f32 1.0, %v2584_v48 }
 0x882   :  { %2589 = vrcp.f32 %v1856_v50 }
 0x883   :  { %2591 = vrcp.f32 %v1857_v43 }
 0x889   :  { %v2586_v52 = vpop.eup %2585 }
 0x88a   :  { %v1862_v54 = vmul.f32 %v2586_v52, %v1828_v51 }
 0x88b   :  { %v2588_v56 = vpop.eup %2587 }
 0x88c   :  { %v1864_v58 = vadd.f32 %v1862_v54, %v3061_v8  ;;  %v1863_v62 = vmul.f32 %v2588_v56, %v1831_v9  ;;  %v2590_v55 = vpop.eup %2589 }
 0x88d   :  { %v2592_v25 = vpop.eup %2591  ;;  %v1868_v49 = vsub.f32 1.0, %v2590_v55  ;;  %v1872_v47 = vmul.f32 %v2590_v55, %v3534_v15 }
 0x88e   :  { %2593 = vtanh.f32 %v1864_v58  ;;  %v1865_v59 = vadd.f32 %v1863_v62, %v3576_v0  ;;  %v1869_v23 = vsub.f32 1.0, %v2592_v25  ;;  %v1873_v8 = vmul.f32 %v2592_v25, %v3537_v12 }
 0x890   :  { %2595 = vtanh.f32 %v1865_v59 }
 0x898   :  { %v2594_v17 = vpop.eup %2593 }
 0x899   :  { %v1870_v41 = vmul.f32 %v2594_v17, %v1868_v49 }
 0x89a   :  { %v2596_v16 = vpop.eup %2595 }
 0x89b   :  { %v1874_v4 = vadd.f32 %v1872_v47, %v1870_v41  ;;  %v1871_v20 = vmul.f32 %v2596_v16, %v1869_v23 }
 0x89d   :  { %v1888_v27 = vsel %vm1886_vm15, %v1874_v4, %v3534_v15  ;;  %v1875_v22 = vadd.f32 %v1873_v8, %v1871_v20 }
 0x89e   :  { %1890 = vst [vmem:[%s3566_s7] sm:$0xff] %v1888_v27 }
 0x89f   :  { %v1889_v13 = vsel %vm1887_vm0, %v1875_v22, %v3537_v12 }
 0x8a0   :  { %1891 = vst [vmem:[%s3566_s7 + $0x8] sm:$0xff] %v1889_v13 }

// kernel: hred_forward.8
= control target key start
LH: loop header
LB: loop body
LE: loop exit
PB: predicated region body
PF: predicated region fallthrough
CT: control target
= control target key end

     0   :  { %v3658_v1 = vmov 0   ;;  %v3660_v46 = vmov 0.0   ;;  %vm2658_vm8 = vmmov 0   ;;  %s3650_s3 = inlined_call_operand.vmem [shape: bf16[128,384], index: 3, kind: input, shape index: {}]   ;;  %s3651_s0 = inlined_call_operand.vmem [shape: bf16[8,16,128], index: 0, kind: input, shape index: {}]   ;;  %s3652_s5 = inlined_call_operand.vmem [shape: bf16[128,384], index: 5, kind: input, shape index: {}]   ;;  %s3653_s1 = inlined_call_operand.vmem [shape: s32[16,1], index: 1, kind: input, shape index: {}]   ;;  %s3654_s2 = inlined_call_operand.vmem [shape: f32[16,128], index: 2, kind: input, shape index: {}]   ;;  %s3655_s4 = inlined_call_operand.vmem [shape: f32[1,384], index: 4, kind: input, shape index: {}]   ;;  %s3656_s6 = inlined_call_operand.vmem [shape: f32[1,384], index: 6, kind: input, shape index: {}]   ;;  %s3657_s7 = inlined_call_operand.vmem [shape: f32[8,16,128], index: 7, kind: output, shape index: {}]  }
   0x1   :  { %v2400_v0 = vld [vmem:[%s3650_s3 + $0x4] ss:$12 sps:$4 sm:$0xff]   ;;  %300 = vmatprep.mubr.bf16.mxu0 %v3658_v1  ;;  %2398 = vset.pattern.permute.xlu0 %v3658_v1  ;;  %v2402_v2 = vld [vmem:[%s3650_s3] ss:$12 sps:$4 sm:$0xff]   ;;  %v2403_v3 = vld [vmem:[%s3650_s3 + $0x1c] ss:$12 sps:$4 sm:$0xff]  }
   0x2   :  { %2399 = vset.pattern.permute.xlu1 %v3658_v1  ;;  %268 = vmatprep.subr.bf16.mxu0 %v2400_v0  ;;  %v2405_v4 = vld [vmem:[%s3650_s3 + $0x18] ss:$12 sps:$4 sm:$0xff]   ;;  %v2406_v5 = vld [vmem:[%s3650_s3 + $0x34] ss:$12 sps:$4 sm:$0xff]   ;;  %v2408_v6 = vld [vmem:[%s3650_s3 + $0x30] ss:$12 sps:$4 sm:$0xff]  }
   0x3   :  { %269 = vmatpush1.bf16.msra.mxu0 %v2402_v2  ;;  %v2409_v7 = vld [vmem:[%s3650_s3 + $0x4c] ss:$12 sps:$4 sm:$0xff]   ;;  %v2411_v8 = vld [vmem:[%s3650_s3 + $0x48] ss:$12 sps:$4 sm:$0xff]   ;;  %v2424_v9 = vld [vmem:[%s3651_s0] sm:$0xff]  }
   0x4   :  { %270 = vmatprep.subr.bf16.mxu0 %v2403_v3  ;;  %v2412_v10 = vld [vmem:[%s3650_s3 + $0x64] ss:$12 sps:$4 sm:$0xff]   ;;  %2123 = vmatprep.mubr.bf16.mxu1 %v2424_v9  ;;  %v2414_v11 = vld [vmem:[%s3650_s3 + $0x60] ss:$12 sps:$4 sm:$0xff]   ;;  %v2415_v12 = vld [vmem:[%s3650_s3 + $0x7c] ss:$12 sps:$4 sm:$0xff]  }
   0x5   :  { %v2417_v13 = vld [vmem:[%s3650_s3 + $0x78] ss:$12 sps:$4 sm:$0xff]   ;;  %v2437_v14 = vld [vmem:[%s3650_s3 + $0x8] ss:$12 sps:$4 sm:$0xff]   ;;  %v2441_v16 = vld [vmem:[%s3650_s3 + $0x20] ss:$12 sps:$4 sm:$0xff]  }
   0x6   :  { %v2418_v15 = vld [vmem:[%s3650_s3 + $0x94] ss:$12 sps:$4 sm:$0xff]   ;;  %2107 = vmatprep.subr.bf16.mxu1 %v2437_v14  ;;  %v2420_v17 = vld [vmem:[%s3650_s3 + $0x90] ss:$12 sps:$4 sm:$0xff]   ;;  %v2443_v18 = vld [vmem:[%s3650_s3 + $0x38] ss:$12 sps:$4 sm:$0xff]  }
   0x7   :  { %271 = vmatpush1.bf16.msra.mxu0 %v2405_v4  ;;  %2108 = vmatpush3.bf16.msra.mxu1 %v2437_v14  ;;  %v2421_v19 = vld [vmem:[%s3650_s3 + $0xac] ss:$12 sps:$4 sm:$0xff]   ;;  %v2423_v20 = vld [vmem:[%s3650_s3 + $0xa8] ss:$12 sps:$4 sm:$0xff]   ;;  %v2447_v21 = vld [vmem:[%s3650_s3 + $0x50] ss:$12 sps:$4 sm:$0xff]  }
   0x8   :  { %272 = vmatprep.subr.bf16.mxu0 %v2406_v5  ;;  %2109 = vmatprep.subr.bf16.mxu1 %v2441_v16  ;;  %v2768_v22 = vld [vmem:[%s3652_s5 + $0x4] ss:$12 sps:$4 sm:$0xff]   ;;  %v2773_v23 = vld [vmem:[%s3652_s5] ss:$12 sps:$4 sm:$0xff]   ;;  %v2778_v24 = vld [vmem:[%s3652_s5 + $0x1c] ss:$12 sps:$4 sm:$0xff]  }
   0x9   :  { %v2449_v25 = vld [vmem:[%s3650_s3 + $0x68] ss:$12 sps:$4 sm:$0xff]   ;;  %v2787_v26 = vld [vmem:[%s3652_s5 + $0x18] ss:$12 sps:$4 sm:$0xff]   ;;  %v2453_v27 = vld [vmem:[%s3650_s3 + $0x80] ss:$12 sps:$4 sm:$0xff]  }
   0xa   :  { %v2798_v28 = vld [vmem:[%s3652_s5 + $0x34] ss:$12 sps:$4 sm:$0xff]   ;;  %v2428_v29 = vld [vmem:[%s3651_s0 + $0x8] sm:$0xff]   ;;  %v2807_v30 = vld [vmem:[%s3652_s5 + $0x30] ss:$12 sps:$4 sm:$0xff]  }
   0xb   :  { %273 = vmatpush1.bf16.msra.mxu0 %v2408_v6  ;;  %2110 = vmatpush3.bf16.msra.mxu1 %v2441_v16  ;;  %v2812_v31 = vld [vmem:[%s3652_s5 + $0x4c] ss:$12 sps:$4 sm:$0xff]   ;;  %v2821_v33 = vld [vmem:[%s3652_s5 + $0x48] ss:$12 sps:$4 sm:$0xff]   ;;  %v2459_v34 = vld [vmem:[%s3650_s3 + $0xb0] ss:$12 sps:$4 sm:$0xff]  }
   0xc   :  { %274 = vmatprep.subr.bf16.mxu0 %v2409_v7  ;;  %2111 = vmatprep.subr.bf16.mxu1 %v2443_v18  ;;  %v2455_v32 = vld [vmem:[%s3650_s3 + $0x98] ss:$12 sps:$4 sm:$0xff]   ;;  %v2432_v36 = vld [vmem:[%s3651_s0 + $0x10] sm:$0xff]   ;;  %v2845_v38 = vld [vmem:[%s3653_s1 + $0x8] sm:$0xff] }
   0xd   :  { %v2832_v35 = vld [vmem:[%s3652_s5 + $0x64] ss:$12 sps:$4 sm:$0xff]   ;;  %v2851_v39 = vld [vmem:[%s3652_s5 + $0x60] ss:$12 sps:$4 sm:$0xff]   ;;  %vm841_vm1 = vcmp.gt.s32.totalorder %v2845_v38, 0  ;;  %v2436_v47 = vld [vmem:[%s3651_s0 + $0x18] sm:$0xff]  }
   0xe   :  { %v2840_v37 = vld [vmem:[%s3653_s1] sm:$0xff]  ;;  %v2859_v40 = vld [vmem:[%s3652_s5 + $0x7c] ss:$12 sps:$4 sm:$0xff]   ;;  %v843_v43 = vsel %vm841_vm1, 1, %v3658_v1  ;;  %v2905_v51 = vld [vmem:[%s3652_s5 + $0xac] ss:$12 sps:$4 sm:$0xff]  }
   0xf   :  { %275 = vmatpush1.bf16.msra.mxu0 %v2411_v8  ;;  %2112 = vmatpush3.bf16.msra.mxu1 %v2443_v18  ;;  %vm840_vm0 = vcmp.gt.s32.totalorder %v2840_v37, 0  ;;  %v2865_v42 = vld [vmem:[%s3652_s5 + $0x8] ss:$12 sps:$4 sm:$0xff]   ;;  %v2873_v44 = vld [vmem:[%s3652_s5 + $0x78] ss:$12 sps:$4 sm:$0xff]   ;;  %vm1141_vm2 = vcmp.gt.s32.totalorder %v2840_v37, 2 }
  0x10   :  { %276 = vmatprep.subr.bf16.mxu0 %v2412_v10  ;;  %2113 = vmatprep.subr.bf16.mxu1 %v2447_v21  ;;  %v842_v41 = vsel %vm840_vm0, 1, %v3658_v1  ;;  %v2880_v45 = vld [vmem:[%s3652_s5 + $0x94] ss:$12 sps:$4 sm:$0xff]   ;;  %v1143_v49 = vsel %vm1141_vm2, 1, %v3658_v1  ;;  %v2897_v50 = vld [vmem:[%s3652_s5 + $0x90] ss:$12 sps:$4 sm:$0xff]  }
  0x11   :  { %845 = vperm.xlu0 %2398, %v842_v41   ;;  %v2890_v48 = vld [vmem:[%s3652_s5 + $0x20] ss:$12 sps:$4 sm:$0xff]   ;;  %vm1292_vm3 = vcmp.gt.s32.totalorder %v2840_v37, 3  ;;  %v2911_v52 = vld [vmem:[%s3652_s5 + $0x38] ss:$12 sps:$4 sm:$0xff]   ;;  %vm1443_vm4 = vcmp.gt.s32.totalorder %v2840_v37, 4 }
  0x12   :  { %v1294_v53 = vsel %vm1292_vm3, 1, %v3658_v1  ;;  %v2919_v54 = vld [vmem:[%s3652_s5 + $0xa8] ss:$12 sps:$4 sm:$0xff]   ;;  %v2442_v55 = vld [vmem:[%s3651_s0 + $0x20] sm:$0xff]   ;;  %v2931_v56 = vld [vmem:[%s3652_s5 + $0x50] ss:$12 sps:$4 sm:$0xff]  }
  0x13   :  { %277 = vmatpush1.bf16.msra.mxu0 %v2414_v11  ;;  %2114 = vmatpush3.bf16.msra.mxu1 %v2447_v21  ;;  %v1445_v57 = vsel %vm1443_vm4, 1, %v3658_v1  ;;  %vm1594_vm5 = vcmp.gt.s32.totalorder %v2840_v37, 5  ;;  %v2942_v58 = vld [vmem:[%s3652_s5 + $0x68] ss:$12 sps:$4 sm:$0xff]   ;;  %vm1745_vm6 = vcmp.gt.s32.totalorder %v2840_v37, 6  ;;  %vm1896_vm7 = vcmp.gt.s32.totalorder %v2840_v37, 7 }
  0x14   :  { %278 = vmatprep.subr.bf16.mxu0 %v2415_v12  ;;  %2115 = vmatprep.subr.bf16.mxu1 %v2449_v25  ;;  %v1596_v59 = vsel %vm1594_vm5, 1, %v3658_v1  ;;  %v2448_v60 = vld [vmem:[%s3651_s0 + $0x28] sm:$0xff]   ;;  %v2454_v61 = vld [vmem:[%s3651_s0 + $0x30] sm:$0xff]   ;;  %v1747_v63 = vsel %vm1745_vm6, 1, %v3658_v1  ;;  %v2967_v0 = vld [vmem:[%s3652_s5 + $0x98] ss:$12 sps:$4 sm:$0xff]   ;;  %v77_v12 = vlaneseq }
  0x15   :  { %848 = vperm.xlu0 %2398, %v843_v43   ;;  %v2958_v62 = vld [vmem:[%s3652_s5 + $0x80] ss:$12 sps:$4 sm:$0xff]   ;;  %v1898_v2 = vsel %vm1896_vm7, 1, %v3658_v1  ;;  %v2460_v3 = vld [vmem:[%s3651_s0 + $0x38] sm:$0xff]   ;;  %vm990_vm9 = vcmp.gt.s32.totalorder %v2840_v37, 1  ;;  %vm991_vm10 = vcmp.gt.s32.totalorder %v2845_v38, 1 }
  0x16   :  { %v2979_v4 = vld [vmem:[%s3652_s5 + $0xb0] ss:$12 sps:$4 sm:$0xff]   ;;  %v2987_v5 = vld [vmem:[%s3654_s2] sm:$0xff]  ;;  %v2992_v6 = vld [vmem:[%s3654_s2 + $0x8] sm:$0xff]  ;;  %v992_v8 = vsel %vm990_vm9, 1, %v3658_v1  ;;  %vm1142_vm11 = vcmp.gt.s32.totalorder %v2845_v38, 2 }
  0x17   :  { %279 = vmatpush1.bf16.msra.mxu0 %v2417_v13  ;;  %2116 = vmatpush3.bf16.msra.mxu1 %v2449_v25  ;;  %v569_v7 = vpack.c.bf16 %v2992_v6, %v2987_v5  ;;  %v1144_v10 = vsel %vm1142_vm11, 1, %v3658_v1  ;;  %vm1293_vm12 = vcmp.gt.s32.totalorder %v2845_v38, 3  ;;  %vm1444_vm13 = vcmp.gt.s32.totalorder %v2845_v38, 4  ;;  %v75_v18 = vld [vmem:[%s3655_s4] sm:$0x7] }
  0x18   :  { %280 = vmatprep.subr.bf16.mxu0 %v2418_v15  ;;  %2117 = vmatprep.subr.bf16.mxu1 %v2453_v27  ;;  %v1295_v11 = vsel %vm1293_vm12, 1, %v3658_v1  ;;  %v1446_v13 = vsel %vm1444_vm13, 1, %v3658_v1  ;;  %vm1595_vm14 = vcmp.gt.s32.totalorder %v2845_v38, 5  ;;  %v3046_v14 = vshrl.u32 %v77_v12, 7 }
  0x19   :  { %1146 = vperm.xlu0 %2398, %v1143_v49   ;;  %995 = vperm.xlu1 %2399, %v992_v8   ;;  %v1597_v15 = vsel %vm1595_vm14, 1, %v3658_v1  ;;  %vm1746_vm15 = vcmp.gt.s32.totalorder %v2845_v38, 6  ;;  %vm1897_vm0 = vcmp.gt.s32.totalorder %v2845_v38, 7 }
  0x1a   :  { %v3662_v16 = vsub.s32 2, %v3046_v14 }
  0x1b   :  { %281 = vmatpush1.bf16.msra.mxu0 %v2420_v17  ;;  %2118 = vmatpush3.bf16.msra.mxu1 %v2453_v27  ;;  %v1748_v17 = vsel %vm1746_vm15, 1, %v3658_v1 }
  0x1c   :  { %282 = vmatprep.subr.bf16.mxu0 %v2421_v19  ;;  %2119 = vmatprep.subr.bf16.mxu1 %v2455_v32  ;;  %v3058_v19 = vrot.slane %v75_v18, %v3662_v16 }
  0x1d   :  { %1297 = vperm.xlu0 %2398, %v1294_v53  }
  0x1f   :  { %283 = vmatpush1.bf16.msra.mxu0 %v2423_v20  ;;  %2120 = vmatpush3.bf16.msra.mxu1 %v2455_v32  ;;  %v1899_v20 = vsel %vm1897_vm0, 1, %v3658_v1 }
  0x20   :  { %714 = vmatprep.subr.bf16.mxu0 %v2768_v22  ;;  %2121 = vmatprep.subr.bf16.mxu1 %v2459_v34 }
  0x21   :  { %1448 = vperm.xlu0 %2398, %v1445_v57  }
  0x22   :  { %301 = vmatmul.mubr.bf16.vlgmr.msra.gmra.mrb[0].mxu0 %v2424_v9  ;;  %v993_v9 = vsel %vm991_vm10, 1, %v3658_v1 }
  0x23   :  { %715 = vmatpush1.bf16.msra.mxu0 %v2773_v23  ;;  %310 = vmatprep.mubr.bf16.mxu0 %v3658_v1 }
  0x24   :  { %716 = vmatprep.subr.bf16.mxu0 %v2778_v24  ;;  %2122 = vmatpush3.bf16.msra.mxu1 %v2459_v34 }
  0x25   :  { %2139 = vmatprep.subr.bf16.mxu1 %v3660_v46  ;;  %1599 = vperm.xlu0 %2398, %v1596_v59  }
  0x26   :  { %998 = vperm.xlu1 %2399, %v993_v9  }
  0x27   :  { %717 = vmatpush1.bf16.msra.mxu0 %v2787_v26  ;;  %2124 = vmatmul.mubr.bf16.vlgmr.msra.gmra.mrb[0].mxu1 %v2428_v29 }
  0x28   :  { %718 = vmatprep.subr.bf16.mxu0 %v2798_v28  ;;  %2140 = vmatpush3.bf16.msra.mxu1 %v2865_v42 }
  0x29   :  { %2127 = vmatprep.mubr.bf16.mxu1 %v2432_v36  ;;  %2141 = vmatprep.subr.bf16.mxu1 %v3660_v46 }
  0x2a   :  { %311 = vmatmul.mubr.bf16.gmra.mrb[4].mxu0 %v2428_v29  ;;  %1750 = vperm.xlu0 %2398, %v1747_v63  }
  0x2b   :  { %320 = vmatprep.mubr.bf16.mxu0 %v3658_v1  ;;  %719 = vmatpush1.bf16.msra.mxu0 %v2807_v30 }
  0x2c   :  { %720 = vmatprep.subr.bf16.mxu0 %v2812_v31  ;;  %2142 = vmatpush3.bf16.msra.mxu1 %v2890_v48 }
  0x2d   :  { %2143 = vmatprep.subr.bf16.mxu1 %v3660_v46  ;;  %1149 = vperm.xlu1 %2399, %v1144_v10  }
  0x2e   :  { %1901 = vperm.xlu0 %2398, %v1898_v2  }
  0x2f   :  { %721 = vmatpush1.bf16.msra.mxu0 %v2821_v33  ;;  %2128 = vmatmul.mubr.bf16.gmra.mrb[4].mxu1 %v2436_v47 }
  0x30   :  { %722 = vmatprep.subr.bf16.mxu0 %v2832_v35  ;;  %2144 = vmatpush3.bf16.msra.mxu1 %v2911_v52 }
  0x31   :  { %2131 = vmatprep.mubr.bf16.mxu1 %v2442_v55  ;;  %2145 = vmatprep.subr.bf16.mxu1 %v3660_v46 }
  0x32   :  { %321 = vmatmul.mubr.bf16.gmra.mrb[8].mxu0 %v2432_v36  ;;  %1300 = vperm.xlu1 %2399, %v1295_v11  }
  0x33   :  { %330 = vmatprep.mubr.bf16.mxu0 %v3658_v1  ;;  %723 = vmatpush1.bf16.msra.mxu0 %v2851_v39 }
  0x34   :  { %724 = vmatprep.subr.bf16.mxu0 %v2859_v40  ;;  %2146 = vmatpush3.bf16.msra.mxu1 %v2931_v56 }
  0x35   :  { %2147 = vmatprep.subr.bf16.mxu1 %v3660_v46 }
  0x36   :  { %1451 = vperm.xlu1 %2399, %v1446_v13  }
  0x37   :  { %725 = vmatpush1.bf16.msra.mxu0 %v2873_v44  ;;  %2132 = vmatmul.mubr.bf16.gmra.mrb[8].mxu1 %v2448_v60 }
  0x38   :  { %726 = vmatprep.subr.bf16.mxu0 %v2880_v45  ;;  %2148 = vmatpush3.bf16.msra.mxu1 %v2942_v58 }
  0x39   :  { %2135 = vmatprep.mubr.bf16.mxu1 %v2454_v61  ;;  %2149 = vmatprep.subr.bf16.mxu1 %v3660_v46 }
  0x3a   :  { %331 = vmatmul.mubr.bf16.gmra.mrb[12].mxu0 %v2436_v47  ;;  %1602 = vperm.xlu1 %2399, %v1597_v15  }
  0x3b   :  { %340 = vmatprep.mubr.bf16.mxu0 %v3658_v1  ;;  %727 = vmatpush1.bf16.msra.mxu0 %v2897_v50 }
  0x3c   :  { %728 = vmatprep.subr.bf16.mxu0 %v2905_v51  ;;  %2150 = vmatpush3.bf16.msra.mxu1 %v2958_v62 }
  0x3d   :  { %2151 = vmatprep.subr.bf16.mxu1 %v3660_v46 }
  0x3e   :  { %1753 = vperm.xlu1 %2399, %v1748_v17  }
  0x3f   :  { %729 = vmatpush1.bf16.msra.mxu0 %v2919_v54  ;;  %2136 = vmatmul.mubr.bf16.gmra.mrb[12].mxu1 %v2460_v3 }
  0x40   :  { %864 = vmatprep.subr.bf16.mxu0 %v2768_v22  ;;  %2152 = vmatpush3.bf16.msra.mxu1 %v2967_v0 }
  0x41   :  { %2155 = vmatprep.mubr.msk.bf16.mxu1 %vm2658_vm8, %v3660_v46  ;;  %2153 = vmatprep.subr.bf16.mxu1 %v3660_v46 }
  0x42   :  { %341 = vmatmul.mubr.bf16.gmra.mrb[16].mxu0 %v2442_v55  ;;  %1904 = vperm.xlu1 %2399, %v1899_v20  }
  0x43   :  { %350 = vmatprep.mubr.bf16.mxu0 %v3658_v1 }
  0x44   :  { %2154 = vmatpush3.bf16.msra.mxu1 %v2979_v4 }
  0x45   :  { %2159 = vmatprep.subr.bf16.mxu1 %v3660_v46 }
  0x47   :  { %2156 = vmatmul.mubr.bf16.vlgmr.msra.gmra.mrb[16].mxu1 %v569_v7 }
  0x48   :  { %2160 = vmatpush3.bf16.msra.mxu1 %v2865_v42  ;;  %2175 = vmatprep.mubr.msk.bf16.mxu1 %vm2658_vm8, %v3660_v46 }
  0x49   :  { %2161 = vmatprep.subr.bf16.mxu1 %v3660_v46 }
  0x4a   :  { %351 = vmatmul.mubr.bf16.gmra.mrb[20].mxu0 %v2448_v60 }
  0x4b   :  { %360 = vmatprep.mubr.bf16.mxu0 %v3658_v1 }
  0x4c   :  { %2162 = vmatpush3.bf16.msra.mxu1 %v2890_v48 }
  0x4d   :  { %2163 = vmatprep.subr.bf16.mxu1 %v3660_v46 }
  0x50   :  { %2164 = vmatpush3.bf16.msra.mxu1 %v2911_v52 }
  0x51   :  { %2165 = vmatprep.subr.bf16.mxu1 %v3660_v46 }
  0x52   :  { %361 = vmatmul.mubr.bf16.gmra.mrb[24].mxu0 %v2454_v61 }
  0x53   :  { %370 = vmatprep.mubr.bf16.mxu0 %v3658_v1 }
  0x54   :  { %2166 = vmatpush3.bf16.msra.mxu1 %v2931_v56 }
  0x55   :  { %2167 = vmatprep.subr.bf16.mxu1 %v3660_v46 }
  0x58   :  { %2168 = vmatpush3.bf16.msra.mxu1 %v2942_v58 }
  0x59   :  { %2169 = vmatprep.subr.bf16.mxu1 %v3660_v46 }
  0x5a   :  { %371 = vmatmul.mubr.bf16.gmra.mrb[28].mxu0 %v2460_v3 }
  0x5b   :  { %746 = vmatprep.mubr.bf16.mxu0 %v3658_v1 }
  0x5c   :  { %2170 = vmatpush3.bf16.msra.mxu1 %v2958_v62 }
  0x5d   :  { %2171 = vmatprep.subr.bf16.mxu1 %v3660_v46 }
  0x60   :  { %2172 = vmatpush3.bf16.msra.mxu1 %v2967_v0 }
  0x61   :  { %2173 = vmatprep.subr.bf16.mxu1 %v3660_v46 }
  0x62   :  { %747 = vmatmul.mubr.bf16.vlgmr.msra.gmra.mrb[0].mxu0 %v569_v7 }
  0x63   :  { %865 = vmatpush1.bf16.msra.mxu0 %v2773_v23  ;;  %896 = vmatprep.mubr.bf16.mxu0 %v3658_v1 }
  0x64   :  { %866 = vmatprep.subr.bf16.mxu0 %v2778_v24  ;;  %2174 = vmatpush3.bf16.msra.mxu1 %v2979_v4 }
  0x65   :  { %2179 = vmatprep.subr.bf16.mxu1 %v3660_v46 }
  0x67   :  { %867 = vmatpush1.bf16.msra.mxu0 %v2787_v26 }
  0x68   :  { %868 = vmatprep.subr.bf16.mxu0 %v2798_v28 }
  0x6b   :  { %869 = vmatpush1.bf16.msra.mxu0 %v2807_v30 }
  0x6c   :  { %870 = vmatprep.subr.bf16.mxu0 %v2812_v31 }
  0x6f   :  { %871 = vmatpush1.bf16.msra.mxu0 %v2821_v33 }
  0x70   :  { %872 = vmatprep.subr.bf16.mxu0 %v2832_v35 }
  0x73   :  { %873 = vmatpush1.bf16.msra.mxu0 %v2851_v39 }
  0x74   :  { %874 = vmatprep.subr.bf16.mxu0 %v2859_v40 }
  0x77   :  { %875 = vmatpush1.bf16.msra.mxu0 %v2873_v44 }
  0x78   :  { %876 = vmatprep.subr.bf16.mxu0 %v2880_v45 }
  0x7b   :  { %877 = vmatpush1.bf16.msra.mxu0 %v2897_v50 }
  0x7c   :  { %878 = vmatprep.subr.bf16.mxu0 %v2905_v51 }
  0x7f   :  { %879 = vmatpush1.bf16.msra.mxu0 %v2919_v54 }
  0x80   :  { %1015 = vmatprep.subr.bf16.mxu0 %v2768_v22 }
  0xfa   :  { %v2125_v21 = vpop.f32.mrb[0].mxu1 }
  0xfb   :  { %v3062_v25 = vadd.f32 %v2125_v21, %v3058_v19  ;;  %v3064_v27 = vpop.f32.mrb[1].mxu1  ;;  %v79_v21 = vsub.s32 0, %v3046_v14 }
  0xfc   :  { %v2126_v29 = vpop.f32.mrb[2].mxu1 }
  0xfd   :  { %v3067_v32 = vadd.f32 %v2126_v29, %v3058_v19  ;;  %v3069_v34 = vpop.f32.mrb[3].mxu1 }
 0x102   :  { %v2129_v36 = vpop.f32.mrb[4].mxu1 }
 0x103   :  { %v3072_v37 = vadd.f32 %v2129_v36, %v3058_v19  ;;  %v431_v38 = vpop.f32.mrb[5].mxu1  ;;  %v558_v36 = vld [vmem:[%s3656_s6] sm:$0x7] }
 0x104   :  { %v3075_v41 = vadd.f32 %v431_v38, %v3058_v19  ;;  %v2130_v43 = vpop.f32.mrb[6].mxu1 }
 0x105   :  { %v3078_v47 = vadd.f32 %v2130_v43, %v3058_v19  ;;  %v434_v49 = vpop.f32.mrb[7].mxu1  ;;  %v83_v43 = vsub.s32 1, %v3046_v14 }
 0x106   :  { %v3081_v53 = vadd.f32 %v434_v49, %v3058_v19  ;;  %v80_v49 = vrot.slane %v75_v18, %v79_v21 }
 0x10a   :  { %v2133_v55 = vpop.f32.mrb[8].mxu1 }
 0x10b   :  { %v3084_v57 = vadd.f32 %v2133_v55, %v3058_v19  ;;  %v447_v59 = vpop.f32.mrb[9].mxu1  ;;  %v574_v55 = vrot.slane %v558_v36, %v79_v21 }
 0x10c   :  { %v3087_v60 = vadd.f32 %v447_v59, %v3058_v19  ;;  %v2134_v61 = vpop.f32.mrb[10].mxu1  ;;  %v84_v59 = vrot.slane %v75_v18, %v83_v43 }
 0x10d   :  { %v3090_v63 = vadd.f32 %v2134_v61, %v3058_v19  ;;  %v450_v2 = vpop.f32.mrb[11].mxu1  ;;  %v578_v61 = vrot.slane %v558_v36, %v83_v43 }
 0x10e   :  { %v3093_v3 = vadd.f32 %v450_v2, %v3058_v19  ;;  %v3112_v2 = vadd.f32 %v574_v55, %v80_v49 }
 0x112   :  { %v2137_v7 = vpop.f32.mrb[12].mxu1 }
 0x113   :  { %v3096_v8 = vadd.f32 %v2137_v7, %v3058_v19  ;;  %v463_v9 = vpop.f32.mrb[13].mxu1 }
 0x114   :  { %v3099_v10 = vadd.f32 %v463_v9, %v3058_v19  ;;  %v2138_v11 = vpop.f32.mrb[14].mxu1  ;;  %v3114_v9 = vadd.f32 %v578_v61, %v84_v59 }
 0x115   :  { %v3102_v12 = vadd.f32 %v2138_v11, %v3058_v19  ;;  %v466_v13 = vpop.f32.mrb[15].mxu1 }
 0x116   :  { %v3105_v15 = vadd.f32 %v466_v13, %v3058_v19 }
 0x117   :  { %3663 = vst [vmem:[#allocation3_spill] sm:$0xff] %v3102_v12 }
 0x11a   :  { %v791_v17 = vpop.f32.mrb[16].mxu1 }
 0x11b   :  { %v2157_v20 = vpop.f32.mrb[17].mxu1 }
 0x11c   :  { %v794_v29 = vpop.f32.mrb[18].mxu1 }
 0x11d   :  { %v2158_v38 = vpop.f32.mrb[19].mxu1 }
 0x135   :  { %v748_v7 = vpop.f32.mrb[0].mxu0 }
 0x136   :  { %v2300_v11 = vadd.f32 %v3112_v2, %v748_v7  ;;  %v750_v13 = vpop.f32.mrb[1].mxu0  ;;  %v3664_v7 = vsub.s32 2, %v3046_v14  ;;  %v419_v14 = vadd.f32 %v3069_v34, %v3058_v19 }
 0x137   :  { %v752_v20 = vpop.f32.mrb[2].mxu0  ;;  %v2302_v38 = vadd.f32 %v3114_v9, %v750_v13 }
 0x138   :  { %v1973_v1 = vmul.f32 -1.442695, %v2300_v11  ;;  %v2304_v46 = vadd.f32 %v3112_v2, %v752_v20  ;;  %v754_v16 = vpop.f32.mrb[3].mxu0  ;;  %v3122_v11 = vrot.slane %v558_v36, %v3664_v7  ;;  %v846_v7 = vpop.permute.xlu0 %845 }
 0x139   :  { %v2306_v18 = vadd.f32 %v3114_v9, %v754_v16  ;;  %v1975_v21 = vmul.f32 -1.442695, %v2302_v38  ;;  %v416_v38 = vadd.f32 %v3064_v27, %v3058_v19  ;;  %vm850_vm1 = vcmp.eq.s32.totalorder %v846_v7, 1 }
 0x13a   :  { %2472 = vpow2.f32 %v1973_v1  ;;  %v1974_v12 = vmul.f32 -1.442695, %v2304_v46  ;;  %v792_v16 = vadd.f32 %v791_v17, %v3122_v11 }
 0x13b   :  { %v1976_v43 = vmul.f32 -1.442695, %v2306_v18 }
 0x13c   :  { %2474 = vpow2.f32 %v1974_v12  ;;  %v849_v34 = vpop.permute.xlu0 %848 }
 0x13d   :  { %2476 = vpow2.f32 %v1975_v21  ;;  %v795_v21 = vadd.f32 %v794_v29, %v3122_v11  ;;  %vm851_vm2 = vcmp.eq.s32.totalorder %v849_v34, 1 }
 0x13e   :  { %2478 = vpow2.f32 %v1976_v43 }
 0x144   :  { %v2473_v49 = vpop.eup %2472 }
 0x145   :  { %v806_v55 = vadd.f32 1.0, %v2473_v49 }
 0x146   :  { %v2475_v59 = vpop.eup %2474 }
 0x147   :  { %2480 = vrcp.f32 %v806_v55  ;;  %v807_v61 = vadd.f32 1.0, %v2475_v59  ;;  %v2477_v13 = vpop.eup %2476 }
 0x148   :  { %v2479_v1 = vpop.eup %2478  ;;  %v820_v46 = vadd.f32 1.0, %v2477_v13 }
 0x149   :  { %2482 = vrcp.f32 %v807_v61  ;;  %v821_v12 = vadd.f32 1.0, %v2479_v1 }
 0x14a   :  { %2484 = vrcp.f32 %v820_v46 }
 0x14b   :  { %2486 = vrcp.f32 %v821_v12 }
 0x151   :  { %v2481_v20 = vpop.eup %2480 }
 0x152   :  { %v826_v18 = vmul.f32 %v2481_v20, %v792_v16 }
 0x153   :  { %v2483_v43 = vpop.eup %2482 }
 0x154   :  { %v828_v36 = vadd.f32 %v826_v18, %v416_v38  ;;  %v827_v49 = vmul.f32 %v2483_v43, %v795_v21  ;;  %v2485_v17 = vpop.eup %2484 }
 0x155   :  { %v2487_v59 = vpop.eup %2486  ;;  %v832_v61 = vsub.f32 1.0, %v2485_v17  ;;  %v836_v27 = vmul.f32 %v2485_v17, %v2987_v5 }
 0x156   :  { %2488 = vtanh.f32 %v828_v36  ;;  %v829_v55 = vadd.f32 %v827_v49, %v419_v14  ;;  %v833_v1 = vsub.f32 1.0, %v2487_v59  ;;  %v837_v16 = vmul.f32 %v2487_v59, %v2992_v6 }
 0x158   :  { %2490 = vtanh.f32 %v829_v55 }
 0x160   :  { %v2489_v13 = vpop.eup %2488 }
 0x161   :  { %v834_v46 = vmul.f32 %v2489_v13, %v832_v61 }
 0x162   :  { %v2491_v29 = vpop.eup %2490 }
 0x163   :  { %v835_v20 = vmul.f32 %v2491_v29, %v833_v1  ;;  %v838_v19 = vadd.f32 %v836_v27, %v834_v46 }
 0x165   :  { %v839_v12 = vadd.f32 %v837_v16, %v835_v20  ;;  %v3133_v38 = vsel %vm850_vm1, %v838_v19, %v2987_v5  ;;  %v3665_v5 = vmov 0.0  }
 0x166   :  { %854 = vst [vmem:[%s3657_s7] sm:$0xff] %v3133_v38 }
 0x167   :  { %v3140_v18 = vsel %vm851_vm2, %v839_v12, %v2992_v6  ;;  %v3666_v6 = vmov 0  }
 0x168   :  { %855 = vst [vmem:[%s3657_s7 + $0x8] sm:$0xff] %v3140_v18  ;;  %v863_v21 = vpack.c.bf16 %v3140_v18, %v3133_v38 }
 0x16a   :  { %897 = vmatmul.mubr.bf16.vlgmr.msra.gmra.mrb[4].mxu0 %v863_v21  ;;  %2176 = vmatmul.mubr.bf16.vlgmr.msra.gmra.mrb[20].mxu1 %v863_v21 }
 0x16b   :  { %1016 = vmatpush1.bf16.msra.mxu0 %v2773_v23  ;;  %2180 = vmatpush3.bf16.msra.mxu1 %v2865_v42 }
 0x16c   :  { %1017 = vmatprep.subr.bf16.mxu0 %v2778_v24  ;;  %2181 = vmatprep.subr.bf16.mxu1 %v3665_v5 }
 0x16d   :  { %1047 = vmatprep.mubr.bf16.mxu0 %v3666_v6  ;;  %2195 = vmatprep.mubr.msk.bf16.mxu1 %vm2658_vm8, %v3665_v5 }
 0x16f   :  { %1018 = vmatpush1.bf16.msra.mxu0 %v2787_v26  ;;  %2182 = vmatpush3.bf16.msra.mxu1 %v2890_v48 }
 0x170   :  { %1019 = vmatprep.subr.bf16.mxu0 %v2798_v28  ;;  %2183 = vmatprep.subr.bf16.mxu1 %v3665_v5 }
 0x173   :  { %1020 = vmatpush1.bf16.msra.mxu0 %v2807_v30  ;;  %2184 = vmatpush3.bf16.msra.mxu1 %v2911_v52 }
 0x174   :  { %1021 = vmatprep.subr.bf16.mxu0 %v2812_v31  ;;  %2185 = vmatprep.subr.bf16.mxu1 %v3665_v5 }
 0x177   :  { %1022 = vmatpush1.bf16.msra.mxu0 %v2821_v33  ;;  %2186 = vmatpush3.bf16.msra.mxu1 %v2931_v56 }
 0x178   :  { %1023 = vmatprep.subr.bf16.mxu0 %v2832_v35  ;;  %2187 = vmatprep.subr.bf16.mxu1 %v3665_v5 }
 0x17b   :  { %1024 = vmatpush1.bf16.msra.mxu0 %v2851_v39  ;;  %2188 = vmatpush3.bf16.msra.mxu1 %v2942_v58 }
 0x17c   :  { %1025 = vmatprep.subr.bf16.mxu0 %v2859_v40  ;;  %2189 = vmatprep.subr.bf16.mxu1 %v3665_v5 }
 0x17f   :  { %1026 = vmatpush1.bf16.msra.mxu0 %v2873_v44  ;;  %2190 = vmatpush3.bf16.msra.mxu1 %v2958_v62 }
 0x180   :  { %1027 = vmatprep.subr.bf16.mxu0 %v2880_v45  ;;  %2191 = vmatprep.subr.bf16.mxu1 %v3665_v5 }
 0x183   :  { %1028 = vmatpush1.bf16.msra.mxu0 %v2897_v50  ;;  %2192 = vmatpush3.bf16.msra.mxu1 %v2967_v0 }
 0x184   :  { %1029 = vmatprep.subr.bf16.mxu0 %v2905_v51  ;;  %2193 = vmatprep.subr.bf16.mxu1 %v3665_v5 }
 0x187   :  { %1030 = vmatpush1.bf16.msra.mxu0 %v2919_v54  ;;  %2194 = vmatpush3.bf16.msra.mxu1 %v2979_v4 }
 0x188   :  { %1166 = vmatprep.subr.bf16.mxu0 %v2768_v22  ;;  %2199 = vmatprep.subr.bf16.mxu1 %v3665_v5 }
 0x23d   :  { %v898_v43 = vpop.f32.mrb[4].mxu0  ;;  %v941_v14 = vpop.f32.mrb[20].mxu1 }
 0x23e   :  { %v2308_v36 = vadd.f32 %v3112_v2, %v898_v43  ;;  %v900_v49 = vpop.f32.mrb[5].mxu0  ;;  %v2177_v55 = vpop.f32.mrb[21].mxu1 }
 0x23f   :  { %v902_v17 = vpop.f32.mrb[6].mxu0  ;;  %v944_v59 = vpop.f32.mrb[22].mxu1  ;;  %v2310_v1 = vadd.f32 %v3114_v9, %v900_v49  ;;  %v942_v49 = vadd.f32 %v941_v14, %v3122_v11 }
 0x240   :  { %v1977_v61 = vmul.f32 -1.442695, %v2308_v36  ;;  %v2312_v7 = vadd.f32 %v3112_v2, %v902_v17  ;;  %v904_v13 = vpop.f32.mrb[7].mxu0  ;;  %v2178_v27 = vpop.f32.mrb[23].mxu1 }
 0x241   :  { %v2314_v29 = vadd.f32 %v3114_v9, %v904_v13  ;;  %v1979_v16 = vmul.f32 -1.442695, %v2310_v1  ;;  %v945_v13 = vadd.f32 %v944_v59, %v3122_v11 }
 0x242   :  { %2492 = vpow2.f32 %v1977_v61  ;;  %v1978_v46 = vmul.f32 -1.442695, %v2312_v7 }
 0x243   :  { %v1980_v20 = vmul.f32 -1.442695, %v2314_v29 }
 0x244   :  { %2494 = vpow2.f32 %v1978_v46 }
 0x245   :  { %2496 = vpow2.f32 %v1979_v16 }
 0x246   :  { %2498 = vpow2.f32 %v1980_v20 }
 0x24c   :  { %v2493_v19 = vpop.eup %2492 }
 0x24d   :  { %v956_v34 = vadd.f32 1.0, %v2493_v19  ;;  %v996_v19 = vpop.permute.xlu1 %995 }
 0x24e   :  { %v2495_v12 = vpop.eup %2494  ;;  %vm1000_vm3 = vcmp.eq.s32.totalorder %v996_v19, 1 }
 0x24f   :  { %2500 = vrcp.f32 %v956_v34  ;;  %v957_v21 = vadd.f32 1.0, %v2495_v12  ;;  %v2497_v43 = vpop.eup %2496 }
 0x250   :  { %v2499_v36 = vpop.eup %2498  ;;  %v970_v55 = vadd.f32 1.0, %v2497_v43 }
 0x251   :  { %2502 = vrcp.f32 %v957_v21  ;;  %v971_v17 = vadd.f32 1.0, %v2499_v36 }
 0x252   :  { %2504 = vrcp.f32 %v970_v55 }
 0x253   :  { %2506 = vrcp.f32 %v971_v17 }
 0x259   :  { %v2501_v61 = vpop.eup %2500 }
 0x25a   :  { %v976_v7 = vmul.f32 %v2501_v61, %v942_v49 }
 0x25b   :  { %v2503_v27 = vpop.eup %2502 }
 0x25c   :  { %v978_v1 = vadd.f32 %v976_v7, %v3062_v25  ;;  %v977_v46 = vmul.f32 %v2503_v27, %v945_v13  ;;  %v2505_v16 = vpop.eup %2504 }
 0x25d   :  { %v2507_v20 = vpop.eup %2506  ;;  %v982_v34 = vsub.f32 1.0, %v2505_v16  ;;  %v986_v21 = vmul.f32 %v2505_v16, %v3133_v38 }
 0x25e   :  { %2508 = vtanh.f32 %v978_v1  ;;  %v979_v29 = vadd.f32 %v977_v46, %v3067_v32  ;;  %v983_v43 = vsub.f32 1.0, %v2507_v20  ;;  %v987_v25 = vmul.f32 %v2507_v20, %v3140_v18  ;;  %v999_v32 = vpop.permute.xlu1 %998 }
 0x25f   :  { %vm1001_vm4 = vcmp.eq.s32.totalorder %v999_v32, 1 }
 0x260   :  { %2510 = vtanh.f32 %v979_v29 }
 0x268   :  { %v2509_v14 = vpop.eup %2508 }
 0x269   :  { %v984_v12 = vmul.f32 %v2509_v14, %v982_v34 }
 0x26a   :  { %v2511_v36 = vpop.eup %2510 }
 0x26b   :  { %v988_v59 = vadd.f32 %v986_v21, %v984_v12  ;;  %v985_v55 = vmul.f32 %v2511_v36, %v983_v43 }
 0x26d   :  { %v3194_v49 = vsel %vm1000_vm3, %v988_v59, %v3133_v38  ;;  %v989_v17 = vadd.f32 %v987_v25, %v985_v55 }
 0x26e   :  { %1981 = vst [vmem:[%s3657_s7 + $0x10] sm:$0xff] %v3194_v49 }
 0x26f   :  { %v3201_v61 = vsel %vm1001_vm4, %v989_v17, %v3140_v18 }
 0x270   :  { %1982 = vst [vmem:[%s3657_s7 + $0x18] sm:$0xff] %v3201_v61  ;;  %v1014_v38 = vpack.c.bf16 %v3201_v61, %v3194_v49 }
 0x272   :  { %1048 = vmatmul.mubr.bf16.vlgmr.msra.gmra.mrb[8].mxu0 %v1014_v38  ;;  %2196 = vmatmul.mubr.bf16.vlgmr.msra.gmra.mrb[24].mxu1 %v1014_v38 }
 0x273   :  { %1167 = vmatpush1.bf16.msra.mxu0 %v2773_v23  ;;  %2200 = vmatpush3.bf16.msra.mxu1 %v2865_v42 }
 0x274   :  { %1168 = vmatprep.subr.bf16.mxu0 %v2778_v24  ;;  %2201 = vmatprep.subr.bf16.mxu1 %v3665_v5 }
 0x275   :  { %1198 = vmatprep.mubr.bf16.mxu0 %v3666_v6  ;;  %2215 = vmatprep.mubr.msk.bf16.mxu1 %vm2658_vm8, %v3665_v5 }
 0x277   :  { %1169 = vmatpush1.bf16.msra.mxu0 %v2787_v26  ;;  %2202 = vmatpush3.bf16.msra.mxu1 %v2890_v48 }
 0x278   :  { %1170 = vmatprep.subr.bf16.mxu0 %v2798_v28  ;;  %2203 = vmatprep.subr.bf16.mxu1 %v3665_v5 }
 0x27b   :  { %1171 = vmatpush1.bf16.msra.mxu0 %v2807_v30  ;;  %2204 = vmatpush3.bf16.msra.mxu1 %v2911_v52 }
 0x27c   :  { %1172 = vmatprep.subr.bf16.mxu0 %v2812_v31  ;;  %2205 = vmatprep.subr.bf16.mxu1 %v3665_v5 }
 0x27f   :  { %1173 = vmatpush1.bf16.msra.mxu0 %v2821_v33  ;;  %2206 = vmatpush3.bf16.msra.mxu1 %v2931_v56 }
 0x280   :  { %1174 = vmatprep.subr.bf16.mxu0 %v2832_v35  ;;  %2207 = vmatprep.subr.bf16.mxu1 %v3665_v5 }
 0x283   :  { %1175 = vmatpush1.bf16.msra.mxu0 %v2851_v39  ;;  %2208 = vmatpush3.bf16.msra.mxu1 %v2942_v58 }
 0x284   :  { %1176 = vmatprep.subr.bf16.mxu0 %v2859_v40  ;;  %2209 = vmatprep.subr.bf16.mxu1 %v3665_v5 }
 0x287   :  { %1177 = vmatpush1.bf16.msra.mxu0 %v2873_v44  ;;  %2210 = vmatpush3.bf16.msra.mxu1 %v2958_v62 }
 0x288   :  { %1178 = vmatprep.subr.bf16.mxu0 %v2880_v45  ;;  %2211 = vmatprep.subr.bf16.mxu1 %v3665_v5 }
 0x28b   :  { %1179 = vmatpush1.bf16.msra.mxu0 %v2897_v50  ;;  %2212 = vmatpush3.bf16.msra.mxu1 %v2967_v0 }
 0x28c   :  { %1180 = vmatprep.subr.bf16.mxu0 %v2905_v51  ;;  %2213 = vmatprep.subr.bf16.mxu1 %v3665_v5 }
 0x28f   :  { %1181 = vmatpush1.bf16.msra.mxu0 %v2919_v54  ;;  %2214 = vmatpush3.bf16.msra.mxu1 %v2979_v4 }
 0x290   :  { %1317 = vmatprep.subr.bf16.mxu0 %v2768_v22  ;;  %2219 = vmatprep.subr.bf16.mxu1 %v3665_v5 }
 0x345   :  { %v1049_v23 = vpop.f32.mrb[8].mxu0  ;;  %v1092_v24 = vpop.f32.mrb[24].mxu1 }
 0x346   :  { %v2316_v26 = vadd.f32 %v3112_v2, %v1049_v23  ;;  %v1051_v28 = vpop.f32.mrb[9].mxu0  ;;  %v2197_v30 = vpop.f32.mrb[25].mxu1  ;;  %v1093_v59 = vadd.f32 %v1092_v24, %v3122_v11 }
 0x347   :  { %v1053_v31 = vpop.f32.mrb[10].mxu0  ;;  %v1095_v18 = vpop.f32.mrb[26].mxu1  ;;  %v2318_v46 = vadd.f32 %v3114_v9, %v1051_v28 }
 0x348   :  { %v1983_v7 = vmul.f32 -1.442695, %v2316_v26  ;;  %v2320_v13 = vadd.f32 %v3112_v2, %v1053_v31  ;;  %v1055_v27 = vpop.f32.mrb[11].mxu0  ;;  %v2198_v1 = vpop.f32.mrb[27].mxu1  ;;  %v1096_v17 = vadd.f32 %v1095_v18, %v3122_v11 }
 0x349   :  { %v2322_v22 = vadd.f32 %v3114_v9, %v1055_v27  ;;  %v1985_v16 = vmul.f32 -1.442695, %v2318_v46 }
 0x34a   :  { %2512 = vpow2.f32 %v1983_v7  ;;  %v1984_v29 = vmul.f32 -1.442695, %v2320_v13 }
 0x34b   :  { %v1986_v20 = vmul.f32 -1.442695, %v2322_v22 }
 0x34c   :  { %2514 = vpow2.f32 %v1984_v29  ;;  %v1147_v29 = vpop.permute.xlu0 %1146 }
 0x34d   :  { %2516 = vpow2.f32 %v1985_v16  ;;  %vm1151_vm5 = vcmp.eq.s32.totalorder %v1147_v29, 1  ;;  %v1150_v16 = vpop.permute.xlu1 %1149 }
 0x34e   :  { %2518 = vpow2.f32 %v1986_v20  ;;  %vm1152_vm6 = vcmp.eq.s32.totalorder %v1150_v16, 1 }
 0x354   :  { %v2513_v19 = vpop.eup %2512 }
 0x355   :  { %v1107_v34 = vadd.f32 1.0, %v2513_v19 }
 0x356   :  { %v2515_v14 = vpop.eup %2514 }
 0x357   :  { %2520 = vrcp.f32 %v1107_v34  ;;  %v1108_v12 = vadd.f32 1.0, %v2515_v14  ;;  %v2517_v21 = vpop.eup %2516  ;;  %v3290_v14 = vld [vmem:[%s3652_s5 + $0x18] ss:$12 sps:$4 sm:$0xff]  }
 0x358   :  { %v2519_v43 = vpop.eup %2518  ;;  %v1121_v36 = vadd.f32 1.0, %v2517_v21 }
 0x359   :  { %2522 = vrcp.f32 %v1108_v12  ;;  %v1122_v55 = vadd.f32 1.0, %v2519_v43  ;;  %v3304_v12 = vld [vmem:[%s3652_s5 + $0x30] ss:$12 sps:$4 sm:$0xff]  }
 0x35a   :  { %2524 = vrcp.f32 %v1121_v36 }
 0x35b   :  { %2526 = vrcp.f32 %v1122_v55 }
 0x361   :  { %v2521_v25 = vpop.eup %2520 }
 0x362   :  { %v1127_v32 = vmul.f32 %v2521_v25, %v1093_v59 }
 0x363   :  { %v2523_v38 = vpop.eup %2522 }
 0x364   :  { %v1129_v23 = vadd.f32 %v1127_v32, %v3075_v41  ;;  %v1128_v26 = vmul.f32 %v2523_v38, %v1096_v17  ;;  %v2525_v30 = vpop.eup %2524 }
 0x365   :  { %v2527_v31 = vpop.eup %2526  ;;  %v1133_v7 = vsub.f32 1.0, %v2525_v30  ;;  %v1137_v27 = vmul.f32 %v2525_v30, %v3194_v49 }
 0x366   :  { %2528 = vtanh.f32 %v1129_v23  ;;  %v1130_v28 = vadd.f32 %v1128_v26, %v3081_v53  ;;  %v1134_v1 = vsub.f32 1.0, %v2527_v31  ;;  %v1138_v22 = vmul.f32 %v2527_v31, %v3201_v61 }
 0x368   :  { %2530 = vtanh.f32 %v1130_v28 }
 0x370   :  { %v2529_v13 = vpop.eup %2528 }
 0x371   :  { %v1135_v24 = vmul.f32 %v2529_v13, %v1133_v7 }
 0x372   :  { %v2531_v46 = vpop.eup %2530 }
 0x373   :  { %v1136_v18 = vmul.f32 %v2531_v46, %v1134_v1  ;;  %v1139_v41 = vadd.f32 %v1137_v27, %v1135_v24 }
 0x375   :  { %v1140_v20 = vadd.f32 %v1138_v22, %v1136_v18  ;;  %v3255_v53 = vsel %vm1151_vm5, %v1139_v41, %v3194_v49  ;;  %v3273_v49 = vld [vmem:[%s3652_s5] ss:$12 sps:$4 sm:$0xff]  }
 0x376   :  { %1987 = vst [vmem:[%s3657_s7 + $0x20] sm:$0xff] %v3255_v53 }
 0x377   :  { %v3262_v19 = vsel %vm1152_vm6, %v1140_v20, %v3201_v61  ;;  %v3280_v61 = vld [vmem:[%s3652_s5 + $0x1c] ss:$12 sps:$4 sm:$0xff]  }
 0x378   :  { %1988 = vst [vmem:[%s3657_s7 + $0x28] sm:$0xff] %v3262_v19  ;;  %v1165_v34 = vpack.c.bf16 %v3262_v19, %v3255_v53 }
 0x37a   :  { %1199 = vmatmul.mubr.bf16.vlgmr.msra.gmra.mrb[12].mxu0 %v1165_v34  ;;  %2216 = vmatmul.mubr.bf16.vlgmr.msra.gmra.mrb[28].mxu1 %v1165_v34  ;;  %v1298_v34 = vpop.permute.xlu0 %1297 }
 0x37b   :  { %1318 = vmatpush1.bf16.msra.mxu0 %v3273_v49  ;;  %2220 = vmatpush3.bf16.msra.mxu1 %v2865_v42  ;;  %v3297_v42 = vld [vmem:[%s3652_s5 + $0x34] ss:$12 sps:$4 sm:$0xff]   ;;  %vm1302_vm7 = vcmp.eq.s32.totalorder %v1298_v34, 1 }
 0x37c   :  { %1319 = vmatprep.subr.bf16.mxu0 %v3280_v61  ;;  %2221 = vmatprep.subr.bf16.mxu1 %v3665_v5 }
 0x37d   :  { %1349 = vmatprep.mubr.bf16.mxu0 %v3666_v6  ;;  %2235 = vmatprep.mubr.msk.bf16.mxu1 %vm2658_vm8, %v3665_v5 }
 0x37f   :  { %1320 = vmatpush1.bf16.msra.mxu0 %v3290_v14  ;;  %2222 = vmatpush3.bf16.msra.mxu1 %v2890_v48  ;;  %v3311_v48 = vld [vmem:[%s3652_s5 + $0x4c] ss:$12 sps:$4 sm:$0xff]  }
 0x380   :  { %1321 = vmatprep.subr.bf16.mxu0 %v3297_v42  ;;  %2223 = vmatprep.subr.bf16.mxu1 %v3665_v5 }
 0x383   :  { %1322 = vmatpush1.bf16.msra.mxu0 %v3304_v12  ;;  %2224 = vmatpush3.bf16.msra.mxu1 %v2911_v52 }
 0x384   :  { %1323 = vmatprep.subr.bf16.mxu0 %v3311_v48  ;;  %2225 = vmatprep.subr.bf16.mxu1 %v3665_v5 }
 0x387   :  { %1324 = vmatpush1.bf16.msra.mxu0 %v2821_v33  ;;  %2226 = vmatpush3.bf16.msra.mxu1 %v2931_v56  ;;  %v3336_v33 = vld [vmem:[%s3652_s5 + $0x4] ss:$12 sps:$4 sm:$0xff]  }
 0x388   :  { %1325 = vmatprep.subr.bf16.mxu0 %v2832_v35  ;;  %2227 = vmatprep.subr.bf16.mxu1 %v3665_v5 }
 0x38b   :  { %1326 = vmatpush1.bf16.msra.mxu0 %v2851_v39  ;;  %2228 = vmatpush3.bf16.msra.mxu1 %v2942_v58 }
 0x38c   :  { %1327 = vmatprep.subr.bf16.mxu0 %v2859_v40  ;;  %2229 = vmatprep.subr.bf16.mxu1 %v3665_v5 }
 0x38f   :  { %1328 = vmatpush1.bf16.msra.mxu0 %v2873_v44  ;;  %2230 = vmatpush3.bf16.msra.mxu1 %v2958_v62 }
 0x390   :  { %1329 = vmatprep.subr.bf16.mxu0 %v2880_v45  ;;  %2231 = vmatprep.subr.bf16.mxu1 %v3665_v5 }
 0x393   :  { %1330 = vmatpush1.bf16.msra.mxu0 %v2897_v50  ;;  %2232 = vmatpush3.bf16.msra.mxu1 %v2967_v0 }
 0x394   :  { %1331 = vmatprep.subr.bf16.mxu0 %v2905_v51  ;;  %2233 = vmatprep.subr.bf16.mxu1 %v3665_v5 }
 0x397   :  { %1332 = vmatpush1.bf16.msra.mxu0 %v2919_v54  ;;  %2234 = vmatpush3.bf16.msra.mxu1 %v2979_v4 }
 0x398   :  { %1468 = vmatprep.subr.bf16.mxu0 %v3336_v33  ;;  %2239 = vmatprep.subr.bf16.mxu1 %v3665_v5 }
 0x44d   :  { %v1200_v35 = vpop.f32.mrb[12].mxu0  ;;  %v1243_v39 = vpop.f32.mrb[28].mxu1 }
 0x44e   :  { %v2324_v40 = vadd.f32 %v3112_v2, %v1200_v35  ;;  %v1202_v44 = vpop.f32.mrb[13].mxu0  ;;  %v2217_v45 = vpop.f32.mrb[29].mxu1  ;;  %v1244_v23 = vadd.f32 %v1243_v39, %v3122_v11 }
 0x44f   :  { %v1204_v50 = vpop.f32.mrb[14].mxu0  ;;  %v1246_v51 = vpop.f32.mrb[30].mxu1  ;;  %v2326_v62 = vadd.f32 %v3114_v9, %v1202_v44 }
 0x450   :  { %v1989_v52 = vmul.f32 -1.442695, %v2324_v40  ;;  %v2328_v54 = vadd.f32 %v3112_v2, %v1204_v50  ;;  %v1206_v56 = vpop.f32.mrb[15].mxu0  ;;  %v2218_v58 = vpop.f32.mrb[31].mxu1  ;;  %v1247_v31 = vadd.f32 %v1246_v51, %v3122_v11  ;;  %v3391_v51 = vld [vmem:[%s3652_s5 + $0x38] ss:$12 sps:$4 sm:$0xff]  }
 0x451   :  { %v2330_v4 = vadd.f32 %v3114_v9, %v1206_v56  ;;  %v1991_v21 = vmul.f32 -1.442695, %v2326_v62  ;;  %v1301_v40 = vpop.permute.xlu1 %1300  ;;  %v3411_v56 = vld [vmem:[%s3652_s5 + $0x64] ss:$12 sps:$4 sm:$0xff]   ;;  %v3418_v58 = vld [vmem:[%s3652_s5 + $0x60] ss:$12 sps:$4 sm:$0xff]  }
 0x452   :  { %2532 = vpow2.f32 %v1989_v52  ;;  %v1990_v0 = vmul.f32 -1.442695, %v2328_v54  ;;  %vm1303_vm9 = vcmp.eq.s32.totalorder %v1301_v40, 1  ;;  %v3399_v52 = vld [vmem:[%s3652_s5 + $0x48] ss:$12 sps:$4 sm:$0xff]  }
 0x453   :  { %v1992_v43 = vmul.f32 -1.442695, %v2330_v4  ;;  %v3405_v54 = vld [vmem:[%s3652_s5 + $0x50] ss:$12 sps:$4 sm:$0xff]   ;;  %v3424_v62 = vld [vmem:[%s3652_s5 + $0x68] ss:$12 sps:$4 sm:$0xff]  }
 0x454   :  { %2534 = vpow2.f32 %v1990_v0  ;;  %v3430_v0 = vld [vmem:[%s3652_s5 + $0x7c] ss:$12 sps:$4 sm:$0xff]   ;;  %v3437_v4 = vld [vmem:[%s3652_s5 + $0x78] ss:$12 sps:$4 sm:$0xff]  }
 0x455   :  { %2536 = vpow2.f32 %v1991_v21  ;;  %v3443_v21 = vld [vmem:[%s3652_s5 + $0x80] ss:$12 sps:$4 sm:$0xff]  }
 0x456   :  { %2538 = vpow2.f32 %v1992_v43  ;;  %v3449_v43 = vld [vmem:[%s3652_s5 + $0x94] ss:$12 sps:$4 sm:$0xff]  }
 0x45c   :  { %v2533_v36 = vpop.eup %2532 }
 0x45d   :  { %v1258_v59 = vadd.f32 1.0, %v2533_v36  ;;  %v3456_v36 = vld [vmem:[%s3652_s5 + $0x90] ss:$12 sps:$4 sm:$0xff]  }
 0x45e   :  { %v2535_v55 = vpop.eup %2534 }
 0x45f   :  { %2540 = vrcp.f32 %v1258_v59  ;;  %v1259_v25 = vadd.f32 1.0, %v2535_v55  ;;  %v2537_v32 = vpop.eup %2536  ;;  %v3462_v59 = vld [vmem:[%s3652_s5 + $0x98] ss:$12 sps:$4 sm:$0xff]  }
 0x460   :  { %v2539_v17 = vpop.eup %2538  ;;  %v1272_v38 = vadd.f32 1.0, %v2537_v32  ;;  %v3468_v55 = vld [vmem:[%s3652_s5 + $0xac] ss:$12 sps:$4 sm:$0xff]   ;;  %v3481_v32 = vld [vmem:[%s3652_s5 + $0xb0] ss:$12 sps:$4 sm:$0xff]  }
 0x461   :  { %2542 = vrcp.f32 %v1259_v25  ;;  %v1273_v26 = vadd.f32 1.0, %v2539_v17  ;;  %v3475_v25 = vld [vmem:[%s3652_s5 + $0xa8] ss:$12 sps:$4 sm:$0xff]  }
 0x462   :  { %2544 = vrcp.f32 %v1272_v38 }
 0x463   :  { %2546 = vrcp.f32 %v1273_v26 }
 0x469   :  { %v2541_v28 = vpop.eup %2540 }
 0x46a   :  { %v1278_v30 = vmul.f32 %v2541_v28, %v1244_v23 }
 0x46b   :  { %v2543_v7 = vpop.eup %2542 }
 0x46c   :  { %v1280_v13 = vadd.f32 %v1278_v30, %v3072_v37  ;;  %v1279_v24 = vmul.f32 %v2543_v7, %v1247_v31  ;;  %v2545_v1 = vpop.eup %2544 }
 0x46d   :  { %v2547_v46 = vpop.eup %2546  ;;  %v1284_v29 = vsub.f32 1.0, %v2545_v1  ;;  %v1288_v41 = vmul.f32 %v2545_v1, %v3255_v53 }
 0x46e   :  { %2548 = vtanh.f32 %v1280_v13  ;;  %v1281_v27 = vadd.f32 %v1279_v24, %v3078_v47  ;;  %v1285_v16 = vsub.f32 1.0, %v2547_v46  ;;  %v1289_v39 = vmul.f32 %v2547_v46, %v3262_v19 }
 0x470   :  { %2550 = vtanh.f32 %v1281_v27 }
 0x478   :  { %v2549_v18 = vpop.eup %2548 }
 0x479   :  { %v1286_v22 = vmul.f32 %v2549_v18, %v1284_v29 }
 0x47a   :  { %v2551_v20 = vpop.eup %2550 }
 0x47b   :  { %v1287_v35 = vmul.f32 %v2551_v20, %v1285_v16  ;;  %v1290_v37 = vadd.f32 %v1288_v41, %v1286_v22 }
 0x47d   :  { %v1291_v44 = vadd.f32 %v1289_v39, %v1287_v35  ;;  %v3351_v47 = vsel %vm1302_vm7, %v1290_v37, %v3255_v53  ;;  %v3370_v53 = vld [vmem:[%s3652_s5 + $0x8] ss:$12 sps:$4 sm:$0xff]  }
 0x47e   :  { %1993 = vst [vmem:[%s3657_s7 + $0x30] sm:$0xff] %v3351_v47 }
 0x47f   :  { %v3358_v45 = vsel %vm1303_vm9, %v1291_v44, %v3262_v19  ;;  %v3382_v19 = vld [vmem:[%s3652_s5 + $0x20] ss:$12 sps:$4 sm:$0xff]  }
 0x480   :  { %1994 = vst [vmem:[%s3657_s7 + $0x38] sm:$0xff] %v3358_v45  ;;  %v1316_v50 = vpack.c.bf16 %v3358_v45, %v3351_v47 }
 0x482   :  { %1350 = vmatmul.mubr.bf16.vlgmr.msra.gmra.mrb[16].mxu0 %v1316_v50  ;;  %2236 = vmatmul.mubr.bf16.vlgmr.msra.gmra.mrb[32].mxu1 %v1316_v50 }
 0x483   :  { %1469 = vmatpush1.bf16.msra.mxu0 %v3273_v49  ;;  %2240 = vmatpush3.bf16.msra.mxu1 %v3370_v53 }
 0x484   :  { %1470 = vmatprep.subr.bf16.mxu0 %v3280_v61  ;;  %2241 = vmatprep.subr.bf16.mxu1 %v3665_v5 }
 0x485   :  { %1500 = vmatprep.mubr.bf16.mxu0 %v3666_v6  ;;  %2255 = vmatprep.mubr.msk.bf16.mxu1 %vm2658_vm8, %v3665_v5 }
 0x487   :  { %1471 = vmatpush1.bf16.msra.mxu0 %v3290_v14  ;;  %2242 = vmatpush3.bf16.msra.mxu1 %v3382_v19 }
 0x488   :  { %1472 = vmatprep.subr.bf16.mxu0 %v3297_v42  ;;  %2243 = vmatprep.subr.bf16.mxu1 %v3665_v5 }
 0x48b   :  { %1473 = vmatpush1.bf16.msra.mxu0 %v3304_v12  ;;  %2244 = vmatpush3.bf16.msra.mxu1 %v3391_v51 }
 0x48c   :  { %1474 = vmatprep.subr.bf16.mxu0 %v3311_v48  ;;  %2245 = vmatprep.subr.bf16.mxu1 %v3665_v5 }
 0x48f   :  { %1475 = vmatpush1.bf16.msra.mxu0 %v3399_v52  ;;  %2246 = vmatpush3.bf16.msra.mxu1 %v3405_v54 }
 0x490   :  { %1476 = vmatprep.subr.bf16.mxu0 %v3411_v56  ;;  %2247 = vmatprep.subr.bf16.mxu1 %v3665_v5 }
 0x493   :  { %1477 = vmatpush1.bf16.msra.mxu0 %v3418_v58  ;;  %2248 = vmatpush3.bf16.msra.mxu1 %v3424_v62 }
 0x494   :  { %1478 = vmatprep.subr.bf16.mxu0 %v3430_v0  ;;  %2249 = vmatprep.subr.bf16.mxu1 %v3665_v5 }
 0x497   :  { %1479 = vmatpush1.bf16.msra.mxu0 %v3437_v4  ;;  %2250 = vmatpush3.bf16.msra.mxu1 %v3443_v21 }
 0x498   :  { %1480 = vmatprep.subr.bf16.mxu0 %v3449_v43  ;;  %2251 = vmatprep.subr.bf16.mxu1 %v3665_v5 }
 0x49b   :  { %1481 = vmatpush1.bf16.msra.mxu0 %v3456_v36  ;;  %2252 = vmatpush3.bf16.msra.mxu1 %v3462_v59 }
 0x49c   :  { %1482 = vmatprep.subr.bf16.mxu0 %v3468_v55  ;;  %2253 = vmatprep.subr.bf16.mxu1 %v3665_v5 }
 0x49f   :  { %1483 = vmatpush1.bf16.msra.mxu0 %v3475_v25  ;;  %2254 = vmatpush3.bf16.msra.mxu1 %v3481_v32 }
 0x4a0   :  { %1619 = vmatprep.subr.bf16.mxu0 %v3336_v33  ;;  %2259 = vmatprep.subr.bf16.mxu1 %v3665_v5 }
 0x555   :  { %v1351_v17 = vpop.f32.mrb[16].mxu0  ;;  %v1394_v38 = vpop.f32.mrb[32].mxu1 }
 0x556   :  { %v2332_v23 = vadd.f32 %v3112_v2, %v1351_v17  ;;  %v1353_v26 = vpop.f32.mrb[17].mxu0  ;;  %v2237_v28 = vpop.f32.mrb[33].mxu1  ;;  %v1395_v40 = vadd.f32 %v1394_v38, %v3122_v11 }
 0x557   :  { %v1355_v30 = vpop.f32.mrb[18].mxu0  ;;  %v1397_v31 = vpop.f32.mrb[34].mxu1  ;;  %v2334_v1 = vadd.f32 %v3114_v9, %v1353_v26 }
 0x558   :  { %v1995_v7 = vmul.f32 -1.442695, %v2332_v23  ;;  %v2336_v13 = vadd.f32 %v3112_v2, %v1355_v30  ;;  %v1357_v24 = vpop.f32.mrb[19].mxu0  ;;  %v2238_v27 = vpop.f32.mrb[35].mxu1  ;;  %v1398_v23 = vadd.f32 %v1397_v31, %v3122_v11 }
 0x559   :  { %v2338_v29 = vadd.f32 %v3114_v9, %v1357_v24  ;;  %v1997_v18 = vmul.f32 -1.442695, %v2334_v1 }
 0x55a   :  { %2552 = vpow2.f32 %v1995_v7  ;;  %v1996_v46 = vmul.f32 -1.442695, %v2336_v13 }
 0x55b   :  { %v1998_v22 = vmul.f32 -1.442695, %v2338_v29 }
 0x55c   :  { %2554 = vpow2.f32 %v1996_v46 }
 0x55d   :  { %2556 = vpow2.f32 %v1997_v18 }
 0x55e   :  { %2558 = vpow2.f32 %v1998_v22  ;;  %v1449_v22 = vpop.permute.xlu0 %1448 }
 0x55f   :  { %vm1453_vm10 = vcmp.eq.s32.totalorder %v1449_v22, 1 }
 0x564   :  { %v2553_v41 = vpop.eup %2552 }
 0x565   :  { %v1409_v16 = vadd.f32 1.0, %v2553_v41 }
 0x566   :  { %v2555_v20 = vpop.eup %2554 }
 0x567   :  { %2560 = vrcp.f32 %v1409_v16  ;;  %v1410_v34 = vadd.f32 1.0, %v2555_v20  ;;  %v2557_v35 = vpop.eup %2556  ;;  %v1452_v16 = vpop.permute.xlu1 %1451 }
 0x568   :  { %v2559_v39 = vpop.eup %2558  ;;  %v1423_v37 = vadd.f32 1.0, %v2557_v35  ;;  %vm1454_vm11 = vcmp.eq.s32.totalorder %v1452_v16, 1 }
 0x569   :  { %2562 = vrcp.f32 %v1410_v34  ;;  %v1424_v44 = vadd.f32 1.0, %v2559_v39 }
 0x56a   :  { %2564 = vrcp.f32 %v1423_v37 }
 0x56b   :  { %2566 = vrcp.f32 %v1424_v44 }
 0x571   :  { %v2561_v50 = vpop.eup %2560 }
 0x572   :  { %v1429_v17 = vmul.f32 %v2561_v50, %v1395_v40 }
 0x573   :  { %v2563_v26 = vpop.eup %2562 }
 0x574   :  { %v1431_v28 = vadd.f32 %v1429_v17, %v3087_v60  ;;  %v1430_v30 = vmul.f32 %v2563_v26, %v1398_v23  ;;  %v2565_v13 = vpop.eup %2564 }
 0x575   :  { %v2567_v24 = vpop.eup %2566  ;;  %v1435_v27 = vsub.f32 1.0, %v2565_v13  ;;  %v1439_v46 = vmul.f32 %v2565_v13, %v3351_v47 }
 0x576   :  { %2568 = vtanh.f32 %v1431_v28  ;;  %v1432_v7 = vadd.f32 %v1430_v30, %v3093_v3  ;;  %v1436_v29 = vsub.f32 1.0, %v2567_v24  ;;  %v1440_v41 = vmul.f32 %v2567_v24, %v3358_v45 }
 0x578   :  { %2570 = vtanh.f32 %v1432_v7 }
 0x580   :  { %v2569_v1 = vpop.eup %2568 }
 0x581   :  { %v1437_v38 = vmul.f32 %v2569_v1, %v1435_v27 }
 0x582   :  { %v2571_v18 = vpop.eup %2570 }
 0x583   :  { %v1438_v31 = vmul.f32 %v2571_v18, %v1436_v29  ;;  %v1441_v60 = vadd.f32 %v1439_v46, %v1437_v38 }
 0x585   :  { %v1442_v20 = vadd.f32 %v1440_v41, %v1438_v31  ;;  %v3497_v3 = vsel %vm1453_vm10, %v1441_v60, %v3351_v47 }
 0x586   :  { %1999 = vst [vmem:[%s3657_s7 + $0x40] sm:$0xff] %v3497_v3 }
 0x587   :  { %v3504_v34 = vsel %vm1454_vm11, %v1442_v20, %v3358_v45 }
 0x588   :  { %2000 = vst [vmem:[%s3657_s7 + $0x48] sm:$0xff] %v3504_v34  ;;  %v1467_v35 = vpack.c.bf16 %v3504_v34, %v3497_v3 }
 0x58a   :  { %1501 = vmatmul.mubr.bf16.vlgmr.msra.gmra.mrb[20].mxu0 %v1467_v35  ;;  %2256 = vmatmul.mubr.bf16.vlgmr.msra.gmra.mrb[36].mxu1 %v1467_v35 }
 0x58b   :  { %1620 = vmatpush1.bf16.msra.mxu0 %v3273_v49  ;;  %2260 = vmatpush3.bf16.msra.mxu1 %v3370_v53 }
 0x58c   :  { %1621 = vmatprep.subr.bf16.mxu0 %v3280_v61  ;;  %2261 = vmatprep.subr.bf16.mxu1 %v3665_v5 }
 0x58d   :  { %1651 = vmatprep.mubr.bf16.mxu0 %v3666_v6  ;;  %2275 = vmatprep.mubr.msk.bf16.mxu1 %vm2658_vm8, %v3665_v5 }
 0x58f   :  { %1622 = vmatpush1.bf16.msra.mxu0 %v3290_v14  ;;  %2262 = vmatpush3.bf16.msra.mxu1 %v3382_v19 }
 0x590   :  { %1623 = vmatprep.subr.bf16.mxu0 %v3297_v42  ;;  %2263 = vmatprep.subr.bf16.mxu1 %v3665_v5 }
 0x593   :  { %1624 = vmatpush1.bf16.msra.mxu0 %v3304_v12  ;;  %2264 = vmatpush3.bf16.msra.mxu1 %v3391_v51 }
 0x594   :  { %1625 = vmatprep.subr.bf16.mxu0 %v3311_v48  ;;  %2265 = vmatprep.subr.bf16.mxu1 %v3665_v5 }
 0x597   :  { %1626 = vmatpush1.bf16.msra.mxu0 %v3399_v52  ;;  %2266 = vmatpush3.bf16.msra.mxu1 %v3405_v54 }
 0x598   :  { %1627 = vmatprep.subr.bf16.mxu0 %v3411_v56  ;;  %2267 = vmatprep.subr.bf16.mxu1 %v3665_v5 }
 0x59b   :  { %1628 = vmatpush1.bf16.msra.mxu0 %v3418_v58  ;;  %2268 = vmatpush3.bf16.msra.mxu1 %v3424_v62 }
 0x59c   :  { %1629 = vmatprep.subr.bf16.mxu0 %v3430_v0  ;;  %2269 = vmatprep.subr.bf16.mxu1 %v3665_v5 }
 0x59f   :  { %1630 = vmatpush1.bf16.msra.mxu0 %v3437_v4  ;;  %2270 = vmatpush3.bf16.msra.mxu1 %v3443_v21 }
 0x5a0   :  { %1631 = vmatprep.subr.bf16.mxu0 %v3449_v43  ;;  %2271 = vmatprep.subr.bf16.mxu1 %v3665_v5 }
 0x5a3   :  { %1632 = vmatpush1.bf16.msra.mxu0 %v3456_v36  ;;  %2272 = vmatpush3.bf16.msra.mxu1 %v3462_v59 }
 0x5a4   :  { %1633 = vmatprep.subr.bf16.mxu0 %v3468_v55  ;;  %2273 = vmatprep.subr.bf16.mxu1 %v3665_v5 }
 0x5a7   :  { %1634 = vmatpush1.bf16.msra.mxu0 %v3475_v25  ;;  %2274 = vmatpush3.bf16.msra.mxu1 %v3481_v32 }
 0x5a8   :  { %1770 = vmatprep.subr.bf16.mxu0 %v3336_v33  ;;  %2279 = vmatprep.subr.bf16.mxu1 %v3665_v5 }
 0x65d   :  { %v1502_v47 = vpop.f32.mrb[20].mxu0  ;;  %v1545_v45 = vpop.f32.mrb[36].mxu1 }
 0x65e   :  { %v2340_v39 = vadd.f32 %v3112_v2, %v1502_v47  ;;  %v1504_v37 = vpop.f32.mrb[21].mxu0  ;;  %v2257_v40 = vpop.f32.mrb[37].mxu1  ;;  %v1546_v31 = vadd.f32 %v1545_v45, %v3122_v11 }
 0x65f   :  { %v1506_v44 = vpop.f32.mrb[22].mxu0  ;;  %v1548_v50 = vpop.f32.mrb[38].mxu1  ;;  %v2342_v30 = vadd.f32 %v3114_v9, %v1504_v37 }
 0x660   :  { %v2001_v17 = vmul.f32 -1.442695, %v2340_v39  ;;  %v2344_v23 = vadd.f32 %v3112_v2, %v1506_v44  ;;  %v1508_v26 = vpop.f32.mrb[23].mxu0  ;;  %v2258_v28 = vpop.f32.mrb[39].mxu1  ;;  %v1549_v20 = vadd.f32 %v1548_v50, %v3122_v11 }
 0x661   :  { %v2346_v33 = vadd.f32 %v3114_v9, %v1508_v26  ;;  %v2003_v13 = vmul.f32 -1.442695, %v2342_v30 }
 0x662   :  { %2572 = vpow2.f32 %v2001_v17  ;;  %v2002_v7 = vmul.f32 -1.442695, %v2344_v23 }
 0x663   :  { %v2004_v24 = vmul.f32 -1.442695, %v2346_v33 }
 0x664   :  { %2574 = vpow2.f32 %v2002_v7  ;;  %v1600_v7 = vpop.permute.xlu0 %1599 }
 0x665   :  { %2576 = vpow2.f32 %v2003_v13  ;;  %vm1604_vm12 = vcmp.eq.s32.totalorder %v1600_v7, 1  ;;  %v1603_v13 = vpop.permute.xlu1 %1602 }
 0x666   :  { %2578 = vpow2.f32 %v2004_v24  ;;  %vm1605_vm13 = vcmp.eq.s32.totalorder %v1603_v13, 1 }
 0x66c   :  { %v2573_v27 = vpop.eup %2572 }
 0x66d   :  { %v1560_v1 = vadd.f32 1.0, %v2573_v27 }
 0x66e   :  { %v2575_v38 = vpop.eup %2574 }
 0x66f   :  { %2580 = vrcp.f32 %v1560_v1  ;;  %v1561_v46 = vadd.f32 1.0, %v2575_v38  ;;  %v2577_v29 = vpop.eup %2576 }
 0x670   :  { %v2579_v18 = vpop.eup %2578  ;;  %v1574_v22 = vadd.f32 1.0, %v2577_v29 }
 0x671   :  { %2582 = vrcp.f32 %v1561_v46  ;;  %v1575_v41 = vadd.f32 1.0, %v2579_v18 }
 0x672   :  { %2584 = vrcp.f32 %v1574_v22 }
 0x673   :  { %2586 = vrcp.f32 %v1575_v41 }
 0x679   :  { %v2581_v60 = vpop.eup %2580 }
 0x67a   :  { %v1580_v16 = vmul.f32 %v2581_v60, %v1546_v31 }
 0x67b   :  { %v2583_v35 = vpop.eup %2582 }
 0x67c   :  { %v1582_v47 = vadd.f32 %v1580_v16, %v3084_v57  ;;  %v1581_v39 = vmul.f32 %v2583_v35, %v1549_v20  ;;  %v2585_v40 = vpop.eup %2584 }
 0x67d   :  { %v2587_v44 = vpop.eup %2586  ;;  %v1586_v17 = vsub.f32 1.0, %v2585_v40  ;;  %v1590_v26 = vmul.f32 %v2585_v40, %v3497_v3 }
 0x67e   :  { %2588 = vtanh.f32 %v1582_v47  ;;  %v1583_v37 = vadd.f32 %v1581_v39, %v3090_v63  ;;  %v1587_v28 = vsub.f32 1.0, %v2587_v44  ;;  %v1591_v33 = vmul.f32 %v2587_v44, %v3504_v34 }
 0x680   :  { %2590 = vtanh.f32 %v1583_v37  ;;  %v1751_v37 = vpop.permute.xlu0 %1750 }
 0x688   :  { %v2589_v23 = vpop.eup %2588 }
 0x689   :  { %v1588_v45 = vmul.f32 %v2589_v23, %v1586_v17  ;;  %v1754_v17 = vpop.permute.xlu1 %1753 }
 0x68a   :  { %v2591_v30 = vpop.eup %2590  ;;  %vm1756_vm14 = vcmp.eq.s32.totalorder %v1754_v17, 1 }
 0x68b   :  { %v1589_v50 = vmul.f32 %v2591_v30, %v1587_v28  ;;  %v1592_v57 = vadd.f32 %v1590_v26, %v1588_v45 }
 0x68d   :  { %v1593_v24 = vadd.f32 %v1591_v33, %v1589_v50  ;;  %v3558_v63 = vsel %vm1604_vm12, %v1592_v57, %v3497_v3 }
 0x68e   :  { %2005 = vst [vmem:[%s3657_s7 + $0x50] sm:$0xff] %v3558_v63 }
 0x68f   :  { %v3565_v27 = vsel %vm1605_vm13, %v1593_v24, %v3504_v34 }
 0x690   :  { %2006 = vst [vmem:[%s3657_s7 + $0x58] sm:$0xff] %v3565_v27  ;;  %v1618_v1 = vpack.c.bf16 %v3565_v27, %v3558_v63 }
 0x692   :  { %1652 = vmatmul.mubr.bf16.vlgmr.msra.gmra.mrb[24].mxu0 %v1618_v1  ;;  %2276 = vmatmul.mubr.bf16.vlgmr.msra.gmra.mrb[40].mxu1 %v1618_v1 }
 0x693   :  { %1771 = vmatpush1.bf16.msra.mxu0 %v3273_v49  ;;  %2280 = vmatpush3.bf16.msra.mxu1 %v3370_v53 }
 0x694   :  { %1772 = vmatprep.subr.bf16.mxu0 %v3280_v61  ;;  %2281 = vmatprep.subr.bf16.mxu1 %v3665_v5 }
 0x695   :  { %1802 = vmatprep.mubr.bf16.mxu0 %v3666_v6  ;;  %2295 = vmatprep.mubr.msk.bf16.mxu1 %vm2658_vm8, %v3665_v5  ;;  %vm1755_vm8 = vcmp.eq.s32.totalorder %v1751_v37, 1 }
 0x697   :  { %1773 = vmatpush1.bf16.msra.mxu0 %v3290_v14  ;;  %2282 = vmatpush3.bf16.msra.mxu1 %v3382_v19 }
 0x698   :  { %1774 = vmatprep.subr.bf16.mxu0 %v3297_v42  ;;  %2283 = vmatprep.subr.bf16.mxu1 %v3665_v5 }
 0x69b   :  { %1775 = vmatpush1.bf16.msra.mxu0 %v3304_v12  ;;  %2284 = vmatpush3.bf16.msra.mxu1 %v3391_v51 }
 0x69c   :  { %1776 = vmatprep.subr.bf16.mxu0 %v3311_v48  ;;  %2285 = vmatprep.subr.bf16.mxu1 %v3665_v5 }
 0x69f   :  { %1777 = vmatpush1.bf16.msra.mxu0 %v3399_v52  ;;  %2286 = vmatpush3.bf16.msra.mxu1 %v3405_v54 }
 0x6a0   :  { %1778 = vmatprep.subr.bf16.mxu0 %v3411_v56  ;;  %2287 = vmatprep.subr.bf16.mxu1 %v3665_v5 }
 0x6a3   :  { %1779 = vmatpush1.bf16.msra.mxu0 %v3418_v58  ;;  %2288 = vmatpush3.bf16.msra.mxu1 %v3424_v62 }
 0x6a4   :  { %1780 = vmatprep.subr.bf16.mxu0 %v3430_v0  ;;  %2289 = vmatprep.subr.bf16.mxu1 %v3665_v5 }
 0x6a7   :  { %1781 = vmatpush1.bf16.msra.mxu0 %v3437_v4  ;;  %2290 = vmatpush3.bf16.msra.mxu1 %v3443_v21 }
 0x6a8   :  { %1782 = vmatprep.subr.bf16.mxu0 %v3449_v43  ;;  %2291 = vmatprep.subr.bf16.mxu1 %v3665_v5 }
 0x6ab   :  { %1783 = vmatpush1.bf16.msra.mxu0 %v3456_v36  ;;  %2292 = vmatpush3.bf16.msra.mxu1 %v3462_v59 }
 0x6ac   :  { %1784 = vmatprep.subr.bf16.mxu0 %v3468_v55  ;;  %2293 = vmatprep.subr.bf16.mxu1 %v3665_v5 }
 0x6af   :  { %1785 = vmatpush1.bf16.msra.mxu0 %v3475_v25  ;;  %2294 = vmatpush3.bf16.msra.mxu1 %v3481_v32 }
 0x765   :  { %v1653_v6 = vpop.f32.mrb[24].mxu0  ;;  %v1696_v49 = vpop.f32.mrb[40].mxu1 }
 0x766   :  { %v2348_v61 = vadd.f32 %v3112_v2, %v1653_v6  ;;  %v1655_v14 = vpop.f32.mrb[25].mxu0  ;;  %v2277_v42 = vpop.f32.mrb[41].mxu1  ;;  %v1697_v25 = vadd.f32 %v1696_v49, %v3122_v11 }
 0x767   :  { %v1657_v12 = vpop.f32.mrb[26].mxu0  ;;  %v1699_v48 = vpop.f32.mrb[42].mxu1  ;;  %v2350_v54 = vadd.f32 %v3114_v9, %v1655_v14 }
 0x768   :  { %v2007_v53 = vmul.f32 -1.442695, %v2348_v61  ;;  %v2352_v19 = vadd.f32 %v3112_v2, %v1657_v12  ;;  %v1659_v51 = vpop.f32.mrb[27].mxu0  ;;  %v2278_v52 = vpop.f32.mrb[43].mxu1  ;;  %v1700_v38 = vadd.f32 %v1699_v48, %v3122_v11 }
 0x769   :  { %v2354_v56 = vadd.f32 %v3114_v9, %v1659_v51  ;;  %v2009_v58 = vmul.f32 -1.442695, %v2350_v54 }
 0x76a   :  { %2592 = vpow2.f32 %v2007_v53  ;;  %v2008_v5 = vmul.f32 -1.442695, %v2352_v19 }
 0x76b   :  { %v2010_v62 = vmul.f32 -1.442695, %v2354_v56 }
 0x76c   :  { %2594 = vpow2.f32 %v2008_v5 }
 0x76d   :  { %2596 = vpow2.f32 %v2009_v58 }
 0x76e   :  { %2598 = vpow2.f32 %v2010_v62 }
 0x774   :  { %v2593_v0 = vpop.eup %2592 }
 0x775   :  { %v1711_v4 = vadd.f32 1.0, %v2593_v0 }
 0x776   :  { %v2595_v21 = vpop.eup %2594 }
 0x777   :  { %2600 = vrcp.f32 %v1711_v4  ;;  %v1712_v43 = vadd.f32 1.0, %v2595_v21  ;;  %v2597_v36 = vpop.eup %2596  ;;  %v3667_v21 = vld [vmem:[#allocation3_spill] sm:$0xff] }
 0x778   :  { %v2599_v59 = vpop.eup %2598  ;;  %v1725_v55 = vadd.f32 1.0, %v2597_v36 }
 0x779   :  { %2602 = vrcp.f32 %v1712_v43  ;;  %v1726_v32 = vadd.f32 1.0, %v2599_v59 }
 0x77a   :  { %2604 = vrcp.f32 %v1725_v55 }
 0x77b   :  { %2606 = vrcp.f32 %v1726_v32  ;;  %v1902_v32 = vpop.permute.xlu0 %1901 }
 0x77c   :  { %vm1906_vm15 = vcmp.eq.s32.totalorder %v1902_v32, 1 }
 0x781   :  { %v2601_v3 = vpop.eup %2600 }
 0x782   :  { %v1731_v34 = vmul.f32 %v2601_v3, %v1697_v25 }
 0x783   :  { %v2603_v46 = vpop.eup %2602 }
 0x784   :  { %v1733_v29 = vadd.f32 %v1731_v34, %v3099_v10  ;;  %v1732_v18 = vmul.f32 %v2603_v46, %v1700_v38  ;;  %v2605_v31 = vpop.eup %2604 }
 0x785   :  { %v2607_v41 = vpop.eup %2606  ;;  %v1737_v60 = vsub.f32 1.0, %v2605_v31  ;;  %v1741_v35 = vmul.f32 %v2605_v31, %v3558_v63 }
 0x786   :  { %2608 = vtanh.f32 %v1733_v29  ;;  %v1734_v22 = vadd.f32 %v1732_v18, %v3105_v15  ;;  %v1738_v47 = vsub.f32 1.0, %v2607_v41  ;;  %v1742_v44 = vmul.f32 %v2607_v41, %v3565_v27 }
 0x788   :  { %2610 = vtanh.f32 %v1734_v22 }
 0x790   :  { %v2609_v16 = vpop.eup %2608 }
 0x791   :  { %v1739_v20 = vmul.f32 %v2609_v16, %v1737_v60 }
 0x792   :  { %v2611_v39 = vpop.eup %2610 }
 0x793   :  { %v1740_v40 = vmul.f32 %v2611_v39, %v1738_v47  ;;  %v1743_v10 = vadd.f32 %v1741_v35, %v1739_v20 }
 0x795   :  { %v1744_v23 = vadd.f32 %v1742_v44, %v1740_v40  ;;  %v3617_v15 = vsel %vm1755_vm8, %v1743_v10, %v3558_v63 }
 0x796   :  { %2011 = vst [vmem:[%s3657_s7 + $0x60] sm:$0xff] %v3617_v15 }
 0x797   :  { %v3624_v45 = vsel %vm1756_vm14, %v1744_v23, %v3565_v27 }
 0x798   :  { %2012 = vst [vmem:[%s3657_s7 + $0x68] sm:$0xff] %v3624_v45  ;;  %v1769_v26 = vpack.c.bf16 %v3624_v45, %v3617_v15 }
 0x79a   :  { %1803 = vmatmul.mubr.bf16.vlgmr.msra.gmra.mrb[28].mxu0 %v1769_v26  ;;  %2296 = vmatmul.mubr.bf16.vlgmr.msra.gmra.mrb[44].mxu1 %v1769_v26 }
 0x86d   :  { %v1804_v28 = vpop.f32.mrb[28].mxu0  ;;  %v1847_v30 = vpop.f32.mrb[44].mxu1 }
 0x86e   :  { %v2356_v7 = vadd.f32 %v3112_v2, %v1804_v28  ;;  %v1806_v50 = vpop.f32.mrb[29].mxu0  ;;  %v2297_v33 = vpop.f32.mrb[45].mxu1  ;;  %v1848_v54 = vadd.f32 %v1847_v30, %v3122_v11 }
 0x86f   :  { %v1808_v57 = vpop.f32.mrb[30].mxu0  ;;  %v1850_v13 = vpop.f32.mrb[46].mxu1  ;;  %v2358_v6 = vadd.f32 %v3114_v9, %v1806_v50 }
 0x870   :  { %v2013_v24 = vmul.f32 -1.442695, %v2356_v7  ;;  %v2360_v63 = vadd.f32 %v3112_v2, %v1808_v57  ;;  %v1810_v27 = vpop.f32.mrb[31].mxu0  ;;  %v2298_v1 = vpop.f32.mrb[47].mxu1 }
 0x871   :  { %v2362_v61 = vadd.f32 %v3114_v9, %v1810_v27  ;;  %v2015_v14 = vmul.f32 -1.442695, %v2358_v6  ;;  %v1851_v9 = vadd.f32 %v1850_v13, %v3122_v11  ;;  %v1905_v11 = vpop.permute.xlu1 %1904 }
 0x872   :  { %2612 = vpow2.f32 %v2013_v24  ;;  %v2014_v49 = vmul.f32 -1.442695, %v2360_v63  ;;  %vm1907_vm0 = vcmp.eq.s32.totalorder %v1905_v11, 1 }
 0x873   :  { %v2016_v42 = vmul.f32 -1.442695, %v2362_v61 }
 0x874   :  { %2614 = vpow2.f32 %v2014_v49 }
 0x875   :  { %2616 = vpow2.f32 %v2015_v14 }
 0x876   :  { %2618 = vpow2.f32 %v2016_v42 }
 0x87c   :  { %v2613_v12 = vpop.eup %2612 }
 0x87d   :  { %v1862_v48 = vadd.f32 1.0, %v2613_v12 }
 0x87e   :  { %v2615_v53 = vpop.eup %2614 }
 0x87f   :  { %2620 = vrcp.f32 %v1862_v48  ;;  %v1863_v19 = vadd.f32 1.0, %v2615_v53  ;;  %v2617_v2 = vpop.eup %2616 }
 0x880   :  { %v2619_v51 = vpop.eup %2618  ;;  %v1876_v52 = vadd.f32 1.0, %v2617_v2 }
 0x881   :  { %2622 = vrcp.f32 %v1863_v19  ;;  %v1877_v5 = vadd.f32 1.0, %v2619_v51 }
 0x882   :  { %2624 = vrcp.f32 %v1876_v52 }
 0x883   :  { %2626 = vrcp.f32 %v1877_v5 }
 0x889   :  { %v2621_v56 = vpop.eup %2620 }
 0x88a   :  { %v1882_v58 = vmul.f32 %v2621_v56, %v1848_v54 }
 0x88b   :  { %v2623_v62 = vpop.eup %2622 }
 0x88c   :  { %v1884_v0 = vadd.f32 %v1882_v58, %v3096_v8  ;;  %v1883_v4 = vmul.f32 %v2623_v62, %v1851_v9  ;;  %v2625_v36 = vpop.eup %2624 }
 0x88d   :  { %v2627_v59 = vpop.eup %2626  ;;  %v1888_v55 = vsub.f32 1.0, %v2625_v36  ;;  %v1892_v34 = vmul.f32 %v2625_v36, %v3617_v15 }
 0x88e   :  { %2628 = vtanh.f32 %v1884_v0  ;;  %v1885_v43 = vadd.f32 %v1883_v4, %v3667_v21  ;;  %v1889_v38 = vsub.f32 1.0, %v2627_v59  ;;  %v1893_v8 = vmul.f32 %v2627_v59, %v3624_v45 }
 0x890   :  { %2630 = vtanh.f32 %v1885_v43 }
 0x898   :  { %v2629_v25 = vpop.eup %2628 }
 0x899   :  { %v1890_v3 = vmul.f32 %v2629_v25, %v1888_v55 }
 0x89a   :  { %v2631_v46 = vpop.eup %2630 }
 0x89b   :  { %v1894_v29 = vadd.f32 %v1892_v34, %v1890_v3  ;;  %v1891_v18 = vmul.f32 %v2631_v46, %v1889_v38 }
 0x89d   :  { %v1908_v22 = vsel %vm1906_vm15, %v1894_v29, %v3617_v15  ;;  %v1895_v31 = vadd.f32 %v1893_v8, %v1891_v18 }
 0x89e   :  { %2017 = vst [vmem:[%s3657_s7 + $0x70] sm:$0xff] %v1908_v22 }
 0x89f   :  { %v1909_v41 = vsel %vm1907_vm0, %v1895_v31, %v3624_v45 }
 0x8a0   :  { %2018 = vst [vmem:[%s3657_s7 + $0x78] sm:$0xff] %v1909_v41 }

// kernel: hred_forward.9
= control target key start
LH: loop header
LB: loop body
LE: loop exit
PB: predicated region body
PF: predicated region fallthrough
CT: control target
= control target key end

     0   :  { %v746_v2 = vmov 0   ;;  %s1032_s0 = inlined_call_operand.vmem [shape: bf16[128,128], index: 0, kind: input, shape index: {}]   ;;  %s1033_s1 = inlined_call_operand.vmem [shape: bf16[128,128], index: 1, kind: input, shape index: {}]   ;;  %s1034_s2 = inlined_call_operand.vmem [shape: f32[1,128], index: 2, kind: input, shape index: {}]   ;;  %s1035_s3 = inlined_call_operand.vmem [shape: f32[128,1], index: 3, kind: input, shape index: {}]   ;;  %s1036_s4 = inlined_call_operand.hbm [shape: f32[128,128], index: 4, kind: output, shape index: {}]  }
   0x1   :  { %v642_v0 = vld [vmem:[%s1033_s1] sm:$0xff]   ;;  %v643_v1 = vld [vmem:[%s1033_s1 + $0x8] sm:$0xff]   ;;  %641 = vset.pattern.permute.xlu1 %v746_v2  ;;  %640 = vset.pattern.permute.xlu0 %v746_v2  ;;  %v644_v3 = vld [vmem:[%s1033_s1 + $0x10] sm:$0xff]  }
   0x2   :  { %588 = vmatprep.subr.bf16.mxu0 %v642_v0  ;;  %620 = vmatprep.subr.bf16.mxu1 %v642_v0  ;;  %v645_v4 = vld [vmem:[%s1033_s1 + $0x18] sm:$0xff]   ;;  %v650_v5 = vld [vmem:[%s1032_s0] sm:$0xff]   ;;  %v647_v8 = vld [vmem:[%s1033_s1 + $0x28] sm:$0xff]  }
   0x3   :  { %589 = vmatpush3.bf16.msra.mxu0 %v642_v0  ;;  %628 = vmatpush3.bf16.msra.mxu1 %v642_v0  ;;  %v651_v6 = vld [vmem:[%s1032_s0 + $0x20] sm:$0xff]   ;;  %v412_v9 = vld [vmem:[%s1035_s3 + $0x8] sm:$0xff]  ;;  %v413_v10 = vld [vmem:[%s1035_s3 + $0x10] sm:$0xff] }
   0x4   :  { %590 = vmatprep.subr.bf16.mxu0 %v643_v1  ;;  %621 = vmatprep.subr.bf16.mxu1 %v643_v1  ;;  %v646_v7 = vld [vmem:[%s1033_s1 + $0x20] sm:$0xff]   ;;  %v648_v12 = vld [vmem:[%s1033_s1 + $0x30] sm:$0xff]  }
   0x5   :  { %604 = vmatprep.mubr.bf16.mxu0 %v650_v5  ;;  %612 = vmatprep.mubr.bf16.mxu1 %v651_v6  ;;  %v411_v11 = vld [vmem:[%s1035_s3] sm:$0xff] }
   0x6   :  { %434 = vperm.xlu1 %641, %v412_v9  }
   0x7   :  { %591 = vmatpush3.bf16.msra.mxu0 %v643_v1  ;;  %629 = vmatpush3.bf16.msra.mxu1 %v643_v1 }
   0x8   :  { %592 = vmatprep.subr.bf16.mxu0 %v644_v3  ;;  %622 = vmatprep.subr.bf16.mxu1 %v644_v3 }
   0xb   :  { %593 = vmatpush3.bf16.msra.mxu0 %v644_v3  ;;  %630 = vmatpush3.bf16.msra.mxu1 %v644_v3 }
   0xc   :  { %594 = vmatprep.subr.bf16.mxu0 %v645_v4  ;;  %623 = vmatprep.subr.bf16.mxu1 %v645_v4 }
   0xf   :  { %595 = vmatpush3.bf16.msra.mxu0 %v645_v4  ;;  %631 = vmatpush3.bf16.msra.mxu1 %v645_v4 }
  0x10   :  { %596 = vmatprep.subr.bf16.mxu0 %v646_v7  ;;  %624 = vmatprep.subr.bf16.mxu1 %v646_v7 }
  0x13   :  { %597 = vmatpush3.bf16.msra.mxu0 %v646_v7  ;;  %632 = vmatpush3.bf16.msra.mxu1 %v646_v7 }
  0x14   :  { %598 = vmatprep.subr.bf16.mxu0 %v647_v8  ;;  %625 = vmatprep.subr.bf16.mxu1 %v647_v8 }
  0x15   :  { %9 = vsyncpa [#allocation3], 0  ;;  %439 = vperm.xlu1 %641, %v413_v10   ;;  %429 = vperm.xlu0 %640, %v411_v11   ;;  %v414_v13 = vld [vmem:[%s1035_s3 + $0x18] sm:$0xff]  ;;  %v420_v14 = vld [vmem:[%s1035_s3 + $0x48] sm:$0xff] }
  0x16   :  { %v649_v15 = vld [vmem:[%s1033_s1 + $0x38] sm:$0xff]   ;;  %v415_v16 = vld [vmem:[%s1035_s3 + $0x20] sm:$0xff]  ;;  %v652_v18 = vld [vmem:[%s1032_s0 + $0x8] sm:$0xff]  }
  0x17   :  { %599 = vmatpush3.bf16.msra.mxu0 %v647_v8  ;;  %633 = vmatpush3.bf16.msra.mxu1 %v647_v8  ;;  %v422_v17 = vld [vmem:[%s1035_s3 + $0x58] sm:$0xff]  ;;  %v653_v19 = vld [vmem:[%s1032_s0 + $0x28] sm:$0xff]   ;;  %v654_v21 = vld [vmem:[%s1032_s0 + $0x10] sm:$0xff]  }
  0x18   :  { %600 = vmatprep.subr.bf16.mxu0 %v648_v12  ;;  %626 = vmatprep.subr.bf16.mxu1 %v648_v12  ;;  %v416_v20 = vld [vmem:[%s1035_s3 + $0x28] sm:$0xff]  ;;  %v656_v22 = vld [vmem:[%s1032_s0 + $0x30] sm:$0xff]   ;;  %v655_v24 = vld [vmem:[%s1032_s0 + $0x18] sm:$0xff]  }
  0x19   :  { %444 = vperm.xlu1 %641, %v414_v13   ;;  %474 = vperm.xlu0 %640, %v420_v14   ;;  %v417_v23 = vld [vmem:[%s1035_s3 + $0x30] sm:$0xff]  ;;  %v657_v25 = vld [vmem:[%s1032_s0 + $0x38] sm:$0xff]   ;;  %v419_v27 = vld [vmem:[%s1035_s3 + $0x40] sm:$0xff] }
  0x1a   :  { %v418_v26 = vld [vmem:[%s1035_s3 + $0x38] sm:$0xff]  ;;  %v421_v28 = vld [vmem:[%s1035_s3 + $0x50] sm:$0xff]  ;;  %v555_v29 = vld [vmem:[%s1034_s2] ss:$0 sm:$0xff] }
  0x1b   :  { %601 = vmatpush3.bf16.msra.mxu0 %v648_v12  ;;  %634 = vmatpush3.bf16.msra.mxu1 %v648_v12  ;;  %v423_v62 = vld [vmem:[%s1035_s3 + $0x60] sm:$0xff]  ;;  %v424_v63 = vld [vmem:[%s1035_s3 + $0x68] sm:$0xff] }
  0x1c   :  { %602 = vmatprep.subr.bf16.mxu0 %v649_v15  ;;  %627 = vmatprep.subr.bf16.mxu1 %v649_v15 }
  0x1d   :  { %449 = vperm.xlu1 %641, %v415_v16   ;;  %484 = vperm.xlu0 %640, %v422_v17  }
  0x1f   :  { %603 = vmatpush3.bf16.msra.mxu0 %v649_v15  ;;  %635 = vmatpush3.bf16.msra.mxu1 %v649_v15 }
  0x21   :  { %454 = vperm.xlu1 %641, %v416_v20  }
  0x22   :  { %605 = vmatmul.mubr.bf16.vlgmr.msra.gmra.mrb[0].mxu0 %v652_v18  ;;  %613 = vmatmul.mubr.bf16.vlgmr.msra.gmra.mrb[0].mxu1 %v653_v19 }
  0x23   :  { %608 = vmatprep.mubr.bf16.mxu0 %v654_v21  ;;  %616 = vmatprep.mubr.bf16.mxu1 %v656_v22 }
  0x25   :  { %459 = vperm.xlu1 %641, %v417_v23  }
  0x29   :  { %464 = vperm.xlu1 %641, %v418_v26  }
  0x2a   :  { %609 = vmatmul.mubr.bf16.gmra.mrb[4].mxu0 %v655_v24  ;;  %617 = vmatmul.mubr.bf16.gmra.mrb[4].mxu1 %v657_v25 }
  0x2d   :  { %469 = vperm.xlu1 %641, %v419_v27  }
  0x31   :  { %479 = vperm.xlu1 %641, %v421_v28  }
  0x85   :  { %v898_v0 = vpop.permute.xlu1 %434 }
  0x94   :  { %v900_v1 = vpop.permute.xlu1 %439  ;;  %v912_v7 = vpop.permute.xlu0 %429 }
  0x98   :  { %v902_v2 = vpop.permute.xlu1 %444  ;;  %v916_v9 = vpop.permute.xlu0 %474 }
  0x9c   :  { %v904_v3 = vpop.permute.xlu1 %449  ;;  %v920_v11 = vpop.permute.xlu0 %484 }
  0xa0   :  { %v906_v4 = vpop.permute.xlu1 %454 }
  0xa4   :  { %v908_v5 = vpop.permute.xlu1 %459 }
  0xa8   :  { %v910_v6 = vpop.permute.xlu1 %464 }
  0xac   :  { %v914_v8 = vpop.permute.xlu1 %469 }
  0xb0   :  { %v918_v10 = vpop.permute.xlu1 %479 }
  0xf5   :  { %v606_v30 = vpop.f32.mrb[0].mxu0  ;;  %v614_v31 = vpop.f32.mrb[0].mxu1 }
  0xf6   :  { %v862_v32 = vadd.f32 %v606_v30, %v555_v29  ;;  %v864_v33 = vadd.f32 %v614_v31, %v555_v29  ;;  %v188_v34 = vpop.f32.mrb[1].mxu0  ;;  %v220_v35 = vpop.f32.mrb[1].mxu1 }
  0xf7   :  { %v607_v36 = vpop.f32.mrb[2].mxu0  ;;  %v615_v37 = vpop.f32.mrb[2].mxu1  ;;  %v189_v40 = vadd.f32 %v555_v29, %v188_v34  ;;  %v221_v44 = vadd.f32 %v555_v29, %v220_v35 }
  0xf8   :  { %271 = vmax.xlane.f32.xlu0 %v864_v33  ;;  %v223_v38 = vpop.f32.mrb[3].mxu1  ;;  %255 = vmax.xlane.f32.xlu1 %v862_v32  ;;  %v191_v39 = vpop.f32.mrb[3].mxu0  ;;  %v200_v41 = vadd.f32 %v607_v36, %v555_v29  ;;  %v232_v45 = vadd.f32 %v615_v37, %v555_v29 }
  0xf9   :  { %v224_v52 = vadd.f32 %v555_v29, %v223_v38  ;;  %v192_v53 = vadd.f32 %v555_v29, %v191_v39 }
  0xfc   :  { %257 = vmax.xlane.f32.xlu1 %v200_v41  ;;  %251 = vmax.xlane.f32.xlu0 %v189_v40 }
  0xfd   :  { %v610_v42 = vpop.f32.mrb[4].mxu0  ;;  %v618_v43 = vpop.f32.mrb[4].mxu1 }
  0xfe   :  { %v204_v46 = vpop.f32.mrb[5].mxu0  ;;  %v236_v47 = vpop.f32.mrb[5].mxu1  ;;  %v868_v54 = vadd.f32 %v610_v42, %v555_v29  ;;  %v872_v56 = vadd.f32 %v618_v43, %v555_v29 }
  0xff   :  { %v611_v48 = vpop.f32.mrb[6].mxu0  ;;  %v619_v49 = vpop.f32.mrb[6].mxu1  ;;  %v880_v58 = vadd.f32 %v555_v29, %v204_v46  ;;  %v886_v60 = vadd.f32 %v555_v29, %v236_v47 }
 0x100   :  { %273 = vmax.xlane.f32.xlu1 %v232_v45  ;;  %267 = vmax.xlane.f32.xlu0 %v221_v44  ;;  %v207_v50 = vpop.f32.mrb[7].mxu0  ;;  %v239_v51 = vpop.f32.mrb[7].mxu1  ;;  %v870_v55 = vadd.f32 %v611_v48, %v555_v29  ;;  %v876_v57 = vadd.f32 %v619_v49, %v555_v29 }
 0x101   :  { %v882_v59 = vadd.f32 %v555_v29, %v207_v50  ;;  %v888_v61 = vadd.f32 %v555_v29, %v239_v51 }
 0x104   :  { %269 = vmax.xlane.f32.xlu1 %v224_v52  ;;  %253 = vmax.xlane.f32.xlu0 %v192_v53 }
 0x108   :  { %265 = vmax.xlane.f32.xlu1 %v870_v55  ;;  %263 = vmax.xlane.f32.xlu0 %v868_v54 }
 0x10c   :  { %281 = vmax.xlane.f32.xlu1 %v876_v57  ;;  %279 = vmax.xlane.f32.xlu0 %v872_v56 }
 0x110   :  { %261 = vmax.xlane.f32.xlu1 %v882_v59  ;;  %259 = vmax.xlane.f32.xlu0 %v880_v58 }
 0x114   :  { %277 = vmax.xlane.f32.xlu1 %v888_v61  ;;  %275 = vmax.xlane.f32.xlu0 %v886_v60 }
 0x125   :  { %489 = vperm.xlu1 %641, %v423_v62  }
 0x12a   :  { %494 = vperm.xlu0 %640, %v424_v63  }
 0x185   :  { %v272_v12 = vpop.xlane.xlu0 %271  ;;  %v256_v13 = vpop.xlane.xlu1 %255 }
 0x186   :  { %v923_v14 = vsub.f32 %v862_v32, %v256_v13  ;;  %v926_v15 = vsub.f32 %v864_v33, %v272_v12 }
 0x188   :  { %v303_v16 = vmul.f32 1.442695, %v923_v14  ;;  %v319_v20 = vmul.f32 1.442695, %v926_v15 }
 0x189   :  { %v258_v17 = vpop.xlane.xlu1 %257  ;;  %v252_v18 = vpop.xlane.xlu0 %251 }
 0x18a   :  { %v929_v19 = vsub.f32 %v200_v41, %v258_v17  ;;  %658 = vpow2.f32 %v303_v16  ;;  %v932_v21 = vsub.f32 %v189_v40, %v252_v18 }
 0x18c   :  { %v305_v22 = vmul.f32 1.442695, %v929_v19  ;;  %v299_v27 = vmul.f32 1.442695, %v932_v21 }
 0x18d   :  { %v274_v23 = vpop.xlane.xlu1 %273  ;;  %v268_v24 = vpop.xlane.xlu0 %267 }
 0x18e   :  { %660 = vpow2.f32 %v305_v22  ;;  %v935_v25 = vsub.f32 %v232_v45, %v274_v23  ;;  %v937_v26 = vsub.f32 %v221_v44, %v268_v24 }
 0x18f   :  { %662 = vpow2.f32 %v319_v20 }
 0x190   :  { %v321_v28 = vmul.f32 1.442695, %v935_v25  ;;  %v315_v31 = vmul.f32 1.442695, %v937_v26 }
 0x191   :  { %v270_v29 = vpop.xlane.xlu1 %269  ;;  %v254_v30 = vpop.xlane.xlu0 %253 }
 0x192   :  { %664 = vpow2.f32 %v321_v28  ;;  %v942_v32 = vsub.f32 %v224_v52, %v270_v29  ;;  %v944_v33 = vsub.f32 %v192_v53, %v254_v30  ;;  %v425_v30 = vld [vmem:[%s1035_s3 + $0x70] sm:$0xff] }
 0x193   :  { %666 = vpow2.f32 %v299_v27 }
 0x194   :  { %v301_v34 = vmul.f32 1.442695, %v944_v33  ;;  %v659_v35 = vpop.eup %658  ;;  %668 = vpow2.f32 %v315_v31  ;;  %v317_v38 = vmul.f32 1.442695, %v942_v32  ;;  %v426_v31 = vld [vmem:[%s1035_s3 + $0x78] sm:$0xff]  ;;  %s747_s3 = smov [#allocation2]  }
 0x195   :  { %v266_v36 = vpop.xlane.xlu1 %265  ;;  %v264_v37 = vpop.xlane.xlu0 %263  ;;  %335 = vadd.xlane.f32.xlu0 %v659_v35  ;;  %s544_s25 = sshll.u32 %s747_s3, 4  ;;  %s545_s25 = int_to_ptr.vmem [resolvable:$true] %s544_s25 }
 0x196   :  { %v949_v39 = vsub.f32 %v870_v55, %v266_v36  ;;  %v952_v40 = vsub.f32 %v868_v54, %v264_v37  ;;  %670 = vpow2.f32 %v301_v34  ;;  %s722_s26 = scalar_lea.vmem %s545_s25, 2048  ;;  %p727_p1 = scmp.lt.s32.totalorder %s545_s25, %s545_s25 }
 0x197   :  { %672 = vpow2.f32 %v317_v38  ;;  %p723_p0 = scmp.ne.s32.totalorder %s545_s25, %s722_s26  ;;  %p728_p2 = scmp.lt.s32.totalorder %s722_s26, %s722_s26 }
 0x198   :  { %v661_v41 = vpop.eup %660  ;;  %v311_v42 = vmul.f32 1.442695, %v952_v40  ;;  %v313_v46 = vmul.f32 1.442695, %v949_v39 }
 0x199   :  { %v663_v43 = vpop.eup %662  ;;  %v282_v44 = vpop.xlane.xlu1 %281  ;;  %337 = vadd.xlane.f32.xlu1 %v661_v41  ;;  %p729_p3 = por %p728_p2, %p727_p1 }
 0x19a   :  { %v280_v45 = vpop.xlane.xlu0 %279  ;;  %v957_v47 = vsub.f32 %v876_v57, %v282_v44  ;;  %351 = vadd.xlane.f32.xlu0 %v663_v43  ;;  %674 = vpow2.f32 %v311_v42 }
 0x19b   :  { %v960_v48 = vsub.f32 %v872_v56, %v280_v45  ;;  %676 = vpow2.f32 %v313_v46  ;;  %p730_p4 = pnand %p729_p3, %p723_p0 }
 0x19c   :  { %v665_v49 = vpop.eup %664  ;;  %v329_v54 = vmul.f32 1.442695, %v957_v47 }
 0x19d   :  { %v327_v50 = vmul.f32 1.442695, %v960_v48  ;;  %v667_v51 = vpop.eup %666  ;;  %353 = vadd.xlane.f32.xlu1 %v665_v49  ;;  %v262_v52 = vpop.xlane.xlu1 %261 }
 0x19e   :  { %v260_v53 = vpop.xlane.xlu0 %259  ;;  %v965_v55 = vsub.f32 %v882_v59, %v262_v52  ;;  %331 = vadd.xlane.f32.xlu0 %v667_v51  ;;  %v669_v56 = vpop.eup %668 }
 0x19f   :  { %v968_v57 = vsub.f32 %v880_v58, %v260_v53  ;;  %678 = vpow2.f32 %v327_v50 }
 0x1a0   :  { %v671_v63 = vpop.eup %670  ;;  %680 = vpow2.f32 %v329_v54  ;;  %v309_v16 = vmul.f32 1.442695, %v965_v55 }
 0x1a1   :  { %v307_v62 = vmul.f32 1.442695, %v968_v57  ;;  %v278_v12 = vpop.xlane.xlu1 %277  ;;  %333 = vadd.xlane.f32.xlu1 %v671_v63  ;;  %v673_v58 = vpop.eup %672 }
 0x1a2   :  { %v276_v13 = vpop.xlane.xlu0 %275  ;;  %347 = vadd.xlane.f32.xlu0 %v669_v56  ;;  %v976_v59 = vsub.f32 %v888_v61, %v278_v12 }
 0x1a3   :  { %v973_v17 = vsub.f32 %v886_v60, %v276_v13  ;;  %682 = vpow2.f32 %v307_v62 }
 0x1a4   :  { %v675_v20 = vpop.eup %674  ;;  %684 = vpow2.f32 %v309_v16  ;;  %v325_v22 = vmul.f32 1.442695, %v976_v59 }
 0x1a5   :  { %v323_v18 = vmul.f32 1.442695, %v973_v17  ;;  %349 = vadd.xlane.f32.xlu1 %v673_v58  ;;  %v677_v23 = vpop.eup %676  ;;  %v988_v35 = vpop.permute.xlu1 %489 }
 0x1a6   :  { %343 = vadd.xlane.f32.xlu0 %v675_v20 }
 0x1a7   :  { %686 = vpow2.f32 %v323_v18 }
 0x1a8   :  { %688 = vpow2.f32 %v325_v22 }
 0x1a9   :  { %v679_v24 = vpop.eup %678  ;;  %345 = vadd.xlane.f32.xlu1 %v677_v23  ;;  %v986_v34 = vpop.permute.xlu0 %494 }
 0x1aa   :  { %359 = vadd.xlane.f32.xlu0 %v679_v24  ;;  %v681_v60 = vpop.eup %680 }
 0x1ad   :  { %v683_v27 = vpop.eup %682  ;;  %361 = vadd.xlane.f32.xlu1 %v681_v60 }
 0x1ae   :  { %339 = vadd.xlane.f32.xlu0 %v683_v27  ;;  %v685_v61 = vpop.eup %684 }
 0x1b1   :  { %v687_v28 = vpop.eup %686  ;;  %341 = vadd.xlane.f32.xlu1 %v685_v61 }
 0x1b2   :  { %355 = vadd.xlane.f32.xlu0 %v687_v28  ;;  %v689_v29 = vpop.eup %688 }
 0x1b5   :  { %357 = vadd.xlane.f32.xlu1 %v689_v29 }
 0x1c6   :  { %499 = vperm.xlu1 %641, %v425_v30  }
 0x1c8   :  { %504 = vperm.xlu0 %640, %v426_v31  }
 0x222   :  { %v336_v36 = vpop.xlane.xlu0 %335 }
 0x223   :  { %690 = vlog2.f32 %v336_v36 }
 0x226   :  { %v338_v37 = vpop.xlane.xlu1 %337 }
 0x227   :  { %692 = vlog2.f32 %v338_v37  ;;  %v352_v38 = vpop.xlane.xlu0 %351 }
 0x228   :  { %694 = vlog2.f32 %v352_v38 }
 0x22a   :  { %v354_v41 = vpop.xlane.xlu1 %353 }
 0x22b   :  { %696 = vlog2.f32 %v354_v41  ;;  %v332_v42 = vpop.xlane.xlu0 %331 }
 0x22c   :  { %698 = vlog2.f32 %v332_v42 }
 0x22d   :  { %v691_v43 = vpop.eup %690 }
 0x22e   :  { %v368_v44 = vmul.f32 0.6931472, %v691_v43  ;;  %v334_v45 = vpop.xlane.xlu1 %333 }
 0x22f   :  { %v348_v46 = vpop.xlane.xlu0 %347  ;;  %700 = vlog2.f32 %v334_v45 }
 0x230   :  { %v397_v50 = vsub.f32 %v923_v14, %v368_v44  ;;  %702 = vlog2.f32 %v348_v46 }
 0x231   :  { %v693_v49 = vpop.eup %692 }
 0x232   :  { %v695_v51 = vpop.eup %694  ;;  %v370_v52 = vmul.f32 0.6931472, %v693_v49  ;;  %v509_v53 = vmul.f32 %v900_v1, %v397_v50  ;;  %v350_v56 = vpop.xlane.xlu1 %349 }
 0x233   :  { %v384_v54 = vmul.f32 0.6931472, %v695_v51  ;;  %v344_v62 = vpop.xlane.xlu0 %343  ;;  %704 = vlog2.f32 %v350_v56 }
 0x234   :  { %v398_v63 = vsub.f32 %v929_v19, %v370_v52  ;;  %525 = vst [vmem:[#allocation2 + $0x10] sm:$0xff] %v509_v53  ;;  %706 = vlog2.f32 %v344_v62 }
 0x235   :  { %v697_v12 = vpop.eup %696  ;;  %v405_v13 = vsub.f32 %v926_v15, %v384_v54 }
 0x236   :  { %v699_v16 = vpop.eup %698  ;;  %v510_v58 = vmul.f32 %v902_v2, %v398_v63  ;;  %v386_v14 = vmul.f32 0.6931472, %v697_v12  ;;  %v346_v22 = vpop.xlane.xlu1 %345 }
 0x237   :  { %v517_v18 = vmul.f32 %v918_v10, %v405_v13  ;;  %v364_v20 = vmul.f32 0.6931472, %v699_v16  ;;  %v360_v1 = vpop.xlane.xlu0 %359  ;;  %708 = vlog2.f32 %v346_v22 }
 0x238   :  { %526 = vst [vmem:[#allocation2 + $0x18] sm:$0xff] %v510_v58  ;;  %v406_v23 = vsub.f32 %v935_v25, %v386_v14  ;;  %710 = vlog2.f32 %v360_v1 }
 0x239   :  { %533 = vst [vmem:[#allocation2 + $0x50] sm:$0xff] %v517_v18  ;;  %v395_v19 = vsub.f32 %v932_v21, %v364_v20  ;;  %v701_v24 = vpop.eup %700 }
 0x23a   :  { %v518_v15 = vmul.f32 %v920_v11, %v406_v23  ;;  %v703_v60 = vpop.eup %702  ;;  %v366_v27 = vmul.f32 0.6931472, %v701_v24  ;;  %v362_v61 = vpop.xlane.xlu1 %361 }
 0x23b   :  { %v507_v2 = vmul.f32 %v912_v7, %v395_v19  ;;  %v340_v10 = vpop.xlane.xlu0 %339  ;;  %v380_v28 = vmul.f32 0.6931472, %v703_v60  ;;  %712 = vlog2.f32 %v362_v61 }
 0x23c   :  { %534 = vst [vmem:[#allocation2 + $0x58] sm:$0xff] %v518_v15  ;;  %v396_v25 = vsub.f32 %v944_v33, %v366_v27  ;;  %714 = vlog2.f32 %v340_v10 }
 0x23d   :  { %523 = vst [vmem:[#allocation2] sm:$0xff] %v507_v2  ;;  %v705_v29 = vpop.eup %704  ;;  %v403_v21 = vsub.f32 %v937_v26, %v380_v28 }
 0x23e   :  { %v707_v30 = vpop.eup %706  ;;  %v508_v31 = vmul.f32 %v898_v0, %v396_v25  ;;  %v382_v11 = vmul.f32 0.6931472, %v705_v29  ;;  %v342_v36 = vpop.xlane.xlu1 %341 }
 0x23f   :  { %v356_v37 = vpop.xlane.xlu0 %355  ;;  %v515_v7 = vmul.f32 %v914_v8, %v403_v21  ;;  %v376_v38 = vmul.f32 0.6931472, %v707_v30  ;;  %716 = vlog2.f32 %v342_v36 }
 0x240   :  { %524 = vst [vmem:[#allocation2 + $0x8] sm:$0xff] %v508_v31  ;;  %v404_v41 = vsub.f32 %v942_v32, %v382_v11  ;;  %718 = vlog2.f32 %v356_v37 }
 0x241   :  { %v709_v42 = vpop.eup %708  ;;  %531 = vst [vmem:[#allocation2 + $0x40] sm:$0xff] %v515_v7  ;;  %v401_v33 = vsub.f32 %v952_v40, %v376_v38 }
 0x242   :  { %v711_v43 = vpop.eup %710  ;;  %v516_v26 = vmul.f32 %v916_v9, %v404_v41  ;;  %v378_v44 = vmul.f32 0.6931472, %v709_v42  ;;  %v358_v0 = vpop.xlane.xlu1 %357 }
 0x243   :  { %v513_v45 = vmul.f32 %v908_v5, %v401_v33  ;;  %v392_v46 = vmul.f32 0.6931472, %v711_v43  ;;  %720 = vlog2.f32 %v358_v0 }
 0x244   :  { %532 = vst [vmem:[#allocation2 + $0x48] sm:$0xff] %v516_v26  ;;  %v402_v8 = vsub.f32 %v949_v39, %v378_v44 }
 0x245   :  { %v713_v49 = vpop.eup %712  ;;  %529 = vst [vmem:[#allocation2 + $0x30] sm:$0xff] %v513_v45  ;;  %v409_v32 = vsub.f32 %v960_v48, %v392_v46 }
 0x246   :  { %v715_v50 = vpop.eup %714  ;;  %v514_v51 = vmul.f32 %v910_v6, %v402_v8  ;;  %v394_v40 = vmul.f32 0.6931472, %v713_v49  ;;  %v500_v52 = vpop.permute.xlu1 %499 }
 0x247   :  { %v372_v53 = vmul.f32 0.6931472, %v715_v50  ;;  %v521_v9 = vmul.f32 %v500_v52, %v409_v32  ;;  %v505_v62 = vpop.permute.xlu0 %504 }
 0x248   :  { %530 = vst [vmem:[#allocation2 + $0x38] sm:$0xff] %v514_v51  ;;  %v410_v54 = vsub.f32 %v957_v47, %v394_v40 }
 0x249   :  { %v717_v5 = vpop.eup %716  ;;  %v399_v56 = vsub.f32 %v968_v57, %v372_v53  ;;  %537 = vst [vmem:[#allocation2 + $0x70] sm:$0xff] %v521_v9 }
 0x24a   :  { %v719_v39 = vpop.eup %718  ;;  %v374_v63 = vmul.f32 0.6931472, %v717_v5  ;;  %v522_v12 = vmul.f32 %v505_v62, %v410_v54 }
 0x24b   :  { %v511_v48 = vmul.f32 %v904_v3, %v399_v56  ;;  %v388_v13 = vmul.f32 0.6931472, %v719_v39 }
 0x24c   :  { %v400_v6 = vsub.f32 %v965_v55, %v374_v63  ;;  %538 = vst [vmem:[#allocation2 + $0x78] sm:$0xff] %v522_v12 }
 0x24d   :  { %v721_v16 = vpop.eup %720  ;;  %527 = vst [vmem:[#allocation2 + $0x20] sm:$0xff] %v511_v48  ;;  %v407_v58 = vsub.f32 %v973_v17, %v388_v13 }
 0x24e   :  { %v512_v47 = vmul.f32 %v906_v4, %v400_v6  ;;  %v390_v14 = vmul.f32 0.6931472, %v721_v16 }
 0x24f   :  { %v519_v57 = vmul.f32 %v988_v35, %v407_v58 }
 0x250   :  { %528 = vst [vmem:[#allocation2 + $0x28] sm:$0xff] %v512_v47  ;;  %v408_v18 = vsub.f32 %v976_v59, %v390_v14 }
 0x251   :  { %535 = vst [vmem:[#allocation2 + $0x60] sm:$0xff] %v519_v57 }
 0x252   :  { %v520_v3 = vmul.f32 %v986_v34, %v408_v18 }
 0x254   :  { %536 = vst [vmem:[#allocation2 + $0x68] sm:$0xff] %v520_v3 }
 0x255   :  { %733 = shalt.err (!%p730_p4)
}
 0x256   :  { %s734_s29 = scalar_lea.hbm %s1036_s4, 2048 }
 0x257   :  { %p735_p5 = scmp.ne.s32.totalorder %s1036_s4, %s734_s29  ;;  %p738_p6 = scmp.lt.u32.totalorder %s734_s29, %s1036_s4 }
 0x259   :  { %p740_p7 = pnand %p738_p6, %p735_p5 }
 0x25b   :  { %743 = shalt.err (!%p740_p7)
}
 0x25c   :  { %s748_s8 = smov 128   ;;  %s749_s9 = smov 8  }
 0x25d   :  { %550 = dma.vmem_to_hbm [thread:$0]  %s545_s25, 2048, %s1036_s4, [#allocation3], %s748_s8, %s748_s8, %s749_s9  }
 0x25e   :  { %744 = dma.done.wait [#allocation3], 2048  }
 0x25f   :  { %745 = vsyncadd [#allocation3], 4294965248 }
 0x260   :  { %554 = vsyncpa [#allocation3], 1 }

</bundles_post_ra>
